<compile_context>
chip_gen: v5e
topology: v5e:2x2
jax: 0.10.0
libtpu: 0.0.40
codegen_flags: <defaults>
</compile_context>

<pallas_src>
import functools

import jax
import jax.numpy as jnp
import numpy as np
from jax.experimental import pallas as pl
from jax.experimental.pallas import tpu as pltpu

_VMEM_LIMIT = 48 * 1024 * 1024  # < 64 MiB physical VMEM on v7x, fine on v5e/v6e


# ----------------------------- Pallas kernels -------------------------------

def _conv_stats_kernel(x_ref, w_ref, scale_ref, shift_ref, inmask_ref,
                       outmask_ref, y_ref, psum_ref, psq_ref,
                       xact_ref, acc_ref, *, H, W, apply_input_act):
    """3x3 'same' conv as 9 row-shifted matmuls over a flattened padded image.

    x_ref:       ((H+2)*(W+2)+2, Cin)  zero-padded image, flattened row-major
                                       (+2 zero rows so shifted windows stay
                                       in bounds).
    w_ref:       (9, Cin, Cout)        one (Cin, Cout) slice per (dy, dx) tap.
    scale/shift: (1, Cin)              previous layer's BN affine, used only
                                       when apply_input_act (fused BN+ReLU).
    inmask_ref:  (P_in, 1)             1.0 on interior pixels (restores exact
                                       zero padding after the fused affine).
    outmask_ref: (P_out, 1)            1.0 on valid output columns (kills the
                                       two wrap-around columns per wide row).
    y_ref:       (P_out, Cout)         wide (width W+2) conv output, masked.
    psum/psq:    (1, Cout)             per-sample partial sum / sum-of-squares.
    """
    Wp = W + 2
    P_out = H * Wp

    if apply_input_act:
        # Fused BN-affine + ReLU of the previous layer, applied to the loaded
        # tile; interior mask makes the border behave like true zero padding.
        h = jnp.maximum(
            x_ref[...].astype(jnp.float32) * scale_ref[...] + shift_ref[...],
            0.0)
        xact_ref[...] = (h * inmask_ref[...]).astype(xact_ref.dtype)
        src = xact_ref
    else:
        src = x_ref

    # 9 shifted matmuls accumulate the conv into an f32 VMEM accumulator.
    for k in range(9):
        dy, dx = divmod(k, 3)
        win = src[pl.ds(dy * Wp + dx, P_out), :]
        contrib = jnp.dot(win, w_ref[k], preferred_element_type=jnp.float32)
        if k == 0:
            acc_ref[...] = contrib
        else:
            acc_ref[...] += contrib

    y = acc_ref[...] * outmask_ref[...]
    # Partial (per grid step) stats -> the batch axis can stay "parallel"
    # (megacore-friendly); tiny final reduction happens in JAX.
    psum_ref[...] = jnp.sum(y, axis=0, keepdims=True)
    psq_ref[...] = jnp.sum(y * y, axis=0, keepdims=True)
    y_ref[...] = y.astype(y_ref.dtype)


def _bn_relu_kernel(y_ref, scale_ref, shift_ref, o_ref):
    """Final BatchNorm affine + ReLU on a lane-dense (rows, W*Cout) slab."""
    y = y_ref[...].astype(jnp.float32)
    o_ref[...] = jnp.maximum(y * scale_ref[...] + shift_ref[...], 0.0)


# ------------------------------- wrappers ------------------------------------

def _conv_layer(x_flat, w9, scale_in, shift_in, gamma, beta, *, H, W,
                apply_input_act, eps, compute_dtype):
    """One conv layer (+ optional fused input-side BN+ReLU) + batch stats."""
    N, P_in, Cin = x_flat.shape
    Cout = w9.shape[-1]
    Wp = W + 2
    P_out = H * Wp

    # Static (trace-time) masks.
    q = np.arange(P_in)
    r, c = q // Wp, q % Wp
    in_mask = jnp.asarray(((r >= 1) & (r <= H) & (c >= 1) & (c <= W))
                          .astype(np.float32).reshape(P_in, 1))
    out_mask = jnp.asarray((np.arange(P_out) % Wp < W)
                           .astype(np.float32).reshape(P_out, 1))

    kernel = functools.partial(_conv_stats_kernel, H=H, W=W,
                               apply_input_act=apply_input_act)

    y_wide, psum, psq = pl.pallas_call(
        kernel,
        out_shape=(jax.ShapeDtypeStruct((N, P_out, Cout), compute_dtype),
                   jax.ShapeDtypeStruct((N, 1, Cout), jnp.float32),
                   jax.ShapeDtypeStruct((N, 1, Cout), jnp.float32)),
        grid_spec=pltpu.PrefetchScalarGridSpec(
            num_scalar_prefetch=0,
            grid=(N,),
            in_specs=[
                pl.BlockSpec((None, P_in, Cin), lambda n: (n, 0, 0)),
                pl.BlockSpec((9, Cin, Cout), lambda n: (0, 0, 0)),
                pl.BlockSpec((1, Cin), lambda n: (0, 0)),
                pl.BlockSpec((1, Cin), lambda n: (0, 0)),
                pl.BlockSpec((P_in, 1), lambda n: (0, 0)),
                pl.BlockSpec((P_out, 1), lambda n: (0, 0)),
            ],
            out_specs=[
                pl.BlockSpec((None, P_out, Cout), lambda n: (n, 0, 0)),
                pl.BlockSpec((None, 1, Cout), lambda n: (n, 0, 0)),
                pl.BlockSpec((None, 1, Cout), lambda n: (n, 0, 0)),
            ],
            scratch_shapes=[pltpu.VMEM((P_in, Cin), compute_dtype),
                            pltpu.VMEM((P_out, Cout), jnp.float32)]),
        compiler_params=pltpu.CompilerParams(
            dimension_semantics=("parallel",),
            vmem_limit_bytes=_VMEM_LIMIT),
    )(x_flat.astype(compute_dtype), w9.astype(compute_dtype),
      scale_in, shift_in, in_mask, out_mask)

    # Training-mode BatchNorm stats (tiny per-channel reduction in JAX).
    M = N * H * W
    mean = jnp.sum(psum, axis=(0, 1)) / M
    var = jnp.maximum(jnp.sum(psq, axis=(0, 1)) / M - mean * mean, 0.0)
    scale = gamma / jnp.sqrt(var + eps)
    shift = beta - mean * scale
    return y_wide, scale, shift


def _bn_relu(slab, scale_row, shift_row, *, tm=512):
    """Lane-dense elementwise BN-affine + ReLU over a (rows, W*Cout) slab."""
    R, WC = slab.shape
    tm = min(tm, R)
    return pl.pallas_call(
        _bn_relu_kernel,
        out_shape=jax.ShapeDtypeStruct((R, WC), jnp.float32),
        grid_spec=pltpu.PrefetchScalarGridSpec(
            num_scalar_prefetch=0,
            grid=(pl.cdiv(R, tm),),
            in_specs=[pl.BlockSpec((tm, WC), lambda i: (i, 0)),
                      pl.BlockSpec((1, WC), lambda i: (0, 0)),
                      pl.BlockSpec((1, WC), lambda i: (0, 0))],
            out_specs=pl.BlockSpec((tm, WC), lambda i: (i, 0))),
        compiler_params=pltpu.CompilerParams(
            dimension_semantics=("parallel",),
            vmem_limit_bytes=_VMEM_LIMIT),
    )(slab, scale_row, shift_row)


def double_conv_block(x_nchw, params, *, eps=1e-5, compute_dtype=jnp.float32):
    """Forward pass equivalent to the PyTorch DoubleConvBlock (training mode).

    Note: conv biases (params["b1"], params["b2"]) cancel exactly under
    training-mode BatchNorm, so they are not used in the computation.
    """
    N, Cin, H, W = x_nchw.shape
    Wp = W + 2
    C1 = params["w1"].shape[0]
    C2 = params["w2"].shape[0]

    x = jnp.transpose(x_nchw, (0, 2, 3, 1)).astype(compute_dtype)   # NHWC
    xp = jnp.pad(x, ((0, 0), (1, 1), (1, 1), (0, 0)))               # spatial pad
    # Flatten row-major at padded width, plus 2 extra zero rows for the taps.
    x1 = jnp.pad(xp.reshape(N, (H + 2) * Wp, Cin), ((0, 0), (0, 2), (0, 0)))

    # PyTorch weight (Cout, Cin, 3, 3) -> (9, Cin, Cout), tap-major (dy, dx).
    w1_9 = jnp.transpose(params["w1"], (2, 3, 1, 0)).reshape(9, Cin, C1)
    w2_9 = jnp.transpose(params["w2"], (2, 3, 1, 0)).reshape(9, C1, C2)

    ones1 = jnp.ones((1, Cin), jnp.float32)
    zeros1 = jnp.zeros((1, Cin), jnp.float32)

    # ---- layer 1: conv1 + batch stats -------------------------------------
    y1_wide, scale1, shift1 = _conv_layer(
        x1, w1_9, ones1, zeros1, params["g1"], params["be1"],
        H=H, W=W, apply_input_act=False, eps=eps, compute_dtype=compute_dtype)

    # Masked wide conv1 output -> zero-padded flat input of conv2
    # (W+3 zero rows on each side gives exactly the (H+2)x(W+2)+2 layout).
    x2 = jnp.pad(y1_wide, ((0, 0), (W + 3, W + 3), (0, 0)))

    # ---- layer 2: fused BN1+ReLU1 + conv2 + batch stats --------------------
    y2_wide, scale2, shift2 = _conv_layer(
        x2, w2_9, scale1.reshape(1, C1).astype(jnp.float32),
        shift1.reshape(1, C1).astype(jnp.float32), params["g2"], params["be2"],
        H=H, W=W, apply_input_act=True, eps=eps, compute_dtype=compute_dtype)

    # ---- final BN2 + ReLU2 on a lane-dense (N*H, W*C2) slab ----------------
    y2 = y2_wide.reshape(N, H, Wp, C2)[:, :, :W, :]
    slab = y2.reshape(N * H, W * C2)
    scale_row = jnp.tile(scale2, W).reshape(1, W * C2).astype(jnp.float32)
    shift_row = jnp.tile(shift2, W).reshape(1, W * C2).astype(jnp.float32)
    out_slab = _bn_relu(slab, scale_row, shift_row)

    out = out_slab.reshape(N, H, W, C2)
    return jnp.transpose(out, (0, 3, 1, 2)).astype(jnp.float32)      # NCHW


# --------------------------- pure-JAX reference -------------------------------

def _reference(x, params, eps=1e-5):
    def conv(x, w, b):
        y = jax.lax.conv_general_dilated(
            x, w, window_strides=(1, 1), padding=((1, 1), (1, 1)),
            dimension_numbers=("NCHW", "OIHW", "NCHW"))
        return y + b.reshape(1, -1, 1, 1)

    def bn_relu(y, g, be):
        mean = y.mean(axis=(0, 2, 3), keepdims=True)
        var = y.var(axis=(0, 2, 3), keepdims=True)  # biased, like PyTorch
        yn = (y - mean) / jnp.sqrt(var + eps)
        return jnp.maximum(yn * g.reshape(1, -1, 1, 1) + be.reshape(1, -1, 1, 1),
                           0.0)

    h = bn_relu(conv(x, params["w1"], params["b1"]), params["g1"], params["be1"])
    return bn_relu(conv(h, params["w2"], params["b2"]), params["g2"], params["be2"])


# ---------------------------------- main --------------------------------------

if __name__ == "__main__":
    key = jax.random.PRNGKey(0)
    N, Cin, Cout, H, W = 2, 4, 8, 16, 16

    k1, k2, k3, k4, kx = jax.random.split(key, 5)
    params = {
        # conv1: (Cout, Cin, 3, 3) + bias, conv2: (Cout, Cout, 3, 3) + bias
        "w1": 0.1 * jax.random.normal(k1, (Cout, Cin, 3, 3), jnp.float32),
        "b1": 0.1 * jax.random.normal(k2, (Cout,), jnp.float32),
        "w2": 0.1 * jax.random.normal(k3, (Cout, Cout, 3, 3), jnp.float32),
        "b2": 0.1 * jax.random.normal(k4, (Cout,), jnp.float32),
        # BatchNorm affine params: PyTorch default init (weight=1, bias=0)
        "g1": jnp.ones((Cout,), jnp.float32),
        "be1": jnp.zeros((Cout,), jnp.float32),
        "g2": jnp.ones((Cout,), jnp.float32),
        "be2": jnp.zeros((Cout,), jnp.float32),
    }

    x = jax.random.normal(kx, (N, Cin, H, W), jnp.float32)

    fwd = jax.jit(double_conv_block, static_argnames=("compute_dtype",))

    # f32 path: strict check against the pure-JAX reference.
    out = jax.block_until_ready(fwd(x, params, compute_dtype=jnp.float32))
    ref = jax.block_until_ready(_reference(x, params))
    assert out.shape == (N, Cout, H, W), out.shape
    assert jnp.allclose(out, ref, rtol=1e-4, atol=1e-4), (
        float(jnp.max(jnp.abs(out - ref))))

    # bf16 operand path (halved HBM traffic / bf16 MXU), f32 accumulation.
    out_bf16 = jax.block_until_ready(fwd(x, params, compute_dtype=jnp.bfloat16))
    assert jnp.allclose(out_bf16, ref, rtol=1e-1, atol=1e-1), (
        float(jnp.max(jnp.abs(out_bf16 - ref))))

    print("KERNEL_OK")
</pallas_src>

<mosaic_0001>
module attributes {stable_mosaic.version = 11 : i64} {
  func.func @_conv_stats_kernel(%arg0: i32, %arg1: memref<1x326x4xf32, #tpu.memory_space<vmem>>, %arg2: memref<9x4x8xf32, #tpu.memory_space<vmem>>, %arg3: memref<1x4xf32, #tpu.memory_space<vmem>>, %arg4: memref<1x4xf32, #tpu.memory_space<vmem>>, %arg5: memref<326x1xf32, #tpu.memory_space<vmem>>, %arg6: memref<288x1xf32, #tpu.memory_space<vmem>>, %arg7: memref<1x288x8xf32, #tpu.memory_space<vmem>>, %arg8: memref<1x1x8xf32, #tpu.memory_space<vmem>>, %arg9: memref<1x1x8xf32, #tpu.memory_space<vmem>>, %arg10: memref<326x4xf32, #tpu.memory_space<vmem>>, %arg11: memref<288x8xf32, #tpu.memory_space<vmem>>) attributes {dimension_semantics = [#tpu.dimension_semantics<parallel>], iteration_bounds = array<i64: 2>, scalar_prefetch = 0 : i64, scratch_operands = 2 : i64, tpu.core_type = #tpu.core_type<tc>, window_params = [{transform_indices = @transform_0, window_bounds = array<i64: 1, 326, 4>}, {pipeline_mode = #tpu.pipeline_mode<synchronous>, transform_indices = @transform_1, window_bounds = array<i64: 9, 4, 8>}, {pipeline_mode = #tpu.pipeline_mode<synchronous>, transform_indices = @transform_2, window_bounds = array<i64: 1, 4>}, {pipeline_mode = #tpu.pipeline_mode<synchronous>, transform_indices = @transform_3, window_bounds = array<i64: 1, 4>}, {pipeline_mode = #tpu.pipeline_mode<synchronous>, transform_indices = @transform_4, window_bounds = array<i64: 326, 1>}, {pipeline_mode = #tpu.pipeline_mode<synchronous>, transform_indices = @transform_5, window_bounds = array<i64: 288, 1>}, {transform_indices = @transform_6, window_bounds = array<i64: 1, 288, 8>}, {transform_indices = @transform_7, window_bounds = array<i64: 1, 1, 8>}, {transform_indices = @transform_8, window_bounds = array<i64: 1, 1, 8>}]} {
    %c0 = arith.constant 0 : index
    %c0_0 = arith.constant 0 : index
    %c0_1 = arith.constant 0 : index
    %0 = vector.load %arg1[%c0, %c0_0, %c0_1] : memref<1x326x4xf32, #tpu.memory_space<vmem>>, vector<1x288x4xf32>
    %1 = vector.shape_cast %0 : vector<1x288x4xf32> to vector<288x4xf32>
    %c0_2 = arith.constant 0 : index
    %c0_3 = arith.constant 0 : index
    %c0_4 = arith.constant 0 : index
    %2 = vector.load %arg2[%c0_2, %c0_3, %c0_4] : memref<9x4x8xf32, #tpu.memory_space<vmem>>, vector<1x4x8xf32>
    %3 = vector.shape_cast %2 : vector<1x4x8xf32> to vector<4x8xf32>
    %cst = arith.constant dense<0.000000e+00> : vector<288x8xf32>
    %4 = tpu.matmul %1, %3, %cst {dimension_numbers = #tpu.dot_dimension_numbers<[1], [0], [0], [1], [0, 0, 1, 1], [], []>} : vector<288x4xf32>, vector<4x8xf32>, vector<288x8xf32> -> vector<288x8xf32>
    %c0_5 = arith.constant 0 : index
    %c0_6 = arith.constant 0 : index
    %5 = vector.load %arg11[%c0_5, %c0_6] : memref<288x8xf32, #tpu.memory_space<vmem>>, vector<288x8xf32>
    tpu.vector_store %arg11[%c0_5, %c0_6], %4 {strides = array<i32>} : memref<288x8xf32, #tpu.memory_space<vmem>>, vector<288x8xf32>,
    %c0_7 = arith.constant 0 : index
    %c1 = arith.constant 1 : index
    %c0_8 = arith.constant 0 : index
    %6 = vector.load %arg1[%c0_7, %c1, %c0_8] : memref<1x326x4xf32, #tpu.memory_space<vmem>>, vector<1x288x4xf32>
    %7 = vector.shape_cast %6 : vector<1x288x4xf32> to vector<288x4xf32>
    %c1_9 = arith.constant 1 : index
    %c0_10 = arith.constant 0 : index
    %c0_11 = arith.constant 0 : index
    %8 = vector.load %arg2[%c1_9, %c0_10, %c0_11] : memref<9x4x8xf32, #tpu.memory_space<vmem>>, vector<1x4x8xf32>
    %9 = vector.shape_cast %8 : vector<1x4x8xf32> to vector<4x8xf32>
    %cst_12 = arith.constant dense<0.000000e+00> : vector<288x8xf32>
    %10 = tpu.matmul %7, %9, %cst_12 {dimension_numbers = #tpu.dot_dimension_numbers<[1], [0], [0], [1], [0, 0, 1, 1], [], []>} : vector<288x4xf32>, vector<4x8xf32>, vector<288x8xf32> -> vector<288x8xf32>
    %c0_13 = arith.constant 0 : index
    %c0_14 = arith.constant 0 : index
    %11 = vector.load %arg11[%c0_13, %c0_14] : memref<288x8xf32, #tpu.memory_space<vmem>>, vector<288x8xf32>
    %12 = arith.addf %11, %10 : vector<288x8xf32>
    %c0_15 = arith.constant 0 : index
    %c0_16 = arith.constant 0 : index
    %13 = vector.load %arg11[%c0_15, %c0_16] : memref<288x8xf32, #tpu.memory_space<vmem>>, vector<288x8xf32>
    tpu.vector_store %arg11[%c0_15, %c0_16], %12 {strides = array<i32>} : memref<288x8xf32, #tpu.memory_space<vmem>>, vector<288x8xf32>,
    %c0_17 = arith.constant 0 : index
    %c2 = arith.constant 2 : index
    %c0_18 = arith.constant 0 : index
    %14 = vector.load %arg1[%c0_17, %c2, %c0_18] : memref<1x326x4xf32, #tpu.memory_space<vmem>>, vector<1x288x4xf32>
    %15 = vector.shape_cast %14 : vector<1x288x4xf32> to vector<288x4xf32>
    %c2_19 = arith.constant 2 : index
    %c0_20 = arith.constant 0 : index
    %c0_21 = arith.constant 0 : index
    %16 = vector.load %arg2[%c2_19, %c0_20, %c0_21] : memref<9x4x8xf32, #tpu.memory_space<vmem>>, vector<1x4x8xf32>
    %17 = vector.shape_cast %16 : vector<1x4x8xf32> to vector<4x8xf32>
    %cst_22 = arith.constant dense<0.000000e+00> : vector<288x8xf32>
    %18 = tpu.matmul %15, %17, %cst_22 {dimension_numbers = #tpu.dot_dimension_numbers<[1], [0], [0], [1], [0, 0, 1, 1], [], []>} : vector<288x4xf32>, vector<4x8xf32>, vector<288x8xf32> -> vector<288x8xf32>
    %c0_23 = arith.constant 0 : index
    %c0_24 = arith.constant 0 : index
    %19 = vector.load %arg11[%c0_23, %c0_24] : memref<288x8xf32, #tpu.memory_space<vmem>>, vector<288x8xf32>
    %20 = arith.addf %19, %18 : vector<288x8xf32>
    %c0_25 = arith.constant 0 : index
    %c0_26 = arith.constant 0 : index
    %21 = vector.load %arg11[%c0_25, %c0_26] : memref<288x8xf32, #tpu.memory_space<vmem>>, vector<288x8xf32>
    tpu.vector_store %arg11[%c0_25, %c0_26], %20 {strides = array<i32>} : memref<288x8xf32, #tpu.memory_space<vmem>>, vector<288x8xf32>,
    %c0_27 = arith.constant 0 : index
    %c18 = arith.constant 18 : index
    %c0_28 = arith.constant 0 : index
    %22 = vector.load %arg1[%c0_27, %c18, %c0_28] : memref<1x326x4xf32, #tpu.memory_space<vmem>>, vector<1x288x4xf32>
    %23 = vector.shape_cast %22 : vector<1x288x4xf32> to vector<288x4xf32>
    %c3 = arith.constant 3 : index
    %c0_29 = arith.constant 0 : index
    %c0_30 = arith.constant 0 : index
    %24 = vector.load %arg2[%c3, %c0_29, %c0_30] : memref<9x4x8xf32, #tpu.memory_space<vmem>>, vector<1x4x8xf32>
    %25 = vector.shape_cast %24 : vector<1x4x8xf32> to vector<4x8xf32>
    %cst_31 = arith.constant dense<0.000000e+00> : vector<288x8xf32>
    %26 = tpu.matmul %23, %25, %cst_31 {dimension_numbers = #tpu.dot_dimension_numbers<[1], [0], [0], [1], [0, 0, 1, 1], [], []>} : vector<288x4xf32>, vector<4x8xf32>, vector<288x8xf32> -> vector<288x8xf32>
    %c0_32 = arith.constant 0 : index
    %c0_33 = arith.constant 0 : index
    %27 = vector.load %arg11[%c0_32, %c0_33] : memref<288x8xf32, #tpu.memory_space<vmem>>, vector<288x8xf32>
    %28 = arith.addf %27, %26 : vector<288x8xf32>
    %c0_34 = arith.constant 0 : index
    %c0_35 = arith.constant 0 : index
    %29 = vector.load %arg11[%c0_34, %c0_35] : memref<288x8xf32, #tpu.memory_space<vmem>>, vector<288x8xf32>
    tpu.vector_store %arg11[%c0_34, %c0_35], %28 {strides = array<i32>} : memref<288x8xf32, #tpu.memory_space<vmem>>, vector<288x8xf32>,
    %c0_36 = arith.constant 0 : index
    %c19 = arith.constant 19 : index
    %c0_37 = arith.constant 0 : index
    %30 = vector.load %arg1[%c0_36, %c19, %c0_37] : memref<1x326x4xf32, #tpu.memory_space<vmem>>, vector<1x288x4xf32>
    %31 = vector.shape_cast %30 : vector<1x288x4xf32> to vector<288x4xf32>
    %c4 = arith.constant 4 : index
    %c0_38 = arith.constant 0 : index
    %c0_39 = arith.constant 0 : index
    %32 = vector.load %arg2[%c4, %c0_38, %c0_39] : memref<9x4x8xf32, #tpu.memory_space<vmem>>, vector<1x4x8xf32>
    %33 = vector.shape_cast %32 : vector<1x4x8xf32> to vector<4x8xf32>
    %cst_40 = arith.constant dense<0.000000e+00> : vector<288x8xf32>
    %34 = tpu.matmul %31, %33, %cst_40 {dimension_numbers = #tpu.dot_dimension_numbers<[1], [0], [0], [1], [0, 0, 1, 1], [], []>} : vector<288x4xf32>, vector<4x8xf32>, vector<288x8xf32> -> vector<288x8xf32>
    %c0_41 = arith.constant 0 : index
    %c0_42 = arith.constant 0 : index
    %35 = vector.load %arg11[%c0_41, %c0_42] : memref<288x8xf32, #tpu.memory_space<vmem>>, vector<288x8xf32>
    %36 = arith.addf %35, %34 : vector<288x8xf32>
    %c0_43 = arith.constant 0 : index
    %c0_44 = arith.constant 0 : index
    %37 = vector.load %arg11[%c0_43, %c0_44] : memref<288x8xf32, #tpu.memory_space<vmem>>, vector<288x8xf32>
    tpu.vector_store %arg11[%c0_43, %c0_44], %36 {strides = array<i32>} : memref<288x8xf32, #tpu.memory_space<vmem>>, vector<288x8xf32>,
    %c0_45 = arith.constant 0 : index
    %c20 = arith.constant 20 : index
    %c0_46 = arith.constant 0 : index
    %38 = vector.load %arg1[%c0_45, %c20, %c0_46] : memref<1x326x4xf32, #tpu.memory_space<vmem>>, vector<1x288x4xf32>
    %39 = vector.shape_cast %38 : vector<1x288x4xf32> to vector<288x4xf32>
    %c5 = arith.constant 5 : index
    %c0_47 = arith.constant 0 : index
    %c0_48 = arith.constant 0 : index
    %40 = vector.load %arg2[%c5, %c0_47, %c0_48] : memref<9x4x8xf32, #tpu.memory_space<vmem>>, vector<1x4x8xf32>
    %41 = vector.shape_cast %40 : vector<1x4x8xf32> to vector<4x8xf32>
    %cst_49 = arith.constant dense<0.000000e+00> : vector<288x8xf32>
    %42 = tpu.matmul %39, %41, %cst_49 {dimension_numbers = #tpu.dot_dimension_numbers<[1], [0], [0], [1], [0, 0, 1, 1], [], []>} : vector<288x4xf32>, vector<4x8xf32>, vector<288x8xf32> -> vector<288x8xf32>
    %c0_50 = arith.constant 0 : index
    %c0_51 = arith.constant 0 : index
    %43 = vector.load %arg11[%c0_50, %c0_51] : memref<288x8xf32, #tpu.memory_space<vmem>>, vector<288x8xf32>
    %44 = arith.addf %43, %42 : vector<288x8xf32>
    %c0_52 = arith.constant 0 : index
    %c0_53 = arith.constant 0 : index
    %45 = vector.load %arg11[%c0_52, %c0_53] : memref<288x8xf32, #tpu.memory_space<vmem>>, vector<288x8xf32>
    tpu.vector_store %arg11[%c0_52, %c0_53], %44 {strides = array<i32>} : memref<288x8xf32, #tpu.memory_space<vmem>>, vector<288x8xf32>,
    %c0_54 = arith.constant 0 : index
    %c36 = arith.constant 36 : index
    %c0_55 = arith.constant 0 : index
    %46 = vector.load %arg1[%c0_54, %c36, %c0_55] : memref<1x326x4xf32, #tpu.memory_space<vmem>>, vector<1x288x4xf32>
    %47 = vector.shape_cast %46 : vector<1x288x4xf32> to vector<288x4xf32>
    %c6 = arith.constant 6 : index
    %c0_56 = arith.constant 0 : index
    %c0_57 = arith.constant 0 : index
    %48 = vector.load %arg2[%c6, %c0_56, %c0_57] : memref<9x4x8xf32, #tpu.memory_space<vmem>>, vector<1x4x8xf32>
    %49 = vector.shape_cast %48 : vector<1x4x8xf32> to vector<4x8xf32>
    %cst_58 = arith.constant dense<0.000000e+00> : vector<288x8xf32>
    %50 = tpu.matmul %47, %49, %cst_58 {dimension_numbers = #tpu.dot_dimension_numbers<[1], [0], [0], [1], [0, 0, 1, 1], [], []>} : vector<288x4xf32>, vector<4x8xf32>, vector<288x8xf32> -> vector<288x8xf32>
    %c0_59 = arith.constant 0 : index
    %c0_60 = arith.constant 0 : index
    %51 = vector.load %arg11[%c0_59, %c0_60] : memref<288x8xf32, #tpu.memory_space<vmem>>, vector<288x8xf32>
    %52 = arith.addf %51, %50 : vector<288x8xf32>
    %c0_61 = arith.constant 0 : index
    %c0_62 = arith.constant 0 : index
    %53 = vector.load %arg11[%c0_61, %c0_62] : memref<288x8xf32, #tpu.memory_space<vmem>>, vector<288x8xf32>
    tpu.vector_store %arg11[%c0_61, %c0_62], %52 {strides = array<i32>} : memref<288x8xf32, #tpu.memory_space<vmem>>, vector<288x8xf32>,
    %c0_63 = arith.constant 0 : index
    %c37 = arith.constant 37 : index
    %c0_64 = arith.constant 0 : index
    %54 = vector.load %arg1[%c0_63, %c37, %c0_64] : memref<1x326x4xf32, #tpu.memory_space<vmem>>, vector<1x288x4xf32>
    %55 = vector.shape_cast %54 : vector<1x288x4xf32> to vector<288x4xf32>
    %c7 = arith.constant 7 : index
    %c0_65 = arith.constant 0 : index
    %c0_66 = arith.constant 0 : index
    %56 = vector.load %arg2[%c7, %c0_65, %c0_66] : memref<9x4x8xf32, #tpu.memory_space<vmem>>, vector<1x4x8xf32>
    %57 = vector.shape_cast %56 : vector<1x4x8xf32> to vector<4x8xf32>
    %cst_67 = arith.constant dense<0.000000e+00> : vector<288x8xf32>
    %58 = tpu.matmul %55, %57, %cst_67 {dimension_numbers = #tpu.dot_dimension_numbers<[1], [0], [0], [1], [0, 0, 1, 1], [], []>} : vector<288x4xf32>, vector<4x8xf32>, vector<288x8xf32> -> vector<288x8xf32>
    %c0_68 = arith.constant 0 : index
    %c0_69 = arith.constant 0 : index
    %59 = vector.load %arg11[%c0_68, %c0_69] : memref<288x8xf32, #tpu.memory_space<vmem>>, vector<288x8xf32>
    %60 = arith.addf %59, %58 : vector<288x8xf32>
    %c0_70 = arith.constant 0 : index
    %c0_71 = arith.constant 0 : index
    %61 = vector.load %arg11[%c0_70, %c0_71] : memref<288x8xf32, #tpu.memory_space<vmem>>, vector<288x8xf32>
    tpu.vector_store %arg11[%c0_70, %c0_71], %60 {strides = array<i32>} : memref<288x8xf32, #tpu.memory_space<vmem>>, vector<288x8xf32>,
    %c0_72 = arith.constant 0 : index
    %c38 = arith.constant 38 : index
    %c0_73 = arith.constant 0 : index
    %62 = vector.load %arg1[%c0_72, %c38, %c0_73] : memref<1x326x4xf32, #tpu.memory_space<vmem>>, vector<1x288x4xf32>
    %63 = vector.shape_cast %62 : vector<1x288x4xf32> to vector<288x4xf32>
    %c8 = arith.constant 8 : index
    %c0_74 = arith.constant 0 : index
    %c0_75 = arith.constant 0 : index
    %64 = vector.load %arg2[%c8, %c0_74, %c0_75] : memref<9x4x8xf32, #tpu.memory_space<vmem>>, vector<1x4x8xf32>
    %65 = vector.shape_cast %64 : vector<1x4x8xf32> to vector<4x8xf32>
    %cst_76 = arith.constant dense<0.000000e+00> : vector<288x8xf32>
    %66 = tpu.matmul %63, %65, %cst_76 {dimension_numbers = #tpu.dot_dimension_numbers<[1], [0], [0], [1], [0, 0, 1, 1], [], []>} : vector<288x4xf32>, vector<4x8xf32>, vector<288x8xf32> -> vector<288x8xf32>
    %c0_77 = arith.constant 0 : index
    %c0_78 = arith.constant 0 : index
    %67 = vector.load %arg11[%c0_77, %c0_78] : memref<288x8xf32, #tpu.memory_space<vmem>>, vector<288x8xf32>
    %68 = arith.addf %67, %66 : vector<288x8xf32>
    %c0_79 = arith.constant 0 : index
    %c0_80 = arith.constant 0 : index
    %69 = vector.load %arg11[%c0_79, %c0_80] : memref<288x8xf32, #tpu.memory_space<vmem>>, vector<288x8xf32>
    tpu.vector_store %arg11[%c0_79, %c0_80], %68 {strides = array<i32>} : memref<288x8xf32, #tpu.memory_space<vmem>>, vector<288x8xf32>,
    %c0_81 = arith.constant 0 : index
    %c0_82 = arith.constant 0 : index
    %70 = vector.load %arg11[%c0_81, %c0_82] : memref<288x8xf32, #tpu.memory_space<vmem>>, vector<288x8xf32>
    %c0_83 = arith.constant 0 : index
    %c0_84 = arith.constant 0 : index
    %71 = vector.load %arg6[%c0_83, %c0_84] : memref<288x1xf32, #tpu.memory_space<vmem>>, vector<288x1xf32>
    %72 = vector.broadcast %71 : vector<288x1xf32> to vector<288x8xf32>
    %73 = arith.mulf %70, %72 : vector<288x8xf32>
    %cst_85 = arith.constant dense<0.000000e+00> : vector<8xf32>
    %74 = vector.multi_reduction <add>, %73, %cst_85 [0] : vector<288x8xf32> to vector<8xf32>
    %75 = vector.shape_cast %74 : vector<8xf32> to vector<1x8xf32>
    %c0_86 = arith.constant 0 : index
    %c0_87 = arith.constant 0 : index
    %c0_88 = arith.constant 0 : index
    %76 = vector.load %arg8[%c0_86, %c0_87, %c0_88] : memref<1x1x8xf32, #tpu.memory_space<vmem>>, vector<1x1x8xf32>
    %77 = vector.shape_cast %76 : vector<1x1x8xf32> to vector<1x8xf32>
    %78 = vector.shape_cast %75 : vector<1x8xf32> to vector<1x1x8xf32>
    tpu.vector_store %arg8[%c0_86, %c0_87, %c0_88], %78 {strides = array<i32>} : memref<1x1x8xf32, #tpu.memory_space<vmem>>, vector<1x1x8xf32>,
    %79 = arith.mulf %73, %73 : vector<288x8xf32>
    %cst_89 = arith.constant dense<0.000000e+00> : vector<8xf32>
    %80 = vector.multi_reduction <add>, %79, %cst_89 [0] : vector<288x8xf32> to vector<8xf32>
    %81 = vector.shape_cast %80 : vector<8xf32> to vector<1x8xf32>
    %c0_90 = arith.constant 0 : index
    %c0_91 = arith.constant 0 : index
    %c0_92 = arith.constant 0 : index
    %82 = vector.load %arg9[%c0_90, %c0_91, %c0_92] : memref<1x1x8xf32, #tpu.memory_space<vmem>>, vector<1x1x8xf32>
    %83 = vector.shape_cast %82 : vector<1x1x8xf32> to vector<1x8xf32>
    %84 = vector.shape_cast %81 : vector<1x8xf32> to vector<1x1x8xf32>
    tpu.vector_store %arg9[%c0_90, %c0_91, %c0_92], %84 {strides = array<i32>} : memref<1x1x8xf32, #tpu.memory_space<vmem>>, vector<1x1x8xf32>,
    %c0_93 = arith.constant 0 : index
    %c0_94 = arith.constant 0 : index
    %c0_95 = arith.constant 0 : index
    %85 = vector.load %arg7[%c0_93, %c0_94, %c0_95] : memref<1x288x8xf32, #tpu.memory_space<vmem>>, vector<1x288x8xf32>
    %86 = vector.shape_cast %85 : vector<1x288x8xf32> to vector<288x8xf32>
    %87 = vector.shape_cast %73 : vector<288x8xf32> to vector<1x288x8xf32>
    tpu.vector_store %arg7[%c0_93, %c0_94, %c0_95], %87 {strides = array<i32>} : memref<1x288x8xf32, #tpu.memory_space<vmem>>, vector<1x288x8xf32>,
    return
  }
  func.func @transform_0(%arg0: i32) -> (i32, i32, i32) {
    %c0_i32 = arith.constant 0 : i32
    %c0_i32_0 = arith.constant 0 : i32
    %c0_i32_1 = arith.constant 0 : i32
    return %arg0, %c0_i32, %c0_i32_0 : i32, i32, i32
  }
  func.func @transform_1(%arg0: i32) -> (i32, i32, i32) {
    %c0_i32 = arith.constant 0 : i32
    %c0_i32_0 = arith.constant 0 : i32
    %c0_i32_1 = arith.constant 0 : i32
    %c0_i32_2 = arith.constant 0 : i32
    return %c0_i32, %c0_i32_0, %c0_i32_1 : i32, i32, i32
  }
  func.func @transform_2(%arg0: i32) -> (i32, i32) {
    %c0_i32 = arith.constant 0 : i32
    %c0_i32_0 = arith.constant 0 : i32
    %c0_i32_1 = arith.constant 0 : i32
    return %c0_i32, %c0_i32_0 : i32, i32
  }
  func.func @transform_3(%arg0: i32) -> (i32, i32) {
    %c0_i32 = arith.constant 0 : i32
    %c0_i32_0 = arith.constant 0 : i32
    %c0_i32_1 = arith.constant 0 : i32
    return %c0_i32, %c0_i32_0 : i32, i32
  }
  func.func @transform_4(%arg0: i32) -> (i32, i32) {
    %c0_i32 = arith.constant 0 : i32
    %c0_i32_0 = arith.constant 0 : i32
    %c0_i32_1 = arith.constant 0 : i32
    return %c0_i32, %c0_i32_0 : i32, i32
  }
  func.func @transform_5(%arg0: i32) -> (i32, i32) {
    %c0_i32 = arith.constant 0 : i32
    %c0_i32_0 = arith.constant 0 : i32
    %c0_i32_1 = arith.constant 0 : i32
    return %c0_i32, %c0_i32_0 : i32, i32
  }
  func.func @transform_6(%arg0: i32) -> (i32, i32, i32) {
    %c0_i32 = arith.constant 0 : i32
    %c0_i32_0 = arith.constant 0 : i32
    %c0_i32_1 = arith.constant 0 : i32
    return %arg0, %c0_i32, %c0_i32_0 : i32, i32, i32
  }
  func.func @transform_7(%arg0: i32) -> (i32, i32, i32) {
    %c0_i32 = arith.constant 0 : i32
    %c0_i32_0 = arith.constant 0 : i32
    %c0_i32_1 = arith.constant 0 : i32
    return %arg0, %c0_i32, %c0_i32_0 : i32, i32, i32
  }
  func.func @transform_8(%arg0: i32) -> (i32, i32, i32) {
    %c0_i32 = arith.constant 0 : i32
    %c0_i32_0 = arith.constant 0 : i32
    %c0_i32_1 = arith.constant 0 : i32
    return %arg0, %c0_i32, %c0_i32_0 : i32, i32, i32
  }
}

module attributes {stable_mosaic.version = 11 : i64} {
  func.func @_conv_stats_kernel(%arg0: i32, %arg1: memref<1x326x8xf32, #tpu.memory_space<vmem>>, %arg2: memref<9x8x8xf32, #tpu.memory_space<vmem>>, %arg3: memref<1x8xf32, #tpu.memory_space<vmem>>, %arg4: memref<1x8xf32, #tpu.memory_space<vmem>>, %arg5: memref<326x1xf32, #tpu.memory_space<vmem>>, %arg6: memref<288x1xf32, #tpu.memory_space<vmem>>, %arg7: memref<1x288x8xf32, #tpu.memory_space<vmem>>, %arg8: memref<1x1x8xf32, #tpu.memory_space<vmem>>, %arg9: memref<1x1x8xf32, #tpu.memory_space<vmem>>, %arg10: memref<326x8xf32, #tpu.memory_space<vmem>>, %arg11: memref<288x8xf32, #tpu.memory_space<vmem>>) attributes {dimension_semantics = [#tpu.dimension_semantics<parallel>], iteration_bounds = array<i64: 2>, scalar_prefetch = 0 : i64, scratch_operands = 2 : i64, tpu.core_type = #tpu.core_type<tc>, window_params = [{transform_indices = @transform_0, window_bounds = array<i64: 1, 326, 8>}, {pipeline_mode = #tpu.pipeline_mode<synchronous>, transform_indices = @transform_1, window_bounds = array<i64: 9, 8, 8>}, {pipeline_mode = #tpu.pipeline_mode<synchronous>, transform_indices = @transform_2, window_bounds = array<i64: 1, 8>}, {pipeline_mode = #tpu.pipeline_mode<synchronous>, transform_indices = @transform_3, window_bounds = array<i64: 1, 8>}, {pipeline_mode = #tpu.pipeline_mode<synchronous>, transform_indices = @transform_4, window_bounds = array<i64: 326, 1>}, {pipeline_mode = #tpu.pipeline_mode<synchronous>, transform_indices = @transform_5, window_bounds = array<i64: 288, 1>}, {transform_indices = @transform_6, window_bounds = array<i64: 1, 288, 8>}, {transform_indices = @transform_7, window_bounds = array<i64: 1, 1, 8>}, {transform_indices = @transform_8, window_bounds = array<i64: 1, 1, 8>}]} {
    %c0 = arith.constant 0 : index
    %c0_0 = arith.constant 0 : index
    %c0_1 = arith.constant 0 : index
    %0 = vector.load %arg1[%c0, %c0_0, %c0_1] : memref<1x326x8xf32, #tpu.memory_space<vmem>>, vector<1x326x8xf32>
    %1 = vector.shape_cast %0 : vector<1x326x8xf32> to vector<326x8xf32>
    %c0_2 = arith.constant 0 : index
    %c0_3 = arith.constant 0 : index
    %2 = vector.load %arg3[%c0_2, %c0_3] : memref<1x8xf32, #tpu.memory_space<vmem>>, vector<1x8xf32>
    %3 = vector.broadcast %2 : vector<1x8xf32> to vector<326x8xf32>
    %4 = arith.mulf %1, %3 : vector<326x8xf32>
    %c0_4 = arith.constant 0 : index
    %c0_5 = arith.constant 0 : index
    %5 = vector.load %arg4[%c0_4, %c0_5] : memref<1x8xf32, #tpu.memory_space<vmem>>, vector<1x8xf32>
    %6 = vector.broadcast %5 : vector<1x8xf32> to vector<326x8xf32>
    %7 = arith.addf %4, %6 : vector<326x8xf32>
    %cst = arith.constant 0.000000e+00 : f32
    %8 = vector.broadcast %cst : f32 to vector<326x8xf32>
    %9 = arith.maximumf %7, %8 : vector<326x8xf32>
    %c0_6 = arith.constant 0 : index
    %c0_7 = arith.constant 0 : index
    %10 = vector.load %arg5[%c0_6, %c0_7] : memref<326x1xf32, #tpu.memory_space<vmem>>, vector<326x1xf32>
    %11 = vector.broadcast %10 : vector<326x1xf32> to vector<326x8xf32>
    %12 = arith.mulf %9, %11 : vector<326x8xf32>
    %c0_8 = arith.constant 0 : index
    %c0_9 = arith.constant 0 : index
    %13 = vector.load %arg10[%c0_8, %c0_9] : memref<326x8xf32, #tpu.memory_space<vmem>>, vector<326x8xf32>
    tpu.vector_store %arg10[%c0_8, %c0_9], %12 {strides = array<i32>} : memref<326x8xf32, #tpu.memory_space<vmem>>, vector<326x8xf32>,
    %c0_10 = arith.constant 0 : index
    %c0_11 = arith.constant 0 : index
    %14 = vector.load %arg10[%c0_10, %c0_11] : memref<326x8xf32, #tpu.memory_space<vmem>>, vector<288x8xf32>
    %c0_12 = arith.constant 0 : index
    %c0_13 = arith.constant 0 : index
    %c0_14 = arith.constant 0 : index
    %15 = vector.load %arg2[%c0_12, %c0_13, %c0_14] : memref<9x8x8xf32, #tpu.memory_space<vmem>>, vector<1x8x8xf32>
    %16 = vector.shape_cast %15 : vector<1x8x8xf32> to vector<8x8xf32>
    %cst_15 = arith.constant dense<0.000000e+00> : vector<288x8xf32>
    %17 = tpu.matmul %14, %16, %cst_15 {dimension_numbers = #tpu.dot_dimension_numbers<[1], [0], [0], [1], [0, 0, 1, 1], [], []>} : vector<288x8xf32>, vector<8x8xf32>, vector<288x8xf32> -> vector<288x8xf32>
    %c0_16 = arith.constant 0 : index
    %c0_17 = arith.constant 0 : index
    %18 = vector.load %arg11[%c0_16, %c0_17] : memref<288x8xf32, #tpu.memory_space<vmem>>, vector<288x8xf32>
    tpu.vector_store %arg11[%c0_16, %c0_17], %17 {strides = array<i32>} : memref<288x8xf32, #tpu.memory_space<vmem>>, vector<288x8xf32>,
    %c1 = arith.constant 1 : index
    %c0_18 = arith.constant 0 : index
    %19 = vector.load %arg10[%c1, %c0_18] : memref<326x8xf32, #tpu.memory_space<vmem>>, vector<288x8xf32>
    %c1_19 = arith.constant 1 : index
    %c0_20 = arith.constant 0 : index
    %c0_21 = arith.constant 0 : index
    %20 = vector.load %arg2[%c1_19, %c0_20, %c0_21] : memref<9x8x8xf32, #tpu.memory_space<vmem>>, vector<1x8x8xf32>
    %21 = vector.shape_cast %20 : vector<1x8x8xf32> to vector<8x8xf32>
    %cst_22 = arith.constant dense<0.000000e+00> : vector<288x8xf32>
    %22 = tpu.matmul %19, %21, %cst_22 {dimension_numbers = #tpu.dot_dimension_numbers<[1], [0], [0], [1], [0, 0, 1, 1], [], []>} : vector<288x8xf32>, vector<8x8xf32>, vector<288x8xf32> -> vector<288x8xf32>
    %c0_23 = arith.constant 0 : index
    %c0_24 = arith.constant 0 : index
    %23 = vector.load %arg11[%c0_23, %c0_24] : memref<288x8xf32, #tpu.memory_space<vmem>>, vector<288x8xf32>
    %24 = arith.addf %23, %22 : vector<288x8xf32>
    %c0_25 = arith.constant 0 : index
    %c0_26 = arith.constant 0 : index
    %25 = vector.load %arg11[%c0_25, %c0_26] : memref<288x8xf32, #tpu.memory_space<vmem>>, vector<288x8xf32>
    tpu.vector_store %arg11[%c0_25, %c0_26], %24 {strides = array<i32>} : memref<288x8xf32, #tpu.memory_space<vmem>>, vector<288x8xf32>,
    %c2 = arith.constant 2 : index
    %c0_27 = arith.constant 0 : index
    %26 = vector.load %arg10[%c2, %c0_27] : memref<326x8xf32, #tpu.memory_space<vmem>>, vector<288x8xf32>
    %c2_28 = arith.constant 2 : index
    %c0_29 = arith.constant 0 : index
    %c0_30 = arith.constant 0 : index
    %27 = vector.load %arg2[%c2_28, %c0_29, %c0_30] : memref<9x8x8xf32, #tpu.memory_space<vmem>>, vector<1x8x8xf32>
    %28 = vector.shape_cast %27 : vector<1x8x8xf32> to vector<8x8xf32>
    %cst_31 = arith.constant dense<0.000000e+00> : vector<288x8xf32>
    %29 = tpu.matmul %26, %28, %cst_31 {dimension_numbers = #tpu.dot_dimension_numbers<[1], [0], [0], [1], [0, 0, 1, 1], [], []>} : vector<288x8xf32>, vector<8x8xf32>, vector<288x8xf32> -> vector<288x8xf32>
    %c0_32 = arith.constant 0 : index
    %c0_33 = arith.constant 0 : index
    %30 = vector.load %arg11[%c0_32, %c0_33] : memref<288x8xf32, #tpu.memory_space<vmem>>, vector<288x8xf32>
    %31 = arith.addf %30, %29 : vector<288x8xf32>
    %c0_34 = arith.constant 0 : index
    %c0_35 = arith.constant 0 : index
    %32 = vector.load %arg11[%c0_34, %c0_35] : memref<288x8xf32, #tpu.memory_space<vmem>>, vector<288x8xf32>
    tpu.vector_store %arg11[%c0_34, %c0_35], %31 {strides = array<i32>} : memref<288x8xf32, #tpu.memory_space<vmem>>, vector<288x8xf32>,
    %c18 = arith.constant 18 : index
    %c0_36 = arith.constant 0 : index
    %33 = vector.load %arg10[%c18, %c0_36] : memref<326x8xf32, #tpu.memory_space<vmem>>, vector<288x8xf32>
    %c3 = arith.constant 3 : index
    %c0_37 = arith.constant 0 : index
    %c0_38 = arith.constant 0 : index
    %34 = vector.load %arg2[%c3, %c0_37, %c0_38] : memref<9x8x8xf32, #tpu.memory_space<vmem>>, vector<1x8x8xf32>
    %35 = vector.shape_cast %34 : vector<1x8x8xf32> to vector<8x8xf32>
    %cst_39 = arith.constant dense<0.000000e+00> : vector<288x8xf32>
    %36 = tpu.matmul %33, %35, %cst_39 {dimension_numbers = #tpu.dot_dimension_numbers<[1], [0], [0], [1], [0, 0, 1, 1], [], []>} : vector<288x8xf32>, vector<8x8xf32>, vector<288x8xf32> -> vector<288x8xf32>
    %c0_40 = arith.constant 0 : index
    %c0_41 = arith.constant 0 : index
    %37 = vector.load %arg11[%c0_40, %c0_41] : memref<288x8xf32, #tpu.memory_space<vmem>>, vector<288x8xf32>
    %38 = arith.addf %37, %36 : vector<288x8xf32>
    %c0_42 = arith.constant 0 : index
    %c0_43 = arith.constant 0 : index
    %39 = vector.load %arg11[%c0_42, %c0_43] : memref<288x8xf32, #tpu.memory_space<vmem>>, vector<288x8xf32>
    tpu.vector_store %arg11[%c0_42, %c0_43], %38 {strides = array<i32>} : memref<288x8xf32, #tpu.memory_space<vmem>>, vector<288x8xf32>,
    %c19 = arith.constant 19 : index
    %c0_44 = arith.constant 0 : index
    %40 = vector.load %arg10[%c19, %c0_44] : memref<326x8xf32, #tpu.memory_space<vmem>>, vector<288x8xf32>
    %c4 = arith.constant 4 : index
    %c0_45 = arith.constant 0 : index
    %c0_46 = arith.constant 0 : index
    %41 = vector.load %arg2[%c4, %c0_45, %c0_46] : memref<9x8x8xf32, #tpu.memory_space<vmem>>, vector<1x8x8xf32>
    %42 = vector.shape_cast %41 : vector<1x8x8xf32> to vector<8x8xf32>
    %cst_47 = arith.constant dense<0.000000e+00> : vector<288x8xf32>
    %43 = tpu.matmul %40, %42, %cst_47 {dimension_numbers = #tpu.dot_dimension_numbers<[1], [0], [0], [1], [0, 0, 1, 1], [], []>} : vector<288x8xf32>, vector<8x8xf32>, vector<288x8xf32> -> vector<288x8xf32>
    %c0_48 = arith.constant 0 : index
    %c0_49 = arith.constant 0 : index
    %44 = vector.load %arg11[%c0_48, %c0_49] : memref<288x8xf32, #tpu.memory_space<vmem>>, vector<288x8xf32>
    %45 = arith.addf %44, %43 : vector<288x8xf32>
    %c0_50 = arith.constant 0 : index
    %c0_51 = arith.constant 0 : index
    %46 = vector.load %arg11[%c0_50, %c0_51] : memref<288x8xf32, #tpu.memory_space<vmem>>, vector<288x8xf32>
    tpu.vector_store %arg11[%c0_50, %c0_51], %45 {strides = array<i32>} : memref<288x8xf32, #tpu.memory_space<vmem>>, vector<288x8xf32>,
    %c20 = arith.constant 20 : index
    %c0_52 = arith.constant 0 : index
    %47 = vector.load %arg10[%c20, %c0_52] : memref<326x8xf32, #tpu.memory_space<vmem>>, vector<288x8xf32>
    %c5 = arith.constant 5 : index
    %c0_53 = arith.constant 0 : index
    %c0_54 = arith.constant 0 : index
    %48 = vector.load %arg2[%c5, %c0_53, %c0_54] : memref<9x8x8xf32, #tpu.memory_space<vmem>>, vector<1x8x8xf32>
    %49 = vector.shape_cast %48 : vector<1x8x8xf32> to vector<8x8xf32>
    %cst_55 = arith.constant dense<0.000000e+00> : vector<288x8xf32>
    %50 = tpu.matmul %47, %49, %cst_55 {dimension_numbers = #tpu.dot_dimension_numbers<[1], [0], [0], [1], [0, 0, 1, 1], [], []>} : vector<288x8xf32>, vector<8x8xf32>, vector<288x8xf32> -> vector<288x8xf32>
    %c0_56 = arith.constant 0 : index
    %c0_57 = arith.constant 0 : index
    %51 = vector.load %arg11[%c0_56, %c0_57] : memref<288x8xf32, #tpu.memory_space<vmem>>, vector<288x8xf32>
    %52 = arith.addf %51, %50 : vector<288x8xf32>
    %c0_58 = arith.constant 0 : index
    %c0_59 = arith.constant 0 : index
    %53 = vector.load %arg11[%c0_58, %c0_59] : memref<288x8xf32, #tpu.memory_space<vmem>>, vector<288x8xf32>
    tpu.vector_store %arg11[%c0_58, %c0_59], %52 {strides = array<i32>} : memref<288x8xf32, #tpu.memory_space<vmem>>, vector<288x8xf32>,
    %c36 = arith.constant 36 : index
    %c0_60 = arith.constant 0 : index
    %54 = vector.load %arg10[%c36, %c0_60] : memref<326x8xf32, #tpu.memory_space<vmem>>, vector<288x8xf32>
    %c6 = arith.constant 6 : index
    %c0_61 = arith.constant 0 : index
    %c0_62 = arith.constant 0 : index
    %55 = vector.load %arg2[%c6, %c0_61, %c0_62] : memref<9x8x8xf32, #tpu.memory_space<vmem>>, vector<1x8x8xf32>
    %56 = vector.shape_cast %55 : vector<1x8x8xf32> to vector<8x8xf32>
    %cst_63 = arith.constant dense<0.000000e+00> : vector<288x8xf32>
    %57 = tpu.matmul %54, %56, %cst_63 {dimension_numbers = #tpu.dot_dimension_numbers<[1], [0], [0], [1], [0, 0, 1, 1], [], []>} : vector<288x8xf32>, vector<8x8xf32>, vector<288x8xf32> -> vector<288x8xf32>
    %c0_64 = arith.constant 0 : index
    %c0_65 = arith.constant 0 : index
    %58 = vector.load %arg11[%c0_64, %c0_65] : memref<288x8xf32, #tpu.memory_space<vmem>>, vector<288x8xf32>
    %59 = arith.addf %58, %57 : vector<288x8xf32>
    %c0_66 = arith.constant 0 : index
    %c0_67 = arith.constant 0 : index
    %60 = vector.load %arg11[%c0_66, %c0_67] : memref<288x8xf32, #tpu.memory_space<vmem>>, vector<288x8xf32>
    tpu.vector_store %arg11[%c0_66, %c0_67], %59 {strides = array<i32>} : memref<288x8xf32, #tpu.memory_space<vmem>>, vector<288x8xf32>,
    %c37 = arith.constant 37 : index
    %c0_68 = arith.constant 0 : index
    %61 = vector.load %arg10[%c37, %c0_68] : memref<326x8xf32, #tpu.memory_space<vmem>>, vector<288x8xf32>
    %c7 = arith.constant 7 : index
    %c0_69 = arith.constant 0 : index
    %c0_70 = arith.constant 0 : index
    %62 = vector.load %arg2[%c7, %c0_69, %c0_70] : memref<9x8x8xf32, #tpu.memory_space<vmem>>, vector<1x8x8xf32>
    %63 = vector.shape_cast %62 : vector<1x8x8xf32> to vector<8x8xf32>
    %cst_71 = arith.constant dense<0.000000e+00> : vector<288x8xf32>
    %64 = tpu.matmul %61, %63, %cst_71 {dimension_numbers = #tpu.dot_dimension_numbers<[1], [0], [0], [1], [0, 0, 1, 1], [], []>} : vector<288x8xf32>, vector<8x8xf32>, vector<288x8xf32> -> vector<288x8xf32>
    %c0_72 = arith.constant 0 : index
    %c0_73 = arith.constant 0 : index
    %65 = vector.load %arg11[%c0_72, %c0_73] : memref<288x8xf32, #tpu.memory_space<vmem>>, vector<288x8xf32>
    %66 = arith.addf %65, %64 : vector<288x8xf32>
    %c0_74 = arith.constant 0 : index
    %c0_75 = arith.constant 0 : index
    %67 = vector.load %arg11[%c0_74, %c0_75] : memref<288x8xf32, #tpu.memory_space<vmem>>, vector<288x8xf32>
    tpu.vector_store %arg11[%c0_74, %c0_75], %66 {strides = array<i32>} : memref<288x8xf32, #tpu.memory_space<vmem>>, vector<288x8xf32>,
    %c38 = arith.constant 38 : index
    %c0_76 = arith.constant 0 : index
    %68 = vector.load %arg10[%c38, %c0_76] : memref<326x8xf32, #tpu.memory_space<vmem>>, vector<288x8xf32>
    %c8 = arith.constant 8 : index
    %c0_77 = arith.constant 0 : index
    %c0_78 = arith.constant 0 : index
    %69 = vector.load %arg2[%c8, %c0_77, %c0_78] : memref<9x8x8xf32, #tpu.memory_space<vmem>>, vector<1x8x8xf32>
    %70 = vector.shape_cast %69 : vector<1x8x8xf32> to vector<8x8xf32>
    %cst_79 = arith.constant dense<0.000000e+00> : vector<288x8xf32>
    %71 = tpu.matmul %68, %70, %cst_79 {dimension_numbers = #tpu.dot_dimension_numbers<[1], [0], [0], [1], [0, 0, 1, 1], [], []>} : vector<288x8xf32>, vector<8x8xf32>, vector<288x8xf32> -> vector<288x8xf32>
    %c0_80 = arith.constant 0 : index
    %c0_81 = arith.constant 0 : index
    %72 = vector.load %arg11[%c0_80, %c0_81] : memref<288x8xf32, #tpu.memory_space<vmem>>, vector<288x8xf32>
    %73 = arith.addf %72, %71 : vector<288x8xf32>
    %c0_82 = arith.constant 0 : index
    %c0_83 = arith.constant 0 : index
    %74 = vector.load %arg11[%c0_82, %c0_83] : memref<288x8xf32, #tpu.memory_space<vmem>>, vector<288x8xf32>
    tpu.vector_store %arg11[%c0_82, %c0_83], %73 {strides = array<i32>} : memref<288x8xf32, #tpu.memory_space<vmem>>, vector<288x8xf32>,
    %c0_84 = arith.constant 0 : index
    %c0_85 = arith.constant 0 : index
    %75 = vector.load %arg11[%c0_84, %c0_85] : memref<288x8xf32, #tpu.memory_space<vmem>>, vector<288x8xf32>
    %c0_86 = arith.constant 0 : index
    %c0_87 = arith.constant 0 : index
    %76 = vector.load %arg6[%c0_86, %c0_87] : memref<288x1xf32, #tpu.memory_space<vmem>>, vector<288x1xf32>
    %77 = vector.broadcast %76 : vector<288x1xf32> to vector<288x8xf32>
    %78 = arith.mulf %75, %77 : vector<288x8xf32>
    %cst_88 = arith.constant dense<0.000000e+00> : vector<8xf32>
    %79 = vector.multi_reduction <add>, %78, %cst_88 [0] : vector<288x8xf32> to vector<8xf32>
    %80 = vector.shape_cast %79 : vector<8xf32> to vector<1x8xf32>
    %c0_89 = arith.constant 0 : index
    %c0_90 = arith.constant 0 : index
    %c0_91 = arith.constant 0 : index
    %81 = vector.load %arg8[%c0_89, %c0_90, %c0_91] : memref<1x1x8xf32, #tpu.memory_space<vmem>>, vector<1x1x8xf32>
    %82 = vector.shape_cast %81 : vector<1x1x8xf32> to vector<1x8xf32>
    %83 = vector.shape_cast %80 : vector<1x8xf32> to vector<1x1x8xf32>
    tpu.vector_store %arg8[%c0_89, %c0_90, %c0_91], %83 {strides = array<i32>} : memref<1x1x8xf32, #tpu.memory_space<vmem>>, vector<1x1x8xf32>,
    %84 = arith.mulf %78, %78 : vector<288x8xf32>
    %cst_92 = arith.constant dense<0.000000e+00> : vector<8xf32>
    %85 = vector.multi_reduction <add>, %84, %cst_92 [0] : vector<288x8xf32> to vector<8xf32>
    %86 = vector.shape_cast %85 : vector<8xf32> to vector<1x8xf32>
    %c0_93 = arith.constant 0 : index
    %c0_94 = arith.constant 0 : index
    %c0_95 = arith.constant 0 : index
    %87 = vector.load %arg9[%c0_93, %c0_94, %c0_95] : memref<1x1x8xf32, #tpu.memory_space<vmem>>, vector<1x1x8xf32>
    %88 = vector.shape_cast %87 : vector<1x1x8xf32> to vector<1x8xf32>
    %89 = vector.shape_cast %86 : vector<1x8xf32> to vector<1x1x8xf32>
    tpu.vector_store %arg9[%c0_93, %c0_94, %c0_95], %89 {strides = array<i32>} : memref<1x1x8xf32, #tpu.memory_space<vmem>>, vector<1x1x8xf32>,
    %c0_96 = arith.constant 0 : index
    %c0_97 = arith.constant 0 : index
    %c0_98 = arith.constant 0 : index
    %90 = vector.load %arg7[%c0_96, %c0_97, %c0_98] : memref<1x288x8xf32, #tpu.memory_space<vmem>>, vector<1x288x8xf32>
    %91 = vector.shape_cast %90 : vector<1x288x8xf32> to vector<288x8xf32>
    %92 = vector.shape_cast %78 : vector<288x8xf32> to vector<1x288x8xf32>
    tpu.vector_store %arg7[%c0_96, %c0_97, %c0_98], %92 {strides = array<i32>} : memref<1x288x8xf32, #tpu.memory_space<vmem>>, vector<1x288x8xf32>,
    return
  }
  func.func @transform_0(%arg0: i32) -> (i32, i32, i32) {
    %c0_i32 = arith.constant 0 : i32
    %c0_i32_0 = arith.constant 0 : i32
    %c0_i32_1 = arith.constant 0 : i32
    return %arg0, %c0_i32, %c0_i32_0 : i32, i32, i32
  }
  func.func @transform_1(%arg0: i32) -> (i32, i32, i32) {
    %c0_i32 = arith.constant 0 : i32
    %c0_i32_0 = arith.constant 0 : i32
    %c0_i32_1 = arith.constant 0 : i32
    %c0_i32_2 = arith.constant 0 : i32
    return %c0_i32, %c0_i32_0, %c0_i32_1 : i32, i32, i32
  }
  func.func @transform_2(%arg0: i32) -> (i32, i32) {
    %c0_i32 = arith.constant 0 : i32
    %c0_i32_0 = arith.constant 0 : i32
    %c0_i32_1 = arith.constant 0 : i32
    return %c0_i32, %c0_i32_0 : i32, i32
  }
  func.func @transform_3(%arg0: i32) -> (i32, i32) {
    %c0_i32 = arith.constant 0 : i32
    %c0_i32_0 = arith.constant 0 : i32
    %c0_i32_1 = arith.constant 0 : i32
    return %c0_i32, %c0_i32_0 : i32, i32
  }
  func.func @transform_4(%arg0: i32) -> (i32, i32) {
    %c0_i32 = arith.constant 0 : i32
    %c0_i32_0 = arith.constant 0 : i32
    %c0_i32_1 = arith.constant 0 : i32
    return %c0_i32, %c0_i32_0 : i32, i32
  }
  func.func @transform_5(%arg0: i32) -> (i32, i32) {
    %c0_i32 = arith.constant 0 : i32
    %c0_i32_0 = arith.constant 0 : i32
    %c0_i32_1 = arith.constant 0 : i32
    return %c0_i32, %c0_i32_0 : i32, i32
  }
  func.func @transform_6(%arg0: i32) -> (i32, i32, i32) {
    %c0_i32 = arith.constant 0 : i32
    %c0_i32_0 = arith.constant 0 : i32
    %c0_i32_1 = arith.constant 0 : i32
    return %arg0, %c0_i32, %c0_i32_0 : i32, i32, i32
  }
  func.func @transform_7(%arg0: i32) -> (i32, i32, i32) {
    %c0_i32 = arith.constant 0 : i32
    %c0_i32_0 = arith.constant 0 : i32
    %c0_i32_1 = arith.constant 0 : i32
    return %arg0, %c0_i32, %c0_i32_0 : i32, i32, i32
  }
  func.func @transform_8(%arg0: i32) -> (i32, i32, i32) {
    %c0_i32 = arith.constant 0 : i32
    %c0_i32_0 = arith.constant 0 : i32
    %c0_i32_1 = arith.constant 0 : i32
    return %arg0, %c0_i32, %c0_i32_0 : i32, i32, i32
  }
}

module attributes {stable_mosaic.version = 11 : i64} {
  func.func @_bn_relu_kernel(%arg0: i32, %arg1: memref<32x128xf32, #tpu.memory_space<vmem>>, %arg2: memref<1x128xf32, #tpu.memory_space<vmem>>, %arg3: memref<1x128xf32, #tpu.memory_space<vmem>>, %arg4: memref<32x128xf32, #tpu.memory_space<vmem>>) attributes {dimension_semantics = [#tpu.dimension_semantics<parallel>], iteration_bounds = array<i64: 1>, scalar_prefetch = 0 : i64, scratch_operands = 0 : i64, tpu.core_type = #tpu.core_type<tc>, window_params = [{transform_indices = @transform_0, window_bounds = array<i64: 32, 128>}, {pipeline_mode = #tpu.pipeline_mode<synchronous>, transform_indices = @transform_1, window_bounds = array<i64: 1, 128>}, {pipeline_mode = #tpu.pipeline_mode<synchronous>, transform_indices = @transform_2, window_bounds = array<i64: 1, 128>}, {transform_indices = @transform_3, window_bounds = array<i64: 32, 128>}]} {
    %c0 = arith.constant 0 : index
    %c0_0 = arith.constant 0 : index
    %0 = vector.load %arg1[%c0, %c0_0] : memref<32x128xf32, #tpu.memory_space<vmem>>, vector<32x128xf32>
    %c0_1 = arith.constant 0 : index
    %c0_2 = arith.constant 0 : index
    %1 = vector.load %arg2[%c0_1, %c0_2] : memref<1x128xf32, #tpu.memory_space<vmem>>, vector<1x128xf32>
    %2 = vector.broadcast %1 : vector<1x128xf32> to vector<32x128xf32>
    %3 = arith.mulf %0, %2 : vector<32x128xf32>
    %c0_3 = arith.constant 0 : index
    %c0_4 = arith.constant 0 : index
    %4 = vector.load %arg3[%c0_3, %c0_4] : memref<1x128xf32, #tpu.memory_space<vmem>>, vector<1x128xf32>
    %5 = vector.broadcast %4 : vector<1x128xf32> to vector<32x128xf32>
    %6 = arith.addf %3, %5 : vector<32x128xf32>
    %cst = arith.constant 0.000000e+00 : f32
    %7 = vector.broadcast %cst : f32 to vector<32x128xf32>
    %8 = arith.maximumf %6, %7 : vector<32x128xf32>
    %c0_5 = arith.constant 0 : index
    %c0_6 = arith.constant 0 : index
    %9 = vector.load %arg4[%c0_5, %c0_6] : memref<32x128xf32, #tpu.memory_space<vmem>>, vector<32x128xf32>
    tpu.vector_store %arg4[%c0_5, %c0_6], %8 {strides = array<i32>} : memref<32x128xf32, #tpu.memory_space<vmem>>, vector<32x128xf32>,
    return
  }
  func.func @transform_0(%arg0: i32) -> (i32, i32) {
    %c0_i32 = arith.constant 0 : i32
    %c0_i32_0 = arith.constant 0 : i32
    return %arg0, %c0_i32 : i32, i32
  }
  func.func @transform_1(%arg0: i32) -> (i32, i32) {
    %c0_i32 = arith.constant 0 : i32
    %c0_i32_0 = arith.constant 0 : i32
    %c0_i32_1 = arith.constant 0 : i32
    return %c0_i32, %c0_i32_0 : i32, i32
  }
  func.func @transform_2(%arg0: i32) -> (i32, i32) {
    %c0_i32 = arith.constant 0 : i32
    %c0_i32_0 = arith.constant 0 : i32
    %c0_i32_1 = arith.constant 0 : i32
    return %c0_i32, %c0_i32_0 : i32, i32
  }
  func.func @transform_3(%arg0: i32) -> (i32, i32) {
    %c0_i32 = arith.constant 0 : i32
    %c0_i32_0 = arith.constant 0 : i32
    return %arg0, %c0_i32 : i32, i32
  }
}

</mosaic_0001>

<bundles_post_ra>
// kernel: tile.13
= control target key start
LH: loop header
LB: loop body
LE: loop exit
PB: predicated region body
PF: predicated region fallthrough
CT: control target
= control target key end

     0   :  { %s28_s0 = inlined_call_operand.vmem [shape: f32[8], index: 0, kind: input, shape index: {}]   ;;  %s29_s1 = inlined_call_operand.vmem [shape: f32[16,8], index: 1, kind: output, shape index: {}]  }
   0x1   :  { %v4_v0 = vld [vmem:[%s28_s0] ss:$0 sm:$0xff] }
   0x2   :  { %5 = vst [vmem:[%s29_s1] sm:$0xff] %v4_v0 }
   0x3   :  { %8 = vst [vmem:[%s29_s1 + $0x8] sm:$0xff] %v4_v0 }

// kernel: tile.14
= control target key start
LH: loop header
LB: loop body
LE: loop exit
PB: predicated region body
PF: predicated region fallthrough
CT: control target
= control target key end

     0   :  { %s131_s10 = smov 120   ;;  %s132_s11 = smov 104   ;;  %vm3_vm0 = vcmask 64512   ;;  %vm9_vm1 = vcmask 1048512   ;;  %vm15_vm2 = vcmask 982912   ;;  %vm21_vm3 = vcmask 917312   ;;  %s207_s0 = inlined_call_operand.vmem [shape: f32[16,8], index: 0, kind: input, shape index: {}]   ;;  %s208_s1 = inlined_call_operand.vmem [shape: f32[1,128], index: 1, kind: output, shape index: {}]  }
   0x1   :  { %v101_v0 = vld [vmem:[%s207_s0 + $0xf] sm:$0x1]   ;;  %v103_v1 = vld [vmem:[%s207_s0 + $0xd] sm:$0x1]   ;;  %v105_v2 = vld [vmem:[%s207_s0 + $0xb] sm:$0x1]  }
   0x2   :  { %7 = vrot.lane.b32.xlu0 %v101_v0, %s131_s10  ;;  %19 = vrot.lane.b32.xlu1 %v103_v1, %s132_s11  ;;  %s133_s14 = smov 88   ;;  %v102_v3 = vld [vmem:[%s207_s0 + $0xe] sm:$0x1]   ;;  %v104_v4 = vld [vmem:[%s207_s0 + $0xc] sm:$0x1]   ;;  %s134_s19 = smov 112  }
   0x3   :  { %31 = vrot.lane.b32.xlu2 %v105_v2, %s133_s14  ;;  %s135_s20 = smov 96   ;;  %v106_v5 = vld [vmem:[%s207_s0 + $0xa] sm:$0x1]   ;;  %s136_s23 = smov 80   ;;  %v107_v6 = vld [vmem:[%s207_s0 + $0x9] sm:$0x1]  }
   0x4   :  { %v108_v7 = vld [vmem:[%s207_s0 + $0x8] sm:$0x1]   ;;  %s137_s28 = smov 72   ;;  %s138_s29 = smov 64   ;;  %v109_v8 = vld [vmem:[%s207_s0 + $0x7] sm:$0x1]  }
   0x5   :  { %s139_s3 = smov 56   ;;  %v110_v9 = vld [vmem:[%s207_s0 + $0x6] sm:$0x1]   ;;  %v111_v10 = vld [vmem:[%s207_s0 + $0x5] sm:$0x1]   ;;  %s140_s8 = smov 48  }
   0x6   :  { %s141_s9 = smov 40   ;;  %v112_v11 = vld [vmem:[%s207_s0 + $0x4] sm:$0x1]   ;;  %s142_s12 = smov 32   ;;  %v113_v12 = vld [vmem:[%s207_s0 + $0x3] sm:$0x1]  }
   0x7   :  { %v114_v13 = vld [vmem:[%s207_s0 + $0x2] sm:$0x1]   ;;  %s143_s17 = smov 24   ;;  %s144_s18 = smov 16   ;;  %v115_v14 = vld [vmem:[%s207_s0 + $0x1] sm:$0x1]  }
   0x8   :  { %s145_s21 = smov 8   ;;  %v2_v15 = vld [vmem:[%s207_s0] sm:$0x1]   ;;  %vm27_vm4 = vcmask 851712   ;;  %vm33_vm5 = vcmask 786112   ;;  %vm39_vm6 = vcmask 720512  }
   0x9   :  { %4 = vst.msk [vmem:[#allocation0] sm:$0x1] %vm3_vm0, %v2_v15   ;;  %vm45_vm7 = vcmask 654912   ;;  %vm51_vm8 = vcmask 589312   ;;  %vm57_vm9 = vcmask 523712   ;;  %vm63_vm10 = vcmask 458112  }
   0xa   :  { %13 = vrot.lane.b32.xlu0 %v102_v3, %s134_s19  ;;  %25 = vrot.lane.b32.xlu1 %v104_v4, %s135_s20  ;;  %vm69_vm11 = vcmask 392512   ;;  %vm75_vm12 = vcmask 326912   ;;  %vm81_vm13 = vcmask 261312   ;;  %vm87_vm14 = vcmask 195712  }
   0xb   :  { %37 = vrot.lane.b32.xlu2 %v106_v5, %s136_s23  ;;  %vm93_vm15 = vcmask 130112  }
  0x12   :  { %43 = vrot.lane.b32.xlu0 %v107_v6, %s137_s28  ;;  %49 = vrot.lane.b32.xlu1 %v108_v7, %s138_s29 }
  0x13   :  { %55 = vrot.lane.b32.xlu2 %v109_v8, %s139_s3 }
  0x1a   :  { %61 = vrot.lane.b32.xlu0 %v110_v9, %s140_s8  ;;  %67 = vrot.lane.b32.xlu1 %v111_v10, %s141_s9 }
  0x1b   :  { %73 = vrot.lane.b32.xlu2 %v112_v11, %s142_s12 }
  0x22   :  { %79 = vrot.lane.b32.xlu0 %v113_v12, %s143_s17  ;;  %85 = vrot.lane.b32.xlu1 %v114_v13, %s144_s18 }
  0x23   :  { %91 = vrot.lane.b32.xlu2 %v115_v14, %s145_s21 }
  0x5d   :  { %v32_v16 = vpop.permute.xlu2 %31  }
  0x65   :  { %v38_v17 = vpop.permute.xlu2 %37  }
  0x6d   :  { %v56_v18 = vpop.permute.xlu2 %55  }
  0x74   :  { %v8_v19 = vpop.permute.xlu0 %7   ;;  %v20_v20 = vpop.permute.xlu1 %19  }
  0x75   :  { %10 = vst.msk [vmem:[#allocation0] sm:$0x1] %vm9_vm1, %v8_v19   ;;  %v74_v21 = vpop.permute.xlu2 %73  }
  0x7c   :  { %v14_v22 = vpop.permute.xlu0 %13   ;;  %v26_v23 = vpop.permute.xlu1 %25  }
  0x7d   :  { %16 = vst.msk [vmem:[#allocation0] sm:$0x1] %vm15_vm2, %v14_v22   ;;  %v92_v24 = vpop.permute.xlu2 %91  }
  0x7e   :  { %22 = vst.msk [vmem:[#allocation0] sm:$0x1] %vm21_vm3, %v20_v20  }
  0x7f   :  { %28 = vst.msk [vmem:[#allocation0] sm:$0x1] %vm27_vm4, %v26_v23  }
  0x80   :  { %34 = vst.msk [vmem:[#allocation0] sm:$0x1] %vm33_vm5, %v32_v16  }
  0x81   :  { %40 = vst.msk [vmem:[#allocation0] sm:$0x1] %vm39_vm6, %v38_v17  }
  0x84   :  { %v44_v25 = vpop.permute.xlu0 %43   ;;  %v50_v26 = vpop.permute.xlu1 %49  }
  0x85   :  { %46 = vst.msk [vmem:[#allocation0] sm:$0x1] %vm45_vm7, %v44_v25  }
  0x86   :  { %52 = vst.msk [vmem:[#allocation0] sm:$0x1] %vm51_vm8, %v50_v26  }
  0x87   :  { %58 = vst.msk [vmem:[#allocation0] sm:$0x1] %vm57_vm9, %v56_v18  }
  0x8c   :  { %v62_v27 = vpop.permute.xlu0 %61   ;;  %v68_v28 = vpop.permute.xlu1 %67  }
  0x8d   :  { %64 = vst.msk [vmem:[#allocation0] sm:$0x1] %vm63_vm10, %v62_v27  }
  0x8e   :  { %70 = vst.msk [vmem:[#allocation0] sm:$0x1] %vm69_vm11, %v68_v28  }
  0x8f   :  { %76 = vst.msk [vmem:[#allocation0] sm:$0x1] %vm75_vm12, %v74_v21  }
  0x94   :  { %v80_v29 = vpop.permute.xlu0 %79   ;;  %v86_v30 = vpop.permute.xlu1 %85  }
  0x95   :  { %82 = vst.msk [vmem:[#allocation0] sm:$0x1] %vm81_vm13, %v80_v29  }
  0x96   :  { %88 = vst.msk [vmem:[#allocation0] sm:$0x1] %vm87_vm14, %v86_v30  }
  0x97   :  { %94 = vst.msk [vmem:[#allocation0] sm:$0x1] %vm93_vm15, %v92_v24  }
  0x9e   :  { %v97_v31 = vld [vmem:[#allocation0] sm:$0x1] }
  0x9f   :  { %100 = vst [vmem:[%s208_s1] sm:$0x1] %v97_v31 }

// kernel: double_conv_block.5
= control target key start
LH: loop header
LB: loop body
LE: loop exit
PB: predicated region body
PF: predicated region fallthrough
CT: control target
= control target key end

     0   :  { %s98_s0 = inlined_call_operand.vmem [shape: f32[32,128], index: 0, kind: input, shape index: {}]   ;;  %s99_s1 = inlined_call_operand.vmem [shape: f32[1,128], index: 1, kind: input, shape index: {}]   ;;  %s100_s2 = inlined_call_operand.vmem [shape: f32[1,128], index: 2, kind: input, shape index: {}]   ;;  %s101_s3 = inlined_call_operand.vmem [shape: f32[32,128], index: 3, kind: output, shape index: {}]  }
   0x1   :  { %v14_v0 = vld [vmem:[%s98_s0] sm:$0xff]  ;;  %v15_v3 = vld [vmem:[%s98_s0 + $0x8] sm:$0xff]  ;;  %v16_v6 = vld [vmem:[%s98_s0 + $0x10] sm:$0xff] }
   0x2   :  { %v46_v1 = vld [vmem:[%s99_s1] ss:$0 sm:$0xff]  ;;  %v17_v7 = vld [vmem:[%s98_s0 + $0x18] sm:$0xff] }
   0x3   :  { %v47_v2 = vld [vmem:[%s100_s2] ss:$0 sm:$0xff]  ;;  %v22_v4 = vmul.f32 %v46_v1, %v14_v0  ;;  %v23_v5 = vmul.f32 %v46_v1, %v15_v3  ;;  %v24_v8 = vmul.f32 %v46_v1, %v16_v6  ;;  %v25_v9 = vmul.f32 %v46_v1, %v17_v7 }
   0x5   :  { %v30_v10 = vadd.f32 %v47_v2, %v22_v4  ;;  %v31_v11 = vadd.f32 %v47_v2, %v23_v5  ;;  %v32_v12 = vadd.f32 %v47_v2, %v24_v8  ;;  %v33_v13 = vadd.f32 %v47_v2, %v25_v9 }
   0x7   :  { %v34_v14 = vmax.f32 %v30_v10, 0.0  ;;  %v35_v15 = vmax.f32 %v31_v11, 0.0  ;;  %v36_v16 = vmax.f32 %v32_v12, 0.0  ;;  %v37_v17 = vmax.f32 %v33_v13, 0.0 }
   0x9   :  { %38 = vst [vmem:[%s101_s3] sm:$0xff] %v34_v14 }
   0xa   :  { %39 = vst [vmem:[%s101_s3 + $0x8] sm:$0xff] %v35_v15 }
   0xb   :  { %40 = vst [vmem:[%s101_s3 + $0x10] sm:$0xff] %v36_v16 }
   0xc   :  { %41 = vst [vmem:[%s101_s3 + $0x18] sm:$0xff] %v37_v17 }

// kernel: double_conv_block.3
= control target key start
LH: loop header
LB: loop body
LE: loop exit
PB: predicated region body
PF: predicated region fallthrough
CT: control target
= control target key end

     0   :  { %s4734_s27 = smov 0   ;;  %s6270_s0 = inlined_call_operand.vmem [shape: f32[2,326,4], index: 0, kind: input, shape index: {}]   ;;  %s6271_s1 = inlined_call_operand.vmem [shape: f32[9,4,8], index: 1, kind: input, shape index: {}]   ;;  %s6272_s2 = inlined_call_operand.vmem [shape: f32[1,4], index: 2, kind: input, shape index: {}]   ;;  %s6273_s3 = inlined_call_operand.vmem [shape: f32[1,4], index: 3, kind: input, shape index: {}]   ;;  %s6274_s4 = inlined_call_operand.vmem [shape: f32[326,1], index: 4, kind: input, shape index: {}]   ;;  %s6275_s5 = inlined_call_operand.vmem [shape: f32[288,1], index: 5, kind: input, shape index: {}]   ;;  %s6276_s6 = inlined_call_operand.vmem [shape: f32[2,288,8], index: 6, kind: output, shape index: {0}]   ;;  %s6277_s7 = inlined_call_operand.vmem [shape: f32[2,1,8], index: 7, kind: output, shape index: {1}]   ;;  %s6278_s8 = inlined_call_operand.vmem [shape: f32[2,1,8], index: 8, kind: output, shape index: {2}]  }
   0x1 LB: > { %s4313_s2 = sadd.s32 4294967295, %s4686_s27   ;;  %p4317_p0 = scmp.ge.s32.totalorder %s4686_s27, 1  ;;  %s4686_s27 = sphi %s4734_s27, %s19_s27  }
   0x2   : > { %p267_p1 = scmp.lt.s32.totalorder %s4686_s27, 3 }
   0x4   : > { %p268_p2 = pnand %p4317_p0, %p267_p1 }
   0x5   : > { %p307_p3 = scmp.lt.s32.totalorder (!%p268_p2), %s4313_s2, 1 }
   0x6   : > { %271 = sbr.rel (%p268_p2) target bundleno = 844 (0x34c), region = 44 }
   0xb   : > { %v359_v0 = vld [vmem:[%s6271_s1] sm:$0xf]  ;;  %vm469_vm0 = vcmask 1043456   ;;  %v4357_v1 = vld [vmem:[%s6271_s1 + $0x4] sm:$0xf]  ;;  %s6280_s2 = smov (!%p307_p3, %s4313_s2), 1 }
   0xc   : > { %4663 = vmatpush.msk.msra.mxu1 %vm469_vm0, %v359_v0  ;;  %4664 = vmatpush.msk.msra.mxu2 %vm469_vm0, %v359_v0  ;;  %v4395_v2 = vld [vmem:[%s6271_s1 + $0x8] sm:$0xf]  ;;  %v4433_v3 = vld [vmem:[%s6271_s1 + $0xc] sm:$0xf]  ;;  %v4471_v4 = vld [vmem:[%s6271_s1 + $0x10] sm:$0xf]  ;;  %s322_s18 = scalar_lea.vmem %s6278_s8, %s6280_s2 }
   0xd   : > { %4665 = vmatpush.msk.msra.mxu3 %vm469_vm0, %v359_v0  ;;  %4320 = vmatpush.msk.msra.mxu0 %vm469_vm0, %v359_v0  ;;  %s4666_s14 = smul.u32 328, %s6280_s2  ;;  %vm360_vm1 = vcmask 31744   ;;  %v4509_v29 = vld [vmem:[%s6271_s1 + $0x14] sm:$0xf]  ;;  %v4547_v30 = vld [vmem:[%s6271_s1 + $0x18] sm:$0xf] }
   0xe   : > { %4358 = vmatpush.msk.msrb.mxu1 %vm469_vm0, %v4357_v1  ;;  %4396 = vmatpush.msk.msrb.mxu2 %vm469_vm0, %v4395_v2  ;;  %v4585_v35 = vld [vmem:[%s6271_s1 + $0x1c] sm:$0xf]  ;;  %v4623_v44 = vld [vmem:[%s6271_s1 + $0x20] sm:$0xf]  ;;  %vm598_vm2 = vcmask 64512   ;;  %s4667_s15 = smul.u32 288, %s6280_s2 }
   0xf   : > { %4434 = vmatpush.msk.msrb.mxu3 %vm469_vm0, %v4433_v3  ;;  %4472 = vmatpush.msk.msrb.mxu0 %vm469_vm0, %v4471_v4  ;;  %s4771_s17 = scalar_lea.vmem %s6270_s0, %s4666_s14  ;;  %vm4056_vm3 = vcmask 57344  }
  0x10   : > { %v332_v5 = vld [vmem:[%s4771_s17 + $0x48] sm:$0xff]  ;;  %v341_v6 = vld [vmem:[%s4771_s17 + $0x90] sm:$0xff]  ;;  %v350_v7 = vld [vmem:[%s4771_s17 + $0xd8] sm:$0xff]  ;;  %s5638_s21 = scalar_lea.vmem %s6276_s6, %s4667_s15  ;;  %s319_s15 = scalar_lea.vmem %s6277_s7, %s6280_s2 }
  0x11   : > { %4330 = vmatmul.msk.f32.vlgmr.msra.gmra.mxu1 %vm360_vm1, %v332_v5  ;;  %4339 = vmatmul.msk.f32.vlgmr.msra.gmra.mxu2 %vm360_vm1, %v341_v6  ;;  %v323_v8 = vld [vmem:[%s4771_s17] sm:$0xff]  ;;  %v333_v9 = vld [vmem:[%s4771_s17 + $0x50] sm:$0xff]  ;;  %v342_v10 = vld [vmem:[%s4771_s17 + $0x98] sm:$0xff] }
  0x12   : > { %4348 = vmatmul.msk.f32.vlgmr.msra.gmra.mxu3 %vm360_vm1, %v350_v7  ;;  %4321 = vmatmul.msk.f32.vlgmr.msra.gmra.mxu0 %vm360_vm1, %v323_v8  ;;  %v351_v11 = vld [vmem:[%s4771_s17 + $0xe0] sm:$0xff]  ;;  %v324_v12 = vld [vmem:[%s4771_s17 + $0x8] sm:$0xff]  ;;  %v334_v13 = vld [vmem:[%s4771_s17 + $0x58] sm:$0xff] }
  0x13   : > { %v343_v14 = vld [vmem:[%s4771_s17 + $0xa0] sm:$0xff]  ;;  %v352_v15 = vld [vmem:[%s4771_s17 + $0xe8] sm:$0xff]  ;;  %v325_v16 = vld [vmem:[%s4771_s17 + $0x10] sm:$0xff]  ;;  %4510 = vmatpush.msk.msra.mxu1 %vm469_vm0, %v4509_v29  ;;  %4548 = vmatpush.msk.msra.mxu2 %vm469_vm0, %v4547_v30 }
  0x14   : > { %v335_v17 = vld [vmem:[%s4771_s17 + $0x60] sm:$0xff]  ;;  %v344_v18 = vld [vmem:[%s4771_s17 + $0xa8] sm:$0xff]  ;;  %v353_v19 = vld [vmem:[%s4771_s17 + $0xf0] sm:$0xff]  ;;  %4586 = vmatpush.msk.msra.mxu3 %vm469_vm0, %v4585_v35  ;;  %4624 = vmatpush.msk.msra.mxu0 %vm469_vm0, %v4623_v44 }
  0x15   : > { %v326_v20 = vld [vmem:[%s4771_s17 + $0x18] sm:$0xff]  ;;  %v336_v21 = vld [vmem:[%s4771_s17 + $0x68] sm:$0xff]  ;;  %v345_v22 = vld [vmem:[%s4771_s17 + $0xb0] sm:$0xff] }
  0x16   : > { %v354_v23 = vld [vmem:[%s4771_s17 + $0xf8] sm:$0xff]  ;;  %v327_v24 = vld [vmem:[%s4771_s17 + $0x20] sm:$0xff]  ;;  %v337_v25 = vld [vmem:[%s4771_s17 + $0x70] sm:$0xff] }
  0x17   : > { %v346_v26 = vld [vmem:[%s4771_s17 + $0xb8] sm:$0xff]  ;;  %v355_v27 = vld [vmem:[%s4771_s17 + $0x100] sm:$0xff]  ;;  %v328_v28 = vld [vmem:[%s4771_s17 + $0x28] sm:$0xff] }
  0x18   : > { %v338_v31 = vld [vmem:[%s4771_s17 + $0x78] sm:$0xff]  ;;  %v347_v32 = vld [vmem:[%s4771_s17 + $0xc0] sm:$0xff]  ;;  %v356_v33 = vld [vmem:[%s4771_s17 + $0x108] sm:$0xff] }
  0x19   : > { %4331 = vmatmul.msk.f32.gmra.mxu1 %vm360_vm1, %v333_v9  ;;  %4340 = vmatmul.msk.f32.gmra.mxu2 %vm360_vm1, %v342_v10  ;;  %v329_v34 = vld [vmem:[%s4771_s17 + $0x30] sm:$0xff]  ;;  %v339_v36 = vld [vmem:[%s4771_s17 + $0x80] sm:$0xff]  ;;  %v348_v37 = vld [vmem:[%s4771_s17 + $0xc8] sm:$0xff] }
  0x1a   : > { %4349 = vmatmul.msk.f32.gmra.mxu3 %vm360_vm1, %v351_v11  ;;  %4322 = vmatmul.msk.f32.gmra.mxu0 %vm360_vm1, %v324_v12  ;;  %v357_v38 = vld [vmem:[%s4771_s17 + $0x110] sm:$0xff]  ;;  %v330_v39 = vld [vmem:[%s4771_s17 + $0x38] sm:$0xff]  ;;  %v340_v40 = vld [vmem:[%s4771_s17 + $0x88] sm:$0xff] }
  0x1b   : > { %v349_v41 = vld [vmem:[%s4771_s17 + $0xd0] sm:$0xff]  ;;  %v358_v42 = vld [vmem:[%s4771_s17 + $0x118] sm:$0xff]  ;;  %v331_v43 = vld [vmem:[%s4771_s17 + $0x40] sm:$0xff] }
  0x1c   : > { %v635_v45 = vld [vmem:[%s4771_s17 + $0x1] sm:$0xff]  ;;  %v1399_v47 = vld [vmem:[%s4771_s17 + $0x12] sm:$0xff]  ;;  %v636_v49 = vld [vmem:[%s4771_s17 + $0x9] sm:$0xff] }
  0x1d   : > { %v1017_v46 = vld [vmem:[%s4771_s17 + $0x2] sm:$0xff]  ;;  %v1781_v48 = vld [vmem:[%s4771_s17 + $0x13] sm:$0xff]  ;;  %v1018_v50 = vld [vmem:[%s4771_s17 + $0xa] sm:$0xff] }
  0x1e   : > { %v1400_v51 = vld [vmem:[%s4771_s17 + $0x1a] sm:$0xff]  ;;  %v637_v53 = vld [vmem:[%s4771_s17 + $0x11] sm:$0xff]  ;;  %v1401_v54 = vld [vmem:[%s4771_s17 + $0x22] sm:$0xff] }
  0x1f   : > { %v1782_v52 = vld [vmem:[%s4771_s17 + $0x1b] sm:$0xff]  ;;  %v1783_v55 = vld [vmem:[%s4771_s17 + $0x23] sm:$0xff]  ;;  %v1784_v58 = vld [vmem:[%s4771_s17 + $0x2b] sm:$0xff] }
  0x20   : > { %v638_v56 = vld [vmem:[%s4771_s17 + $0x19] sm:$0xff]  ;;  %v1402_v57 = vld [vmem:[%s4771_s17 + $0x2a] sm:$0xff]  ;;  %v639_v59 = vld [vmem:[%s4771_s17 + $0x21] sm:$0xff] }
  0x21   : > { %4332 = vmatmul.msk.f32.gmra.mxu1 %vm360_vm1, %v334_v13  ;;  %4341 = vmatmul.msk.f32.gmra.mxu2 %vm360_vm1, %v343_v14  ;;  %v1403_v60 = vld [vmem:[%s4771_s17 + $0x32] sm:$0xff]  ;;  %v640_v62 = vld [vmem:[%s4771_s17 + $0x29] sm:$0xff]  ;;  %v1404_v63 = vld [vmem:[%s4771_s17 + $0x3a] sm:$0xff] }
  0x22   : > { %4350 = vmatmul.msk.f32.gmra.mxu3 %vm360_vm1, %v352_v15  ;;  %4323 = vmatmul.msk.f32.gmra.mxu0 %vm360_vm1, %v325_v16  ;;  %v1785_v61 = vld [vmem:[%s4771_s17 + $0x33] sm:$0xff]  ;;  %v1786_v0 = vld [vmem:[%s4771_s17 + $0x3b] sm:$0xff]  ;;  %v1787_v3 = vld [vmem:[%s4771_s17 + $0x43] sm:$0xff] }
  0x23   : > { %v641_v1 = vld [vmem:[%s4771_s17 + $0x31] sm:$0xff]  ;;  %v1405_v2 = vld [vmem:[%s4771_s17 + $0x42] sm:$0xff]  ;;  %v642_v5 = vld [vmem:[%s4771_s17 + $0x39] sm:$0xff] }
  0x24   : > { %v1406_v6 = vld [vmem:[%s4771_s17 + $0x4a] sm:$0xff]  ;;  %v643_v12 = vld [vmem:[%s4771_s17 + $0x41] sm:$0xff]  ;;  %v1407_v13 = vld [vmem:[%s4771_s17 + $0x52] sm:$0xff] }
  0x25   : > { %v1788_v8 = vld [vmem:[%s4771_s17 + $0x4b] sm:$0xff]  ;;  %v1789_v15 = vld [vmem:[%s4771_s17 + $0x53] sm:$0xff]  ;;  %v1791_v29 = vld [vmem:[%s4771_s17 + $0x63] sm:$0xff] }
  0x29   : > { %4333 = vmatmul.msk.f32.gmra.mxu1 %vm360_vm1, %v335_v17  ;;  %4342 = vmatmul.msk.f32.gmra.mxu2 %vm360_vm1, %v344_v18 }
  0x2a   : > { %4351 = vmatmul.msk.f32.gmra.mxu3 %vm360_vm1, %v353_v19  ;;  %4324 = vmatmul.msk.f32.gmra.mxu0 %vm360_vm1, %v326_v20  ;;  %v644_v19 = vld [vmem:[%s4771_s17 + $0x49] sm:$0xff]  ;;  %v1408_v20 = vld [vmem:[%s4771_s17 + $0x5a] sm:$0xff] }
  0x31   : > { %4334 = vmatmul.msk.f32.gmra.mxu1 %vm360_vm1, %v336_v21  ;;  %4343 = vmatmul.msk.f32.gmra.mxu2 %vm360_vm1, %v345_v22  ;;  %v1790_v22 = vld [vmem:[%s4771_s17 + $0x5b] sm:$0xff] }
  0x32   : > { %4352 = vmatmul.msk.f32.gmra.mxu3 %vm360_vm1, %v354_v23  ;;  %4325 = vmatmul.msk.f32.gmra.mxu0 %vm360_vm1, %v327_v24 }
  0x39   : > { %4335 = vmatmul.msk.f32.gmra.mxu1 %vm360_vm1, %v337_v25  ;;  %4344 = vmatmul.msk.f32.gmra.mxu2 %vm360_vm1, %v346_v26  ;;  %v645_v26 = vld [vmem:[%s4771_s17 + $0x51] sm:$0xff] }
  0x3a   : > { %4353 = vmatmul.msk.f32.gmra.mxu3 %vm360_vm1, %v355_v27  ;;  %4326 = vmatmul.msk.f32.gmra.mxu0 %vm360_vm1, %v328_v28  ;;  %v1409_v27 = vld [vmem:[%s4771_s17 + $0x62] sm:$0xff] }
  0x41   : > { %4336 = vmatmul.msk.f32.gmra.mxu1 %vm360_vm1, %v338_v31  ;;  %4345 = vmatmul.msk.f32.gmra.mxu2 %vm360_vm1, %v347_v32 }
  0x42   : > { %4354 = vmatmul.msk.f32.gmra.mxu3 %vm360_vm1, %v356_v33  ;;  %4327 = vmatmul.msk.f32.gmra.mxu0 %vm360_vm1, %v329_v34  ;;  %v646_v33 = vld [vmem:[%s4771_s17 + $0x59] sm:$0xff]  ;;  %v1410_v34 = vld [vmem:[%s4771_s17 + $0x6a] sm:$0xff] }
  0x49   : > { %4337 = vmatmul.msk.f32.gmra.mxu1 %vm360_vm1, %v339_v36  ;;  %4346 = vmatmul.msk.f32.gmra.mxu2 %vm360_vm1, %v348_v37  ;;  %v1792_v36 = vld [vmem:[%s4771_s17 + $0x6b] sm:$0xff] }
  0x4a   : > { %4355 = vmatmul.msk.f32.gmra.mxu3 %vm360_vm1, %v357_v38  ;;  %4328 = vmatmul.msk.f32.gmra.mxu0 %vm360_vm1, %v330_v39 }
  0x51   : > { %4338 = vmatmul.msk.f32.gmra.mxu1 %vm360_vm1, %v340_v40  ;;  %4347 = vmatmul.msk.f32.gmra.mxu2 %vm360_vm1, %v349_v41  ;;  %v647_v40 = vld [vmem:[%s4771_s17 + $0x61] sm:$0xff]  ;;  %v1411_v41 = vld [vmem:[%s4771_s17 + $0x72] sm:$0xff] }
  0x52   : > { %4356 = vmatmul.msk.f32.gmra.mxu3 %vm360_vm1, %v358_v42  ;;  %4329 = vmatmul.msk.f32.gmra.mxu0 %vm360_vm1, %v331_v43  ;;  %v1793_v43 = vld [vmem:[%s4771_s17 + $0x73] sm:$0xff] }
  0x59   : > { %4359 = vmatmul.msk.f32.vlgmr.msrb.gmra.mxu1 %vm360_vm1, %v635_v45  ;;  %4397 = vmatmul.msk.f32.vlgmr.msrb.gmra.mxu2 %vm360_vm1, %v1017_v46 }
  0x5a   : > { %4435 = vmatmul.msk.f32.vlgmr.msrb.gmra.mxu3 %vm360_vm1, %v1399_v47  ;;  %4473 = vmatmul.msk.f32.vlgmr.msrb.gmra.mxu0 %vm360_vm1, %v1781_v48  ;;  %v1412_v48 = vld [vmem:[%s4771_s17 + $0x7a] sm:$0xff] }
  0x61   : > { %4360 = vmatmul.msk.f32.gmra.mxu1 %vm360_vm1, %v636_v49  ;;  %4398 = vmatmul.msk.f32.gmra.mxu2 %vm360_vm1, %v1018_v50  ;;  %v1794_v50 = vld [vmem:[%s4771_s17 + $0x7b] sm:$0xff] }
  0x62   : > { %4436 = vmatmul.msk.f32.gmra.mxu3 %vm360_vm1, %v1400_v51  ;;  %4474 = vmatmul.msk.f32.gmra.mxu0 %vm360_vm1, %v1782_v52 }
  0x69   : > { %4361 = vmatmul.msk.f32.gmra.mxu1 %vm360_vm1, %v637_v53  ;;  %4399 = vmatmul.msk.f32.gmra.mxu2 %vm360_vm1, %v1399_v47  ;;  %v648_v47 = vld [vmem:[%s4771_s17 + $0x69] sm:$0xff] }
  0x6a   : > { %4437 = vmatmul.msk.f32.gmra.mxu3 %vm360_vm1, %v1401_v54  ;;  %4475 = vmatmul.msk.f32.gmra.mxu0 %vm360_vm1, %v1783_v55  ;;  %v1413_v55 = vld [vmem:[%s4771_s17 + $0x82] sm:$0xff] }
  0x71   : > { %4362 = vmatmul.msk.f32.gmra.mxu1 %vm360_vm1, %v638_v56  ;;  %4400 = vmatmul.msk.f32.gmra.mxu2 %vm360_vm1, %v1400_v51 }
  0x72   : > { %4438 = vmatmul.msk.f32.gmra.mxu3 %vm360_vm1, %v1402_v57  ;;  %4476 = vmatmul.msk.f32.gmra.mxu0 %vm360_vm1, %v1784_v58 }
  0x79   : > { %4363 = vmatmul.msk.f32.gmra.mxu1 %vm360_vm1, %v639_v59  ;;  %4401 = vmatmul.msk.f32.gmra.mxu2 %vm360_vm1, %v1401_v54  ;;  %v649_v54 = vld [vmem:[%s4771_s17 + $0x71] sm:$0xff] }
  0x7a   : > { %4439 = vmatmul.msk.f32.gmra.mxu3 %vm360_vm1, %v1403_v60  ;;  %4477 = vmatmul.msk.f32.gmra.mxu0 %vm360_vm1, %v1785_v61  ;;  %v650_v61 = vld [vmem:[%s4771_s17 + $0x79] sm:$0xff] }
  0x81   : > { %4364 = vmatmul.msk.f32.gmra.mxu1 %vm360_vm1, %v640_v62  ;;  %4402 = vmatmul.msk.f32.gmra.mxu2 %vm360_vm1, %v1402_v57  ;;  %v1795_v57 = vld [vmem:[%s4771_s17 + $0x83] sm:$0xff] }
  0x82   : > { %4440 = vmatmul.msk.f32.gmra.mxu3 %vm360_vm1, %v1404_v63  ;;  %4478 = vmatmul.msk.f32.gmra.mxu0 %vm360_vm1, %v1786_v0  ;;  %v1414_v62 = vld [vmem:[%s4771_s17 + $0x8a] sm:$0xff] }
  0x83   : > { %v1796_v0 = vld [vmem:[%s4771_s17 + $0x8b] sm:$0xff] }
  0x89   : > { %4365 = vmatmul.msk.f32.gmra.mxu1 %vm360_vm1, %v641_v1  ;;  %4403 = vmatmul.msk.f32.gmra.mxu2 %vm360_vm1, %v1403_v60 }
  0x8a   : > { %4441 = vmatmul.msk.f32.gmra.mxu3 %vm360_vm1, %v1405_v2  ;;  %4479 = vmatmul.msk.f32.gmra.mxu0 %vm360_vm1, %v1787_v3 }
  0x8e   : > { %v517_v4 = vpop.f32.mrf.mxu1 }
  0x8f   : > { %608 = vst.msk [vmem:[#allocation3 + $0x48] sm:$0xff] %vm598_vm2, %v517_v4  ;;  %v490_v7 = vpop.f32.mrf.mxu0 }
  0x90   : > { %599 = vst.msk [vmem:[#allocation3] sm:$0xff] %vm598_vm2, %v490_v7  ;;  %v1415_v7 = vld [vmem:[%s4771_s17 + $0x92] sm:$0xff] }
  0x91   : > { %4366 = vmatmul.msk.f32.gmra.mxu1 %vm360_vm1, %v642_v5  ;;  %4404 = vmatmul.msk.f32.gmra.mxu2 %vm360_vm1, %v1404_v63  ;;  %v651_v5 = vld [vmem:[%s4771_s17 + $0x81] sm:$0xff] }
  0x92   : > { %4442 = vmatmul.msk.f32.gmra.mxu3 %vm360_vm1, %v1406_v6  ;;  %4480 = vmatmul.msk.f32.gmra.mxu0 %vm360_vm1, %v1788_v8 }
  0x94   : > { %v544_v9 = vpop.f32.mrf.mxu2 }
  0x95   : > { %617 = vst.msk [vmem:[#allocation3 + $0x90] sm:$0xff] %vm598_vm2, %v544_v9  ;;  %v571_v10 = vpop.f32.mrf.mxu3  ;;  %v1797_v9 = vld [vmem:[%s4771_s17 + $0x93] sm:$0xff] }
  0x96   : > { %v520_v11 = vpop.f32.mrf.mxu1  ;;  %626 = vst.msk [vmem:[#allocation3 + $0xd8] sm:$0xff] %vm598_vm2, %v571_v10 }
  0x97   : > { %609 = vst.msk [vmem:[#allocation3 + $0x50] sm:$0xff] %vm598_vm2, %v520_v11  ;;  %v493_v14 = vpop.f32.mrf.mxu0  ;;  %v909_v4 = vld [vmem:[#allocation3] sm:$0xff] }
  0x98   : > { %600 = vst.msk [vmem:[#allocation3 + $0x8] sm:$0xff] %vm598_vm2, %v493_v14  ;;  %v652_v14 = vld [vmem:[%s4771_s17 + $0x89] sm:$0xff] }
  0x99   : > { %4367 = vmatmul.msk.f32.gmra.mxu1 %vm360_vm1, %v643_v12  ;;  %4405 = vmatmul.msk.f32.gmra.mxu2 %vm360_vm1, %v1405_v2 }
  0x9a   : > { %4443 = vmatmul.msk.f32.gmra.mxu3 %vm360_vm1, %v1407_v13  ;;  %4481 = vmatmul.msk.f32.gmra.mxu0 %vm360_vm1, %v1789_v15 }
  0x9c   : > { %v547_v16 = vpop.f32.mrf.mxu2 }
  0x9d   : > { %618 = vst.msk [vmem:[#allocation3 + $0x98] sm:$0xff] %vm598_vm2, %v547_v16  ;;  %v574_v17 = vpop.f32.mrf.mxu3  ;;  %v1416_v16 = vld [vmem:[%s4771_s17 + $0x9a] sm:$0xff] }
  0x9e   : > { %v523_v18 = vpop.f32.mrf.mxu1  ;;  %627 = vst.msk [vmem:[#allocation3 + $0xe0] sm:$0xff] %vm598_vm2, %v574_v17 }
  0x9f   : > { %610 = vst.msk [vmem:[#allocation3 + $0x58] sm:$0xff] %vm598_vm2, %v523_v18  ;;  %v496_v21 = vpop.f32.mrf.mxu0 }
  0xa0   : > { %601 = vst.msk [vmem:[#allocation3 + $0x10] sm:$0xff] %vm598_vm2, %v496_v21 }
  0xa1   : > { %4368 = vmatmul.msk.f32.gmra.mxu1 %vm360_vm1, %v644_v19  ;;  %4406 = vmatmul.msk.f32.gmra.mxu2 %vm360_vm1, %v1406_v6 }
  0xa2   : > { %4444 = vmatmul.msk.f32.gmra.mxu3 %vm360_vm1, %v1408_v20  ;;  %4482 = vmatmul.msk.f32.gmra.mxu0 %vm360_vm1, %v1790_v22 }
  0xa4   : > { %v550_v23 = vpop.f32.mrf.mxu2 }
  0xa5   : > { %619 = vst.msk [vmem:[#allocation3 + $0xa0] sm:$0xff] %vm598_vm2, %v550_v23  ;;  %v577_v24 = vpop.f32.mrf.mxu3 }
  0xa6   : > { %v526_v25 = vpop.f32.mrf.mxu1  ;;  %628 = vst.msk [vmem:[#allocation3 + $0xe8] sm:$0xff] %vm598_vm2, %v577_v24 }
  0xa7   : > { %611 = vst.msk [vmem:[#allocation3 + $0x60] sm:$0xff] %vm598_vm2, %v526_v25  ;;  %v499_v28 = vpop.f32.mrf.mxu0  ;;  %v911_v24 = vld [vmem:[#allocation3 + $0x10] sm:$0xff] }
  0xa8   : > { %602 = vst.msk [vmem:[#allocation3 + $0x18] sm:$0xff] %vm598_vm2, %v499_v28  ;;  %v653_v25 = vld [vmem:[%s4771_s17 + $0x91] sm:$0xff] }
  0xa9   : > { %4369 = vmatmul.msk.f32.gmra.mxu1 %vm360_vm1, %v645_v26  ;;  %4407 = vmatmul.msk.f32.gmra.mxu2 %vm360_vm1, %v1407_v13  ;;  %v910_v13 = vld [vmem:[#allocation3 + $0x8] sm:$0xff] }
  0xaa   : > { %4445 = vmatmul.msk.f32.gmra.mxu3 %vm360_vm1, %v1409_v27  ;;  %4483 = vmatmul.msk.f32.gmra.mxu0 %vm360_vm1, %v1791_v29 }
  0xac   : > { %v553_v30 = vpop.f32.mrf.mxu2 }
  0xad   : > { %620 = vst.msk [vmem:[#allocation3 + $0xa8] sm:$0xff] %vm598_vm2, %v553_v30  ;;  %v580_v31 = vpop.f32.mrf.mxu3 }
  0xae   : > { %v529_v32 = vpop.f32.mrf.mxu1  ;;  %629 = vst.msk [vmem:[#allocation3 + $0xf0] sm:$0xff] %vm598_vm2, %v580_v31  ;;  %v1799_v31 = vld [vmem:[%s4771_s17 + $0xa3] sm:$0xff] }
  0xaf   : > { %612 = vst.msk [vmem:[#allocation3 + $0x68] sm:$0xff] %vm598_vm2, %v529_v32  ;;  %v502_v35 = vpop.f32.mrf.mxu0 }
  0xb0   : > { %603 = vst.msk [vmem:[#allocation3 + $0x20] sm:$0xff] %vm598_vm2, %v502_v35 }
  0xb1   : > { %4370 = vmatmul.msk.f32.gmra.mxu1 %vm360_vm1, %v646_v33  ;;  %4408 = vmatmul.msk.f32.gmra.mxu2 %vm360_vm1, %v1408_v20  ;;  %v1798_v20 = vld [vmem:[%s4771_s17 + $0x9b] sm:$0xff] }
  0xb2   : > { %4446 = vmatmul.msk.f32.gmra.mxu3 %vm360_vm1, %v1410_v34  ;;  %4484 = vmatmul.msk.f32.gmra.mxu0 %vm360_vm1, %v1792_v36 }
  0xb4   : > { %v556_v37 = vpop.f32.mrf.mxu2 }
  0xb5   : > { %621 = vst.msk [vmem:[#allocation3 + $0xb0] sm:$0xff] %vm598_vm2, %v556_v37  ;;  %v583_v38 = vpop.f32.mrf.mxu3  ;;  %v912_v37 = vld [vmem:[#allocation3 + $0x18] sm:$0xff] }
  0xb6   : > { %v532_v39 = vpop.f32.mrf.mxu1  ;;  %630 = vst.msk [vmem:[#allocation3 + $0xf8] sm:$0xff] %vm598_vm2, %v583_v38  ;;  %v654_v38 = vld [vmem:[%s4771_s17 + $0x99] sm:$0xff] }
  0xb7   : > { %613 = vst.msk [vmem:[#allocation3 + $0x70] sm:$0xff] %vm598_vm2, %v532_v39  ;;  %v505_v42 = vpop.f32.mrf.mxu0 }
  0xb8   : > { %604 = vst.msk [vmem:[#allocation3 + $0x28] sm:$0xff] %vm598_vm2, %v505_v42 }
  0xb9   : > { %4371 = vmatmul.msk.f32.gmra.mxu1 %vm360_vm1, %v647_v40  ;;  %4409 = vmatmul.msk.f32.gmra.mxu2 %vm360_vm1, %v1409_v27  ;;  %v1417_v27 = vld [vmem:[%s4771_s17 + $0xa2] sm:$0xff]  ;;  %v1418_v40 = vld [vmem:[%s4771_s17 + $0xaa] sm:$0xff] }
  0xba   : > { %4447 = vmatmul.msk.f32.gmra.mxu3 %vm360_vm1, %v1411_v41  ;;  %4485 = vmatmul.msk.f32.gmra.mxu0 %vm360_vm1, %v1793_v43 }
  0xbc   : > { %v559_v44 = vpop.f32.mrf.mxu2 }
  0xbd   : > { %622 = vst.msk [vmem:[#allocation3 + $0xb8] sm:$0xff] %vm598_vm2, %v559_v44  ;;  %v586_v45 = vpop.f32.mrf.mxu3  ;;  %v1800_v44 = vld [vmem:[%s4771_s17 + $0xab] sm:$0xff] }
  0xbe   : > { %v535_v46 = vpop.f32.mrf.mxu1  ;;  %631 = vst.msk [vmem:[#allocation3 + $0x100] sm:$0xff] %vm598_vm2, %v586_v45 }
  0xbf   : > { %614 = vst.msk [vmem:[#allocation3 + $0x78] sm:$0xff] %vm598_vm2, %v535_v46  ;;  %v508_v49 = vpop.f32.mrf.mxu0 }
  0xc0   : > { %605 = vst.msk [vmem:[#allocation3 + $0x30] sm:$0xff] %vm598_vm2, %v508_v49 }
  0xc1   : > { %4372 = vmatmul.msk.f32.gmra.mxu1 %vm360_vm1, %v648_v47  ;;  %4410 = vmatmul.msk.f32.gmra.mxu2 %vm360_vm1, %v1410_v34 }
  0xc2   : > { %4448 = vmatmul.msk.f32.gmra.mxu3 %vm360_vm1, %v1412_v48  ;;  %4486 = vmatmul.msk.f32.gmra.mxu0 %vm360_vm1, %v1794_v50 }
  0xc4   : > { %v562_v51 = vpop.f32.mrf.mxu2 }
  0xc5   : > { %623 = vst.msk [vmem:[#allocation3 + $0xc0] sm:$0xff] %vm598_vm2, %v562_v51  ;;  %v589_v52 = vpop.f32.mrf.mxu3 }
  0xc6   : > { %v538_v53 = vpop.f32.mrf.mxu1  ;;  %632 = vst.msk [vmem:[#allocation3 + $0x108] sm:$0xff] %vm598_vm2, %v589_v52  ;;  %v913_v52 = vld [vmem:[#allocation3 + $0x20] sm:$0xff] }
  0xc7   : > { %615 = vst.msk [vmem:[#allocation3 + $0x80] sm:$0xff] %vm598_vm2, %v538_v53  ;;  %v511_v56 = vpop.f32.mrf.mxu0  ;;  %v655_v53 = vld [vmem:[%s4771_s17 + $0xa1] sm:$0xff] }
  0xc8   : > { %606 = vst.msk [vmem:[#allocation3 + $0x38] sm:$0xff] %vm598_vm2, %v511_v56 }
  0xc9   : > { %4373 = vmatmul.msk.f32.gmra.mxu1 %vm360_vm1, %v649_v54  ;;  %4411 = vmatmul.msk.f32.gmra.mxu2 %vm360_vm1, %v1411_v41 }
  0xca   : > { %4449 = vmatmul.msk.f32.gmra.mxu3 %vm360_vm1, %v1413_v55  ;;  %4487 = vmatmul.msk.f32.gmra.mxu0 %vm360_vm1, %v1795_v57 }
  0xcc   : > { %v565_v58 = vpop.f32.mrf.mxu2 }
  0xcd   : > { %624 = vst.msk [vmem:[#allocation3 + $0xc8] sm:$0xff] %vm598_vm2, %v565_v58  ;;  %v592_v59 = vpop.f32.mrf.mxu3 }
  0xce   : > { %v541_v60 = vpop.f32.mrf.mxu1  ;;  %633 = vst.msk [vmem:[#allocation3 + $0x110] sm:$0xff] %vm598_vm2, %v592_v59  ;;  %v1801_v59 = vld [vmem:[%s4771_s17 + $0xb3] sm:$0xff] }
  0xcf   : > { %616 = vst.msk [vmem:[#allocation3 + $0x88] sm:$0xff] %vm598_vm2, %v541_v60  ;;  %v514_v63 = vpop.f32.mrf.mxu0 }
  0xd0   : > { %607 = vst.msk [vmem:[#allocation3 + $0x40] sm:$0xff] %vm598_vm2, %v514_v63 }
  0xd1   : > { %4374 = vmatmul.msk.f32.gmra.mxu1 %vm360_vm1, %v650_v61  ;;  %4412 = vmatmul.msk.f32.gmra.mxu2 %vm360_vm1, %v1412_v48 }
  0xd2   : > { %4450 = vmatmul.msk.f32.gmra.mxu3 %vm360_vm1, %v1414_v62  ;;  %4488 = vmatmul.msk.f32.gmra.mxu0 %vm360_vm1, %v1796_v0 }
  0xd4   : > { %v568_v1 = vpop.f32.mrf.mxu2 }
  0xd5   : > { %625 = vst.msk [vmem:[#allocation3 + $0xd0] sm:$0xff] %vm598_vm2, %v568_v1  ;;  %v595_v2 = vpop.f32.mrf.mxu3 }
  0xd6   : > { %v801_v3 = vpop.f32.mrf.mxu1  ;;  %634 = vst.msk [vmem:[#allocation3 + $0x118] sm:$0xff] %vm598_vm2, %v595_v2 }
  0xd7   : > { %v945_v6 = vadd.f32 %v909_v4, %v801_v3  ;;  %v5016_v8 = vpop.f32.mrf.mxu0  ;;  %v914_v3 = vld [vmem:[#allocation3 + $0x28] sm:$0xff] }
  0xd8   : > { %v656_v4 = vld [vmem:[%s4771_s17 + $0xa9] sm:$0xff] }
  0xd9   : > { %981 = vst.msk [vmem:[#allocation3] sm:$0xff] %vm598_vm2, %v945_v6  ;;  %4375 = vmatmul.msk.f32.gmra.mxu1 %vm360_vm1, %v651_v5  ;;  %4413 = vmatmul.msk.f32.gmra.mxu2 %vm360_vm1, %v1413_v55  ;;  %v1419_v55 = vld [vmem:[%s4771_s17 + $0xb2] sm:$0xff]  ;;  %v1420_v6 = vld [vmem:[%s4771_s17 + $0xba] sm:$0xff] }
  0xda   : > { %4451 = vmatmul.msk.f32.gmra.mxu3 %vm360_vm1, %v1415_v7  ;;  %4489 = vmatmul.msk.f32.gmra.mxu0 %vm360_vm1, %v1797_v9 }
  0xdc   : > { %v1183_v10 = vpop.f32.mrf.mxu2 }
  0xdd   : > { %v1565_v11 = vpop.f32.mrf.mxu3 }
  0xde   : > { %v804_v12 = vpop.f32.mrf.mxu1 }
  0xdf   : > { %v946_v15 = vadd.f32 %v910_v13, %v804_v12  ;;  %v5026_v19 = vpop.f32.mrf.mxu0 }
  0xe0   : > { %v1291_v17 = vld [vmem:[#allocation3] sm:$0xff] }
  0xe1   : > { %982 = vst.msk [vmem:[#allocation3 + $0x8] sm:$0xff] %vm598_vm2, %v946_v15  ;;  %v1327_v18 = vadd.f32 %v1291_v17, %v1183_v10  ;;  %4376 = vmatmul.msk.f32.gmra.mxu1 %vm360_vm1, %v652_v14  ;;  %4414 = vmatmul.msk.f32.gmra.mxu2 %vm360_vm1, %v1414_v62  ;;  %v1802_v10 = vld [vmem:[%s4771_s17 + $0xbb] sm:$0xff] }
  0xe2   : > { %4452 = vmatmul.msk.f32.gmra.mxu3 %vm360_vm1, %v1416_v16  ;;  %4490 = vmatmul.msk.f32.gmra.mxu0 %vm360_vm1, %v1798_v20 }
  0xe3   : > { %1363 = vst.msk [vmem:[#allocation3] sm:$0xff] %vm598_vm2, %v1327_v18  ;;  %v915_v18 = vld [vmem:[#allocation3 + $0x30] sm:$0xff] }
  0xe4   : > { %v1186_v21 = vpop.f32.mrf.mxu2 }
  0xe5   : > { %v1568_v22 = vpop.f32.mrf.mxu3 }
  0xe6   : > { %v807_v23 = vpop.f32.mrf.mxu1 }
  0xe7   : > { %v947_v26 = vadd.f32 %v911_v24, %v807_v23  ;;  %v5037_v30 = vpop.f32.mrf.mxu0 }
  0xe8   : > { %v1292_v28 = vld [vmem:[#allocation3 + $0x8] sm:$0xff] }
  0xe9   : > { %983 = vst.msk [vmem:[#allocation3 + $0x10] sm:$0xff] %vm598_vm2, %v947_v26  ;;  %v1328_v29 = vadd.f32 %v1292_v28, %v1186_v21  ;;  %4377 = vmatmul.msk.f32.gmra.mxu1 %vm360_vm1, %v653_v25  ;;  %4415 = vmatmul.msk.f32.gmra.mxu2 %vm360_vm1, %v1415_v7  ;;  %v1421_v21 = vld [vmem:[%s4771_s17 + $0xc2] sm:$0xff] }
  0xea   : > { %v1673_v32 = vld [vmem:[#allocation3] sm:$0xff]  ;;  %4453 = vmatmul.msk.f32.gmra.mxu3 %vm360_vm1, %v1417_v27  ;;  %4491 = vmatmul.msk.f32.gmra.mxu0 %vm360_vm1, %v1799_v31 }
  0xeb   : > { %1364 = vst.msk [vmem:[#allocation3 + $0x8] sm:$0xff] %vm598_vm2, %v1328_v29  ;;  %v1709_v33 = vadd.f32 %v1673_v32, %v1565_v11  ;;  %v1803_v25 = vld [vmem:[%s4771_s17 + $0xc3] sm:$0xff] }
  0xec   : > { %v1189_v34 = vpop.f32.mrf.mxu2 }
  0xed   : > { %1745 = vst.msk [vmem:[#allocation3] sm:$0xff] %vm598_vm2, %v1709_v33  ;;  %v1571_v35 = vpop.f32.mrf.mxu3  ;;  %v916_v33 = vld [vmem:[#allocation3 + $0x38] sm:$0xff] }
  0xee   : > { %v810_v36 = vpop.f32.mrf.mxu1 }
  0xef   : > { %v948_v39 = vadd.f32 %v912_v37, %v810_v36  ;;  %v5049_v43 = vpop.f32.mrf.mxu0  ;;  %v1422_v36 = vld [vmem:[%s4771_s17 + $0xca] sm:$0xff] }
  0xf0   : > { %v1293_v41 = vld [vmem:[#allocation3 + $0x10] sm:$0xff] }
  0xf1   : > { %984 = vst.msk [vmem:[#allocation3 + $0x18] sm:$0xff] %vm598_vm2, %v948_v39  ;;  %v1329_v42 = vadd.f32 %v1293_v41, %v1189_v34  ;;  %4378 = vmatmul.msk.f32.gmra.mxu1 %vm360_vm1, %v654_v38  ;;  %4416 = vmatmul.msk.f32.gmra.mxu2 %vm360_vm1, %v1416_v16  ;;  %v658_v34 = vld [vmem:[%s4771_s17 + $0xb9] sm:$0xff] }
  0xf2   : > { %v1674_v45 = vld [vmem:[#allocation3 + $0x8] sm:$0xff]  ;;  %4454 = vmatmul.msk.f32.gmra.mxu3 %vm360_vm1, %v1418_v40  ;;  %4492 = vmatmul.msk.f32.gmra.mxu0 %vm360_vm1, %v1800_v44 }
  0xf3   : > { %1365 = vst.msk [vmem:[#allocation3 + $0x10] sm:$0xff] %vm598_vm2, %v1329_v42  ;;  %v1710_v46 = vadd.f32 %v1674_v45, %v1568_v22 }
  0xf4   : > { %v2055_v47 = vld [vmem:[#allocation3] sm:$0xff]  ;;  %v1192_v48 = vpop.f32.mrf.mxu2 }
  0xf5   : > { %1746 = vst.msk [vmem:[#allocation3 + $0x8] sm:$0xff] %vm598_vm2, %v1710_v46  ;;  %v2091_v49 = vadd.f32 %v2055_v47, %v5016_v8  ;;  %v1574_v50 = vpop.f32.mrf.mxu3 }
  0xf6   : > { %v813_v51 = vpop.f32.mrf.mxu1 }
  0xf7   : > { %2127 = vst.msk [vmem:[#allocation3] sm:$0xff] %vm598_vm2, %v2091_v49  ;;  %v949_v54 = vadd.f32 %v913_v52, %v813_v51  ;;  %v5063_v58 = vpop.f32.mrf.mxu0  ;;  %v659_v49 = vld [vmem:[%s4771_s17 + $0xc1] sm:$0xff]  ;;  %v1423_v51 = vld [vmem:[%s4771_s17 + $0xd2] sm:$0xff] }
  0xf8   : > { %v1294_v56 = vld [vmem:[#allocation3 + $0x18] sm:$0xff] }
  0xf9   : > { %985 = vst.msk [vmem:[#allocation3 + $0x20] sm:$0xff] %vm598_vm2, %v949_v54  ;;  %v1330_v57 = vadd.f32 %v1294_v56, %v1192_v48  ;;  %4379 = vmatmul.msk.f32.gmra.mxu1 %vm360_vm1, %v655_v53  ;;  %4417 = vmatmul.msk.f32.gmra.mxu2 %vm360_vm1, %v1417_v27  ;;  %v917_v48 = vld [vmem:[#allocation3 + $0x40] sm:$0xff] }
  0xfa   : > { %v1675_v60 = vld [vmem:[#allocation3 + $0x10] sm:$0xff]  ;;  %4455 = vmatmul.msk.f32.gmra.mxu3 %vm360_vm1, %v1419_v55  ;;  %4493 = vmatmul.msk.f32.gmra.mxu0 %vm360_vm1, %v1801_v59 }
  0xfb   : > { %1366 = vst.msk [vmem:[#allocation3 + $0x18] sm:$0xff] %vm598_vm2, %v1330_v57  ;;  %v1711_v61 = vadd.f32 %v1675_v60, %v1571_v35 }
  0xfc   : > { %v2056_v62 = vld [vmem:[#allocation3 + $0x8] sm:$0xff]  ;;  %v1195_v63 = vpop.f32.mrf.mxu2 }
  0xfd   : > { %1747 = vst.msk [vmem:[#allocation3 + $0x10] sm:$0xff] %vm598_vm2, %v1711_v61  ;;  %v2092_v0 = vadd.f32 %v2056_v62, %v5026_v19  ;;  %v1577_v1 = vpop.f32.mrf.mxu3  ;;  %v657_v19 = vld [vmem:[%s4771_s17 + $0xb1] sm:$0xff] }
  0xfe   : > { %v816_v2 = vpop.f32.mrf.mxu1 }
  0xff   : > { %2128 = vst.msk [vmem:[#allocation3 + $0x8] sm:$0xff] %vm598_vm2, %v2092_v0  ;;  %v950_v5 = vadd.f32 %v914_v3, %v816_v2  ;;  %v5077_v9 = vpop.f32.mrf.mxu0  ;;  %v660_v0 = vld [vmem:[%s4771_s17 + $0xc9] sm:$0xff]  ;;  %v1424_v2 = vld [vmem:[%s4771_s17 + $0xda] sm:$0xff] }
 0x100   : > { %v1295_v7 = vld [vmem:[#allocation3 + $0x20] sm:$0xff] }
 0x101   : > { %986 = vst.msk [vmem:[#allocation3 + $0x28] sm:$0xff] %vm598_vm2, %v950_v5  ;;  %v1331_v8 = vadd.f32 %v1295_v7, %v1195_v63  ;;  %4380 = vmatmul.msk.f32.gmra.mxu1 %vm360_vm1, %v656_v4  ;;  %4418 = vmatmul.msk.f32.gmra.mxu2 %vm360_vm1, %v1418_v40  ;;  %v1804_v40 = vld [vmem:[%s4771_s17 + $0xcb] sm:$0xff] }
 0x102   : > { %v1676_v11 = vld [vmem:[#allocation3 + $0x18] sm:$0xff]  ;;  %4456 = vmatmul.msk.f32.gmra.mxu3 %vm360_vm1, %v1420_v6  ;;  %4494 = vmatmul.msk.f32.gmra.mxu0 %vm360_vm1, %v1802_v10  ;;  %v918_v63 = vld [vmem:[#allocation3 + $0x48] sm:$0xff] }
 0x103   : > { %1367 = vst.msk [vmem:[#allocation3 + $0x20] sm:$0xff] %vm598_vm2, %v1331_v8  ;;  %v1712_v12 = vadd.f32 %v1676_v11, %v1574_v50 }
 0x104   : > { %v2057_v13 = vld [vmem:[#allocation3 + $0x10] sm:$0xff]  ;;  %v1198_v14 = vpop.f32.mrf.mxu2 }
 0x105   : > { %1748 = vst.msk [vmem:[#allocation3 + $0x18] sm:$0xff] %vm598_vm2, %v1712_v12  ;;  %v2093_v15 = vadd.f32 %v2057_v13, %v5037_v30  ;;  %v1580_v16 = vpop.f32.mrf.mxu3 }
 0x106   : > { %v819_v17 = vpop.f32.mrf.mxu1 }
 0x107   : > { %2129 = vst.msk [vmem:[#allocation3 + $0x10] sm:$0xff] %vm598_vm2, %v2093_v15  ;;  %v951_v20 = vadd.f32 %v915_v18, %v819_v17  ;;  %v5091_v24 = vpop.f32.mrf.mxu0  ;;  %v661_v15 = vld [vmem:[%s4771_s17 + $0xd1] sm:$0xff]  ;;  %v1425_v17 = vld [vmem:[%s4771_s17 + $0xe2] sm:$0xff] }
 0x108   : > { %v1296_v22 = vld [vmem:[#allocation3 + $0x28] sm:$0xff] }
 0x109   : > { %987 = vst.msk [vmem:[#allocation3 + $0x30] sm:$0xff] %vm598_vm2, %v951_v20  ;;  %v1332_v23 = vadd.f32 %v1296_v22, %v1198_v14  ;;  %4381 = vmatmul.msk.f32.gmra.mxu1 %vm360_vm1, %v657_v19  ;;  %4419 = vmatmul.msk.f32.gmra.mxu2 %vm360_vm1, %v1419_v55  ;;  %v1805_v55 = vld [vmem:[%s4771_s17 + $0xd3] sm:$0xff] }
 0x10a   : > { %v1677_v26 = vld [vmem:[#allocation3 + $0x20] sm:$0xff]  ;;  %4457 = vmatmul.msk.f32.gmra.mxu3 %vm360_vm1, %v1421_v21  ;;  %4495 = vmatmul.msk.f32.gmra.mxu0 %vm360_vm1, %v1803_v25  ;;  %v919_v14 = vld [vmem:[#allocation3 + $0x50] sm:$0xff] }
 0x10b   : > { %1368 = vst.msk [vmem:[#allocation3 + $0x28] sm:$0xff] %vm598_vm2, %v1332_v23  ;;  %v1713_v27 = vadd.f32 %v1677_v26, %v1577_v1 }
 0x10c   : > { %v2058_v28 = vld [vmem:[#allocation3 + $0x18] sm:$0xff]  ;;  %v1201_v29 = vpop.f32.mrf.mxu2 }
 0x10d   : > { %1749 = vst.msk [vmem:[#allocation3 + $0x20] sm:$0xff] %vm598_vm2, %v1713_v27  ;;  %v2094_v30 = vadd.f32 %v2058_v28, %v5049_v43  ;;  %v1583_v31 = vpop.f32.mrf.mxu3 }
 0x10e   : > { %v822_v32 = vpop.f32.mrf.mxu1 }
 0x10f   : > { %2130 = vst.msk [vmem:[#allocation3 + $0x18] sm:$0xff] %vm598_vm2, %v2094_v30  ;;  %v952_v35 = vadd.f32 %v916_v33, %v822_v32  ;;  %v5105_v39 = vpop.f32.mrf.mxu0  ;;  %v662_v30 = vld [vmem:[%s4771_s17 + $0xd9] sm:$0xff]  ;;  %v1426_v32 = vld [vmem:[%s4771_s17 + $0xea] sm:$0xff] }
 0x110   : > { %v1297_v37 = vld [vmem:[#allocation3 + $0x30] sm:$0xff] }
 0x111   : > { %988 = vst.msk [vmem:[#allocation3 + $0x38] sm:$0xff] %vm598_vm2, %v952_v35  ;;  %v1333_v38 = vadd.f32 %v1297_v37, %v1201_v29  ;;  %4382 = vmatmul.msk.f32.gmra.mxu1 %vm360_vm1, %v658_v34  ;;  %4420 = vmatmul.msk.f32.gmra.mxu2 %vm360_vm1, %v1420_v6  ;;  %v1806_v6 = vld [vmem:[%s4771_s17 + $0xdb] sm:$0xff] }
 0x112   : > { %v1678_v41 = vld [vmem:[#allocation3 + $0x28] sm:$0xff]  ;;  %4458 = vmatmul.msk.f32.gmra.mxu3 %vm360_vm1, %v1422_v36  ;;  %4496 = vmatmul.msk.f32.gmra.mxu0 %vm360_vm1, %v1804_v40  ;;  %v920_v29 = vld [vmem:[#allocation3 + $0x58] sm:$0xff] }
 0x113   : > { %1369 = vst.msk [vmem:[#allocation3 + $0x30] sm:$0xff] %vm598_vm2, %v1333_v38  ;;  %v1714_v42 = vadd.f32 %v1678_v41, %v1580_v16 }
 0x114   : > { %v2059_v43 = vld [vmem:[#allocation3 + $0x20] sm:$0xff]  ;;  %v1204_v44 = vpop.f32.mrf.mxu2 }
 0x115   : > { %1750 = vst.msk [vmem:[#allocation3 + $0x28] sm:$0xff] %vm598_vm2, %v1714_v42  ;;  %v2095_v45 = vadd.f32 %v2059_v43, %v5063_v58  ;;  %v1586_v46 = vpop.f32.mrf.mxu3 }
 0x116   : > { %v825_v47 = vpop.f32.mrf.mxu1 }
 0x117   : > { %2131 = vst.msk [vmem:[#allocation3 + $0x20] sm:$0xff] %vm598_vm2, %v2095_v45  ;;  %v953_v50 = vadd.f32 %v917_v48, %v825_v47  ;;  %v5119_v54 = vpop.f32.mrf.mxu0  ;;  %v663_v45 = vld [vmem:[%s4771_s17 + $0xe1] sm:$0xff]  ;;  %v1427_v47 = vld [vmem:[%s4771_s17 + $0xf2] sm:$0xff] }
 0x118   : > { %v1298_v52 = vld [vmem:[#allocation3 + $0x38] sm:$0xff] }
 0x119   : > { %989 = vst.msk [vmem:[#allocation3 + $0x40] sm:$0xff] %vm598_vm2, %v953_v50  ;;  %v1334_v53 = vadd.f32 %v1298_v52, %v1204_v44  ;;  %4383 = vmatmul.msk.f32.gmra.mxu1 %vm360_vm1, %v659_v49  ;;  %4421 = vmatmul.msk.f32.gmra.mxu2 %vm360_vm1, %v1421_v21  ;;  %v1807_v21 = vld [vmem:[%s4771_s17 + $0xe3] sm:$0xff] }
 0x11a   : > { %v1679_v56 = vld [vmem:[#allocation3 + $0x30] sm:$0xff]  ;;  %4459 = vmatmul.msk.f32.gmra.mxu3 %vm360_vm1, %v1423_v51  ;;  %4497 = vmatmul.msk.f32.gmra.mxu0 %vm360_vm1, %v1805_v55  ;;  %v921_v44 = vld [vmem:[#allocation3 + $0x60] sm:$0xff] }
 0x11b   : > { %1370 = vst.msk [vmem:[#allocation3 + $0x38] sm:$0xff] %vm598_vm2, %v1334_v53  ;;  %v1715_v57 = vadd.f32 %v1679_v56, %v1583_v31 }
 0x11c   : > { %v2060_v58 = vld [vmem:[#allocation3 + $0x28] sm:$0xff]  ;;  %v1207_v59 = vpop.f32.mrf.mxu2 }
 0x11d   : > { %1751 = vst.msk [vmem:[#allocation3 + $0x30] sm:$0xff] %vm598_vm2, %v1715_v57  ;;  %v2096_v60 = vadd.f32 %v2060_v58, %v5077_v9  ;;  %v1589_v61 = vpop.f32.mrf.mxu3 }
 0x11e   : > { %v828_v62 = vpop.f32.mrf.mxu1 }
 0x11f   : > { %2132 = vst.msk [vmem:[#allocation3 + $0x28] sm:$0xff] %vm598_vm2, %v2096_v60  ;;  %v954_v1 = vadd.f32 %v918_v63, %v828_v62  ;;  %v5133_v5 = vpop.f32.mrf.mxu0  ;;  %v664_v60 = vld [vmem:[%s4771_s17 + $0xe9] sm:$0xff]  ;;  %v1428_v62 = vld [vmem:[%s4771_s17 + $0xfa] sm:$0xff] }
 0x120   : > { %v1299_v3 = vld [vmem:[#allocation3 + $0x40] sm:$0xff] }
 0x121   : > { %990 = vst.msk [vmem:[#allocation3 + $0x48] sm:$0xff] %vm598_vm2, %v954_v1  ;;  %v1335_v4 = vadd.f32 %v1299_v3, %v1207_v59  ;;  %4384 = vmatmul.msk.f32.gmra.mxu1 %vm360_vm1, %v660_v0  ;;  %4422 = vmatmul.msk.f32.gmra.mxu2 %vm360_vm1, %v1422_v36  ;;  %v1808_v36 = vld [vmem:[%s4771_s17 + $0xeb] sm:$0xff] }
 0x122   : > { %v1680_v7 = vld [vmem:[#allocation3 + $0x38] sm:$0xff]  ;;  %4460 = vmatmul.msk.f32.gmra.mxu3 %vm360_vm1, %v1424_v2  ;;  %4498 = vmatmul.msk.f32.gmra.mxu0 %vm360_vm1, %v1806_v6  ;;  %v922_v59 = vld [vmem:[#allocation3 + $0x68] sm:$0xff] }
 0x123   : > { %1371 = vst.msk [vmem:[#allocation3 + $0x40] sm:$0xff] %vm598_vm2, %v1335_v4  ;;  %v1716_v8 = vadd.f32 %v1680_v7, %v1586_v46 }
 0x124   : > { %v2061_v9 = vld [vmem:[#allocation3 + $0x30] sm:$0xff]  ;;  %v1210_v10 = vpop.f32.mrf.mxu2 }
 0x125   : > { %1752 = vst.msk [vmem:[#allocation3 + $0x38] sm:$0xff] %vm598_vm2, %v1716_v8  ;;  %v2097_v11 = vadd.f32 %v2061_v9, %v5091_v24  ;;  %v1592_v12 = vpop.f32.mrf.mxu3 }
 0x126   : > { %v831_v13 = vpop.f32.mrf.mxu1 }
 0x127   : > { %2133 = vst.msk [vmem:[#allocation3 + $0x30] sm:$0xff] %vm598_vm2, %v2097_v11  ;;  %v955_v16 = vadd.f32 %v919_v14, %v831_v13  ;;  %v5147_v20 = vpop.f32.mrf.mxu0  ;;  %v665_v11 = vld [vmem:[%s4771_s17 + $0xf1] sm:$0xff]  ;;  %v1429_v13 = vld [vmem:[%s4771_s17 + $0x102] sm:$0xff] }
 0x128   : > { %v1300_v18 = vld [vmem:[#allocation3 + $0x48] sm:$0xff] }
 0x129   : > { %991 = vst.msk [vmem:[#allocation3 + $0x50] sm:$0xff] %vm598_vm2, %v955_v16  ;;  %v1336_v19 = vadd.f32 %v1300_v18, %v1210_v10  ;;  %4385 = vmatmul.msk.f32.gmra.mxu1 %vm360_vm1, %v661_v15  ;;  %4423 = vmatmul.msk.f32.gmra.mxu2 %vm360_vm1, %v1423_v51  ;;  %v1809_v51 = vld [vmem:[%s4771_s17 + $0xf3] sm:$0xff] }
 0x12a   : > { %v1681_v22 = vld [vmem:[#allocation3 + $0x40] sm:$0xff]  ;;  %4461 = vmatmul.msk.f32.gmra.mxu3 %vm360_vm1, %v1425_v17  ;;  %4499 = vmatmul.msk.f32.gmra.mxu0 %vm360_vm1, %v1807_v21  ;;  %v923_v10 = vld [vmem:[#allocation3 + $0x70] sm:$0xff] }
 0x12b   : > { %1372 = vst.msk [vmem:[#allocation3 + $0x48] sm:$0xff] %vm598_vm2, %v1336_v19  ;;  %v1717_v23 = vadd.f32 %v1681_v22, %v1589_v61 }
 0x12c   : > { %v2062_v24 = vld [vmem:[#allocation3 + $0x38] sm:$0xff]  ;;  %v1213_v25 = vpop.f32.mrf.mxu2 }
 0x12d   : > { %1753 = vst.msk [vmem:[#allocation3 + $0x40] sm:$0xff] %vm598_vm2, %v1717_v23  ;;  %v2098_v26 = vadd.f32 %v2062_v24, %v5105_v39  ;;  %v1595_v27 = vpop.f32.mrf.mxu3 }
 0x12e   : > { %v834_v28 = vpop.f32.mrf.mxu1 }
 0x12f   : > { %2134 = vst.msk [vmem:[#allocation3 + $0x38] sm:$0xff] %vm598_vm2, %v2098_v26  ;;  %v956_v31 = vadd.f32 %v920_v29, %v834_v28  ;;  %v5161_v35 = vpop.f32.mrf.mxu0  ;;  %v666_v26 = vld [vmem:[%s4771_s17 + $0xf9] sm:$0xff]  ;;  %v1430_v28 = vld [vmem:[%s4771_s17 + $0x10a] sm:$0xff] }
 0x130   : > { %v1301_v33 = vld [vmem:[#allocation3 + $0x50] sm:$0xff] }
 0x131   : > { %992 = vst.msk [vmem:[#allocation3 + $0x58] sm:$0xff] %vm598_vm2, %v956_v31  ;;  %v1337_v34 = vadd.f32 %v1301_v33, %v1213_v25  ;;  %4386 = vmatmul.msk.f32.gmra.mxu1 %vm360_vm1, %v662_v30  ;;  %4424 = vmatmul.msk.f32.gmra.mxu2 %vm360_vm1, %v1424_v2  ;;  %v1810_v2 = vld [vmem:[%s4771_s17 + $0xfb] sm:$0xff] }
 0x132   : > { %v1682_v37 = vld [vmem:[#allocation3 + $0x48] sm:$0xff]  ;;  %4462 = vmatmul.msk.f32.gmra.mxu3 %vm360_vm1, %v1426_v32  ;;  %4500 = vmatmul.msk.f32.gmra.mxu0 %vm360_vm1, %v1808_v36  ;;  %v924_v25 = vld [vmem:[#allocation3 + $0x78] sm:$0xff] }
 0x133   : > { %1373 = vst.msk [vmem:[#allocation3 + $0x50] sm:$0xff] %vm598_vm2, %v1337_v34  ;;  %v1718_v38 = vadd.f32 %v1682_v37, %v1592_v12 }
 0x134   : > { %v2063_v39 = vld [vmem:[#allocation3 + $0x40] sm:$0xff]  ;;  %v1216_v40 = vpop.f32.mrf.mxu2 }
 0x135   : > { %1754 = vst.msk [vmem:[#allocation3 + $0x48] sm:$0xff] %vm598_vm2, %v1718_v38  ;;  %v2099_v41 = vadd.f32 %v2063_v39, %v5119_v54  ;;  %v1598_v42 = vpop.f32.mrf.mxu3 }
 0x136   : > { %v837_v43 = vpop.f32.mrf.mxu1 }
 0x137   : > { %2135 = vst.msk [vmem:[#allocation3 + $0x40] sm:$0xff] %vm598_vm2, %v2099_v41  ;;  %v957_v46 = vadd.f32 %v921_v44, %v837_v43  ;;  %v5175_v50 = vpop.f32.mrf.mxu0  ;;  %v667_v41 = vld [vmem:[%s4771_s17 + $0x101] sm:$0xff]  ;;  %v1431_v43 = vld [vmem:[%s4771_s17 + $0x112] sm:$0xff] }
 0x138   : > { %v1302_v48 = vld [vmem:[#allocation3 + $0x58] sm:$0xff] }
 0x139   : > { %993 = vst.msk [vmem:[#allocation3 + $0x60] sm:$0xff] %vm598_vm2, %v957_v46  ;;  %v1338_v49 = vadd.f32 %v1302_v48, %v1216_v40  ;;  %4387 = vmatmul.msk.f32.gmra.mxu1 %vm360_vm1, %v663_v45  ;;  %4425 = vmatmul.msk.f32.gmra.mxu2 %vm360_vm1, %v1425_v17  ;;  %v1811_v17 = vld [vmem:[%s4771_s17 + $0x103] sm:$0xff] }
 0x13a   : > { %v1683_v52 = vld [vmem:[#allocation3 + $0x50] sm:$0xff]  ;;  %4463 = vmatmul.msk.f32.gmra.mxu3 %vm360_vm1, %v1427_v47  ;;  %4501 = vmatmul.msk.f32.gmra.mxu0 %vm360_vm1, %v1809_v51  ;;  %v925_v40 = vld [vmem:[#allocation3 + $0x80] sm:$0xff] }
 0x13b   : > { %1374 = vst.msk [vmem:[#allocation3 + $0x58] sm:$0xff] %vm598_vm2, %v1338_v49  ;;  %v1719_v53 = vadd.f32 %v1683_v52, %v1595_v27 }
 0x13c   : > { %v2064_v54 = vld [vmem:[#allocation3 + $0x48] sm:$0xff]  ;;  %v1219_v55 = vpop.f32.mrf.mxu2 }
 0x13d   : > { %1755 = vst.msk [vmem:[#allocation3 + $0x50] sm:$0xff] %vm598_vm2, %v1719_v53  ;;  %v2100_v56 = vadd.f32 %v2064_v54, %v5133_v5  ;;  %v1601_v57 = vpop.f32.mrf.mxu3 }
 0x13e   : > { %v840_v58 = vpop.f32.mrf.mxu1 }
 0x13f   : > { %2136 = vst.msk [vmem:[#allocation3 + $0x48] sm:$0xff] %vm598_vm2, %v2100_v56  ;;  %v958_v61 = vadd.f32 %v922_v59, %v840_v58  ;;  %v5189_v1 = vpop.f32.mrf.mxu0  ;;  %v668_v56 = vld [vmem:[%s4771_s17 + $0x109] sm:$0xff]  ;;  %v1432_v58 = vld [vmem:[%s4771_s17 + $0x11a] sm:$0xff] }
 0x140   : > { %v1303_v63 = vld [vmem:[#allocation3 + $0x60] sm:$0xff] }
 0x141   : > { %994 = vst.msk [vmem:[#allocation3 + $0x68] sm:$0xff] %vm598_vm2, %v958_v61  ;;  %v1339_v0 = vadd.f32 %v1303_v63, %v1219_v55  ;;  %4388 = vmatmul.msk.f32.gmra.mxu1 %vm360_vm1, %v664_v60  ;;  %4426 = vmatmul.msk.f32.gmra.mxu2 %vm360_vm1, %v1426_v32  ;;  %v1812_v32 = vld [vmem:[%s4771_s17 + $0x10b] sm:$0xff] }
 0x142   : > { %v1684_v3 = vld [vmem:[#allocation3 + $0x58] sm:$0xff]  ;;  %4464 = vmatmul.msk.f32.gmra.mxu3 %vm360_vm1, %v1428_v62  ;;  %4502 = vmatmul.msk.f32.gmra.mxu0 %vm360_vm1, %v1810_v2  ;;  %v926_v55 = vld [vmem:[#allocation3 + $0x88] sm:$0xff] }
 0x143   : > { %1375 = vst.msk [vmem:[#allocation3 + $0x60] sm:$0xff] %vm598_vm2, %v1339_v0  ;;  %v1720_v4 = vadd.f32 %v1684_v3, %v1598_v42 }
 0x144   : > { %v2065_v5 = vld [vmem:[#allocation3 + $0x50] sm:$0xff]  ;;  %v1222_v6 = vpop.f32.mrf.mxu2 }
 0x145   : > { %1756 = vst.msk [vmem:[#allocation3 + $0x58] sm:$0xff] %vm598_vm2, %v1720_v4  ;;  %v2101_v7 = vadd.f32 %v2065_v5, %v5147_v20  ;;  %v1604_v8 = vpop.f32.mrf.mxu3 }
 0x146   : > { %v843_v9 = vpop.f32.mrf.mxu1 }
 0x147   : > { %2137 = vst.msk [vmem:[#allocation3 + $0x50] sm:$0xff] %vm598_vm2, %v2101_v7  ;;  %v959_v12 = vadd.f32 %v923_v10, %v843_v9  ;;  %v5203_v16 = vpop.f32.mrf.mxu0  ;;  %v669_v7 = vld [vmem:[%s4771_s17 + $0x111] sm:$0xff]  ;;  %v1433_v9 = vld [vmem:[%s4771_s17 + $0x122] sm:$0xff] }
 0x148   : > { %v1304_v14 = vld [vmem:[#allocation3 + $0x68] sm:$0xff] }
 0x149   : > { %995 = vst.msk [vmem:[#allocation3 + $0x70] sm:$0xff] %vm598_vm2, %v959_v12  ;;  %v1340_v15 = vadd.f32 %v1304_v14, %v1222_v6  ;;  %4389 = vmatmul.msk.f32.gmra.mxu1 %vm360_vm1, %v665_v11  ;;  %4427 = vmatmul.msk.f32.gmra.mxu2 %vm360_vm1, %v1427_v47  ;;  %v1813_v47 = vld [vmem:[%s4771_s17 + $0x113] sm:$0xff] }
 0x14a   : > { %v1685_v18 = vld [vmem:[#allocation3 + $0x60] sm:$0xff]  ;;  %4465 = vmatmul.msk.f32.gmra.mxu3 %vm360_vm1, %v1429_v13  ;;  %4503 = vmatmul.msk.f32.gmra.mxu0 %vm360_vm1, %v1811_v17  ;;  %v927_v6 = vld [vmem:[#allocation3 + $0x90] sm:$0xff] }
 0x14b   : > { %1376 = vst.msk [vmem:[#allocation3 + $0x68] sm:$0xff] %vm598_vm2, %v1340_v15  ;;  %v1721_v19 = vadd.f32 %v1685_v18, %v1601_v57 }
 0x14c   : > { %v2066_v20 = vld [vmem:[#allocation3 + $0x58] sm:$0xff]  ;;  %v1225_v21 = vpop.f32.mrf.mxu2 }
 0x14d   : > { %1757 = vst.msk [vmem:[#allocation3 + $0x60] sm:$0xff] %vm598_vm2, %v1721_v19  ;;  %v2102_v22 = vadd.f32 %v2066_v20, %v5161_v35  ;;  %v1607_v23 = vpop.f32.mrf.mxu3 }
 0x14e   : > { %v846_v24 = vpop.f32.mrf.mxu1 }
 0x14f   : > { %2138 = vst.msk [vmem:[#allocation3 + $0x58] sm:$0xff] %vm598_vm2, %v2102_v22  ;;  %v960_v27 = vadd.f32 %v924_v25, %v846_v24  ;;  %v5217_v31 = vpop.f32.mrf.mxu0  ;;  %v670_v22 = vld [vmem:[%s4771_s17 + $0x119] sm:$0xff]  ;;  %v1434_v24 = vld [vmem:[%s4771_s17 + $0x12a] sm:$0xff] }
 0x150   : > { %v1305_v29 = vld [vmem:[#allocation3 + $0x70] sm:$0xff] }
 0x151   : > { %996 = vst.msk [vmem:[#allocation3 + $0x78] sm:$0xff] %vm598_vm2, %v960_v27  ;;  %v1341_v30 = vadd.f32 %v1305_v29, %v1225_v21  ;;  %4390 = vmatmul.msk.f32.gmra.mxu1 %vm360_vm1, %v666_v26  ;;  %4428 = vmatmul.msk.f32.gmra.mxu2 %vm360_vm1, %v1428_v62  ;;  %v1814_v62 = vld [vmem:[%s4771_s17 + $0x11b] sm:$0xff] }
 0x152   : > { %v1686_v33 = vld [vmem:[#allocation3 + $0x68] sm:$0xff]  ;;  %4466 = vmatmul.msk.f32.gmra.mxu3 %vm360_vm1, %v1430_v28  ;;  %4504 = vmatmul.msk.f32.gmra.mxu0 %vm360_vm1, %v1812_v32  ;;  %v928_v21 = vld [vmem:[#allocation3 + $0x98] sm:$0xff] }
 0x153   : > { %1377 = vst.msk [vmem:[#allocation3 + $0x70] sm:$0xff] %vm598_vm2, %v1341_v30  ;;  %v1722_v34 = vadd.f32 %v1686_v33, %v1604_v8 }
 0x154   : > { %v2067_v35 = vld [vmem:[#allocation3 + $0x60] sm:$0xff]  ;;  %v1228_v36 = vpop.f32.mrf.mxu2 }
 0x155   : > { %1758 = vst.msk [vmem:[#allocation3 + $0x68] sm:$0xff] %vm598_vm2, %v1722_v34  ;;  %v2103_v37 = vadd.f32 %v2067_v35, %v5175_v50  ;;  %v1610_v38 = vpop.f32.mrf.mxu3 }
 0x156   : > { %v849_v39 = vpop.f32.mrf.mxu1 }
 0x157   : > { %2139 = vst.msk [vmem:[#allocation3 + $0x60] sm:$0xff] %vm598_vm2, %v2103_v37  ;;  %v961_v42 = vadd.f32 %v925_v40, %v849_v39  ;;  %v5231_v46 = vpop.f32.mrf.mxu0  ;;  %v2163_v37 = vld [vmem:[%s4771_s17 + $0x14] sm:$0xff]  ;;  %v2927_v40 = vld [vmem:[%s4771_s17 + $0x25] sm:$0xff] }
 0x158   : > { %v1306_v44 = vld [vmem:[#allocation3 + $0x78] sm:$0xff] }
 0x159   : > { %997 = vst.msk [vmem:[#allocation3 + $0x80] sm:$0xff] %vm598_vm2, %v961_v42  ;;  %v1342_v45 = vadd.f32 %v1306_v44, %v1228_v36  ;;  %4391 = vmatmul.msk.f32.gmra.mxu1 %vm360_vm1, %v667_v41  ;;  %4429 = vmatmul.msk.f32.gmra.mxu2 %vm360_vm1, %v1429_v13  ;;  %v1815_v13 = vld [vmem:[%s4771_s17 + $0x123] sm:$0xff] }
 0x15a   : > { %v1687_v48 = vld [vmem:[#allocation3 + $0x70] sm:$0xff]  ;;  %4467 = vmatmul.msk.f32.gmra.mxu3 %vm360_vm1, %v1431_v43  ;;  %4505 = vmatmul.msk.f32.gmra.mxu0 %vm360_vm1, %v1813_v47  ;;  %v929_v36 = vld [vmem:[#allocation3 + $0xa0] sm:$0xff] }
 0x15b   : > { %1378 = vst.msk [vmem:[#allocation3 + $0x78] sm:$0xff] %vm598_vm2, %v1342_v45  ;;  %v1723_v49 = vadd.f32 %v1687_v48, %v1607_v23  ;;  %v3309_v44 = vld [vmem:[%s4771_s17 + $0x26] sm:$0xff] }
 0x15c   : > { %v2068_v50 = vld [vmem:[#allocation3 + $0x68] sm:$0xff]  ;;  %v1231_v51 = vpop.f32.mrf.mxu2 }
 0x15d   : > { %1759 = vst.msk [vmem:[#allocation3 + $0x70] sm:$0xff] %vm598_vm2, %v1723_v49  ;;  %v2104_v52 = vadd.f32 %v2068_v50, %v5189_v1  ;;  %v1613_v53 = vpop.f32.mrf.mxu3 }
 0x15e   : > { %v852_v54 = vpop.f32.mrf.mxu1 }
 0x15f   : > { %2140 = vst.msk [vmem:[#allocation3 + $0x68] sm:$0xff] %vm598_vm2, %v2104_v52  ;;  %v962_v57 = vadd.f32 %v926_v55, %v852_v54  ;;  %v5245_v61 = vpop.f32.mrf.mxu0  ;;  %v930_v52 = vld [vmem:[#allocation3 + $0xa8] sm:$0xff] }
 0x160   : > { %v1307_v59 = vld [vmem:[#allocation3 + $0x80] sm:$0xff]  ;;  %v2546_v54 = vld [vmem:[%s4771_s17 + $0x2c] sm:$0xff] }
 0x161   : > { %998 = vst.msk [vmem:[#allocation3 + $0x88] sm:$0xff] %vm598_vm2, %v962_v57  ;;  %v1343_v60 = vadd.f32 %v1307_v59, %v1231_v51  ;;  %4392 = vmatmul.msk.f32.gmra.mxu1 %vm360_vm1, %v668_v56  ;;  %4430 = vmatmul.msk.f32.gmra.mxu2 %vm360_vm1, %v1430_v28  ;;  %v1816_v28 = vld [vmem:[%s4771_s17 + $0x12b] sm:$0xff] }
 0x162   : > { %v1688_v63 = vld [vmem:[#allocation3 + $0x78] sm:$0xff]  ;;  %4468 = vmatmul.msk.f32.gmra.mxu3 %vm360_vm1, %v1432_v58  ;;  %4506 = vmatmul.msk.f32.gmra.mxu0 %vm360_vm1, %v1814_v62  ;;  %v2928_v56 = vld [vmem:[%s4771_s17 + $0x2d] sm:$0xff] }
 0x163   : > { %1379 = vst.msk [vmem:[#allocation3 + $0x80] sm:$0xff] %vm598_vm2, %v1343_v60  ;;  %v1724_v0 = vadd.f32 %v1688_v63, %v1610_v38  ;;  %v2545_v38 = vld [vmem:[%s4771_s17 + $0x24] sm:$0xff]  ;;  %v3310_v60 = vld [vmem:[%s4771_s17 + $0x2e] sm:$0xff] }
 0x164   : > { %v2069_v1 = vld [vmem:[#allocation3 + $0x70] sm:$0xff]  ;;  %v1234_v2 = vpop.f32.mrf.mxu2 }
 0x165   : > { %1760 = vst.msk [vmem:[#allocation3 + $0x78] sm:$0xff] %vm598_vm2, %v1724_v0  ;;  %v2105_v3 = vadd.f32 %v2069_v1, %v5203_v16  ;;  %v1616_v4 = vpop.f32.mrf.mxu3 }
 0x166   : > { %v855_v5 = vpop.f32.mrf.mxu1 }
 0x167   : > { %2141 = vst.msk [vmem:[#allocation3 + $0x70] sm:$0xff] %vm598_vm2, %v2105_v3  ;;  %v963_v8 = vadd.f32 %v927_v6, %v855_v5  ;;  %v5259_v12 = vpop.f32.mrf.mxu0  ;;  %v2547_v5 = vld [vmem:[%s4771_s17 + $0x34] sm:$0xff] }
 0x168   : > { %v1308_v10 = vld [vmem:[#allocation3 + $0x88] sm:$0xff] }
 0x169   : > { %999 = vst.msk [vmem:[#allocation3 + $0x90] sm:$0xff] %vm598_vm2, %v963_v8  ;;  %v1344_v11 = vadd.f32 %v1308_v10, %v1234_v2  ;;  %4393 = vmatmul.msk.f32.gmra.mxu1 %vm360_vm1, %v669_v7  ;;  %4431 = vmatmul.msk.f32.gmra.mxu2 %vm360_vm1, %v1431_v43  ;;  %v2929_v7 = vld [vmem:[%s4771_s17 + $0x35] sm:$0xff] }
 0x16a   : > { %v1689_v14 = vld [vmem:[#allocation3 + $0x80] sm:$0xff]  ;;  %4469 = vmatmul.msk.f32.gmra.mxu3 %vm360_vm1, %v1433_v9  ;;  %4507 = vmatmul.msk.f32.gmra.mxu0 %vm360_vm1, %v1815_v13 }
 0x16b   : > { %1380 = vst.msk [vmem:[#allocation3 + $0x88] sm:$0xff] %vm598_vm2, %v1344_v11  ;;  %v1725_v15 = vadd.f32 %v1689_v14, %v1613_v53  ;;  %v2164_v53 = vld [vmem:[%s4771_s17 + $0x1c] sm:$0xff]  ;;  %v4688_v14 = vmov 0  }
 0x16c   : > { %v2070_v16 = vld [vmem:[#allocation3 + $0x78] sm:$0xff]  ;;  %v1237_v17 = vpop.f32.mrf.mxu2  ;;  %4677 = vset.pattern.permute.xlu0 %v4688_v14  ;;  %4678 = vset.pattern.permute.xlu1 %v4688_v14 }
 0x16d   : > { %1761 = vst.msk [vmem:[#allocation3 + $0x80] sm:$0xff] %vm598_vm2, %v1725_v15  ;;  %v2106_v18 = vadd.f32 %v2070_v16, %v5217_v31  ;;  %v1619_v19 = vpop.f32.mrf.mxu3  ;;  %v3311_v11 = vld [vmem:[%s4771_s17 + $0x36] sm:$0xff]  ;;  %v3727_v15 = vld [vmem:[%s6275_s5] sm:$0xff]  ;;  %4679 = vset.pattern.permute.xlu2 %v4688_v14 }
 0x16e   : > { %v858_v20 = vpop.f32.mrf.mxu1  ;;  %3765 = vperm.xlu0 %4677, %v3727_v15  }
 0x16f   : > { %2142 = vst.msk [vmem:[#allocation3 + $0x78] sm:$0xff] %vm598_vm2, %v2106_v18  ;;  %v964_v23 = vadd.f32 %v928_v21, %v858_v20  ;;  %v5273_v27 = vpop.f32.mrf.mxu0  ;;  %v932_v21 = vld [vmem:[#allocation3 + $0xb8] sm:$0xff] }
 0x170   : > { %v1309_v25 = vld [vmem:[#allocation3 + $0x90] sm:$0xff] }
 0x171   : > { %1000 = vst.msk [vmem:[#allocation3 + $0x98] sm:$0xff] %vm598_vm2, %v964_v23  ;;  %v1345_v26 = vadd.f32 %v1309_v25, %v1237_v17  ;;  %4394 = vmatmul.msk.f32.gmra.mxu1 %vm360_vm1, %v670_v22  ;;  %4432 = vmatmul.msk.f32.gmra.mxu2 %vm360_vm1, %v1432_v58  ;;  %v2548_v22 = vld [vmem:[%s4771_s17 + $0x3c] sm:$0xff] }
 0x172   : > { %v1690_v29 = vld [vmem:[#allocation3 + $0x88] sm:$0xff]  ;;  %4470 = vmatmul.msk.f32.gmra.mxu3 %vm360_vm1, %v1434_v24  ;;  %4508 = vmatmul.msk.f32.gmra.mxu0 %vm360_vm1, %v1816_v28  ;;  %v2930_v24 = vld [vmem:[%s4771_s17 + $0x3d] sm:$0xff] }
 0x173   : > { %1381 = vst.msk [vmem:[#allocation3 + $0x90] sm:$0xff] %vm598_vm2, %v1345_v26  ;;  %v1726_v30 = vadd.f32 %v1690_v29, %v1616_v4  ;;  %v931_v4 = vld [vmem:[#allocation3 + $0xb0] sm:$0xff] }
 0x174   : > { %v2071_v31 = vld [vmem:[#allocation3 + $0x80] sm:$0xff]  ;;  %v1240_v32 = vpop.f32.mrf.mxu2 }
 0x175   : > { %1762 = vst.msk [vmem:[#allocation3 + $0x88] sm:$0xff] %vm598_vm2, %v1726_v30  ;;  %v2107_v33 = vadd.f32 %v2071_v31, %v5231_v46  ;;  %v1622_v34 = vpop.f32.mrf.mxu3  ;;  %v3728_v31 = vld [vmem:[%s6275_s5 + $0x8] sm:$0xff] }
 0x176   : > { %v861_v35 = vpop.f32.mrf.mxu1  ;;  %3770 = vperm.xlu0 %4677, %v3728_v31  }
 0x177   : > { %2143 = vst.msk [vmem:[#allocation3 + $0x80] sm:$0xff] %vm598_vm2, %v2107_v33  ;;  %v965_v39 = vadd.f32 %v929_v36, %v861_v35  ;;  %v5288_v43 = vpop.f32.mrf.mxu0 }
 0x178   : > { %v1310_v41 = vld [vmem:[#allocation3 + $0x98] sm:$0xff] }
 0x179   : > { %1001 = vst.msk [vmem:[#allocation3 + $0xa0] sm:$0xff] %vm598_vm2, %v965_v39  ;;  %v1346_v42 = vadd.f32 %v1310_v41, %v1240_v32  ;;  %4511 = vmatmul.msk.f32.vlgmr.msra.gmra.mxu1 %vm360_vm1, %v2163_v37  ;;  %4549 = vmatmul.msk.f32.vlgmr.msra.gmra.mxu2 %vm360_vm1, %v2545_v38  ;;  %v933_v37 = vld [vmem:[#allocation3 + $0xc0] sm:$0xff] }
 0x17a   : > { %v1691_v45 = vld [vmem:[#allocation3 + $0x90] sm:$0xff]  ;;  %4587 = vmatmul.msk.f32.vlgmr.msra.gmra.mxu3 %vm360_vm1, %v2927_v40  ;;  %4625 = vmatmul.msk.f32.vlgmr.msra.gmra.mxu0 %vm360_vm1, %v3309_v44  ;;  %v2931_v40 = vld [vmem:[%s4771_s17 + $0x45] sm:$0xff] }
 0x17b   : > { %1382 = vst.msk [vmem:[#allocation3 + $0x98] sm:$0xff] %vm598_vm2, %v1346_v42  ;;  %v1727_v46 = vadd.f32 %v1691_v45, %v1619_v19 }
 0x17c   : > { %v2072_v47 = vld [vmem:[#allocation3 + $0x88] sm:$0xff]  ;;  %v1243_v48 = vpop.f32.mrf.mxu2 }
 0x17d   : > { %1763 = vst.msk [vmem:[#allocation3 + $0x90] sm:$0xff] %vm598_vm2, %v1727_v46  ;;  %v2108_v49 = vadd.f32 %v2072_v47, %v5245_v61  ;;  %v1625_v50 = vpop.f32.mrf.mxu3  ;;  %v3729_v47 = vld [vmem:[%s6275_s5 + $0x10] sm:$0xff] }
 0x17e   : > { %v864_v51 = vpop.f32.mrf.mxu1  ;;  %3775 = vperm.xlu1 %4678, %v3729_v47  }
 0x17f   : > { %2144 = vst.msk [vmem:[#allocation3 + $0x88] sm:$0xff] %vm598_vm2, %v2108_v49  ;;  %v966_v55 = vadd.f32 %v930_v52, %v864_v51  ;;  %v5303_v59 = vpop.f32.mrf.mxu0 }
 0x180   : > { %v1311_v57 = vld [vmem:[#allocation3 + $0xa0] sm:$0xff] }
 0x181   : > { %1002 = vst.msk [vmem:[#allocation3 + $0xa8] sm:$0xff] %vm598_vm2, %v966_v55  ;;  %v1347_v58 = vadd.f32 %v1311_v57, %v1243_v48  ;;  %4512 = vmatmul.msk.f32.gmra.mxu1 %vm360_vm1, %v2164_v53  ;;  %4550 = vmatmul.msk.f32.gmra.mxu2 %vm360_vm1, %v2546_v54  ;;  %v934_v53 = vld [vmem:[#allocation3 + $0xc8] sm:$0xff] }
 0x182   : > { %v1692_v61 = vld [vmem:[#allocation3 + $0x98] sm:$0xff]  ;;  %4588 = vmatmul.msk.f32.gmra.mxu3 %vm360_vm1, %v2928_v56  ;;  %4626 = vmatmul.msk.f32.gmra.mxu0 %vm360_vm1, %v3310_v60  ;;  %v2932_v56 = vld [vmem:[%s4771_s17 + $0x4d] sm:$0xff] }
 0x183   : > { %1383 = vst.msk [vmem:[#allocation3 + $0xa0] sm:$0xff] %vm598_vm2, %v1347_v58  ;;  %v1728_v62 = vadd.f32 %v1692_v61, %v1622_v34 }
 0x184   : > { %v2073_v63 = vld [vmem:[#allocation3 + $0x90] sm:$0xff]  ;;  %v1246_v0 = vpop.f32.mrf.mxu2 }
 0x185   : > { %1764 = vst.msk [vmem:[#allocation3 + $0x98] sm:$0xff] %vm598_vm2, %v1728_v62  ;;  %v2109_v1 = vadd.f32 %v2073_v63, %v5259_v12  ;;  %v1628_v2 = vpop.f32.mrf.mxu3  ;;  %v3730_v63 = vld [vmem:[%s6275_s5 + $0x18] sm:$0xff] }
 0x186   : > { %v867_v3 = vpop.f32.mrf.mxu1  ;;  %3780 = vperm.xlu1 %4678, %v3730_v63  }
 0x187   : > { %2145 = vst.msk [vmem:[#allocation3 + $0x90] sm:$0xff] %vm598_vm2, %v2109_v1  ;;  %v967_v6 = vadd.f32 %v931_v4, %v867_v3  ;;  %v5317_v10 = vpop.f32.mrf.mxu0 }
 0x188   : > { %v1312_v8 = vld [vmem:[#allocation3 + $0xa8] sm:$0xff] }
 0x189   : > { %1003 = vst.msk [vmem:[#allocation3 + $0xb0] sm:$0xff] %vm598_vm2, %v967_v6  ;;  %v1348_v9 = vadd.f32 %v1312_v8, %v1246_v0  ;;  %4513 = vmatmul.msk.f32.gmra.mxu1 %vm360_vm1, %v2545_v38  ;;  %4551 = vmatmul.msk.f32.gmra.mxu2 %vm360_vm1, %v2547_v5  ;;  %v2549_v38 = vld [vmem:[%s4771_s17 + $0x44] sm:$0xff]  ;;  %v2551_v6 = vld [vmem:[%s4771_s17 + $0x54] sm:$0xff] }
 0x18a   : > { %v1693_v12 = vld [vmem:[#allocation3 + $0xa0] sm:$0xff]  ;;  %4589 = vmatmul.msk.f32.gmra.mxu3 %vm360_vm1, %v2929_v7  ;;  %4627 = vmatmul.msk.f32.gmra.mxu0 %vm360_vm1, %v3311_v11  ;;  %v2933_v8 = vld [vmem:[%s4771_s17 + $0x55] sm:$0xff] }
 0x18b   : > { %1384 = vst.msk [vmem:[#allocation3 + $0xa8] sm:$0xff] %vm598_vm2, %v1348_v9  ;;  %v1729_v13 = vadd.f32 %v1693_v12, %v1625_v50 }
 0x18c   : > { %v2074_v16 = vld [vmem:[#allocation3 + $0x98] sm:$0xff]  ;;  %v1249_v17 = vpop.f32.mrf.mxu2 }
 0x18d   : > { %1765 = vst.msk [vmem:[#allocation3 + $0xa0] sm:$0xff] %vm598_vm2, %v1729_v13  ;;  %v2110_v18 = vadd.f32 %v2074_v16, %v5273_v27  ;;  %v1631_v19 = vpop.f32.mrf.mxu3  ;;  %v3312_v27 = vld [vmem:[%s4771_s17 + $0x3e] sm:$0xff] }
 0x18e   : > { %v870_v20 = vpop.f32.mrf.mxu1 }
 0x18f   : > { %2146 = vst.msk [vmem:[#allocation3 + $0x98] sm:$0xff] %vm598_vm2, %v2110_v18  ;;  %v968_v23 = vadd.f32 %v932_v21, %v870_v20  ;;  %v5334_v28 = vpop.f32.mrf.mxu0  ;;  %v936_v20 = vld [vmem:[#allocation3 + $0xd8] sm:$0xff] }
 0x190   : > { %v1313_v25 = vld [vmem:[#allocation3 + $0xb0] sm:$0xff]  ;;  %v2552_v21 = vld [vmem:[%s4771_s17 + $0x5c] sm:$0xff] }
 0x191   : > { %1004 = vst.msk [vmem:[#allocation3 + $0xb8] sm:$0xff] %vm598_vm2, %v968_v23  ;;  %v1349_v26 = vadd.f32 %v1313_v25, %v1249_v17  ;;  %4514 = vmatmul.msk.f32.gmra.mxu1 %vm360_vm1, %v2546_v54  ;;  %4552 = vmatmul.msk.f32.gmra.mxu2 %vm360_vm1, %v2548_v22  ;;  %v2550_v54 = vld [vmem:[%s4771_s17 + $0x4c] sm:$0xff]  ;;  %v2934_v23 = vld [vmem:[%s4771_s17 + $0x5d] sm:$0xff] }
 0x192   : > { %v1694_v29 = vld [vmem:[#allocation3 + $0xa8] sm:$0xff]  ;;  %4590 = vmatmul.msk.f32.gmra.mxu3 %vm360_vm1, %v2930_v24  ;;  %4628 = vmatmul.msk.f32.gmra.mxu0 %vm360_vm1, %v3312_v27 }
 0x193   : > { %1385 = vst.msk [vmem:[#allocation3 + $0xb0] sm:$0xff] %vm598_vm2, %v1349_v26  ;;  %v1730_v30 = vadd.f32 %v1694_v29, %v1628_v2 }
 0x194   : > { %v2075_v32 = vld [vmem:[#allocation3 + $0xa0] sm:$0xff]  ;;  %v1252_v33 = vpop.f32.mrf.mxu2 }
 0x195   : > { %1766 = vst.msk [vmem:[#allocation3 + $0xa8] sm:$0xff] %vm598_vm2, %v1730_v30  ;;  %v2111_v34 = vadd.f32 %v2075_v32, %v5288_v43  ;;  %v1634_v35 = vpop.f32.mrf.mxu3  ;;  %v3313_v43 = vld [vmem:[%s4771_s17 + $0x46] sm:$0xff] }
 0x196   : > { %v873_v36 = vpop.f32.mrf.mxu1 }
 0x197   : > { %2147 = vst.msk [vmem:[#allocation3 + $0xa0] sm:$0xff] %vm598_vm2, %v2111_v34  ;;  %v969_v39 = vadd.f32 %v933_v37, %v873_v36  ;;  %v5351_v44 = vpop.f32.mrf.mxu0  ;;  %v2553_v36 = vld [vmem:[%s4771_s17 + $0x64] sm:$0xff] }
 0x198   : > { %v1314_v41 = vld [vmem:[#allocation3 + $0xb8] sm:$0xff] }
 0x199   : > { %1005 = vst.msk [vmem:[#allocation3 + $0xc0] sm:$0xff] %vm598_vm2, %v969_v39  ;;  %v1350_v42 = vadd.f32 %v1314_v41, %v1252_v33  ;;  %4515 = vmatmul.msk.f32.gmra.mxu1 %vm360_vm1, %v2547_v5  ;;  %4553 = vmatmul.msk.f32.gmra.mxu2 %vm360_vm1, %v2549_v38  ;;  %v935_v5 = vld [vmem:[#allocation3 + $0xd0] sm:$0xff] }
 0x19a   : > { %v1695_v45 = vld [vmem:[#allocation3 + $0xb0] sm:$0xff]  ;;  %4591 = vmatmul.msk.f32.gmra.mxu3 %vm360_vm1, %v2931_v40  ;;  %4629 = vmatmul.msk.f32.gmra.mxu0 %vm360_vm1, %v3313_v43 }
 0x19b   : > { %1386 = vst.msk [vmem:[#allocation3 + $0xb8] sm:$0xff] %vm598_vm2, %v1350_v42  ;;  %v1731_v46 = vadd.f32 %v1695_v45, %v1631_v19  ;;  %v3317_v42 = vld [vmem:[%s4771_s17 + $0x66] sm:$0xff]  ;;  %v3733_v45 = vld [vmem:[%s6275_s5 + $0x30] sm:$0xff] }
 0x19c   : > { %v2076_v48 = vld [vmem:[#allocation3 + $0xa8] sm:$0xff]  ;;  %v1255_v49 = vpop.f32.mrf.mxu2  ;;  %3795 = vperm.xlu0 %4677, %v3733_v45  }
 0x19d   : > { %1767 = vst.msk [vmem:[#allocation3 + $0xb0] sm:$0xff] %vm598_vm2, %v1731_v46  ;;  %v2112_v50 = vadd.f32 %v2076_v48, %v5303_v59  ;;  %v1637_v51 = vpop.f32.mrf.mxu3  ;;  %v3314_v59 = vld [vmem:[%s4771_s17 + $0x4e] sm:$0xff] }
 0x19e   : > { %v876_v52 = vpop.f32.mrf.mxu1 }
 0x19f   : > { %2148 = vst.msk [vmem:[#allocation3 + $0xa8] sm:$0xff] %vm598_vm2, %v2112_v50  ;;  %v970_v55 = vadd.f32 %v934_v53, %v876_v52  ;;  %v5368_v60 = vpop.f32.mrf.mxu0  ;;  %v2554_v52 = vld [vmem:[%s4771_s17 + $0x6c] sm:$0xff] }
 0x1a0   : > { %v1315_v57 = vld [vmem:[#allocation3 + $0xc0] sm:$0xff] }
 0x1a1   : > { %1006 = vst.msk [vmem:[#allocation3 + $0xc8] sm:$0xff] %vm598_vm2, %v970_v55  ;;  %v1351_v58 = vadd.f32 %v1315_v57, %v1255_v49  ;;  %4516 = vmatmul.msk.f32.gmra.mxu1 %vm360_vm1, %v2548_v22  ;;  %4554 = vmatmul.msk.f32.gmra.mxu2 %vm360_vm1, %v2550_v54 }
 0x1a2   : > { %v1696_v61 = vld [vmem:[#allocation3 + $0xb8] sm:$0xff]  ;;  %4592 = vmatmul.msk.f32.gmra.mxu3 %vm360_vm1, %v2932_v56  ;;  %4630 = vmatmul.msk.f32.gmra.mxu0 %vm360_vm1, %v3314_v59 }
 0x1a3   : > { %1387 = vst.msk [vmem:[#allocation3 + $0xc0] sm:$0xff] %vm598_vm2, %v1351_v58  ;;  %v1732_v62 = vadd.f32 %v1696_v61, %v1634_v35  ;;  %v937_v35 = vld [vmem:[#allocation3 + $0xe0] sm:$0xff]  ;;  %v3318_v58 = vld [vmem:[%s4771_s17 + $0x6e] sm:$0xff] }
 0x1a4   : > { %v2077_v0 = vld [vmem:[#allocation3 + $0xb0] sm:$0xff]  ;;  %v1258_v1 = vpop.f32.mrf.mxu2  ;;  %v3731_v61 = vld [vmem:[%s6275_s5 + $0x20] sm:$0xff] }
 0x1a5   : > { %1768 = vst.msk [vmem:[#allocation3 + $0xb8] sm:$0xff] %vm598_vm2, %v1732_v62  ;;  %v2113_v2 = vadd.f32 %v2077_v0, %v5317_v10  ;;  %v1640_v3 = vpop.f32.mrf.mxu3  ;;  %v3315_v10 = vld [vmem:[%s4771_s17 + $0x56] sm:$0xff]  ;;  %3785 = vperm.xlu2 %4679, %v3731_v61  }
 0x1a6   : > { %v879_v4 = vpop.f32.mrf.mxu1  ;;  %v3734_v62 = vld [vmem:[%s6275_s5 + $0x38] sm:$0xff] }
 0x1a7   : > { %2149 = vst.msk [vmem:[#allocation3 + $0xb0] sm:$0xff] %vm598_vm2, %v2113_v2  ;;  %v971_v7 = vadd.f32 %v935_v5, %v879_v4  ;;  %v5385_v12 = vpop.f32.mrf.mxu0  ;;  %3800 = vperm.xlu1 %4678, %v3734_v62   ;;  %v939_v4 = vld [vmem:[#allocation3 + $0xf0] sm:$0xff]  ;;  %v3735_v62 = vld [vmem:[%s6275_s5 + $0x40] sm:$0xff] }
 0x1a8   : > { %v1316_v9 = vld [vmem:[#allocation3 + $0xc8] sm:$0xff]  ;;  %v2555_v5 = vld [vmem:[%s4771_s17 + $0x74] sm:$0xff] }
 0x1a9   : > { %1007 = vst.msk [vmem:[#allocation3 + $0xd0] sm:$0xff] %vm598_vm2, %v971_v7  ;;  %v1352_v11 = vadd.f32 %v1316_v9, %v1258_v1  ;;  %4517 = vmatmul.msk.f32.gmra.mxu1 %vm360_vm1, %v2549_v38  ;;  %4555 = vmatmul.msk.f32.gmra.mxu2 %vm360_vm1, %v2551_v6  ;;  %v2935_v38 = vld [vmem:[%s4771_s17 + $0x65] sm:$0xff]  ;;  %v2937_v7 = vld [vmem:[%s4771_s17 + $0x75] sm:$0xff] }
 0x1aa   : > { %v1697_v13 = vld [vmem:[#allocation3 + $0xc0] sm:$0xff]  ;;  %4593 = vmatmul.msk.f32.gmra.mxu3 %vm360_vm1, %v2933_v8  ;;  %4631 = vmatmul.msk.f32.gmra.mxu0 %vm360_vm1, %v3315_v10 }
 0x1ab   : > { %1388 = vst.msk [vmem:[#allocation3 + $0xc8] sm:$0xff] %vm598_vm2, %v1352_v11  ;;  %v1733_v14 = vadd.f32 %v1697_v13, %v1637_v51  ;;  %v938_v51 = vld [vmem:[#allocation3 + $0xe8] sm:$0xff] }
 0x1ac   : > { %v2078_v15 = vld [vmem:[#allocation3 + $0xb8] sm:$0xff]  ;;  %v1261_v16 = vpop.f32.mrf.mxu2 }
 0x1ad   : > { %1769 = vst.msk [vmem:[#allocation3 + $0xc0] sm:$0xff] %vm598_vm2, %v1733_v14  ;;  %v2114_v17 = vadd.f32 %v2078_v15, %v5334_v28  ;;  %v1643_v18 = vpop.f32.mrf.mxu3  ;;  %v3316_v28 = vld [vmem:[%s4771_s17 + $0x5e] sm:$0xff]  ;;  %v3732_v14 = vld [vmem:[%s6275_s5 + $0x28] sm:$0xff] }
 0x1ae   : > { %v882_v19 = vpop.f32.mrf.mxu1  ;;  %3790 = vperm.xlu2 %4679, %v3732_v14   ;;  %v3739_v14 = vld [vmem:[%s6275_s5 + $0x60] sm:$0xff] }
 0x1af   : > { %2150 = vst.msk [vmem:[#allocation3 + $0xb8] sm:$0xff] %vm598_vm2, %v2114_v17  ;;  %v972_v22 = vadd.f32 %v936_v20, %v882_v19  ;;  %v5399_v26 = vpop.f32.mrf.mxu0  ;;  %v940_v20 = vld [vmem:[#allocation3 + $0xf8] sm:$0xff] }
 0x1b0   : > { %v1317_v24 = vld [vmem:[#allocation3 + $0xd0] sm:$0xff] }
 0x1b1   : > { %1008 = vst.msk [vmem:[#allocation3 + $0xd8] sm:$0xff] %vm598_vm2, %v972_v22  ;;  %v1353_v25 = vadd.f32 %v1317_v24, %v1261_v16  ;;  %4518 = vmatmul.msk.f32.gmra.mxu1 %vm360_vm1, %v2550_v54  ;;  %4556 = vmatmul.msk.f32.gmra.mxu2 %vm360_vm1, %v2552_v21  ;;  %v2936_v54 = vld [vmem:[%s4771_s17 + $0x6d] sm:$0xff] }
 0x1b2   : > { %v1698_v27 = vld [vmem:[#allocation3 + $0xc8] sm:$0xff]  ;;  %4594 = vmatmul.msk.f32.gmra.mxu3 %vm360_vm1, %v2934_v23  ;;  %4632 = vmatmul.msk.f32.gmra.mxu0 %vm360_vm1, %v3316_v28  ;;  %v2938_v23 = vld [vmem:[%s4771_s17 + $0x7d] sm:$0xff] }
 0x1b3   : > { %1389 = vst.msk [vmem:[#allocation3 + $0xd0] sm:$0xff] %vm598_vm2, %v1353_v25  ;;  %v1734_v29 = vadd.f32 %v1698_v27, %v1640_v3 }
 0x1b4   : > { %v2079_v30 = vld [vmem:[#allocation3 + $0xc0] sm:$0xff]  ;;  %v1264_v31 = vpop.f32.mrf.mxu2 }
 0x1b5   : > { %1770 = vst.msk [vmem:[#allocation3 + $0xc8] sm:$0xff] %vm598_vm2, %v1734_v29  ;;  %v2115_v32 = vadd.f32 %v2079_v30, %v5351_v44  ;;  %v1646_v33 = vpop.f32.mrf.mxu3  ;;  %v3736_v30 = vld [vmem:[%s6275_s5 + $0x48] sm:$0xff] }
 0x1b6   : > { %v885_v34 = vpop.f32.mrf.mxu1  ;;  %3810 = vperm.xlu0 %4677, %v3736_v30   ;;  %3805 = vperm.xlu2 %4679, %v3735_v62   ;;  %v3740_v30 = vld [vmem:[%s6275_s5 + $0x68] sm:$0xff] }
 0x1b7   : > { %2151 = vst.msk [vmem:[#allocation3 + $0xc0] sm:$0xff] %vm598_vm2, %v2115_v32  ;;  %v973_v37 = vadd.f32 %v937_v35, %v885_v34  ;;  %v5413_v41 = vpop.f32.mrf.mxu0 }
 0x1b8   : > { %v1318_v39 = vld [vmem:[#allocation3 + $0xd8] sm:$0xff] }
 0x1b9   : > { %1009 = vst.msk [vmem:[#allocation3 + $0xe0] sm:$0xff] %vm598_vm2, %v973_v37  ;;  %v1354_v40 = vadd.f32 %v1318_v39, %v1264_v31  ;;  %4519 = vmatmul.msk.f32.gmra.mxu1 %vm360_vm1, %v2551_v6  ;;  %4557 = vmatmul.msk.f32.gmra.mxu2 %vm360_vm1, %v2553_v36  ;;  %v2557_v37 = vld [vmem:[%s4771_s17 + $0x84] sm:$0xff] }
 0x1ba   : > { %v1699_v44 = vld [vmem:[#allocation3 + $0xd0] sm:$0xff]  ;;  %4595 = vmatmul.msk.f32.gmra.mxu3 %vm360_vm1, %v2935_v38  ;;  %4633 = vmatmul.msk.f32.gmra.mxu0 %vm360_vm1, %v3317_v42  ;;  %v2939_v39 = vld [vmem:[%s4771_s17 + $0x85] sm:$0xff] }
 0x1bb   : > { %1390 = vst.msk [vmem:[#allocation3 + $0xd8] sm:$0xff] %vm598_vm2, %v1354_v40  ;;  %v1735_v43 = vadd.f32 %v1699_v44, %v1643_v18 }
 0x1bc   : > { %v2080_v46 = vld [vmem:[#allocation3 + $0xc8] sm:$0xff]  ;;  %v1267_v47 = vpop.f32.mrf.mxu2 }
 0x1bd   : > { %1771 = vst.msk [vmem:[#allocation3 + $0xd0] sm:$0xff] %vm598_vm2, %v1735_v43  ;;  %v2116_v48 = vadd.f32 %v2080_v46, %v5368_v60  ;;  %v1649_v49 = vpop.f32.mrf.mxu3  ;;  %v3737_v46 = vld [vmem:[%s6275_s5 + $0x50] sm:$0xff] }
 0x1be   : > { %v888_v50 = vpop.f32.mrf.mxu1  ;;  %3815 = vperm.xlu1 %4678, %v3737_v46   ;;  %3825 = vperm.xlu0 %4677, %v3739_v14   ;;  %v3738_v46 = vld [vmem:[%s6275_s5 + $0x58] sm:$0xff] }
 0x1bf   : > { %2152 = vst.msk [vmem:[#allocation3 + $0xc8] sm:$0xff] %vm598_vm2, %v2116_v48  ;;  %v974_v53 = vadd.f32 %v938_v51, %v888_v50  ;;  %v5430_v57 = vpop.f32.mrf.mxu0  ;;  %3820 = vperm.xlu2 %4679, %v3738_v46  }
 0x1c0   : > { %v1319_v55 = vld [vmem:[#allocation3 + $0xe0] sm:$0xff] }
 0x1c1   : > { %1010 = vst.msk [vmem:[#allocation3 + $0xe8] sm:$0xff] %vm598_vm2, %v974_v53  ;;  %v1355_v56 = vadd.f32 %v1319_v55, %v1267_v47  ;;  %4520 = vmatmul.msk.f32.gmra.mxu1 %vm360_vm1, %v2552_v21  ;;  %4558 = vmatmul.msk.f32.gmra.mxu2 %vm360_vm1, %v2554_v52  ;;  %v2556_v21 = vld [vmem:[%s4771_s17 + $0x7c] sm:$0xff]  ;;  %v2558_v53 = vld [vmem:[%s4771_s17 + $0x8c] sm:$0xff] }
 0x1c2   : > { %v1700_v60 = vld [vmem:[#allocation3 + $0xd8] sm:$0xff]  ;;  %4596 = vmatmul.msk.f32.gmra.mxu3 %vm360_vm1, %v2936_v54  ;;  %4634 = vmatmul.msk.f32.gmra.mxu0 %vm360_vm1, %v3318_v58  ;;  %v2940_v55 = vld [vmem:[%s4771_s17 + $0x8d] sm:$0xff] }
 0x1c3   : > { %1391 = vst.msk [vmem:[#allocation3 + $0xe0] sm:$0xff] %vm598_vm2, %v1355_v56  ;;  %v1736_v59 = vadd.f32 %v1700_v60, %v1646_v33 }
 0x1c4   : > { %v2081_v63 = vld [vmem:[#allocation3 + $0xd0] sm:$0xff]  ;;  %v1270_v0 = vpop.f32.mrf.mxu2 }
 0x1c5   : > { %1772 = vst.msk [vmem:[#allocation3 + $0xd8] sm:$0xff] %vm598_vm2, %v1736_v59  ;;  %v2117_v1 = vadd.f32 %v2081_v63, %v5385_v12  ;;  %v1652_v2 = vpop.f32.mrf.mxu3  ;;  %v3319_v12 = vld [vmem:[%s4771_s17 + $0x76] sm:$0xff] }
 0x1c6   : > { %v891_v3 = vpop.f32.mrf.mxu1  ;;  %3830 = vperm.xlu1 %4678, %v3740_v30  }
 0x1c7   : > { %2153 = vst.msk [vmem:[#allocation3 + $0xd0] sm:$0xff] %vm598_vm2, %v2117_v1  ;;  %v975_v6 = vadd.f32 %v939_v4, %v891_v3  ;;  %v5450_v11 = vpop.f32.mrf.mxu0  ;;  %v943_v4 = vld [vmem:[#allocation3 + $0x110] sm:$0xff] }
 0x1c8   : > { %v1320_v8 = vld [vmem:[#allocation3 + $0xe8] sm:$0xff] }
 0x1c9   : > { %1011 = vst.msk [vmem:[#allocation3 + $0xf0] sm:$0xff] %vm598_vm2, %v975_v6  ;;  %v1356_v9 = vadd.f32 %v1320_v8, %v1270_v0  ;;  %4521 = vmatmul.msk.f32.gmra.mxu1 %vm360_vm1, %v2553_v36  ;;  %4559 = vmatmul.msk.f32.gmra.mxu2 %vm360_vm1, %v2555_v5  ;;  %v941_v36 = vld [vmem:[#allocation3 + $0x100] sm:$0xff] }
 0x1ca   : > { %v1701_v10 = vld [vmem:[#allocation3 + $0xe0] sm:$0xff]  ;;  %4597 = vmatmul.msk.f32.gmra.mxu3 %vm360_vm1, %v2937_v7  ;;  %4635 = vmatmul.msk.f32.gmra.mxu0 %vm360_vm1, %v3319_v12  ;;  %v2941_v7 = vld [vmem:[%s4771_s17 + $0x95] sm:$0xff] }
 0x1cb   : > { %1392 = vst.msk [vmem:[#allocation3 + $0xe8] sm:$0xff] %vm598_vm2, %v1356_v9  ;;  %v1737_v13 = vadd.f32 %v1701_v10, %v1649_v49 }
 0x1cc   : > { %v2082_v15 = vld [vmem:[#allocation3 + $0xd8] sm:$0xff]  ;;  %v1273_v16 = vpop.f32.mrf.mxu2 }
 0x1cd   : > { %1773 = vst.msk [vmem:[#allocation3 + $0xe0] sm:$0xff] %vm598_vm2, %v1737_v13  ;;  %v2118_v17 = vadd.f32 %v2082_v15, %v5399_v26  ;;  %v1655_v18 = vpop.f32.mrf.mxu3  ;;  %v3320_v26 = vld [vmem:[%s4771_s17 + $0x7e] sm:$0xff] }
 0x1ce   : > { %v894_v19 = vpop.f32.mrf.mxu1 }
 0x1cf   : > { %2154 = vst.msk [vmem:[#allocation3 + $0xd8] sm:$0xff] %vm598_vm2, %v2118_v17  ;;  %v976_v22 = vadd.f32 %v940_v20, %v894_v19  ;;  %v5467_v28 = vpop.f32.mrf.mxu0  ;;  %v944_v20 = vld [vmem:[#allocation3 + $0x118] sm:$0xff] }
 0x1d0   : > { %v1321_v24 = vld [vmem:[#allocation3 + $0xf0] sm:$0xff] }
 0x1d1   : > { %1012 = vst.msk [vmem:[#allocation3 + $0xf8] sm:$0xff] %vm598_vm2, %v976_v22  ;;  %v1357_v25 = vadd.f32 %v1321_v24, %v1273_v16  ;;  %4522 = vmatmul.msk.f32.gmra.mxu1 %vm360_vm1, %v2554_v52  ;;  %4560 = vmatmul.msk.f32.gmra.mxu2 %vm360_vm1, %v2556_v21  ;;  %v942_v52 = vld [vmem:[#allocation3 + $0x108] sm:$0xff] }
 0x1d2   : > { %v1702_v27 = vld [vmem:[#allocation3 + $0xe8] sm:$0xff]  ;;  %4598 = vmatmul.msk.f32.gmra.mxu3 %vm360_vm1, %v2938_v23  ;;  %4636 = vmatmul.msk.f32.gmra.mxu0 %vm360_vm1, %v3320_v26  ;;  %v2942_v23 = vld [vmem:[%s4771_s17 + $0x9d] sm:$0xff] }
 0x1d3   : > { %1393 = vst.msk [vmem:[#allocation3 + $0xf0] sm:$0xff] %vm598_vm2, %v1357_v25  ;;  %v1738_v29 = vadd.f32 %v1702_v27, %v1652_v2 }
 0x1d4   : > { %v2083_v31 = vld [vmem:[#allocation3 + $0xe0] sm:$0xff]  ;;  %v1276_v32 = vpop.f32.mrf.mxu2 }
 0x1d5   : > { %1774 = vst.msk [vmem:[#allocation3 + $0xe8] sm:$0xff] %vm598_vm2, %v1738_v29  ;;  %v2119_v33 = vadd.f32 %v2083_v31, %v5413_v41  ;;  %v1658_v34 = vpop.f32.mrf.mxu3  ;;  %v3321_v41 = vld [vmem:[%s4771_s17 + $0x86] sm:$0xff] }
 0x1d6   : > { %v897_v35 = vpop.f32.mrf.mxu1 }
 0x1d7   : > { %2155 = vst.msk [vmem:[#allocation3 + $0xe0] sm:$0xff] %vm598_vm2, %v2119_v33  ;;  %v977_v38 = vadd.f32 %v941_v36, %v897_v35  ;;  %v5484_v44 = vpop.f32.mrf.mxu0  ;;  %v2437_v36 = vld [vmem:[#allocation3] sm:$0xff] }
 0x1d8   : > { %v1322_v40 = vld [vmem:[#allocation3 + $0xf8] sm:$0xff] }
 0x1d9   : > { %1013 = vst.msk [vmem:[#allocation3 + $0x100] sm:$0xff] %vm598_vm2, %v977_v38  ;;  %v1358_v42 = vadd.f32 %v1322_v40, %v1276_v32  ;;  %4523 = vmatmul.msk.f32.gmra.mxu1 %vm360_vm1, %v2555_v5  ;;  %4561 = vmatmul.msk.f32.gmra.mxu2 %vm360_vm1, %v2557_v37  ;;  %v2559_v5 = vld [vmem:[%s4771_s17 + $0x94] sm:$0xff] }
 0x1da   : > { %v1703_v43 = vld [vmem:[#allocation3 + $0xf0] sm:$0xff]  ;;  %4599 = vmatmul.msk.f32.gmra.mxu3 %vm360_vm1, %v2939_v39  ;;  %4637 = vmatmul.msk.f32.gmra.mxu0 %vm360_vm1, %v3321_v41  ;;  %v2943_v39 = vld [vmem:[%s4771_s17 + $0xa5] sm:$0xff] }
 0x1db   : > { %1394 = vst.msk [vmem:[#allocation3 + $0xf8] sm:$0xff] %vm598_vm2, %v1358_v42  ;;  %v1739_v45 = vadd.f32 %v1703_v43, %v1655_v18 }
 0x1dc   : > { %v2084_v47 = vld [vmem:[#allocation3 + $0xe8] sm:$0xff]  ;;  %v1279_v48 = vpop.f32.mrf.mxu2 }
 0x1dd   : > { %1775 = vst.msk [vmem:[#allocation3 + $0xf0] sm:$0xff] %vm598_vm2, %v1739_v45  ;;  %v2120_v49 = vadd.f32 %v2084_v47, %v5430_v57  ;;  %v1661_v50 = vpop.f32.mrf.mxu3  ;;  %v3322_v57 = vld [vmem:[%s4771_s17 + $0x8e] sm:$0xff] }
 0x1de   : > { %v900_v51 = vpop.f32.mrf.mxu1 }
 0x1df   : > { %2156 = vst.msk [vmem:[#allocation3 + $0xe8] sm:$0xff] %vm598_vm2, %v2120_v49  ;;  %v978_v54 = vadd.f32 %v942_v52, %v900_v51  ;;  %v5501_v60 = vpop.f32.mrf.mxu0  ;;  %v2438_v52 = vld [vmem:[#allocation3 + $0x8] sm:$0xff] }
 0x1e0   : > { %v1323_v56 = vld [vmem:[#allocation3 + $0x100] sm:$0xff] }
 0x1e1   : > { %1014 = vst.msk [vmem:[#allocation3 + $0x108] sm:$0xff] %vm598_vm2, %v978_v54  ;;  %v1359_v58 = vadd.f32 %v1323_v56, %v1279_v48  ;;  %4524 = vmatmul.msk.f32.gmra.mxu1 %vm360_vm1, %v2556_v21  ;;  %4562 = vmatmul.msk.f32.gmra.mxu2 %vm360_vm1, %v2558_v53  ;;  %v2560_v21 = vld [vmem:[%s4771_s17 + $0x9c] sm:$0xff] }
 0x1e2   : > { %v1704_v59 = vld [vmem:[#allocation3 + $0xf8] sm:$0xff]  ;;  %4600 = vmatmul.msk.f32.gmra.mxu3 %vm360_vm1, %v2940_v55  ;;  %4638 = vmatmul.msk.f32.gmra.mxu0 %vm360_vm1, %v3322_v57  ;;  %v2944_v55 = vld [vmem:[%s4771_s17 + $0xad] sm:$0xff] }
 0x1e3   : > { %1395 = vst.msk [vmem:[#allocation3 + $0x100] sm:$0xff] %vm598_vm2, %v1359_v58  ;;  %v1740_v61 = vadd.f32 %v1704_v59, %v1658_v34 }
 0x1e4   : > { %v2085_v63 = vld [vmem:[#allocation3 + $0xf0] sm:$0xff]  ;;  %v1282_v0 = vpop.f32.mrf.mxu2 }
 0x1e5   : > { %1776 = vst.msk [vmem:[#allocation3 + $0xf8] sm:$0xff] %vm598_vm2, %v1740_v61  ;;  %v2121_v1 = vadd.f32 %v2085_v63, %v5450_v11  ;;  %v1664_v2 = vpop.f32.mrf.mxu3  ;;  %v3323_v11 = vld [vmem:[%s4771_s17 + $0x96] sm:$0xff] }
 0x1e6   : > { %v903_v3 = vpop.f32.mrf.mxu1 }
 0x1e7   : > { %2157 = vst.msk [vmem:[#allocation3 + $0xf0] sm:$0xff] %vm598_vm2, %v2121_v1  ;;  %v979_v6 = vadd.f32 %v943_v4, %v903_v3  ;;  %v5518_v12 = vpop.f32.mrf.mxu0  ;;  %v2439_v4 = vld [vmem:[#allocation3 + $0x10] sm:$0xff] }
 0x1e8   : > { %v1324_v8 = vld [vmem:[#allocation3 + $0x108] sm:$0xff] }
 0x1e9   : > { %1015 = vst.msk [vmem:[#allocation3 + $0x110] sm:$0xff] %vm598_vm2, %v979_v6  ;;  %v1360_v9 = vadd.f32 %v1324_v8, %v1282_v0  ;;  %4525 = vmatmul.msk.f32.gmra.mxu1 %vm360_vm1, %v2557_v37  ;;  %4563 = vmatmul.msk.f32.gmra.mxu2 %vm360_vm1, %v2559_v5  ;;  %v2561_v37 = vld [vmem:[%s4771_s17 + $0xa4] sm:$0xff]  ;;  %v3742_v0 = vld [vmem:[%s6275_s5 + $0x78] sm:$0xff] }
 0x1ea   : > { %v1705_v10 = vld [vmem:[#allocation3 + $0x100] sm:$0xff]  ;;  %4601 = vmatmul.msk.f32.gmra.mxu3 %vm360_vm1, %v2941_v7  ;;  %4639 = vmatmul.msk.f32.gmra.mxu0 %vm360_vm1, %v3323_v11  ;;  %v2945_v7 = vld [vmem:[%s4771_s17 + $0xb5] sm:$0xff] }
 0x1eb   : > { %1396 = vst.msk [vmem:[#allocation3 + $0x108] sm:$0xff] %vm598_vm2, %v1360_v9  ;;  %v1741_v13 = vadd.f32 %v1705_v10, %v1661_v50  ;;  %3840 = vperm.xlu0 %4677, %v3742_v0   ;;  %v3746_v0 = vld [vmem:[%s6275_s5 + $0x98] sm:$0xff] }
 0x1ec   : > { %v2086_v15 = vld [vmem:[#allocation3 + $0xf8] sm:$0xff]  ;;  %v1285_v16 = vpop.f32.mrf.mxu2 }
 0x1ed   : > { %1777 = vst.msk [vmem:[#allocation3 + $0x100] sm:$0xff] %vm598_vm2, %v1741_v13  ;;  %v2122_v17 = vadd.f32 %v2086_v15, %v5467_v28  ;;  %v1667_v18 = vpop.f32.mrf.mxu3  ;;  %v3324_v28 = vld [vmem:[%s4771_s17 + $0x9e] sm:$0xff] }
 0x1ee   : > { %v906_v19 = vpop.f32.mrf.mxu1 }
 0x1ef   : > { %2158 = vst.msk [vmem:[#allocation3 + $0xf8] sm:$0xff] %vm598_vm2, %v2122_v17  ;;  %v980_v22 = vadd.f32 %v944_v20, %v906_v19  ;;  %v5535_v26 = vpop.f32.mrf.mxu0  ;;  %v2440_v20 = vld [vmem:[#allocation3 + $0x18] sm:$0xff] }
 0x1f0   : > { %v1325_v24 = vld [vmem:[#allocation3 + $0x110] sm:$0xff] }
 0x1f1   : > { %1016 = vst.msk [vmem:[#allocation3 + $0x118] sm:$0xff] %vm598_vm2, %v980_v22  ;;  %v1361_v25 = vadd.f32 %v1325_v24, %v1285_v16  ;;  %4526 = vmatmul.msk.f32.gmra.mxu1 %vm360_vm1, %v2558_v53  ;;  %4564 = vmatmul.msk.f32.gmra.mxu2 %vm360_vm1, %v2560_v21  ;;  %v2562_v53 = vld [vmem:[%s4771_s17 + $0xac] sm:$0xff]  ;;  %v3743_v16 = vld [vmem:[%s6275_s5 + $0x80] sm:$0xff] }
 0x1f2   : > { %v1706_v27 = vld [vmem:[#allocation3 + $0x108] sm:$0xff]  ;;  %4602 = vmatmul.msk.f32.gmra.mxu3 %vm360_vm1, %v2942_v23  ;;  %4640 = vmatmul.msk.f32.gmra.mxu0 %vm360_vm1, %v3324_v28  ;;  %v2946_v23 = vld [vmem:[%s4771_s17 + $0xbd] sm:$0xff] }
 0x1f3   : > { %1397 = vst.msk [vmem:[#allocation3 + $0x110] sm:$0xff] %vm598_vm2, %v1361_v25  ;;  %v1742_v29 = vadd.f32 %v1706_v27, %v1664_v2  ;;  %3845 = vperm.xlu1 %4678, %v3743_v16   ;;  %v3748_v16 = vld [vmem:[%s6275_s5 + $0xa8] sm:$0xff] }
 0x1f4   : > { %v2087_v31 = vld [vmem:[#allocation3 + $0x100] sm:$0xff]  ;;  %v1288_v32 = vpop.f32.mrf.mxu2 }
 0x1f5   : > { %1778 = vst.msk [vmem:[#allocation3 + $0x108] sm:$0xff] %vm598_vm2, %v1742_v29  ;;  %v2123_v33 = vadd.f32 %v2087_v31, %v5484_v44  ;;  %v1670_v34 = vpop.f32.mrf.mxu3  ;;  %v3325_v44 = vld [vmem:[%s4771_s17 + $0xa6] sm:$0xff] }
 0x1f6   : > { %v2329_v35 = vpop.f32.mrf.mxu1 }
 0x1f7   : > { %2159 = vst.msk [vmem:[#allocation3 + $0x100] sm:$0xff] %vm598_vm2, %v2123_v33  ;;  %v2473_v38 = vadd.f32 %v2437_v36, %v2329_v35  ;;  %v5552_v41 = vpop.f32.mrf.mxu0  ;;  %v2441_v36 = vld [vmem:[#allocation3 + $0x20] sm:$0xff] }
 0x1f8   : > { %v1326_v40 = vld [vmem:[#allocation3 + $0x118] sm:$0xff] }
 0x1f9   : > { %2509 = vst.msk [vmem:[#allocation3] sm:$0xff] %vm598_vm2, %v2473_v38  ;;  %v1362_v42 = vadd.f32 %v1326_v40, %v1288_v32  ;;  %4527 = vmatmul.msk.f32.gmra.mxu1 %vm360_vm1, %v2559_v5  ;;  %4565 = vmatmul.msk.f32.gmra.mxu2 %vm360_vm1, %v2561_v37  ;;  %v2563_v5 = vld [vmem:[%s4771_s17 + $0xb4] sm:$0xff] }
 0x1fa   : > { %v1707_v43 = vld [vmem:[#allocation3 + $0x110] sm:$0xff]  ;;  %4603 = vmatmul.msk.f32.gmra.mxu3 %vm360_vm1, %v2943_v39  ;;  %4641 = vmatmul.msk.f32.gmra.mxu0 %vm360_vm1, %v3325_v44  ;;  %v2947_v39 = vld [vmem:[%s4771_s17 + $0xc5] sm:$0xff] }
 0x1fb   : > { %1398 = vst.msk [vmem:[#allocation3 + $0x118] sm:$0xff] %vm598_vm2, %v1362_v42  ;;  %v1743_v45 = vadd.f32 %v1707_v43, %v1667_v18  ;;  %v3741_v32 = vld [vmem:[%s6275_s5 + $0x70] sm:$0xff]  ;;  %v3329_v44 = vld [vmem:[%s4771_s17 + $0xc6] sm:$0xff]  ;;  %3860 = vperm.xlu1 %4678, %v3746_v0  }
 0x1fc   : > { %v2088_v47 = vld [vmem:[#allocation3 + $0x108] sm:$0xff]  ;;  %v2711_v48 = vpop.f32.mrf.mxu2  ;;  %3835 = vperm.xlu2 %4679, %v3741_v32  }
 0x1fd   : > { %1779 = vst.msk [vmem:[#allocation3 + $0x110] sm:$0xff] %vm598_vm2, %v1743_v45  ;;  %v2124_v49 = vadd.f32 %v2088_v47, %v5501_v60  ;;  %v3093_v50 = vpop.f32.mrf.mxu3  ;;  %v3326_v60 = vld [vmem:[%s4771_s17 + $0xae] sm:$0xff]  ;;  %v3766_v45 = vpop.permute.xlu0 %3765 }
 0x1fe   : > { %v2332_v51 = vpop.f32.mrf.mxu1 }
 0x1ff   : > { %2160 = vst.msk [vmem:[#allocation3 + $0x108] sm:$0xff] %vm598_vm2, %v2124_v49  ;;  %v2474_v54 = vadd.f32 %v2438_v52, %v2332_v51  ;;  %v5569_v57 = vpop.f32.mrf.mxu0  ;;  %v3745_v49 = vld [vmem:[%s6275_s5 + $0x90] sm:$0xff] }
 0x200   : > { %v2819_v56 = vld [vmem:[#allocation3] sm:$0xff]  ;;  %3855 = vperm.xlu0 %4677, %v3745_v49  }
 0x201   : > { %2510 = vst.msk [vmem:[#allocation3 + $0x8] sm:$0xff] %vm598_vm2, %v2474_v54  ;;  %v2855_v58 = vadd.f32 %v2819_v56, %v2711_v48  ;;  %4528 = vmatmul.msk.f32.gmra.mxu1 %vm360_vm1, %v2560_v21  ;;  %4566 = vmatmul.msk.f32.gmra.mxu2 %vm360_vm1, %v2562_v53  ;;  %v2564_v21 = vld [vmem:[%s4771_s17 + $0xbc] sm:$0xff]  ;;  %v2442_v54 = vld [vmem:[#allocation3 + $0x28] sm:$0xff] }
 0x202   : > { %v1708_v59 = vld [vmem:[#allocation3 + $0x118] sm:$0xff]  ;;  %4604 = vmatmul.msk.f32.gmra.mxu3 %vm360_vm1, %v2944_v55  ;;  %4642 = vmatmul.msk.f32.gmra.mxu0 %vm360_vm1, %v3326_v60  ;;  %v5641_v55 = vld [vmem:[%s4771_s17 + $0xcc] sm:$0xff] }
 0x203   : > { %2891 = vst.msk [vmem:[#allocation3] sm:$0xff] %vm598_vm2, %v2855_v58  ;;  %v1744_v61 = vadd.f32 %v1708_v59, %v1670_v34  ;;  %v2948_v60 = vld [vmem:[%s4771_s17 + $0xcd] sm:$0xff]  ;;  %v3332_v49 = vld [vmem:[%s4771_s17 + $0xde] sm:$0xff] }
 0x204   : > { %v2089_v62 = vld [vmem:[#allocation3 + $0x110] sm:$0xff]  ;;  %v2714_v63 = vpop.f32.mrf.mxu2 }
 0x205   : > { %1780 = vst.msk [vmem:[#allocation3 + $0x118] sm:$0xff] %vm598_vm2, %v1744_v61  ;;  %v2125_v1 = vadd.f32 %v2089_v62, %v5518_v12  ;;  %v3096_v2 = vpop.f32.mrf.mxu3  ;;  %v3327_v12 = vld [vmem:[%s4771_s17 + $0xb6] sm:$0xff]  ;;  %v3330_v62 = vld [vmem:[%s4771_s17 + $0xce] sm:$0xff] }
 0x206   : > { %v2335_v3 = vpop.f32.mrf.mxu1 }
 0x207   : > { %2161 = vst.msk [vmem:[#allocation3 + $0x110] sm:$0xff] %vm598_vm2, %v2125_v1  ;;  %v2475_v6 = vadd.f32 %v2439_v4, %v2335_v3  ;;  %v5586_v11 = vpop.f32.mrf.mxu0  ;;  %v3771_v3 = vpop.permute.xlu0 %3770 }
 0x208   : > { %v2820_v8 = vld [vmem:[#allocation3 + $0x8] sm:$0xff]  ;;  %3870 = vperm.xlu0 %4677, %v3748_v16  }
 0x209   : > { %2511 = vst.msk [vmem:[#allocation3 + $0x10] sm:$0xff] %vm598_vm2, %v2475_v6  ;;  %v2856_v9 = vadd.f32 %v2820_v8, %v2714_v63  ;;  %4529 = vmatmul.msk.f32.gmra.mxu1 %vm360_vm1, %v2561_v37  ;;  %4567 = vmatmul.msk.f32.gmra.mxu2 %vm360_vm1, %v2563_v5  ;;  %v5615_v37 = vld [vmem:[%s4771_s17 + $0xc4] sm:$0xff] }
 0x20a   : > { %v3201_v10 = vld [vmem:[#allocation3] sm:$0xff]  ;;  %4605 = vmatmul.msk.f32.gmra.mxu3 %vm360_vm1, %v2945_v7  ;;  %4643 = vmatmul.msk.f32.gmra.mxu0 %vm360_vm1, %v3327_v12  ;;  %v5665_v12 = vld [vmem:[%s4771_s17 + $0xd4] sm:$0xff] }
 0x20b   : > { %2892 = vst.msk [vmem:[#allocation3 + $0x8] sm:$0xff] %vm598_vm2, %v2856_v9  ;;  %v3237_v13 = vadd.f32 %v3201_v10, %v3093_v50  ;;  %v2443_v9 = vld [vmem:[#allocation3 + $0x30] sm:$0xff] }
 0x20c   : > { %v2090_v14 = vld [vmem:[#allocation3 + $0x118] sm:$0xff]  ;;  %v2717_v15 = vpop.f32.mrf.mxu2 }
 0x20d   : > { %3273 = vst.msk [vmem:[#allocation3] sm:$0xff] %vm598_vm2, %v3237_v13  ;;  %v2126_v17 = vadd.f32 %v2090_v14, %v5535_v26  ;;  %v3099_v18 = vpop.f32.mrf.mxu3  ;;  %v3328_v26 = vld [vmem:[%s4771_s17 + $0xbe] sm:$0xff] }
 0x20e   : > { %v2338_v19 = vpop.f32.mrf.mxu1 }
 0x20f   : > { %2162 = vst.msk [vmem:[#allocation3 + $0x118] sm:$0xff] %vm598_vm2, %v2126_v17  ;;  %v2476_v22 = vadd.f32 %v2440_v20, %v2338_v19  ;;  %v5603_v28 = vpop.f32.mrf.mxu0 }
 0x210   : > { %v2821_v24 = vld [vmem:[#allocation3 + $0x10] sm:$0xff] }
 0x211   : > { %2512 = vst.msk [vmem:[#allocation3 + $0x18] sm:$0xff] %vm598_vm2, %v2476_v22  ;;  %v2857_v25 = vadd.f32 %v2821_v24, %v2717_v15  ;;  %4530 = vmatmul.msk.f32.gmra.mxu1 %vm360_vm1, %v2562_v53  ;;  %4568 = vmatmul.msk.f32.gmra.mxu2 %vm360_vm1, %v2564_v21  ;;  %v2949_v15 = vld [vmem:[%s4771_s17 + $0xd5] sm:$0xff] }
 0x212   : > { %v3202_v27 = vld [vmem:[#allocation3 + $0x8] sm:$0xff]  ;;  %4606 = vmatmul.msk.f32.gmra.mxu3 %vm360_vm1, %v2946_v23  ;;  %4644 = vmatmul.msk.f32.gmra.mxu0 %vm360_vm1, %v3328_v26  ;;  %v3749_v26 = vld [vmem:[%s6275_s5 + $0xb0] sm:$0xff] }
 0x213   : > { %2893 = vst.msk [vmem:[#allocation3 + $0x10] sm:$0xff] %vm598_vm2, %v2857_v25  ;;  %v3238_v29 = vadd.f32 %v3202_v27, %v3096_v2  ;;  %v3776_v25 = vpop.permute.xlu1 %3775  ;;  %3875 = vperm.xlu1 %4678, %v3749_v26  }
 0x214   : > { %v3583_v30 = vld [vmem:[#allocation3] sm:$0xff]  ;;  %v2720_v31 = vpop.f32.mrf.mxu2 }
 0x215   : > { %3274 = vst.msk [vmem:[#allocation3 + $0x8] sm:$0xff] %vm598_vm2, %v3238_v29  ;;  %v3619_v33 = vadd.f32 %v3583_v30, %v5552_v41  ;;  %v3102_v34 = vpop.f32.mrf.mxu3 }
 0x216   : > { %v2341_v35 = vpop.f32.mrf.mxu1 }
 0x217   : > { %3655 = vst.msk [vmem:[#allocation3] sm:$0xff] %vm598_vm2, %v3619_v33  ;;  %v2477_v38 = vadd.f32 %v2441_v36, %v2341_v35  ;;  %v5623_v41 = vpop.f32.mrf.mxu0 }
 0x218   : > { %v2822_v40 = vld [vmem:[#allocation3 + $0x18] sm:$0xff] }
 0x219   : > { %2513 = vst.msk [vmem:[#allocation3 + $0x20] sm:$0xff] %vm598_vm2, %v2477_v38  ;;  %v2858_v42 = vadd.f32 %v2822_v40, %v2720_v31  ;;  %4531 = vmatmul.msk.f32.gmra.mxu1 %vm360_vm1, %v2563_v5  ;;  %4569 = vmatmul.msk.f32.gmra.mxu2 %vm360_vm1, %v5615_v37  ;;  %v5700_v40 = vld [vmem:[%s4771_s17 + $0xdc] sm:$0xff] }
 0x21a   : > { %v3203_v43 = vld [vmem:[#allocation3 + $0x10] sm:$0xff]  ;;  %4607 = vmatmul.msk.f32.gmra.mxu3 %vm360_vm1, %v2947_v39  ;;  %4645 = vmatmul.msk.f32.gmra.mxu0 %vm360_vm1, %v3329_v44  ;;  %v2444_v39 = vld [vmem:[#allocation3 + $0x38] sm:$0xff] }
 0x21b   : > { %2894 = vst.msk [vmem:[#allocation3 + $0x18] sm:$0xff] %vm598_vm2, %v2858_v42  ;;  %v3239_v46 = vadd.f32 %v3203_v43, %v3099_v18  ;;  %v2950_v43 = vld [vmem:[%s4771_s17 + $0xdd] sm:$0xff] }
 0x21c   : > { %v3584_v47 = vld [vmem:[#allocation3 + $0x8] sm:$0xff]  ;;  %v2723_v48 = vpop.f32.mrf.mxu2 }
 0x21d   : > { %3275 = vst.msk [vmem:[#allocation3 + $0x10] sm:$0xff] %vm598_vm2, %v3239_v46  ;;  %v3620_v50 = vadd.f32 %v3584_v47, %v5569_v57  ;;  %v3105_v51 = vpop.f32.mrf.mxu3 }
 0x21e   : > { %v3691_v52 = vld [vmem:[#allocation3] sm:$0xff]  ;;  %v2344_v53 = vpop.f32.mrf.mxu1 }
 0x21f   : > { %3656 = vst.msk [vmem:[#allocation3 + $0x8] sm:$0xff] %vm598_vm2, %v3620_v50  ;;  %v3943_v56 = vmul.f32 %v3766_v45, %v3691_v52  ;;  %v2478_v58 = vadd.f32 %v2442_v54, %v2344_v53  ;;  %v5650_v61 = vpop.f32.mrf.mxu0  ;;  %v3751_v45 = vld [vmem:[%s6275_s5 + $0xc0] sm:$0xff]  ;;  %v3752_v52 = vld [vmem:[%s6275_s5 + $0xc8] sm:$0xff] }
 0x220   : > { %v2823_v57 = vld [vmem:[#allocation3 + $0x20] sm:$0xff]  ;;  %3885 = vperm.xlu0 %4677, %v3751_v45   ;;  %3890 = vperm.xlu1 %4678, %v3752_v52  }
 0x221   : > { %4172 = vst.msk [vmem:[%s5638_s21] sm:$0xff] %vm598_vm2, %v3943_v56  ;;  %v2859_v59 = vadd.f32 %v2823_v57, %v2723_v48  ;;  %4532 = vmatmul.msk.f32.gmra.mxu1 %vm360_vm1, %v2564_v21  ;;  %4570 = vmatmul.msk.f32.gmra.mxu2 %vm360_vm1, %v5641_v55  ;;  %v4058_v10 = vmul.f32 %v3943_v56, %v3943_v56  ;;  %v3331_v21 = vld [vmem:[%s4771_s17 + $0xd6] sm:$0xff] }
 0x222   : > { %2514 = vst.msk [vmem:[#allocation3 + $0x28] sm:$0xff] %vm598_vm2, %v2478_v58  ;;  %v3204_v63 = vld [vmem:[#allocation3 + $0x18] sm:$0xff]  ;;  %4608 = vmatmul.msk.f32.gmra.mxu3 %vm360_vm1, %v2948_v60  ;;  %4646 = vmatmul.msk.f32.gmra.mxu0 %vm360_vm1, %v3330_v62  ;;  %v3781_v60 = vpop.permute.xlu1 %3780 }
 0x223   : > { %2895 = vst.msk [vmem:[#allocation3 + $0x20] sm:$0xff] %vm598_vm2, %v2859_v59  ;;  %v3240_v1 = vadd.f32 %v3204_v63, %v3102_v34  ;;  %v4094_v27 = vsel %vm598_vm2, %v4058_v10, 0.0  ;;  %v3744_v34 = vld [vmem:[%s6275_s5 + $0x88] sm:$0xff] }
 0x224   : > { %v3585_v2 = vld [vmem:[#allocation3 + $0x10] sm:$0xff]  ;;  %v2726_v4 = vpop.f32.mrf.mxu2  ;;  %3850 = vperm.xlu2 %4679, %v3744_v34   ;;  %v3333_v10 = vld [vmem:[%s4771_s17 + $0xe6] sm:$0xff] }
 0x225   : > { %3276 = vst.msk [vmem:[#allocation3 + $0x18] sm:$0xff] %vm598_vm2, %v3240_v1  ;;  %v3621_v5 = vadd.f32 %v3585_v2, %v5586_v11  ;;  %v5662_v6 = vpop.f32.mrf.mxu3  ;;  %v3979_v11 = vsel %vm598_vm2, %v3943_v56, 0.0  ;;  %v2445_v1 = vld [vmem:[#allocation3 + $0x40] sm:$0xff] }
 0x226   : > { %v3692_v7 = vld [vmem:[#allocation3 + $0x8] sm:$0xff]  ;;  %v2347_v8 = vpop.f32.mrf.mxu1 }
 0x227   : > { %3657 = vst.msk [vmem:[#allocation3 + $0x10] sm:$0xff] %vm598_vm2, %v3621_v5  ;;  %v3944_v13 = vmul.f32 %v3771_v3, %v3692_v7  ;;  %v2479_v14 = vadd.f32 %v2443_v9, %v2347_v8  ;;  %v5680_v20 = vpop.f32.mrf.mxu0  ;;  %v5731_v2 = vld [vmem:[%s4771_s17 + $0xe4] sm:$0xff] }
 0x228   : > { %v2951_v5 = vld [vmem:[%s4771_s17 + $0xe5] sm:$0xff] }
 0x229   : > { %v3980_v17 = vsel %vm598_vm2, %v3944_v13, 0.0  ;;  %v4059_v18 = vmul.f32 %v3944_v13, %v3944_v13  ;;  %4173 = vst.msk [vmem:[%s5638_s21 + $0x8] sm:$0xff] %vm598_vm2, %v3944_v13  ;;  %v2824_v19 = vld [vmem:[#allocation3 + $0x28] sm:$0xff]  ;;  %4533 = vmatmul.msk.f32.gmra.mxu1 %vm360_vm1, %v5615_v37  ;;  %4571 = vmatmul.msk.f32.gmra.mxu2 %vm360_vm1, %v5665_v12 }
 0x22a   : > { %v3981_v22 = vadd.f32 %v3980_v17, %v3979_v11  ;;  %2515 = vst.msk [vmem:[#allocation3 + $0x30] sm:$0xff] %vm598_vm2, %v2479_v14  ;;  %v2860_v23 = vadd.f32 %v2824_v19, %v2726_v4  ;;  %v3205_v24 = vld [vmem:[#allocation3 + $0x20] sm:$0xff]  ;;  %4609 = vmatmul.msk.f32.gmra.mxu3 %vm360_vm1, %v2949_v15  ;;  %4647 = vmatmul.msk.f32.gmra.mxu0 %vm360_vm1, %v3331_v21  ;;  %v3786_v11 = vpop.permute.xlu2 %3785 }
 0x22b   : > { %v4095_v29 = vsel %vm598_vm2, %v4059_v18, 0.0  ;;  %v3241_v30 = vadd.f32 %v3205_v24, %v3105_v51  ;;  %v3755_v15 = vld [vmem:[%s6275_s5 + $0xe0] sm:$0xff] }
 0x22c   : > { %v4096_v31 = vadd.f32 %v4095_v29, %v4094_v27  ;;  %2896 = vst.msk [vmem:[#allocation3 + $0x28] sm:$0xff] %vm598_vm2, %v2860_v23  ;;  %v3586_v32 = vld [vmem:[#allocation3 + $0x18] sm:$0xff]  ;;  %v2729_v33 = vpop.f32.mrf.mxu2  ;;  %3905 = vperm.xlu1 %4678, %v3755_v15   ;;  %v3747_v21 = vld [vmem:[%s6275_s5 + $0xa0] sm:$0xff]  ;;  %v2446_v27 = vld [vmem:[#allocation3 + $0x48] sm:$0xff] }
 0x22d   : > { %3277 = vst.msk [vmem:[#allocation3 + $0x20] sm:$0xff] %vm598_vm2, %v3241_v30  ;;  %v3622_v35 = vadd.f32 %v3586_v32, %v5603_v28  ;;  %v5697_v36 = vpop.f32.mrf.mxu3  ;;  %3865 = vperm.xlu2 %4679, %v3747_v21   ;;  %v5765_v29 = vld [vmem:[%s4771_s17 + $0xec] sm:$0xff] }
 0x22e   : > { %v3693_v37 = vld [vmem:[#allocation3 + $0x10] sm:$0xff]  ;;  %v2350_v38 = vpop.f32.mrf.mxu1 }
 0x22f   : > { %3658 = vst.msk [vmem:[#allocation3 + $0x18] sm:$0xff] %vm598_vm2, %v3622_v35  ;;  %v3945_v42 = vmul.f32 %v3776_v25, %v3693_v37  ;;  %v2480_v44 = vadd.f32 %v2444_v39, %v2350_v38  ;;  %v5714_v48 = vpop.f32.mrf.mxu0  ;;  %v2952_v32 = vld [vmem:[%s4771_s17 + $0xed] sm:$0xff] }
 0x230   : > { %v3334_v37 = vld [vmem:[%s4771_s17 + $0xee] sm:$0xff] }
 0x231   : > { %v3982_v28 = vsel %vm598_vm2, %v3945_v42, 0.0  ;;  %v4060_v46 = vmul.f32 %v3945_v42, %v3945_v42  ;;  %4174 = vst.msk [vmem:[%s5638_s21 + $0x10] sm:$0xff] %vm598_vm2, %v3945_v42  ;;  %v2825_v47 = vld [vmem:[#allocation3 + $0x30] sm:$0xff]  ;;  %4534 = vmatmul.msk.f32.gmra.mxu1 %vm360_vm1, %v5641_v55  ;;  %4572 = vmatmul.msk.f32.gmra.mxu2 %vm360_vm1, %v5700_v40  ;;  %v3758_v42 = vld [vmem:[%s6275_s5 + $0xf8] sm:$0xff] }
 0x232   : > { %v3983_v50 = vadd.f32 %v3982_v28, %v3981_v22  ;;  %2516 = vst.msk [vmem:[#allocation3 + $0x38] sm:$0xff] %vm598_vm2, %v2480_v44  ;;  %v2861_v51 = vadd.f32 %v2825_v47, %v2729_v33  ;;  %4610 = vmatmul.msk.f32.gmra.mxu3 %vm360_vm1, %v2950_v43  ;;  %4648 = vmatmul.msk.f32.gmra.mxu0 %vm360_vm1, %v3332_v49  ;;  %v3757_v33 = vld [vmem:[%s6275_s5 + $0xf0] sm:$0xff]  ;;  %v3791_v49 = vpop.permute.xlu2 %3790 }
 0x233   : > { %v4097_v53 = vsel %vm598_vm2, %v4060_v46, 0.0  ;;  %v3206_v54 = vld [vmem:[#allocation3 + $0x28] sm:$0xff]  ;;  %v3750_v46 = vld [vmem:[%s6275_s5 + $0xb8] sm:$0xff] }
 0x234   : > { %v4098_v55 = vadd.f32 %v4097_v53, %v4096_v31  ;;  %2897 = vst.msk [vmem:[#allocation3 + $0x30] sm:$0xff] %vm598_vm2, %v2861_v51  ;;  %v3242_v56 = vadd.f32 %v3206_v54, %v5662_v6  ;;  %v3587_v58 = vld [vmem:[#allocation3 + $0x20] sm:$0xff]  ;;  %v2732_v57 = vpop.f32.mrf.mxu2  ;;  %v3754_v6 = vld [vmem:[%s6275_s5 + $0xd8] sm:$0xff]  ;;  %3920 = vperm.xlu1 %4678, %v3758_v42   ;;  %v2447_v53 = vld [vmem:[#allocation3 + $0x50] sm:$0xff] }
 0x235   : > { %v3623_v59 = vadd.f32 %v3587_v58, %v5623_v41  ;;  %v5727_v62 = vpop.f32.mrf.mxu3  ;;  %3900 = vperm.xlu0 %4677, %v3754_v6   ;;  %3880 = vperm.xlu2 %4679, %v3750_v46   ;;  %v5799_v54 = vld [vmem:[%s4771_s17 + $0xf4] sm:$0xff]  ;;  %v2449_v42 = vld [vmem:[#allocation3 + $0x60] sm:$0xff] }
 0x236   : > { %3278 = vst.msk [vmem:[#allocation3 + $0x28] sm:$0xff] %vm598_vm2, %v3242_v56  ;;  %v3694_v63 = vld [vmem:[#allocation3 + $0x18] sm:$0xff]  ;;  %v2353_v0 = vpop.f32.mrf.mxu1 }
 0x237   : > { %3659 = vst.msk [vmem:[#allocation3 + $0x20] sm:$0xff] %vm598_vm2, %v3623_v59  ;;  %v3946_v3 = vmul.f32 %v3781_v60, %v3694_v63  ;;  %v2481_v4 = vadd.f32 %v2445_v1, %v2353_v0  ;;  %v5745_v9 = vpop.f32.mrf.mxu0  ;;  %v2953_v58 = vld [vmem:[%s4771_s17 + $0xf5] sm:$0xff] }
 0x239   : > { %v3984_v41 = vsel %vm598_vm2, %v3946_v3, 0.0  ;;  %v4061_v7 = vmul.f32 %v3946_v3, %v3946_v3  ;;  %4175 = vst.msk [vmem:[%s5638_s21 + $0x18] sm:$0xff] %vm598_vm2, %v3946_v3  ;;  %v2826_v8 = vld [vmem:[#allocation3 + $0x38] sm:$0xff]  ;;  %4535 = vmatmul.msk.f32.gmra.mxu1 %vm360_vm1, %v5665_v12  ;;  %4573 = vmatmul.msk.f32.gmra.mxu2 %vm360_vm1, %v5731_v2  ;;  %v3761_v3 = vld [vmem:[%s6275_s5 + $0x110] sm:$0xff] }
 0x23a   : > { %v3985_v13 = vadd.f32 %v3984_v41, %v3983_v50  ;;  %2517 = vst.msk [vmem:[#allocation3 + $0x40] sm:$0xff] %vm598_vm2, %v2481_v4  ;;  %v2862_v14 = vadd.f32 %v2826_v8, %v2732_v57  ;;  %4611 = vmatmul.msk.f32.gmra.mxu3 %vm360_vm1, %v2951_v5  ;;  %4649 = vmatmul.msk.f32.gmra.mxu0 %vm360_vm1, %v3333_v10  ;;  %v3760_v57 = vld [vmem:[%s6275_s5 + $0x108] sm:$0xff] }
 0x23b   : > { %v4099_v16 = vsel %vm598_vm2, %v4061_v7, 0.0  ;;  %v3207_v12 = vld [vmem:[#allocation3 + $0x30] sm:$0xff] }
 0x23c   : > { %v4100_v17 = vadd.f32 %v4099_v16, %v4098_v55  ;;  %2898 = vst.msk [vmem:[#allocation3 + $0x38] sm:$0xff] %vm598_vm2, %v2862_v14  ;;  %v3243_v18 = vadd.f32 %v3207_v12, %v5697_v36  ;;  %v2735_v19 = vpop.f32.mrf.mxu2  ;;  %3935 = vperm.xlu1 %4678, %v3761_v3   ;;  %v3753_v7 = vld [vmem:[%s6275_s5 + $0xd0] sm:$0xff]  ;;  %v2448_v12 = vld [vmem:[#allocation3 + $0x58] sm:$0xff] }
 0x23d   : > { %v3588_v22 = vld [vmem:[#allocation3 + $0x28] sm:$0xff]  ;;  %v5760_v23 = vpop.f32.mrf.mxu3  ;;  %3915 = vperm.xlu0 %4677, %v3757_v33   ;;  %3895 = vperm.xlu2 %4679, %v3753_v7  }
 0x23e   : > { %3279 = vst.msk [vmem:[#allocation3 + $0x30] sm:$0xff] %vm598_vm2, %v3243_v18  ;;  %v3624_v24 = vadd.f32 %v3588_v22, %v5650_v61  ;;  %v3695_v25 = vld [vmem:[#allocation3 + $0x20] sm:$0xff]  ;;  %v2356_v26 = vpop.f32.mrf.mxu1  ;;  %v3756_v33 = vld [vmem:[%s6275_s5 + $0xe8] sm:$0xff] }
 0x23f   : > { %v3947_v30 = vmul.f32 %v3786_v11, %v3695_v25  ;;  %v2482_v31 = vadd.f32 %v2446_v27, %v2356_v26  ;;  %v5779_v36 = vpop.f32.mrf.mxu0  ;;  %v5831_v11 = vld [vmem:[%s4771_s17 + $0xfc] sm:$0xff]  ;;  %v5882_v3 = vld [vmem:[%s4771_s17 + $0x10c] sm:$0xff] }
 0x240   : > { %3660 = vst.msk [vmem:[#allocation3 + $0x28] sm:$0xff] %vm598_vm2, %v3624_v24  ;;  %v3336_v24 = vld [vmem:[%s4771_s17 + $0xfe] sm:$0xff] }
 0x241   : > { %v3986_v34 = vsel %vm598_vm2, %v3947_v30, 0.0  ;;  %v4062_v35 = vmul.f32 %v3947_v30, %v3947_v30  ;;  %4176 = vst.msk [vmem:[%s5638_s21 + $0x20] sm:$0xff] %vm598_vm2, %v3947_v30  ;;  %v2827_v61 = vld [vmem:[#allocation3 + $0x40] sm:$0xff]  ;;  %4536 = vmatmul.msk.f32.gmra.mxu1 %vm360_vm1, %v5700_v40  ;;  %4574 = vmatmul.msk.f32.gmra.mxu2 %vm360_vm1, %v5765_v29 }
 0x242   : > { %v3987_v38 = vadd.f32 %v3986_v34, %v3985_v13  ;;  %2518 = vst.msk [vmem:[#allocation3 + $0x48] sm:$0xff] %vm598_vm2, %v2482_v31  ;;  %v2863_v39 = vadd.f32 %v2827_v61, %v2735_v19  ;;  %4612 = vmatmul.msk.f32.gmra.mxu3 %vm360_vm1, %v2952_v32  ;;  %4650 = vmatmul.msk.f32.gmra.mxu0 %vm360_vm1, %v3334_v37  ;;  %v3796_v13 = vpop.permute.xlu0 %3795  ;;  %v2954_v19 = vld [vmem:[%s4771_s17 + $0xfd] sm:$0xff]  ;;  %v3801_v61 = vpop.permute.xlu1 %3800 }
 0x243   : > { %v4101_v44 = vsel %vm598_vm2, %v4062_v35, 0.0  ;;  %v3208_v40 = vld [vmem:[#allocation3 + $0x38] sm:$0xff] }
 0x244   : > { %v4102_v43 = vadd.f32 %v4101_v44, %v4100_v17  ;;  %2899 = vst.msk [vmem:[#allocation3 + $0x40] sm:$0xff] %vm598_vm2, %v2863_v39  ;;  %v3244_v45 = vadd.f32 %v3208_v40, %v5727_v62  ;;  %v2738_v28 = vpop.f32.mrf.mxu2  ;;  %v3335_v62 = vld [vmem:[%s4771_s17 + $0xf6] sm:$0xff]  ;;  %v5857_v44 = vld [vmem:[%s4771_s17 + $0x104] sm:$0xff] }
 0x245   : > { %v3589_v47 = vld [vmem:[#allocation3 + $0x30] sm:$0xff]  ;;  %v5794_v50 = vpop.f32.mrf.mxu3  ;;  %3930 = vperm.xlu0 %4677, %v3760_v57   ;;  %3910 = vperm.xlu2 %4679, %v3756_v33  }
 0x246   : > { %3280 = vst.msk [vmem:[#allocation3 + $0x38] sm:$0xff] %vm598_vm2, %v3244_v45  ;;  %v3625_v51 = vadd.f32 %v3589_v47, %v5680_v20  ;;  %v2359_v52 = vpop.f32.mrf.mxu1  ;;  %v2955_v45 = vld [vmem:[%s4771_s17 + $0x105] sm:$0xff] }
 0x247   : > { %v3696_v55 = vld [vmem:[#allocation3 + $0x28] sm:$0xff]  ;;  %v2483_v56 = vadd.f32 %v2447_v53, %v2359_v52  ;;  %v5811_v20 = vpop.f32.mrf.mxu0 }
 0x248   : > { %3661 = vst.msk [vmem:[#allocation3 + $0x30] sm:$0xff] %vm598_vm2, %v3625_v51  ;;  %v3948_v60 = vmul.f32 %v3791_v49, %v3696_v55  ;;  %v3337_v49 = vld [vmem:[%s4771_s17 + $0x106] sm:$0xff] }
 0x249   : > { %2519 = vst.msk [vmem:[#allocation3 + $0x50] sm:$0xff] %vm598_vm2, %v2483_v56  ;;  %v2828_v59 = vld [vmem:[#allocation3 + $0x48] sm:$0xff]  ;;  %4537 = vmatmul.msk.f32.gmra.mxu1 %vm360_vm1, %v5731_v2  ;;  %4575 = vmatmul.msk.f32.gmra.mxu2 %vm360_vm1, %v5799_v54 }
 0x24a   : > { %v3988_v63 = vsel %vm598_vm2, %v3948_v60, 0.0  ;;  %v4063_v0 = vmul.f32 %v3948_v60, %v3948_v60  ;;  %4177 = vst.msk [vmem:[%s5638_s21 + $0x28] sm:$0xff] %vm598_vm2, %v3948_v60  ;;  %v2864_v1 = vadd.f32 %v2828_v59, %v2738_v28  ;;  %4613 = vmatmul.msk.f32.gmra.mxu3 %vm360_vm1, %v2953_v58  ;;  %4651 = vmatmul.msk.f32.gmra.mxu0 %vm360_vm1, %v3335_v62  ;;  %v3759_v58 = vld [vmem:[%s6275_s5 + $0x100] sm:$0xff]  ;;  %v3806_v59 = vpop.permute.xlu2 %3805 }
 0x24b   : > { %v3989_v2 = vadd.f32 %v3988_v63, %v3987_v38  ;;  %v3209_v4 = vld [vmem:[#allocation3 + $0x40] sm:$0xff] }
 0x24c   : > { %v4103_v5 = vsel %vm598_vm2, %v4063_v0, 0.0  ;;  %2900 = vst.msk [vmem:[#allocation3 + $0x48] sm:$0xff] %vm598_vm2, %v2864_v1  ;;  %v3245_v6 = vadd.f32 %v3209_v4, %v5760_v23  ;;  %v2741_v41 = vpop.f32.mrf.mxu2  ;;  %v2450_v1 = vld [vmem:[#allocation3 + $0x68] sm:$0xff] }
 0x24d   : > { %v4104_v8 = vadd.f32 %v4103_v5, %v4102_v43  ;;  %v3590_v10 = vld [vmem:[#allocation3 + $0x38] sm:$0xff]  ;;  %v3123_v14 = vpop.f32.mrf.mxu3  ;;  %3925 = vperm.xlu2 %4679, %v3759_v58   ;;  %v2956_v5 = vld [vmem:[%s4771_s17 + $0x10d] sm:$0xff] }
 0x24e   : > { %3281 = vst.msk [vmem:[#allocation3 + $0x40] sm:$0xff] %vm598_vm2, %v3245_v6  ;;  %v3626_v15 = vadd.f32 %v3590_v10, %v5714_v48  ;;  %v2362_v16 = vpop.f32.mrf.mxu1 }
 0x24f   : > { %v3697_v17 = vld [vmem:[#allocation3 + $0x30] sm:$0xff]  ;;  %v2484_v18 = vadd.f32 %v2448_v12, %v2362_v16  ;;  %v5840_v48 = vpop.f32.mrf.mxu0 }
 0x250   : > { %3662 = vst.msk [vmem:[#allocation3 + $0x38] sm:$0xff] %vm598_vm2, %v3626_v15  ;;  %v3949_v21 = vmul.f32 %v3796_v13, %v3697_v17  ;;  %v2829_v22 = vld [vmem:[#allocation3 + $0x50] sm:$0xff] }
 0x251   : > { %2520 = vst.msk [vmem:[#allocation3 + $0x58] sm:$0xff] %vm598_vm2, %v2484_v18  ;;  %v2865_v23 = vadd.f32 %v2829_v22, %v2741_v41  ;;  %4538 = vmatmul.msk.f32.gmra.mxu1 %vm360_vm1, %v5765_v29  ;;  %4576 = vmatmul.msk.f32.gmra.mxu2 %vm360_vm1, %v5831_v11  ;;  %v3762_v18 = vld [vmem:[%s6275_s5 + $0x118] sm:$0xff]  ;;  %v3811_v22 = vpop.permute.xlu0 %3810 }
 0x252   : > { %v3990_v25 = vsel %vm598_vm2, %v3949_v21, 0.0  ;;  %v4064_v26 = vmul.f32 %v3949_v21, %v3949_v21  ;;  %4178 = vst.msk [vmem:[%s5638_s21 + $0x30] sm:$0xff] %vm598_vm2, %v3949_v21  ;;  %4614 = vmatmul.msk.f32.gmra.mxu3 %vm360_vm1, %v2954_v19  ;;  %4652 = vmatmul.msk.f32.gmra.mxu0 %vm360_vm1, %v3336_v24 }
 0x253   : > { %v3991_v27 = vadd.f32 %v3990_v25, %v3989_v2  ;;  %2901 = vst.msk [vmem:[#allocation3 + $0x50] sm:$0xff] %vm598_vm2, %v2865_v23  ;;  %v3210_v30 = vld [vmem:[#allocation3 + $0x48] sm:$0xff]  ;;  %v2451_v25 = vld [vmem:[#allocation3 + $0x70] sm:$0xff] }
 0x254   : > { %v4105_v29 = vsel %vm598_vm2, %v4064_v26, 0.0  ;;  %v3246_v31 = vadd.f32 %v3210_v30, %v5794_v50  ;;  %v2744_v32 = vpop.f32.mrf.mxu2  ;;  %v5907_v26 = vld [vmem:[%s4771_s17 + $0x114] sm:$0xff] }
 0x255   : > { %v4106_v34 = vadd.f32 %v4105_v29, %v4104_v8  ;;  %v3591_v35 = vld [vmem:[#allocation3 + $0x40] sm:$0xff]  ;;  %v3126_v37 = vpop.f32.mrf.mxu3  ;;  %v3338_v8 = vld [vmem:[%s4771_s17 + $0x10e] sm:$0xff]  ;;  %3940 = vperm.xlu2 %4679, %v3762_v18  }
 0x256   : > { %3282 = vst.msk [vmem:[#allocation3 + $0x48] sm:$0xff] %vm598_vm2, %v3246_v31  ;;  %v3627_v38 = vadd.f32 %v3591_v35, %v5745_v9  ;;  %v2365_v39 = vpop.f32.mrf.mxu1  ;;  %v2957_v29 = vld [vmem:[%s4771_s17 + $0x115] sm:$0xff] }
 0x257   : > { %v3698_v40 = vld [vmem:[#allocation3 + $0x38] sm:$0xff]  ;;  %v2485_v43 = vadd.f32 %v2449_v42, %v2365_v39  ;;  %v5866_v9 = vpop.f32.mrf.mxu0 }
 0x258   : > { %3663 = vst.msk [vmem:[#allocation3 + $0x40] sm:$0xff] %vm598_vm2, %v3627_v38  ;;  %v3950_v28 = vmul.f32 %v3801_v61, %v3698_v40  ;;  %v2830_v46 = vld [vmem:[#allocation3 + $0x58] sm:$0xff]  ;;  %v3816_v40 = vpop.permute.xlu1 %3815 }
 0x259   : > { %2521 = vst.msk [vmem:[#allocation3 + $0x60] sm:$0xff] %vm598_vm2, %v2485_v43  ;;  %v2866_v47 = vadd.f32 %v2830_v46, %v2744_v32  ;;  %4539 = vmatmul.msk.f32.gmra.mxu1 %vm360_vm1, %v5799_v54  ;;  %4577 = vmatmul.msk.f32.gmra.mxu2 %vm360_vm1, %v5857_v44 }
 0x25a   : > { %v3992_v50 = vsel %vm598_vm2, %v3950_v28, 0.0  ;;  %v4065_v51 = vmul.f32 %v3950_v28, %v3950_v28  ;;  %4179 = vst.msk [vmem:[%s5638_s21 + $0x38] sm:$0xff] %vm598_vm2, %v3950_v28  ;;  %v3211_v52 = vld [vmem:[#allocation3 + $0x50] sm:$0xff]  ;;  %4615 = vmatmul.msk.f32.gmra.mxu3 %vm360_vm1, %v2955_v45  ;;  %4653 = vmatmul.msk.f32.gmra.mxu0 %vm360_vm1, %v3337_v49 }
 0x25b   : > { %v3993_v53 = vadd.f32 %v3992_v50, %v3991_v27  ;;  %2902 = vst.msk [vmem:[#allocation3 + $0x58] sm:$0xff] %vm598_vm2, %v2866_v47  ;;  %v3247_v55 = vadd.f32 %v3211_v52, %v3123_v14  ;;  %v2452_v50 = vld [vmem:[#allocation3 + $0x78] sm:$0xff] }
 0x25c   : > { %v4107_v54 = vsel %vm598_vm2, %v4065_v51, 0.0  ;;  %v2747_v56 = vpop.f32.mrf.mxu2  ;;  %v5929_v51 = vld [vmem:[%s4771_s17 + $0x11c] sm:$0xff] }
 0x25d   : > { %v4108_v60 = vadd.f32 %v4107_v54, %v4106_v34  ;;  %3283 = vst.msk [vmem:[#allocation3 + $0x50] sm:$0xff] %vm598_vm2, %v3247_v55  ;;  %v3592_v57 = vld [vmem:[#allocation3 + $0x48] sm:$0xff]  ;;  %v3129_v62 = vpop.f32.mrf.mxu3  ;;  %v3339_v34 = vld [vmem:[%s4771_s17 + $0x116] sm:$0xff] }
 0x25e   : > { %v3628_v63 = vadd.f32 %v3592_v57, %v5779_v36  ;;  %v2368_v0 = vpop.f32.mrf.mxu1  ;;  %v2958_v55 = vld [vmem:[%s4771_s17 + $0x11d] sm:$0xff] }
 0x25f   : > { %v3699_v2 = vld [vmem:[#allocation3 + $0x40] sm:$0xff]  ;;  %v2486_v4 = vadd.f32 %v2450_v1, %v2368_v0  ;;  %v5891_v36 = vpop.f32.mrf.mxu0 }
 0x260   : > { %3664 = vst.msk [vmem:[#allocation3 + $0x48] sm:$0xff] %vm598_vm2, %v3628_v63  ;;  %v3951_v6 = vmul.f32 %v3806_v59, %v3699_v2  ;;  %v2831_v41 = vld [vmem:[#allocation3 + $0x60] sm:$0xff]  ;;  %v3821_v2 = vpop.permute.xlu2 %3820 }
 0x261   : > { %2522 = vst.msk [vmem:[#allocation3 + $0x68] sm:$0xff] %vm598_vm2, %v2486_v4  ;;  %v2867_v7 = vadd.f32 %v2831_v41, %v2747_v56  ;;  %4540 = vmatmul.msk.f32.gmra.mxu1 %vm360_vm1, %v5831_v11  ;;  %4578 = vmatmul.msk.f32.gmra.mxu2 %vm360_vm1, %v5882_v3  ;;  %v3340_v57 = vld [vmem:[%s4771_s17 + $0x11e] sm:$0xff] }
 0x262   : > { %v3994_v10 = vsel %vm598_vm2, %v3951_v6, 0.0  ;;  %v4066_v13 = vmul.f32 %v3951_v6, %v3951_v6  ;;  %4180 = vst.msk [vmem:[%s5638_s21 + $0x40] sm:$0xff] %vm598_vm2, %v3951_v6  ;;  %v3212_v14 = vld [vmem:[#allocation3 + $0x58] sm:$0xff]  ;;  %4616 = vmatmul.msk.f32.gmra.mxu3 %vm360_vm1, %v2956_v5  ;;  %4654 = vmatmul.msk.f32.gmra.mxu0 %vm360_vm1, %v3338_v8  ;;  %v2453_v8 = vld [vmem:[#allocation3 + $0x80] sm:$0xff] }
 0x263   : > { %v3995_v15 = vadd.f32 %v3994_v10, %v3993_v53  ;;  %2903 = vst.msk [vmem:[#allocation3 + $0x60] sm:$0xff] %vm598_vm2, %v2867_v7  ;;  %v3248_v16 = vadd.f32 %v3212_v14, %v3126_v37  ;;  %v5951_v10 = vld [vmem:[%s4771_s17 + $0x124] sm:$0xff] }
 0x264   : > { %v4109_v12 = vsel %vm598_vm2, %v4066_v13, 0.0  ;;  %v3593_v11 = vld [vmem:[#allocation3 + $0x50] sm:$0xff]  ;;  %v2750_v17 = vpop.f32.mrf.mxu2 }
 0x265   : > { %v4110_v19 = vadd.f32 %v4109_v12, %v4108_v60  ;;  %3284 = vst.msk [vmem:[#allocation3 + $0x58] sm:$0xff] %vm598_vm2, %v3248_v16  ;;  %v3629_v21 = vadd.f32 %v3593_v11, %v5811_v20  ;;  %v3132_v23 = vpop.f32.mrf.mxu3 }
 0x266   : > { %v2371_v24 = vpop.f32.mrf.mxu1 }
 0x267   : > { %3665 = vst.msk [vmem:[#allocation3 + $0x50] sm:$0xff] %vm598_vm2, %v3629_v21  ;;  %v3700_v27 = vld [vmem:[#allocation3 + $0x48] sm:$0xff]  ;;  %v2487_v30 = vadd.f32 %v2451_v25, %v2371_v24  ;;  %v5916_v20 = vpop.f32.mrf.mxu0 }
 0x268   : > { %v3952_v31 = vmul.f32 %v3811_v22, %v3700_v27  ;;  %v2832_v32 = vld [vmem:[#allocation3 + $0x68] sm:$0xff] }
 0x269   : > { %2523 = vst.msk [vmem:[#allocation3 + $0x70] sm:$0xff] %vm598_vm2, %v2487_v30  ;;  %v2868_v33 = vadd.f32 %v2832_v32, %v2750_v17  ;;  %4541 = vmatmul.msk.f32.gmra.mxu1 %vm360_vm1, %v5857_v44  ;;  %4579 = vmatmul.msk.f32.gmra.mxu2 %vm360_vm1, %v5907_v26  ;;  %v3341_v17 = vld [vmem:[%s4771_s17 + $0x126] sm:$0xff] }
 0x26a   : > { %v3996_v35 = vsel %vm598_vm2, %v3952_v31, 0.0  ;;  %v4067_v61 = vmul.f32 %v3952_v31, %v3952_v31  ;;  %4181 = vst.msk [vmem:[%s5638_s21 + $0x48] sm:$0xff] %vm598_vm2, %v3952_v31  ;;  %v3213_v37 = vld [vmem:[#allocation3 + $0x60] sm:$0xff]  ;;  %4617 = vmatmul.msk.f32.gmra.mxu3 %vm360_vm1, %v2957_v29  ;;  %4655 = vmatmul.msk.f32.gmra.mxu0 %vm360_vm1, %v3339_v34  ;;  %v5973_v34 = vld [vmem:[%s4771_s17 + $0x12c] sm:$0xff] }
 0x26b   : > { %v3997_v38 = vadd.f32 %v3996_v35, %v3995_v15  ;;  %2904 = vst.msk [vmem:[#allocation3 + $0x68] sm:$0xff] %vm598_vm2, %v2868_v33  ;;  %v3249_v39 = vadd.f32 %v3213_v37, %v3129_v62  ;;  %v2959_v15 = vld [vmem:[%s4771_s17 + $0x125] sm:$0xff]  ;;  %v2960_v37 = vld [vmem:[%s4771_s17 + $0x12d] sm:$0xff] }
 0x26c   : > { %v4111_v42 = vsel %vm598_vm2, %v4067_v61, 0.0  ;;  %v3594_v44 = vld [vmem:[#allocation3 + $0x58] sm:$0xff]  ;;  %v2753_v43 = vpop.f32.mrf.mxu2  ;;  %v2454_v33 = vld [vmem:[#allocation3 + $0x88] sm:$0xff] }
 0x26d   : > { %v4112_v45 = vadd.f32 %v4111_v42, %v4110_v19  ;;  %3285 = vst.msk [vmem:[#allocation3 + $0x60] sm:$0xff] %vm598_vm2, %v3249_v39  ;;  %v3630_v28 = vadd.f32 %v3594_v44, %v5840_v48  ;;  %v3135_v46 = vpop.f32.mrf.mxu3  ;;  %v3342_v44 = vld [vmem:[%s4771_s17 + $0x12e] sm:$0xff] }
 0x26e   : > { %v3701_v47 = vld [vmem:[#allocation3 + $0x50] sm:$0xff]  ;;  %v2374_v49 = vpop.f32.mrf.mxu1 }
 0x26f   : > { %3666 = vst.msk [vmem:[#allocation3 + $0x58] sm:$0xff] %vm598_vm2, %v3630_v28  ;;  %v3953_v52 = vmul.f32 %v3816_v40, %v3701_v47  ;;  %v2488_v53 = vadd.f32 %v2452_v50, %v2374_v49  ;;  %v5940_v48 = vpop.f32.mrf.mxu0  ;;  %v3831_v50 = vpop.permute.xlu1 %3830 }
 0x270   : > { %v2833_v54 = vld [vmem:[#allocation3 + $0x70] sm:$0xff] }
 0x271   : > { %v3998_v56 = vsel %vm598_vm2, %v3953_v52, 0.0  ;;  %v4068_v58 = vmul.f32 %v3953_v52, %v3953_v52  ;;  %4182 = vst.msk [vmem:[%s5638_s21 + $0x50] sm:$0xff] %vm598_vm2, %v3953_v52  ;;  %v2869_v60 = vadd.f32 %v2833_v54, %v2753_v43  ;;  %4542 = vmatmul.msk.f32.gmra.mxu1 %vm360_vm1, %v5882_v3  ;;  %4580 = vmatmul.msk.f32.gmra.mxu2 %vm360_vm1, %v5929_v51 }
 0x272   : > { %v3999_v59 = vadd.f32 %v3998_v56, %v3997_v38  ;;  %2524 = vst.msk [vmem:[#allocation3 + $0x78] sm:$0xff] %vm598_vm2, %v2488_v53  ;;  %v3214_v62 = vld [vmem:[#allocation3 + $0x68] sm:$0xff]  ;;  %4618 = vmatmul.msk.f32.gmra.mxu3 %vm360_vm1, %v2958_v55  ;;  %4656 = vmatmul.msk.f32.gmra.mxu0 %vm360_vm1, %v3340_v57  ;;  %v2455_v56 = vld [vmem:[#allocation3 + $0x90] sm:$0xff] }
 0x273   : > { %v4113_v63 = vsel %vm598_vm2, %v4068_v58, 0.0  ;;  %2905 = vst.msk [vmem:[#allocation3 + $0x70] sm:$0xff] %vm598_vm2, %v2869_v60  ;;  %v3250_v0 = vadd.f32 %v3214_v62, %v3132_v23  ;;  %v2579_v58 = vld [vmem:[%s4771_s17 + $0x134] sm:$0xff] }
 0x274   : > { %v4114_v1 = vadd.f32 %v4113_v63, %v4112_v45  ;;  %v3595_v3 = vld [vmem:[#allocation3 + $0x60] sm:$0xff]  ;;  %v2756_v4 = vpop.f32.mrf.mxu2 }
 0x275   : > { %3286 = vst.msk [vmem:[#allocation3 + $0x68] sm:$0xff] %vm598_vm2, %v3250_v0  ;;  %v3631_v5 = vadd.f32 %v3595_v3, %v5866_v9  ;;  %v3138_v6 = vpop.f32.mrf.mxu3 }
 0x276   : > { %v3702_v41 = vld [vmem:[#allocation3 + $0x58] sm:$0xff]  ;;  %v2377_v7 = vpop.f32.mrf.mxu1 }
 0x277   : > { %3667 = vst.msk [vmem:[#allocation3 + $0x60] sm:$0xff] %vm598_vm2, %v3631_v5  ;;  %v3954_v13 = vmul.f32 %v3821_v2, %v3702_v41  ;;  %v2489_v14 = vadd.f32 %v2453_v8, %v2377_v7  ;;  %v5962_v9 = vpop.f32.mrf.mxu0  ;;  %v3836_v7 = vpop.permute.xlu2 %3835 }
 0x279   : > { %v4000_v16 = vsel %vm598_vm2, %v3954_v13, 0.0  ;;  %v4069_v12 = vmul.f32 %v3954_v13, %v3954_v13  ;;  %4183 = vst.msk [vmem:[%s5638_s21 + $0x58] sm:$0xff] %vm598_vm2, %v3954_v13  ;;  %v2834_v11 = vld [vmem:[#allocation3 + $0x78] sm:$0xff]  ;;  %4543 = vmatmul.msk.f32.gmra.mxu1 %vm360_vm1, %v5907_v26  ;;  %4581 = vmatmul.msk.f32.gmra.mxu2 %vm360_vm1, %v5951_v10  ;;  %v3826_v26 = vpop.permute.xlu0 %3825 }
 0x27a   : > { %v4001_v18 = vadd.f32 %v4000_v16, %v3999_v59  ;;  %2525 = vst.msk [vmem:[#allocation3 + $0x80] sm:$0xff] %vm598_vm2, %v2489_v14  ;;  %v2870_v19 = vadd.f32 %v2834_v11, %v2756_v4  ;;  %v3215_v21 = vld [vmem:[#allocation3 + $0x70] sm:$0xff]  ;;  %4619 = vmatmul.msk.f32.gmra.mxu3 %vm360_vm1, %v2959_v15  ;;  %4657 = vmatmul.msk.f32.gmra.mxu0 %vm360_vm1, %v3341_v17  ;;  %v2580_v11 = vld [vmem:[%s4771_s17 + $0x13c] sm:$0xff] }
 0x27b   : > { %v4115_v22 = vsel %vm598_vm2, %v4069_v12, 0.0  ;;  %v3251_v23 = vadd.f32 %v3215_v21, %v3135_v46  ;;  %v2961_v59 = vld [vmem:[%s4771_s17 + $0x135] sm:$0xff] }
 0x27c   : > { %v4116_v24 = vadd.f32 %v4115_v22, %v4114_v1  ;;  %2906 = vst.msk [vmem:[#allocation3 + $0x78] sm:$0xff] %vm598_vm2, %v2870_v19  ;;  %v3596_v25 = vld [vmem:[#allocation3 + $0x68] sm:$0xff]  ;;  %v2759_v27 = vpop.f32.mrf.mxu2  ;;  %v3343_v1 = vld [vmem:[%s4771_s17 + $0x136] sm:$0xff] }
 0x27d   : > { %3287 = vst.msk [vmem:[#allocation3 + $0x70] sm:$0xff] %vm598_vm2, %v3251_v23  ;;  %v3632_v30 = vadd.f32 %v3596_v25, %v5891_v36  ;;  %v3141_v29 = vpop.f32.mrf.mxu3  ;;  %v2456_v12 = vld [vmem:[#allocation3 + $0x98] sm:$0xff] }
 0x27e   : > { %v3703_v31 = vld [vmem:[#allocation3 + $0x60] sm:$0xff]  ;;  %v2380_v32 = vpop.f32.mrf.mxu1 }
 0x27f   : > { %3668 = vst.msk [vmem:[#allocation3 + $0x68] sm:$0xff] %vm598_vm2, %v3632_v30  ;;  %v3955_v35 = vmul.f32 %v3826_v26, %v3703_v31  ;;  %v2490_v61 = vadd.f32 %v2454_v33, %v2380_v32  ;;  %v5984_v36 = vpop.f32.mrf.mxu0  ;;  %v2962_v19 = vld [vmem:[%s4771_s17 + $0x13d] sm:$0xff] }
 0x281   : > { %v4002_v38 = vsel %vm598_vm2, %v3955_v35, 0.0  ;;  %v4070_v39 = vmul.f32 %v3955_v35, %v3955_v35  ;;  %4184 = vst.msk [vmem:[%s5638_s21 + $0x60] sm:$0xff] %vm598_vm2, %v3955_v35  ;;  %v2835_v42 = vld [vmem:[#allocation3 + $0x80] sm:$0xff]  ;;  %4544 = vmatmul.msk.f32.gmra.mxu1 %vm360_vm1, %v5929_v51  ;;  %4582 = vmatmul.msk.f32.gmra.mxu2 %vm360_vm1, %v5973_v34 }
 0x282   : > { %v4003_v40 = vadd.f32 %v4002_v38, %v4001_v18  ;;  %2526 = vst.msk [vmem:[#allocation3 + $0x88] sm:$0xff] %vm598_vm2, %v2490_v61  ;;  %v2871_v43 = vadd.f32 %v2835_v42, %v2759_v27  ;;  %4620 = vmatmul.msk.f32.gmra.mxu3 %vm360_vm1, %v2960_v37  ;;  %4658 = vmatmul.msk.f32.gmra.mxu0 %vm360_vm1, %v3342_v44  ;;  %v2457_v38 = vld [vmem:[#allocation3 + $0xa0] sm:$0xff] }
 0x283   : > { %v4117_v45 = vsel %vm598_vm2, %v4070_v39, 0.0  ;;  %v3216_v28 = vld [vmem:[#allocation3 + $0x78] sm:$0xff] }
 0x284   : > { %v4118_v46 = vadd.f32 %v4117_v45, %v4116_v24  ;;  %2907 = vst.msk [vmem:[#allocation3 + $0x80] sm:$0xff] %vm598_vm2, %v2871_v43  ;;  %v3252_v47 = vadd.f32 %v3216_v28, %v3138_v6  ;;  %v3597_v49 = vld [vmem:[#allocation3 + $0x70] sm:$0xff]  ;;  %v2762_v51 = vpop.f32.mrf.mxu2  ;;  %v3344_v24 = vld [vmem:[%s4771_s17 + $0x13e] sm:$0xff] }
 0x285   : > { %v3633_v52 = vadd.f32 %v3597_v49, %v5916_v20  ;;  %v3144_v53 = vpop.f32.mrf.mxu3 }
 0x286   : > { %3288 = vst.msk [vmem:[#allocation3 + $0x78] sm:$0xff] %vm598_vm2, %v3252_v47  ;;  %v3704_v55 = vld [vmem:[#allocation3 + $0x68] sm:$0xff]  ;;  %v2383_v54 = vpop.f32.mrf.mxu1 }
 0x287   : > { %3669 = vst.msk [vmem:[#allocation3 + $0x70] sm:$0xff] %vm598_vm2, %v3633_v52  ;;  %v3956_v60 = vmul.f32 %v3831_v50, %v3704_v55  ;;  %v2491_v57 = vadd.f32 %v2455_v56, %v2383_v54  ;;  %v6003_v20 = vpop.f32.mrf.mxu0  ;;  %v3846_v55 = vpop.permute.xlu1 %3845 }
 0x289   : > { %v4004_v62 = vsel %vm598_vm2, %v3956_v60, 0.0  ;;  %v4071_v63 = vmul.f32 %v3956_v60, %v3956_v60  ;;  %4185 = vst.msk [vmem:[%s5638_s21 + $0x68] sm:$0xff] %vm598_vm2, %v3956_v60  ;;  %v2836_v0 = vld [vmem:[#allocation3 + $0x88] sm:$0xff]  ;;  %4545 = vmatmul.msk.f32.gmra.mxu1 %vm360_vm1, %v5951_v10  ;;  %4583 = vmatmul.msk.f32.gmra.mxu2 %vm360_vm1, %v2579_v58 }
 0x28a   : > { %v4005_v3 = vadd.f32 %v4004_v62, %v4003_v40  ;;  %2527 = vst.msk [vmem:[#allocation3 + $0x90] sm:$0xff] %vm598_vm2, %v2491_v57  ;;  %v2872_v2 = vadd.f32 %v2836_v0, %v2762_v51  ;;  %4621 = vmatmul.msk.f32.gmra.mxu3 %vm360_vm1, %v2961_v59  ;;  %4659 = vmatmul.msk.f32.gmra.mxu0 %vm360_vm1, %v3343_v1  ;;  %v2458_v60 = vld [vmem:[#allocation3 + $0xa8] sm:$0xff] }
 0x28b   : > { %v4119_v4 = vsel %vm598_vm2, %v4071_v63, 0.0  ;;  %v3217_v5 = vld [vmem:[#allocation3 + $0x80] sm:$0xff] }
 0x28c   : > { %v4120_v6 = vadd.f32 %v4119_v4, %v4118_v46  ;;  %2908 = vst.msk [vmem:[#allocation3 + $0x88] sm:$0xff] %vm598_vm2, %v2872_v2  ;;  %v3253_v41 = vadd.f32 %v3217_v5, %v3141_v29  ;;  %v2765_v8 = vpop.f32.mrf.mxu2 }
 0x28d   : > { %v3598_v10 = vld [vmem:[#allocation3 + $0x78] sm:$0xff]  ;;  %v3147_v13 = vpop.f32.mrf.mxu3 }
 0x28e   : > { %3289 = vst.msk [vmem:[#allocation3 + $0x80] sm:$0xff] %vm598_vm2, %v3253_v41  ;;  %v3634_v14 = vadd.f32 %v3598_v10, %v5940_v48  ;;  %v3705_v15 = vld [vmem:[#allocation3 + $0x70] sm:$0xff]  ;;  %v2386_v16 = vpop.f32.mrf.mxu1  ;;  %v3851_v10 = vpop.permute.xlu2 %3850 }
 0x28f   : > { %v3957_v17 = vmul.f32 %v3836_v7, %v3705_v15  ;;  %v2492_v18 = vadd.f32 %v2456_v12, %v2386_v16  ;;  %v6022_v48 = vpop.f32.mrf.mxu0  ;;  %v2459_v16 = vld [vmem:[#allocation3 + $0xb0] sm:$0xff] }
 0x290   : > { %3670 = vst.msk [vmem:[#allocation3 + $0x78] sm:$0xff] %vm598_vm2, %v3634_v14 }
 0x291   : > { %v4006_v21 = vsel %vm598_vm2, %v3957_v17, 0.0  ;;  %v4072_v22 = vmul.f32 %v3957_v17, %v3957_v17  ;;  %4186 = vst.msk [vmem:[%s5638_s21 + $0x70] sm:$0xff] %vm598_vm2, %v3957_v17  ;;  %v2837_v23 = vld [vmem:[#allocation3 + $0x90] sm:$0xff]  ;;  %4546 = vmatmul.msk.f32.gmra.mxu1 %vm360_vm1, %v5973_v34  ;;  %4584 = vmatmul.msk.f32.gmra.mxu2 %vm360_vm1, %v2580_v11  ;;  %v3841_v34 = vpop.permute.xlu0 %3840 }
 0x292   : > { %v4007_v25 = vadd.f32 %v4006_v21, %v4005_v3  ;;  %2528 = vst.msk [vmem:[#allocation3 + $0x98] sm:$0xff] %vm598_vm2, %v2492_v18  ;;  %v2873_v26 = vadd.f32 %v2837_v23, %v2765_v8  ;;  %4622 = vmatmul.msk.f32.gmra.mxu3 %vm360_vm1, %v2962_v19  ;;  %4660 = vmatmul.msk.f32.gmra.mxu0 %vm360_vm1, %v3344_v24 }
 0x293   : > { %v4121_v27 = vsel %vm598_vm2, %v4072_v22, 0.0  ;;  %v3218_v30 = vld [vmem:[#allocation3 + $0x88] sm:$0xff] }
 0x294   : > { %v4122_v29 = vadd.f32 %v4121_v27, %v4120_v6  ;;  %2909 = vst.msk [vmem:[#allocation3 + $0x90] sm:$0xff] %vm598_vm2, %v2873_v26  ;;  %v3254_v31 = vadd.f32 %v3218_v30, %v3144_v53  ;;  %v2768_v32 = vpop.f32.mrf.mxu2 }
 0x295   : > { %v3599_v33 = vld [vmem:[#allocation3 + $0x80] sm:$0xff]  ;;  %v3150_v35 = vpop.f32.mrf.mxu3 }
 0x296   : > { %3290 = vst.msk [vmem:[#allocation3 + $0x88] sm:$0xff] %vm598_vm2, %v3254_v31  ;;  %v3635_v61 = vadd.f32 %v3599_v33, %v5962_v9  ;;  %v2389_v37 = vpop.f32.mrf.mxu1 }
 0x297   : > { %v3706_v39 = vld [vmem:[#allocation3 + $0x78] sm:$0xff]  ;;  %v2493_v42 = vadd.f32 %v2457_v38, %v2389_v37  ;;  %v6034_v43 = vpop.f32.mrf.mxu0 }
 0x298   : > { %3671 = vst.msk [vmem:[#allocation3 + $0x80] sm:$0xff] %vm598_vm2, %v3635_v61  ;;  %v3958_v44 = vmul.f32 %v3841_v34, %v3706_v39 }
 0x299   : > { %2529 = vst.msk [vmem:[#allocation3 + $0xa0] sm:$0xff] %vm598_vm2, %v2493_v42  ;;  %v2838_v40 = vld [vmem:[#allocation3 + $0x98] sm:$0xff]  ;;  %v3856_v31 = vpop.permute.xlu0 %3855 }
 0x29a   : > { %v4008_v45 = vsel %vm598_vm2, %v3958_v44, 0.0  ;;  %v4073_v28 = vmul.f32 %v3958_v44, %v3958_v44  ;;  %4187 = vst.msk [vmem:[%s5638_s21 + $0x78] sm:$0xff] %vm598_vm2, %v3958_v44  ;;  %v2874_v46 = vadd.f32 %v2838_v40, %v2768_v32 }
 0x29b   : > { %v4009_v47 = vadd.f32 %v4008_v45, %v4007_v25  ;;  %v3219_v9 = vld [vmem:[#allocation3 + $0x90] sm:$0xff] }
 0x29c   : > { %v4123_v49 = vsel %vm598_vm2, %v4073_v28, 0.0  ;;  %2910 = vst.msk [vmem:[#allocation3 + $0x98] sm:$0xff] %vm598_vm2, %v2874_v46  ;;  %v3255_v50 = vadd.f32 %v3219_v9, %v3147_v13  ;;  %v2771_v51 = vpop.f32.mrf.mxu2 }
 0x29d   : > { %v4124_v52 = vadd.f32 %v4123_v49, %v4122_v29  ;;  %v3600_v53 = vld [vmem:[#allocation3 + $0x88] sm:$0xff]  ;;  %v3153_v54 = vpop.f32.mrf.mxu3 }
 0x29e   : > { %3291 = vst.msk [vmem:[#allocation3 + $0x90] sm:$0xff] %vm598_vm2, %v3255_v50  ;;  %v3636_v56 = vadd.f32 %v3600_v53, %v5984_v36  ;;  %v2392_v58 = vpop.f32.mrf.mxu1 }
 0x29f   : > { %v3707_v57 = vld [vmem:[#allocation3 + $0x80] sm:$0xff]  ;;  %v2494_v59 = vadd.f32 %v2458_v60, %v2392_v58  ;;  %v6045_v1 = vpop.f32.mrf.mxu0 }
 0x2a0   : > { %3672 = vst.msk [vmem:[#allocation3 + $0x88] sm:$0xff] %vm598_vm2, %v3636_v56  ;;  %v3959_v62 = vmul.f32 %v3846_v55, %v3707_v57  ;;  %v2839_v63 = vld [vmem:[#allocation3 + $0xa0] sm:$0xff] }
 0x2a1   : > { %2530 = vst.msk [vmem:[#allocation3 + $0xa8] sm:$0xff] %vm598_vm2, %v2494_v59  ;;  %v2875_v0 = vadd.f32 %v2839_v63, %v2771_v51  ;;  %v2461_v55 = vld [vmem:[#allocation3 + $0xc0] sm:$0xff] }
 0x2a2   : > { %v4010_v3 = vsel %vm598_vm2, %v3959_v62, 0.0  ;;  %v4074_v2 = vmul.f32 %v3959_v62, %v3959_v62  ;;  %4188 = vst.msk [vmem:[%s5638_s21 + $0x80] sm:$0xff] %vm598_vm2, %v3959_v62 }
 0x2a3   : > { %v4011_v4 = vadd.f32 %v4010_v3, %v4009_v47  ;;  %2911 = vst.msk [vmem:[#allocation3 + $0xa0] sm:$0xff] %vm598_vm2, %v2875_v0  ;;  %v3220_v36 = vld [vmem:[#allocation3 + $0x98] sm:$0xff] }
 0x2a4   : > { %v4125_v5 = vsel %vm598_vm2, %v4074_v2, 0.0  ;;  %v3256_v6 = vadd.f32 %v3220_v36, %v3150_v35  ;;  %v2774_v41 = vpop.f32.mrf.mxu2  ;;  %v2460_v35 = vld [vmem:[#allocation3 + $0xb8] sm:$0xff] }
 0x2a5   : > { %v4126_v7 = vadd.f32 %v4125_v5, %v4124_v52  ;;  %v3601_v8 = vld [vmem:[#allocation3 + $0x90] sm:$0xff]  ;;  %v3156_v13 = vpop.f32.mrf.mxu3 }
 0x2a6   : > { %3292 = vst.msk [vmem:[#allocation3 + $0x98] sm:$0xff] %vm598_vm2, %v3256_v6  ;;  %v3637_v14 = vadd.f32 %v3601_v8, %v6003_v20  ;;  %v2395_v15 = vpop.f32.mrf.mxu1  ;;  %v3866_v8 = vpop.permute.xlu2 %3865 }
 0x2a7   : > { %v3708_v12 = vld [vmem:[#allocation3 + $0x88] sm:$0xff]  ;;  %v2495_v11 = vadd.f32 %v2459_v16, %v2395_v15  ;;  %v6056_v21 = vpop.f32.mrf.mxu0 }
 0x2a8   : > { %3673 = vst.msk [vmem:[#allocation3 + $0x90] sm:$0xff] %vm598_vm2, %v3637_v14  ;;  %v3960_v17 = vmul.f32 %v3851_v10, %v3708_v12  ;;  %v2840_v18 = vld [vmem:[#allocation3 + $0xa8] sm:$0xff] }
 0x2a9   : > { %2531 = vst.msk [vmem:[#allocation3 + $0xb0] sm:$0xff] %vm598_vm2, %v2495_v11  ;;  %v2876_v19 = vadd.f32 %v2840_v18, %v2774_v41  ;;  %v2462_v14 = vld [vmem:[#allocation3 + $0xc8] sm:$0xff] }
 0x2aa   : > { %v4012_v22 = vsel %vm598_vm2, %v3960_v17, 0.0  ;;  %v4075_v23 = vmul.f32 %v3960_v17, %v3960_v17  ;;  %4189 = vst.msk [vmem:[%s5638_s21 + $0x88] sm:$0xff] %vm598_vm2, %v3960_v17  ;;  %v3221_v24 = vld [vmem:[#allocation3 + $0xa0] sm:$0xff] }
 0x2ab   : > { %v4013_v20 = vadd.f32 %v4012_v22, %v4011_v4  ;;  %2912 = vst.msk [vmem:[#allocation3 + $0xa8] sm:$0xff] %vm598_vm2, %v2876_v19  ;;  %v3257_v25 = vadd.f32 %v3221_v24, %v3153_v54  ;;  %v3861_v54 = vpop.permute.xlu1 %3860 }
 0x2ac   : > { %v4127_v26 = vsel %vm598_vm2, %v4075_v23, 0.0  ;;  %v2777_v27 = vpop.f32.mrf.mxu2 }
 0x2ad   : > { %v4128_v30 = vadd.f32 %v4127_v26, %v4126_v7  ;;  %3293 = vst.msk [vmem:[#allocation3 + $0xa0] sm:$0xff] %vm598_vm2, %v3257_v25  ;;  %v3602_v29 = vld [vmem:[#allocation3 + $0x98] sm:$0xff]  ;;  %v3159_v32 = vpop.f32.mrf.mxu3  ;;  %v3871_v26 = vpop.permute.xlu0 %3870 }
 0x2ae   : > { %v3638_v33 = vadd.f32 %v3602_v29, %v6022_v48  ;;  %v2398_v34 = vpop.f32.mrf.mxu1 }
 0x2af   : > { %v3709_v61 = vld [vmem:[#allocation3 + $0x90] sm:$0xff]  ;;  %v2496_v37 = vadd.f32 %v2460_v35, %v2398_v34  ;;  %v6070_v28 = vpop.f32.mrf.mxu0 }
 0x2b0   : > { %3674 = vst.msk [vmem:[#allocation3 + $0x98] sm:$0xff] %vm598_vm2, %v3638_v33  ;;  %v3961_v38 = vmul.f32 %v3856_v31, %v3709_v61  ;;  %v2841_v39 = vld [vmem:[#allocation3 + $0xb0] sm:$0xff] }
 0x2b1   : > { %2532 = vst.msk [vmem:[#allocation3 + $0xb8] sm:$0xff] %vm598_vm2, %v2496_v37  ;;  %v2877_v42 = vadd.f32 %v2841_v39, %v2777_v27 }
 0x2b2   : > { %v4014_v44 = vsel %vm598_vm2, %v3961_v38, 0.0  ;;  %v4076_v40 = vmul.f32 %v3961_v38, %v3961_v38  ;;  %4190 = vst.msk [vmem:[%s5638_s21 + $0x90] sm:$0xff] %vm598_vm2, %v3961_v38  ;;  %v3222_v45 = vld [vmem:[#allocation3 + $0xa8] sm:$0xff] }
 0x2b3   : > { %v4015_v48 = vadd.f32 %v4014_v44, %v4013_v20  ;;  %2913 = vst.msk [vmem:[#allocation3 + $0xb0] sm:$0xff] %vm598_vm2, %v2877_v42  ;;  %v3258_v46 = vadd.f32 %v3222_v45, %v3156_v13 }
 0x2b4   : > { %v4129_v47 = vsel %vm598_vm2, %v4076_v40, 0.0  ;;  %v3603_v9 = vld [vmem:[#allocation3 + $0xa0] sm:$0xff]  ;;  %v2780_v49 = vpop.f32.mrf.mxu2 }
 0x2b5   : > { %v4130_v50 = vadd.f32 %v4129_v47, %v4128_v30  ;;  %3294 = vst.msk [vmem:[#allocation3 + $0xa8] sm:$0xff] %vm598_vm2, %v3258_v46  ;;  %v3639_v51 = vadd.f32 %v3603_v9, %v6034_v43  ;;  %v3162_v52 = vpop.f32.mrf.mxu3 }
 0x2b6   : > { %v2401_v53 = vpop.f32.mrf.mxu1 }
 0x2b7   : > { %v3710_v56 = vld [vmem:[#allocation3 + $0x98] sm:$0xff]  ;;  %3675 = vst.msk [vmem:[#allocation3 + $0xa0] sm:$0xff] %vm598_vm2, %v3639_v51  ;;  %v2497_v58 = vadd.f32 %v2461_v55, %v2401_v53  ;;  %v6083_v5 = vpop.f32.mrf.mxu0 }
 0x2b8   : > { %v3962_v60 = vmul.f32 %v3861_v54, %v3710_v56  ;;  %v2842_v57 = vld [vmem:[#allocation3 + $0xb8] sm:$0xff] }
 0x2b9   : > { %2533 = vst.msk [vmem:[#allocation3 + $0xc0] sm:$0xff] %vm598_vm2, %v2497_v58  ;;  %v2878_v59 = vadd.f32 %v2842_v57, %v2780_v49  ;;  %v3876_v49 = vpop.permute.xlu1 %3875 }
 0x2ba   : > { %v4016_v62 = vsel %vm598_vm2, %v3962_v60, 0.0  ;;  %v4077_v63 = vmul.f32 %v3962_v60, %v3962_v60  ;;  %4191 = vst.msk [vmem:[%s5638_s21 + $0x98] sm:$0xff] %vm598_vm2, %v3962_v60  ;;  %v3223_v0 = vld [vmem:[#allocation3 + $0xb0] sm:$0xff] }
 0x2bb   : > { %v4017_v43 = vadd.f32 %v4016_v62, %v4015_v48  ;;  %2914 = vst.msk [vmem:[#allocation3 + $0xb8] sm:$0xff] %vm598_vm2, %v2878_v59  ;;  %v3259_v3 = vadd.f32 %v3223_v0, %v3159_v32  ;;  %v2463_v32 = vld [vmem:[#allocation3 + $0xd0] sm:$0xff] }
 0x2bc   : > { %v4131_v2 = vsel %vm598_vm2, %v4077_v63, 0.0  ;;  %v3604_v4 = vld [vmem:[#allocation3 + $0xa8] sm:$0xff]  ;;  %v2783_v36 = vpop.f32.mrf.mxu2 }
 0x2bd   : > { %v4132_v6 = vadd.f32 %v4131_v2, %v4130_v50  ;;  %3295 = vst.msk [vmem:[#allocation3 + $0xb0] sm:$0xff] %vm598_vm2, %v3259_v3  ;;  %v3640_v41 = vadd.f32 %v3604_v4, %v6045_v1  ;;  %v3165_v7 = vpop.f32.mrf.mxu3 }
 0x2be   : > { %v3711_v10 = vld [vmem:[#allocation3 + $0xa0] sm:$0xff]  ;;  %v2404_v13 = vpop.f32.mrf.mxu1 }
 0x2bf   : > { %v3963_v15 = vmul.f32 %v3866_v8, %v3711_v10  ;;  %3676 = vst.msk [vmem:[#allocation3 + $0xa8] sm:$0xff] %vm598_vm2, %v3640_v41  ;;  %v2498_v16 = vadd.f32 %v2462_v14, %v2404_v13  ;;  %v6096_v33 = vpop.f32.mrf.mxu0 }
 0x2c0   : > { %v2843_v12 = vld [vmem:[#allocation3 + $0xc0] sm:$0xff] }
 0x2c1   : > { %v4018_v11 = vsel %vm598_vm2, %v3963_v15, 0.0  ;;  %v4078_v17 = vmul.f32 %v3963_v15, %v3963_v15  ;;  %4192 = vst.msk [vmem:[%s5638_s21 + $0xa0] sm:$0xff] %vm598_vm2, %v3963_v15  ;;  %v2879_v18 = vadd.f32 %v2843_v12, %v2783_v36  ;;  %v3881_v36 = vpop.permute.xlu2 %3880 }
 0x2c2   : > { %v4019_v19 = vadd.f32 %v4018_v11, %v4017_v43  ;;  %2534 = vst.msk [vmem:[#allocation3 + $0xc8] sm:$0xff] %vm598_vm2, %v2498_v16  ;;  %v3224_v1 = vld [vmem:[#allocation3 + $0xb8] sm:$0xff] }
 0x2c3   : > { %v4133_v22 = vsel %vm598_vm2, %v4078_v17, 0.0  ;;  %2915 = vst.msk [vmem:[#allocation3 + $0xc0] sm:$0xff] %vm598_vm2, %v2879_v18  ;;  %v3260_v23 = vadd.f32 %v3224_v1, %v3162_v52  ;;  %v2464_v52 = vld [vmem:[#allocation3 + $0xd8] sm:$0xff] }
 0x2c4   : > { %v4134_v24 = vadd.f32 %v4133_v22, %v4132_v6  ;;  %v3605_v20 = vld [vmem:[#allocation3 + $0xb0] sm:$0xff]  ;;  %v2786_v25 = vpop.f32.mrf.mxu2 }
 0x2c5   : > { %3296 = vst.msk [vmem:[#allocation3 + $0xb8] sm:$0xff] %vm598_vm2, %v3260_v23  ;;  %v3641_v27 = vadd.f32 %v3605_v20, %v6056_v21  ;;  %v3168_v30 = vpop.f32.mrf.mxu3 }
 0x2c6   : > { %v3712_v29 = vld [vmem:[#allocation3 + $0xa8] sm:$0xff]  ;;  %v2407_v31 = vpop.f32.mrf.mxu1 }
 0x2c7   : > { %v3964_v34 = vmul.f32 %v3871_v26, %v3712_v29  ;;  %3677 = vst.msk [vmem:[#allocation3 + $0xb0] sm:$0xff] %vm598_vm2, %v3641_v27  ;;  %v2499_v35 = vadd.f32 %v2463_v32, %v2407_v31  ;;  %v6108_v54 = vpop.f32.mrf.mxu0  ;;  %v2466_v27 = vld [vmem:[#allocation3 + $0xe8] sm:$0xff] }
 0x2c9   : > { %v4020_v61 = vsel %vm598_vm2, %v3964_v34, 0.0  ;;  %v4079_v37 = vmul.f32 %v3964_v34, %v3964_v34  ;;  %4193 = vst.msk [vmem:[%s5638_s21 + $0xa8] sm:$0xff] %vm598_vm2, %v3964_v34  ;;  %v2844_v38 = vld [vmem:[#allocation3 + $0xc8] sm:$0xff] }
 0x2ca   : > { %v4021_v39 = vadd.f32 %v4020_v61, %v4019_v19  ;;  %2535 = vst.msk [vmem:[#allocation3 + $0xd0] sm:$0xff] %vm598_vm2, %v2499_v35  ;;  %v2880_v21 = vadd.f32 %v2844_v38, %v2786_v25  ;;  %v3225_v42 = vld [vmem:[#allocation3 + $0xc0] sm:$0xff] }
 0x2cb   : > { %v4135_v44 = vsel %vm598_vm2, %v4079_v37, 0.0  ;;  %v3261_v40 = vadd.f32 %v3225_v42, %v3165_v7  ;;  %v2465_v7 = vld [vmem:[#allocation3 + $0xe0] sm:$0xff] }
 0x2cc   : > { %v4136_v45 = vadd.f32 %v4135_v44, %v4134_v24  ;;  %2916 = vst.msk [vmem:[#allocation3 + $0xc8] sm:$0xff] %vm598_vm2, %v2880_v21  ;;  %v3606_v48 = vld [vmem:[#allocation3 + $0xb8] sm:$0xff]  ;;  %v2789_v46 = vpop.f32.mrf.mxu2  ;;  %v3886_v24 = vpop.permute.xlu0 %3885 }
 0x2cd   : > { %3297 = vst.msk [vmem:[#allocation3 + $0xc0] sm:$0xff] %vm598_vm2, %v3261_v40  ;;  %v3642_v47 = vadd.f32 %v3606_v48, %v6070_v28  ;;  %v3171_v9 = vpop.f32.mrf.mxu3 }
 0x2ce   : > { %v3713_v50 = vld [vmem:[#allocation3 + $0xb0] sm:$0xff]  ;;  %v2410_v51 = vpop.f32.mrf.mxu1 }
 0x2cf   : > { %v3965_v53 = vmul.f32 %v3876_v49, %v3713_v50  ;;  %3678 = vst.msk [vmem:[#allocation3 + $0xb8] sm:$0xff] %vm598_vm2, %v3642_v47  ;;  %v2500_v55 = vadd.f32 %v2464_v52, %v2410_v51  ;;  %v3556_v12 = vpop.f32.mrf.mxu0  ;;  %v3891_v47 = vpop.permute.xlu1 %3890 }
 0x2d1   : > { %v4022_v56 = vsel %vm598_vm2, %v3965_v53, 0.0  ;;  %v4080_v58 = vmul.f32 %v3965_v53, %v3965_v53  ;;  %4194 = vst.msk [vmem:[%s5638_s21 + $0xb0] sm:$0xff] %vm598_vm2, %v3965_v53  ;;  %v2845_v60 = vld [vmem:[#allocation3 + $0xd0] sm:$0xff] }
 0x2d2   : > { %v4023_v57 = vadd.f32 %v4022_v56, %v4021_v39  ;;  %2536 = vst.msk [vmem:[#allocation3 + $0xd8] sm:$0xff] %vm598_vm2, %v2500_v55  ;;  %v2881_v28 = vadd.f32 %v2845_v60, %v2789_v46  ;;  %v2467_v46 = vld [vmem:[#allocation3 + $0xf0] sm:$0xff] }
 0x2d3   : > { %v4137_v59 = vsel %vm598_vm2, %v4080_v58, 0.0  ;;  %v3226_v62 = vld [vmem:[#allocation3 + $0xc8] sm:$0xff] }
 0x2d4   : > { %v4138_v63 = vadd.f32 %v4137_v59, %v4136_v45  ;;  %2917 = vst.msk [vmem:[#allocation3 + $0xd0] sm:$0xff] %vm598_vm2, %v2881_v28  ;;  %v3262_v0 = vadd.f32 %v3226_v62, %v3168_v30  ;;  %v3607_v43 = vld [vmem:[#allocation3 + $0xc0] sm:$0xff]  ;;  %v2792_v3 = vpop.f32.mrf.mxu2  ;;  %v3896_v59 = vpop.permute.xlu2 %3895 }
 0x2d5   : > { %v3643_v2 = vadd.f32 %v3607_v43, %v6083_v5  ;;  %v3174_v4 = vpop.f32.mrf.mxu3 }
 0x2d6   : > { %v3714_v6 = vld [vmem:[#allocation3 + $0xb8] sm:$0xff]  ;;  %3298 = vst.msk [vmem:[#allocation3 + $0xc8] sm:$0xff] %vm598_vm2, %v3262_v0  ;;  %v2413_v41 = vpop.f32.mrf.mxu1 }
 0x2d7   : > { %v3966_v8 = vmul.f32 %v3881_v36, %v3714_v6  ;;  %3679 = vst.msk [vmem:[#allocation3 + $0xc0] sm:$0xff] %vm598_vm2, %v3643_v2  ;;  %v2501_v10 = vadd.f32 %v2465_v7, %v2413_v41  ;;  %v3559_v42 = vpop.f32.mrf.mxu0 }
 0x2d9   : > { %v4024_v13 = vsel %vm598_vm2, %v3966_v8, 0.0  ;;  %v4081_v14 = vmul.f32 %v3966_v8, %v3966_v8  ;;  %4195 = vst.msk [vmem:[%s5638_s21 + $0xb8] sm:$0xff] %vm598_vm2, %v3966_v8  ;;  %v2846_v15 = vld [vmem:[#allocation3 + $0xd8] sm:$0xff] }
 0x2da   : > { %v4025_v16 = vadd.f32 %v4024_v13, %v4023_v57  ;;  %2537 = vst.msk [vmem:[#allocation3 + $0xe0] sm:$0xff] %vm598_vm2, %v2501_v10  ;;  %v2882_v5 = vadd.f32 %v2846_v15, %v2792_v3  ;;  %v2468_v57 = vld [vmem:[#allocation3 + $0xf8] sm:$0xff]  ;;  %v2469_v10 = vld [vmem:[#allocation3 + $0x100] sm:$0xff]  ;;  %v3901_v13 = vpop.permute.xlu0 %3900 }
 0x2db   : > { %v4139_v11 = vsel %vm598_vm2, %v4081_v14, 0.0  ;;  %v3227_v17 = vld [vmem:[#allocation3 + $0xd0] sm:$0xff] }
 0x2dc   : > { %v4140_v18 = vadd.f32 %v4139_v11, %v4138_v63  ;;  %2918 = vst.msk [vmem:[#allocation3 + $0xd8] sm:$0xff] %vm598_vm2, %v2882_v5  ;;  %v3263_v19 = vadd.f32 %v3227_v17, %v3171_v9  ;;  %v2795_v1 = vpop.f32.mrf.mxu2 }
 0x2dd   : > { %v3608_v22 = vld [vmem:[#allocation3 + $0xc8] sm:$0xff]  ;;  %v3177_v23 = vpop.f32.mrf.mxu3 }
 0x2de   : > { %v3715_v20 = vld [vmem:[#allocation3 + $0xc0] sm:$0xff]  ;;  %3299 = vst.msk [vmem:[#allocation3 + $0xd0] sm:$0xff] %vm598_vm2, %v3263_v19  ;;  %v3644_v25 = vadd.f32 %v3608_v22, %v6096_v33  ;;  %v2416_v26 = vpop.f32.mrf.mxu1 }
 0x2df   : > { %v3967_v30 = vmul.f32 %v3886_v24, %v3715_v20  ;;  %v2502_v29 = vadd.f32 %v2466_v27, %v2416_v26  ;;  %v3562_v28 = vpop.f32.mrf.mxu0  ;;  %v2470_v20 = vld [vmem:[#allocation3 + $0x108] sm:$0xff] }
 0x2e0   : > { %3680 = vst.msk [vmem:[#allocation3 + $0xc8] sm:$0xff] %vm598_vm2, %v3644_v25  ;;  %v3906_v25 = vpop.permute.xlu1 %3905 }
 0x2e1   : > { %v4026_v31 = vsel %vm598_vm2, %v3967_v30, 0.0  ;;  %v4082_v32 = vmul.f32 %v3967_v30, %v3967_v30  ;;  %4196 = vst.msk [vmem:[%s5638_s21 + $0xc0] sm:$0xff] %vm598_vm2, %v3967_v30  ;;  %v2847_v34 = vld [vmem:[#allocation3 + $0xe0] sm:$0xff] }
 0x2e2   : > { %v6131_v35 = vadd.f32 %v4026_v31, %v4025_v16  ;;  %2538 = vst.msk [vmem:[#allocation3 + $0xe8] sm:$0xff] %vm598_vm2, %v2502_v29  ;;  %v2883_v61 = vadd.f32 %v2847_v34, %v2795_v1 }
 0x2e3   : > { %v4141_v37 = vsel %vm598_vm2, %v4082_v32, 0.0  ;;  %v3228_v33 = vld [vmem:[#allocation3 + $0xd8] sm:$0xff] }
 0x2e4   : > { %v6135_v38 = vadd.f32 %v4141_v37, %v4140_v18  ;;  %2919 = vst.msk [vmem:[#allocation3 + $0xe0] sm:$0xff] %vm598_vm2, %v2883_v61  ;;  %v3264_v39 = vadd.f32 %v3228_v33, %v3174_v4  ;;  %v2798_v21 = vpop.f32.mrf.mxu2 }
 0x2e5   : > { %v3609_v44 = vld [vmem:[#allocation3 + $0xd0] sm:$0xff]  ;;  %v3180_v40 = vpop.f32.mrf.mxu3 }
 0x2e6   : > { %3300 = vst.msk [vmem:[#allocation3 + $0xd8] sm:$0xff] %vm598_vm2, %v3264_v39  ;;  %v3645_v45 = vadd.f32 %v3609_v44, %v6108_v54  ;;  %v2419_v48 = vpop.f32.mrf.mxu1  ;;  %v2471_v44 = vld [vmem:[#allocation3 + $0x110] sm:$0xff] }
 0x2e7   : > { %v3716_v9 = vld [vmem:[#allocation3 + $0xc8] sm:$0xff]  ;;  %v2503_v49 = vadd.f32 %v2467_v46, %v2419_v48 }
 0x2e8   : > { %v6140_v50 = vmul.f32 %v3891_v47, %v3716_v9  ;;  %3681 = vst.msk [vmem:[#allocation3 + $0xd0] sm:$0xff] %vm598_vm2, %v3645_v45 }
 0x2e9   : > { %2539 = vst.msk [vmem:[#allocation3 + $0xf0] sm:$0xff] %vm598_vm2, %v2503_v49  ;;  %v2848_v51 = vld [vmem:[#allocation3 + $0xe8] sm:$0xff] }
 0x2ea   : > { %4197 = vst.msk [vmem:[%s5638_s21 + $0xc8] sm:$0xff] %vm598_vm2, %v6140_v50  ;;  %v2884_v52 = vadd.f32 %v2848_v51, %v2798_v21 }
 0x2eb   : > { %v3229_v53 = vld [vmem:[#allocation3 + $0xe0] sm:$0xff] }
 0x2ec   : > { %2920 = vst.msk [vmem:[#allocation3 + $0xe8] sm:$0xff] %vm598_vm2, %v2884_v52  ;;  %v3265_v55 = vadd.f32 %v3229_v53, %v3177_v23  ;;  %v2801_v54 = vpop.f32.mrf.mxu2 }
 0x2ed   : > { %v3610_v56 = vld [vmem:[#allocation3 + $0xd8] sm:$0xff]  ;;  %v3183_v0 = vpop.f32.mrf.mxu3 }
 0x2ee   : > { %3301 = vst.msk [vmem:[#allocation3 + $0xe0] sm:$0xff] %vm598_vm2, %v3265_v55  ;;  %v3646_v58 = vadd.f32 %v3610_v56, %v3556_v12  ;;  %v2422_v60 = vpop.f32.mrf.mxu1  ;;  %v3565_v12 = vpop.f32.mrf.mxu0 }
 0x2ef   : > { %v3717_v62 = vld [vmem:[#allocation3 + $0xd0] sm:$0xff]  ;;  %v2504_v63 = vadd.f32 %v2468_v57, %v2422_v60 }
 0x2f0   : > { %v6149_v43 = vmul.f32 %v3896_v59, %v3717_v62  ;;  %3682 = vst.msk [vmem:[#allocation3 + $0xd8] sm:$0xff] %vm598_vm2, %v3646_v58  ;;  %v2849_v3 = vld [vmem:[#allocation3 + $0xf0] sm:$0xff]  ;;  %v3916_v58 = vpop.permute.xlu0 %3915 }
 0x2f1   : > { %2540 = vst.msk [vmem:[#allocation3 + $0xf8] sm:$0xff] %vm598_vm2, %v2504_v63  ;;  %v2885_v2 = vadd.f32 %v2849_v3, %v2801_v54 }
 0x2f2   : > { %4198 = vst.msk [vmem:[%s5638_s21 + $0xd0] sm:$0xff] %vm598_vm2, %v6149_v43 }
 0x2f3   : > { %2921 = vst.msk [vmem:[#allocation3 + $0xf0] sm:$0xff] %vm598_vm2, %v2885_v2  ;;  %v3230_v4 = vld [vmem:[#allocation3 + $0xe8] sm:$0xff] }
 0x2f4   : > { %v3266_v36 = vadd.f32 %v3230_v4, %v3180_v40  ;;  %v2804_v6 = vpop.f32.mrf.mxu2  ;;  %v3911_v40 = vpop.permute.xlu2 %3910 }
 0x2f5   : > { %v3611_v41 = vld [vmem:[#allocation3 + $0xe0] sm:$0xff]  ;;  %v3186_v17 = vpop.f32.mrf.mxu3 }
 0x2f6   : > { %3302 = vst.msk [vmem:[#allocation3 + $0xe8] sm:$0xff] %vm598_vm2, %v3266_v36  ;;  %v3647_v7 = vadd.f32 %v3611_v41, %v3559_v42  ;;  %v2425_v8 = vpop.f32.mrf.mxu1  ;;  %v3568_v34 = vpop.f32.mrf.mxu0 }
 0x2f7   : > { %v3718_v14 = vld [vmem:[#allocation3 + $0xd8] sm:$0xff]  ;;  %v2505_v15 = vadd.f32 %v2469_v10, %v2425_v8 }
 0x2f8   : > { %v6158_v16 = vmul.f32 %v3901_v13, %v3718_v14  ;;  %3683 = vst.msk [vmem:[#allocation3 + $0xe0] sm:$0xff] %vm598_vm2, %v3647_v7  ;;  %v2850_v5 = vld [vmem:[#allocation3 + $0xf8] sm:$0xff] }
 0x2f9   : > { %2541 = vst.msk [vmem:[#allocation3 + $0x100] sm:$0xff] %vm598_vm2, %v2505_v15  ;;  %v2886_v11 = vadd.f32 %v2850_v5, %v2804_v6  ;;  %v3921_v6 = vpop.permute.xlu1 %3920 }
 0x2fa   : > { %4199 = vst.msk [vmem:[%s5638_s21 + $0xd8] sm:$0xff] %vm598_vm2, %v6158_v16  ;;  %v3231_v18 = vld [vmem:[#allocation3 + $0xf0] sm:$0xff] }
 0x2fb   : > { %2922 = vst.msk [vmem:[#allocation3 + $0xf8] sm:$0xff] %vm598_vm2, %v2886_v11  ;;  %v3267_v19 = vadd.f32 %v3231_v18, %v3183_v0 }
 0x2fc   : > { %v2807_v1 = vpop.f32.mrf.mxu2  ;;  %v3926_v18 = vpop.permute.xlu2 %3925 }
 0x2fd   : > { %3303 = vst.msk [vmem:[#allocation3 + $0xf0] sm:$0xff] %vm598_vm2, %v3267_v19  ;;  %v3612_v22 = vld [vmem:[#allocation3 + $0xe8] sm:$0xff]  ;;  %v3189_v37 = vpop.f32.mrf.mxu3 }
 0x2fe   : > { %v3648_v23 = vadd.f32 %v3612_v22, %v3562_v28  ;;  %v2428_v24 = vpop.f32.mrf.mxu1  ;;  %v3571_v53 = vpop.f32.mrf.mxu0  ;;  %v2472_v28 = vld [vmem:[#allocation3 + $0x118] sm:$0xff] }
 0x2ff   : > { %v3719_v26 = vld [vmem:[#allocation3 + $0xe0] sm:$0xff]  ;;  %v2506_v27 = vadd.f32 %v2470_v20, %v2428_v24  ;;  %v4083_v24 = vmul.f32 %v6140_v50, %v6140_v50 }
 0x300   : > { %v6167_v30 = vmul.f32 %v3906_v25, %v3719_v26  ;;  %3684 = vst.msk [vmem:[#allocation3 + $0xe8] sm:$0xff] %vm598_vm2, %v3648_v23  ;;  %v2851_v29 = vld [vmem:[#allocation3 + $0x100] sm:$0xff]  ;;  %v4028_v25 = vsel %vm598_vm2, %v6140_v50, 0.0  ;;  %v4084_v26 = vmul.f32 %v6149_v43, %v6149_v43 }
 0x301   : > { %2542 = vst.msk [vmem:[#allocation3 + $0x108] sm:$0xff] %vm598_vm2, %v2506_v27  ;;  %v2887_v31 = vadd.f32 %v2851_v29, %v2807_v1  ;;  %v4029_v50 = vadd.f32 %v4028_v25, %v6131_v35 }
 0x302   : > { %4200 = vst.msk [vmem:[%s5638_s21 + $0xe0] sm:$0xff] %vm598_vm2, %v6167_v30  ;;  %v3232_v32 = vld [vmem:[#allocation3 + $0xf8] sm:$0xff]  ;;  %v4034_v35 = vsel %vm598_vm2, %v6167_v30, 0.0 }
 0x303   : > { %2923 = vst.msk [vmem:[#allocation3 + $0x100] sm:$0xff] %vm598_vm2, %v2887_v31  ;;  %v3268_v61 = vadd.f32 %v3232_v32, %v3186_v17  ;;  %v3931_v32 = vpop.permute.xlu0 %3930 }
 0x304   : > { %v3613_v33 = vld [vmem:[#allocation3 + $0xf0] sm:$0xff]  ;;  %v2810_v39 = vpop.f32.mrf.mxu2 }
 0x305   : > { %3304 = vst.msk [vmem:[#allocation3 + $0xf8] sm:$0xff] %vm598_vm2, %v3268_v61  ;;  %v3649_v21 = vadd.f32 %v3613_v33, %v3565_v12  ;;  %v3192_v56 = vpop.f32.mrf.mxu3  ;;  %v4030_v61 = vsel %vm598_vm2, %v6149_v43, 0.0 }
 0x306   : > { %v2431_v42 = vpop.f32.mrf.mxu1  ;;  %v3574_v7 = vpop.f32.mrf.mxu0 }
 0x307   : > { %v3720_v45 = vld [vmem:[#allocation3 + $0xe8] sm:$0xff]  ;;  %3685 = vst.msk [vmem:[#allocation3 + $0xf0] sm:$0xff] %vm598_vm2, %v3649_v21  ;;  %v2507_v48 = vadd.f32 %v2471_v44, %v2431_v42  ;;  %v4145_v21 = vsel %vm598_vm2, %v4084_v26, 0.0  ;;  %v4032_v42 = vsel %vm598_vm2, %v6158_v16, 0.0  ;;  %v4086_v44 = vmul.f32 %v6167_v30, %v6167_v30 }
 0x308   : > { %v6177_v46 = vmul.f32 %v3911_v40, %v3720_v45  ;;  %v2852_v47 = vld [vmem:[#allocation3 + $0x108] sm:$0xff]  ;;  %v4031_v40 = vadd.f32 %v4030_v61, %v4029_v50 }
 0x309   : > { %2543 = vst.msk [vmem:[#allocation3 + $0x110] sm:$0xff] %vm598_vm2, %v2507_v48  ;;  %v2888_v9 = vadd.f32 %v2852_v47, %v2810_v39 }
 0x30a   : > { %4201 = vst.msk [vmem:[%s5638_s21 + $0xe8] sm:$0xff] %vm598_vm2, %v6177_v46  ;;  %v3233_v49 = vld [vmem:[#allocation3 + $0x100] sm:$0xff]  ;;  %v4087_v48 = vmul.f32 %v6177_v46, %v6177_v46 }
 0x30b   : > { %2924 = vst.msk [vmem:[#allocation3 + $0x108] sm:$0xff] %vm598_vm2, %v2888_v9  ;;  %v3269_v51 = vadd.f32 %v3233_v49, %v3189_v37  ;;  %v4085_v37 = vmul.f32 %v6158_v16, %v6158_v16  ;;  %v4033_v9 = vadd.f32 %v4032_v42, %v4031_v40  ;;  %v4149_v16 = vsel %vm598_vm2, %v4086_v44, 0.0 }
 0x30c   : > { %v3614_v52 = vld [vmem:[#allocation3 + $0xf8] sm:$0xff]  ;;  %v2813_v54 = vpop.f32.mrf.mxu2  ;;  %v4151_v30 = vsel %vm598_vm2, %v4087_v48, 0.0 }
 0x30d   : > { %3305 = vst.msk [vmem:[#allocation3 + $0x100] sm:$0xff] %vm598_vm2, %v3269_v51  ;;  %v3650_v55 = vadd.f32 %v3614_v52, %v3568_v34  ;;  %v3195_v13 = vpop.f32.mrf.mxu3  ;;  %v4143_v34 = vsel %vm598_vm2, %v4083_v24, 0.0  ;;  %v4147_v45 = vsel %vm598_vm2, %v4085_v37, 0.0  ;;  %v4036_v51 = vsel %vm598_vm2, %v6177_v46, 0.0 }
 0x30e   : > { %v3721_v60 = vld [vmem:[#allocation3 + $0xf0] sm:$0xff]  ;;  %v2434_v57 = vpop.f32.mrf.mxu1  ;;  %v3577_v23 = vpop.f32.mrf.mxu0  ;;  %v4144_v43 = vadd.f32 %v4143_v34, %v6135_v38 }
 0x30f   : > { %v6185_v59 = vmul.f32 %v3916_v58, %v3721_v60  ;;  %3686 = vst.msk [vmem:[#allocation3 + $0xf8] sm:$0xff] %vm598_vm2, %v3650_v55  ;;  %v2508_v62 = vadd.f32 %v2472_v28, %v2434_v57 }
 0x310   : > { %v2853_v63 = vld [vmem:[#allocation3 + $0x110] sm:$0xff]  ;;  %v4146_v47 = vadd.f32 %v4145_v21, %v4144_v43 }
 0x311   : > { %4202 = vst.msk [vmem:[%s5638_s21 + $0xf0] sm:$0xff] %vm598_vm2, %v6185_v59  ;;  %v2889_v0 = vadd.f32 %v2853_v63, %v2813_v54  ;;  %v4088_v38 = vmul.f32 %v6185_v59, %v6185_v59  ;;  %v3936_v54 = vpop.permute.xlu1 %3935 }
 0x312   : > { %2544 = vst.msk [vmem:[#allocation3 + $0x118] sm:$0xff] %vm598_vm2, %v2508_v62  ;;  %v3234_v3 = vld [vmem:[#allocation3 + $0x108] sm:$0xff]  ;;  %v4148_v52 = vadd.f32 %v4147_v45, %v4146_v47 }
 0x313   : > { %2925 = vst.msk [vmem:[#allocation3 + $0x110] sm:$0xff] %vm598_vm2, %v2889_v0  ;;  %v3270_v2 = vadd.f32 %v3234_v3, %v3192_v56  ;;  %v4038_v56 = vsel %vm598_vm2, %v6185_v59, 0.0  ;;  %v4153_v63 = vsel %vm598_vm2, %v4088_v38, 0.0 }
 0x314   : > { %v3615_v4 = vld [vmem:[#allocation3 + $0x100] sm:$0xff]  ;;  %v2816_v10 = vpop.f32.mrf.mxu2  ;;  %v4150_v28 = vadd.f32 %v4149_v16, %v4148_v52 }
 0x315   : > { %3306 = vst.msk [vmem:[#allocation3 + $0x108] sm:$0xff] %vm598_vm2, %v3270_v2  ;;  %v3651_v36 = vadd.f32 %v3615_v4, %v3571_v53  ;;  %v3198_v22 = vpop.f32.mrf.mxu3  ;;  %v4035_v53 = vadd.f32 %v4034_v35, %v4033_v9 }
 0x316   : > { %v3722_v41 = vld [vmem:[#allocation3 + $0xf8] sm:$0xff]  ;;  %v3580_v49 = vpop.f32.mrf.mxu0  ;;  %v4152_v2 = vadd.f32 %v4151_v30, %v4150_v28 }
 0x317   : > { %v6194_v8 = vmul.f32 %v3921_v6, %v3722_v41  ;;  %3687 = vst.msk [vmem:[#allocation3 + $0x100] sm:$0xff] %vm598_vm2, %v3651_v36  ;;  %v4037_v46 = vadd.f32 %v4036_v51, %v4035_v53 }
 0x318   : > { %v4154_v41 = vadd.f32 %v4153_v63, %v4152_v2 }
 0x319   : > { %4203 = vst.msk [vmem:[%s5638_s21 + $0xf8] sm:$0xff] %vm598_vm2, %v6194_v8  ;;  %v2854_v14 = vld [vmem:[#allocation3 + $0x118] sm:$0xff]  ;;  %v4089_v58 = vmul.f32 %v6194_v8, %v6194_v8  ;;  %v4040_v0 = vsel %vm598_vm2, %v6194_v8, 0.0  ;;  %v4039_v4 = vadd.f32 %v4038_v56, %v4037_v46 }
 0x31a   : > { %v2890_v15 = vadd.f32 %v2854_v14, %v2816_v10  ;;  %v3235_v5 = vld [vmem:[#allocation3 + $0x110] sm:$0xff] }
 0x31b   : > { %v3271_v12 = vadd.f32 %v3235_v5, %v3195_v13  ;;  %v4155_v59 = vsel %vm598_vm2, %v4089_v58, 0.0 }
 0x31c   : > { %2926 = vst.msk [vmem:[#allocation3 + $0x118] sm:$0xff] %vm598_vm2, %v2890_v15  ;;  %v3616_v11 = vld [vmem:[#allocation3 + $0x108] sm:$0xff]  ;;  %v4156_v14 = vadd.f32 %v4155_v59, %v4154_v41 }
 0x31d   : > { %3307 = vst.msk [vmem:[#allocation3 + $0x110] sm:$0xff] %vm598_vm2, %v3271_v12  ;;  %v3652_v17 = vadd.f32 %v3616_v11, %v3574_v7  ;;  %v4041_v7 = vadd.f32 %v4040_v0, %v4039_v4  ;;  %v3941_v11 = vpop.permute.xlu2 %3940 }
 0x31e   : > { %v3723_v19 = vld [vmem:[#allocation3 + $0x100] sm:$0xff] }
 0x31f   : > { %v3975_v1 = vmul.f32 %v3926_v18, %v3723_v19  ;;  %3688 = vst.msk [vmem:[#allocation3 + $0x108] sm:$0xff] %vm598_vm2, %v3652_v17 }
 0x321   : > { %4204 = vst.msk [vmem:[%s5638_s21 + $0x100] sm:$0xff] %vm598_vm2, %v3975_v1  ;;  %v4090_v3 = vmul.f32 %v3975_v1, %v3975_v1  ;;  %v4042_v36 = vsel %vm598_vm2, %v3975_v1, 0.0 }
 0x322   : > { %v4043_v15 = vadd.f32 %v4042_v36, %v4041_v7 }
 0x323   : > { %v3236_v20 = vld [vmem:[#allocation3 + $0x118] sm:$0xff]  ;;  %v4157_v10 = vsel %vm598_vm2, %v4090_v3, 0.0 }
 0x324   : > { %v3272_v27 = vadd.f32 %v3236_v20, %v3198_v22  ;;  %v3617_v29 = vld [vmem:[#allocation3 + $0x110] sm:$0xff]  ;;  %v4158_v17 = vadd.f32 %v4157_v10, %v4156_v14 }
 0x325   : > { %v3653_v31 = vadd.f32 %v3617_v29, %v3577_v23 }
 0x326   : > { %v3724_v33 = vld [vmem:[#allocation3 + $0x108] sm:$0xff]  ;;  %3308 = vst.msk [vmem:[#allocation3 + $0x118] sm:$0xff] %vm598_vm2, %v3272_v27 }
 0x327   : > { %v3976_v39 = vmul.f32 %v3931_v32, %v3724_v33  ;;  %3689 = vst.msk [vmem:[#allocation3 + $0x110] sm:$0xff] %vm598_vm2, %v3653_v31 }
 0x329   : > { %4205 = vst.msk [vmem:[%s5638_s21 + $0x108] sm:$0xff] %vm598_vm2, %v3976_v39  ;;  %v4091_v6 = vmul.f32 %v3976_v39, %v3976_v39  ;;  %v4044_v13 = vsel %vm598_vm2, %v3976_v39, 0.0 }
 0x32a   : > { %v4045_v18 = vadd.f32 %v4044_v13, %v4043_v15 }
 0x32b   : > { %v4159_v5 = vsel %vm598_vm2, %v4091_v6, 0.0 }
 0x32c   : > { %v4160_v23 = vadd.f32 %v4159_v5, %v4158_v17 }
 0x32d   : > { %v3618_v55 = vld [vmem:[#allocation3 + $0x118] sm:$0xff] }
 0x32e   : > { %v3725_v60 = vld [vmem:[#allocation3 + $0x110] sm:$0xff]  ;;  %v3654_v57 = vadd.f32 %v3618_v55, %v3580_v49 }
 0x32f   : > { %v3977_v62 = vmul.f32 %v3936_v54, %v3725_v60 }
 0x330   : > { %3690 = vst.msk [vmem:[#allocation3 + $0x118] sm:$0xff] %vm598_vm2, %v3654_v57 }
 0x331   : > { %4206 = vst.msk [vmem:[%s5638_s21 + $0x110] sm:$0xff] %vm598_vm2, %v3977_v62  ;;  %v4092_v8 = vmul.f32 %v3977_v62, %v3977_v62  ;;  %v4046_v12 = vsel %vm598_vm2, %v3977_v62, 0.0 }
 0x332   : > { %v4047_v24 = vadd.f32 %v4046_v12, %v4045_v18 }
 0x333   : > { %v4161_v1 = vsel %vm598_vm2, %v4092_v8, 0.0 }
 0x334   : > { %v4162_v26 = vadd.f32 %v4161_v1, %v4160_v23 }
 0x337   : > { %v3726_v19 = vld [vmem:[#allocation3 + $0x118] sm:$0xff] }
 0x338   : > { %v3978_v22 = vmul.f32 %v3941_v11, %v3726_v19 }
 0x33a   : > { %v4048_v20 = vsel %vm598_vm2, %v3978_v22, 0.0  ;;  %v4093_v25 = vmul.f32 %v3978_v22, %v3978_v22  ;;  %4207 = vst.msk [vmem:[%s5638_s21 + $0x118] sm:$0xff] %vm598_vm2, %v3978_v22 }
 0x33b   : > { %v4049_v27 = vadd.f32 %v4048_v20, %v4047_v24 }
 0x33c   : > { %v4163_v29 = vsel %vm598_vm2, %v4093_v25, 0.0 }
 0x33d   : > { %v4050_v31 = vrot.slane %v4049_v27, 4  ;;  %v4164_v32 = vadd.f32 %v4163_v29, %v4162_v26 }
 0x33f   : > { %v4051_v34 = vadd.f32 %v4050_v31, %v4049_v27  ;;  %v4165_v61 = vrot.slane %v4164_v32, 4 }
 0x341   : > { %v4052_v37 = vrot.slane %v4051_v34, 2  ;;  %v4166_v33 = vadd.f32 %v4165_v61, %v4164_v32 }
 0x343   : > { %v4053_v50 = vadd.f32 %v4052_v37, %v4051_v34  ;;  %v4167_v39 = vrot.slane %v4166_v33, 2 }
 0x345   : > { %v4054_v21 = vrot.slane %v4053_v50, 1  ;;  %v4168_v42 = vadd.f32 %v4167_v39, %v4166_v33 }
 0x347   : > { %v4055_v44 = vadd.f32 %v4054_v21, %v4053_v50  ;;  %v4169_v43 = vrot.slane %v4168_v42, 1 }
 0x349   : > { %4057 = vst.msk [vmem:[%s319_s15] sm:$0x1] %vm4056_vm3, %v4055_v44  ;;  %v4170_v40 = vadd.f32 %v4169_v43, %v4168_v42 }
 0x34b   : > { %4171 = vst.msk [vmem:[%s322_s18] sm:$0x1] %vm4056_vm3, %v4170_v40 }
 0x34c PF: > { %s19_s27 = sadd.s32 1, %s4686_s27  }
 0x34d   : > { %p16_p4 = scmp.ge.s32.totalorder %s19_s27, 4  }
 0x34f   :  { %18 = sbr.rel (!%p16_p4) target bundleno = 1 (0x1), region = 106 }

// kernel: double_conv_block.4
= control target key start
LH: loop header
LB: loop body
LE: loop exit
PB: predicated region body
PF: predicated region fallthrough
CT: control target
= control target key end

     0   :  { %s5199_s27 = smov 0   ;;  %s6555_s0 = inlined_call_operand.vmem [shape: f32[2,326,8], index: 0, kind: input, shape index: {}]   ;;  %s6556_s1 = inlined_call_operand.vmem [shape: f32[9,8,8], index: 1, kind: input, shape index: {}]   ;;  %s6557_s2 = inlined_call_operand.vmem [shape: f32[1,8], index: 2, kind: input, shape index: {}]   ;;  %s6558_s3 = inlined_call_operand.vmem [shape: f32[1,8], index: 3, kind: input, shape index: {}]   ;;  %s6559_s4 = inlined_call_operand.vmem [shape: f32[326,1], index: 4, kind: input, shape index: {}]   ;;  %s6560_s5 = inlined_call_operand.vmem [shape: f32[288,1], index: 5, kind: input, shape index: {}]   ;;  %s6561_s6 = inlined_call_operand.vmem [shape: f32[2,288,8], index: 6, kind: output, shape index: {0}]   ;;  %s6562_s7 = inlined_call_operand.vmem [shape: f32[2,1,8], index: 7, kind: output, shape index: {1}]   ;;  %s6563_s8 = inlined_call_operand.vmem [shape: f32[2,1,8], index: 8, kind: output, shape index: {2}]  }
   0x1 LB: > { %s4785_s28 = sadd.s32 4294967295, %s5151_s27   ;;  %p4789_p0 = scmp.ge.s32.totalorder %s5151_s27, 1  ;;  %s5151_s27 = sphi %s5199_s27, %s19_s27  }
   0x2   : > { %p267_p1 = scmp.lt.s32.totalorder %s5151_s27, 3 }
   0x4   : > { %p268_p2 = pnand %p4789_p0, %p267_p1 }
   0x5   : > { %p307_p3 = scmp.lt.s32.totalorder (!%p268_p2), %s4785_s28, 1 }
   0x6   : > { %271 = sbr.rel (%p268_p2) target bundleno = 976 (0x3d0), region = 44 }
   0xb   : > { %v522_v0 = vld [vmem:[%s6559_s4 + $0xd8] sm:$0xff]  ;;  %v505_v1 = vld [vmem:[%s6559_s4 + $0x50] sm:$0xff]  ;;  %v504_v2 = vld [vmem:[%s6559_s4 + $0x48] sm:$0xff]  ;;  %v5153_v3 = vmov 0   ;;  %s6565_s28 = smov (!%p307_p3, %s4785_s28), 1  ;;  %vm782_vm0 = vcmask 64512  }
   0xc   : > { %5142 = vset.pattern.permute.xlu2 %v5153_v3  ;;  %5141 = vset.pattern.permute.xlu1 %v5153_v3  ;;  %v506_v4 = vld [vmem:[%s6559_s4 + $0x58] sm:$0xff]  ;;  %v513_v6 = vld [vmem:[%s6559_s4 + $0x90] sm:$0xff]  ;;  %v507_v7 = vld [vmem:[%s6559_s4 + $0x60] sm:$0xff]  ;;  %s5129_s29 = smul.u32 328, %s6565_s28  ;;  %vm823_vm1 = vcmask 62464   ;;  %s319_s18 = scalar_lea.vmem %s6562_s7, %s6565_s28  ;;  %vm4528_vm2 = vcmask 57344  }
   0xd   : > { %5140 = vset.pattern.permute.xlu0 %v5153_v3  ;;  %673 = vperm.xlu2 %5142, %v522_v0   ;;  %v514_v5 = vld [vmem:[%s6559_s4 + $0x98] sm:$0xff]  ;;  %v523_v8 = vld [vmem:[%s6559_s4 + $0xe0] sm:$0xff]  ;;  %v524_v10 = vld [vmem:[%s6559_s4 + $0xe8] sm:$0xff]  ;;  %s5130_s12 = smul.u32 288, %s6565_s28  ;;  %s322_s21 = scalar_lea.vmem %s6563_s8, %s6565_s28 }
   0xe   : > { %588 = vperm.xlu1 %5141, %v505_v1   ;;  %583 = vperm.xlu0 %5140, %v504_v2   ;;  %v515_v9 = vld [vmem:[%s6559_s4 + $0xa0] sm:$0xff]  ;;  %v516_v11 = vld [vmem:[%s6559_s4 + $0xa8] sm:$0xff]  ;;  %v517_v15 = vld [vmem:[%s6559_s4 + $0xb0] sm:$0xff]  ;;  %s5307_s10 = scalar_lea.vmem %s6555_s0, %s5129_s29 }
   0xf   : > { %v495_v12 = vld [vmem:[%s6559_s4] sm:$0xff]  ;;  %v496_v13 = vld [vmem:[%s6559_s4 + $0x8] sm:$0xff]  ;;  %v518_v16 = vld [vmem:[%s6559_s4 + $0xb8] sm:$0xff]  ;;  %s6105_s15 = scalar_lea.vmem %s6561_s6, %s5130_s12 }
  0x10   : > { %v508_v14 = vld [vmem:[%s6559_s4 + $0x68] sm:$0xff]  ;;  %v525_v17 = vld [vmem:[%s6559_s4 + $0xf0] sm:$0xff]  ;;  %v510_v19 = vld [vmem:[%s6559_s4 + $0x78] sm:$0xff] }
  0x11   : > { %v509_v18 = vld [vmem:[%s6559_s4 + $0x70] sm:$0xff]  ;;  %v526_v21 = vld [vmem:[%s6559_s4 + $0xf8] sm:$0xff]  ;;  %v527_v22 = vld [vmem:[%s6559_s4 + $0x100] sm:$0xff] }
  0x12   : > { %v497_v20 = vld [vmem:[%s6559_s4 + $0x10] sm:$0xff]  ;;  %v519_v23 = vld [vmem:[%s6559_s4 + $0xc0] sm:$0xff]  ;;  %v498_v24 = vld [vmem:[%s6559_s4 + $0x18] sm:$0xff] }
  0x13   : > { %v499_v25 = vld [vmem:[%s6559_s4 + $0x20] sm:$0xff]  ;;  %v520_v27 = vld [vmem:[%s6559_s4 + $0xc8] sm:$0xff]  ;;  %v521_v28 = vld [vmem:[%s6559_s4 + $0xd0] sm:$0xff] }
  0x14   : > { %v511_v26 = vld [vmem:[%s6559_s4 + $0x80] sm:$0xff]  ;;  %v528_v29 = vld [vmem:[%s6559_s4 + $0x108] sm:$0xff]  ;;  %v350_v31 = vld [vmem:[%s5307_s10 + $0xd8] sm:$0xff] }
  0x15   : > { %593 = vperm.xlu2 %5142, %v506_v4   ;;  %v512_v30 = vld [vmem:[%s6559_s4 + $0x88] sm:$0xff]  ;;  %v501_v32 = vld [vmem:[%s6559_s4 + $0x30] sm:$0xff]  ;;  %v5316_v33 = vld [vmem:[%s6557_s2] ss:$0 sm:$0xff] }
  0x16   : > { %633 = vperm.xlu1 %5141, %v514_v5   ;;  %628 = vperm.xlu0 %5140, %v513_v6   ;;  %v500_v34 = vld [vmem:[%s6559_s4 + $0x28] sm:$0xff]  ;;  %v529_v35 = vld [vmem:[%s6559_s4 + $0x110] sm:$0xff]  ;;  %v395_v36 = vmul.f32 %v5316_v33, %v350_v31  ;;  %v5328_v37 = vld [vmem:[%s6558_s3] ss:$0 sm:$0xff] }
  0x17   : > { %v334_v39 = vld [vmem:[%s5307_s10 + $0x58] sm:$0xff]  ;;  %v503_v40 = vld [vmem:[%s6559_s4 + $0x40] sm:$0xff]  ;;  %v533_v49 = vld [vmem:[%s6559_s4 + $0x130] sm:$0xff] }
  0x18   : > { %v440_v38 = vadd.f32 %v5328_v37, %v395_v36  ;;  %v530_v41 = vld [vmem:[%s6559_s4 + $0x118] sm:$0xff]  ;;  %v379_v44 = vmul.f32 %v5316_v33, %v334_v39  ;;  %v335_v48 = vld [vmem:[%s5307_s10 + $0x60] sm:$0xff]  ;;  %v532_v52 = vld [vmem:[%s6559_s4 + $0x128] sm:$0xff] }
  0x19   : > { %v502_v42 = vld [vmem:[%s6559_s4 + $0x38] sm:$0xff]  ;;  %v861_v50 = vld [vmem:[%s6556_s1] sm:$0xff]  ;;  %v380_v54 = vmul.f32 %v5316_v33, %v335_v48  ;;  %v352_v58 = vld [vmem:[%s5307_s10 + $0xe8] sm:$0xff] }
  0x1a   : > { %v481_v43 = vmax.f32 %v440_v38, 0.0  ;;  %v424_v47 = vadd.f32 %v5328_v37, %v379_v44  ;;  %v531_v51 = vld [vmem:[%s6559_s4 + $0x120] sm:$0xff]  ;;  %5126 = vmatpush.msra.mxu1 %v861_v50  ;;  %5128 = vmatpush.msra.mxu3 %v861_v50  ;;  %v333_v61 = vld [vmem:[%s5307_s10 + $0x50] sm:$0xff]  ;;  %v332_v62 = vld [vmem:[%s5307_s10 + $0x48] sm:$0xff]  ;;  %v397_v2 = vmul.f32 %v5316_v33, %v352_v58 }
  0x1b   : > { %5127 = vmatpush.msra.mxu2 %v861_v50  ;;  %985 = vmatpush.msra.mxu0 %v861_v50  ;;  %v425_v57 = vadd.f32 %v5328_v37, %v380_v54  ;;  %v4199_v60 = vld [vmem:[%s6560_s5] sm:$0xff]  ;;  %v534_v63 = vld [vmem:[%s6559_s4 + $0x138] sm:$0xff]  ;;  %v4828_v3 = vld [vmem:[%s6556_s1 + $0x8] sm:$0xff]  ;;  %v378_v4 = vmul.f32 %v5316_v33, %v333_v61  ;;  %v377_v5 = vmul.f32 %v5316_v33, %v332_v62 }
  0x1c   : > { %v465_v53 = vmax.f32 %v424_v47, 0.0  ;;  %v535_v0 = vld [vmem:[%s6559_s4 + $0x140] sm:$0x3f]  ;;  %1292 = vmatpush.msrb.mxu1 %v4828_v3  ;;  %v4902_v47 = vld [vmem:[%s6556_s1 + $0x18] sm:$0xff]  ;;  %v4208_v58 = vld [vmem:[%s6560_s5 + $0x48] sm:$0xff] }
  0x1d   : > { %598 = vperm.xlu2 %5142, %v507_v7   ;;  %v466_v1 = vmax.f32 %v425_v57, 0.0  ;;  %v351_v36 = vld [vmem:[%s5307_s10 + $0xe0] sm:$0xff]  ;;  %2050 = vmatpush.msrb.mxu3 %v4902_v47  ;;  %v338_v57 = vld [vmem:[%s5307_s10 + $0x78] sm:$0xff] }
  0x1e   : > { %678 = vperm.xlu1 %5141, %v523_v8   ;;  %638 = vperm.xlu0 %5140, %v515_v9   ;;  %v442_v8 = vadd.f32 %v5328_v37, %v397_v2  ;;  %v423_v9 = vadd.f32 %v5328_v37, %v378_v4  ;;  %v343_v38 = vld [vmem:[%s5307_s10 + $0xa0] sm:$0xff]  ;;  %v4206_v62 = vld [vmem:[%s6560_s5 + $0x38] sm:$0xff] }
  0x1f   : > { %v4203_v39 = vld [vmem:[%s6560_s5 + $0x20] sm:$0xff] }
  0x25   : > { %683 = vperm.xlu2 %5142, %v524_v10   ;;  %v422_v10 = vadd.f32 %v5328_v37, %v377_v5 }
  0x26   : > { %643 = vperm.xlu0 %5140, %v516_v11   ;;  %538 = vperm.xlu1 %5141, %v495_v12   ;;  %v324_v11 = vld [vmem:[%s5307_s10 + $0x8] sm:$0xff]  ;;  %v4202_v12 = vld [vmem:[%s6560_s5 + $0x18] sm:$0xff] }
  0x2d   : > { %543 = vperm.xlu2 %5142, %v496_v13   ;;  %v342_v13 = vld [vmem:[%s5307_s10 + $0x98] sm:$0xff] }
  0x2e   : > { %603 = vperm.xlu0 %5140, %v508_v14   ;;  %648 = vperm.xlu1 %5141, %v517_v15   ;;  %v341_v14 = vld [vmem:[%s5307_s10 + $0x90] sm:$0xff]  ;;  %v4200_v15 = vld [vmem:[%s6560_s5 + $0x8] sm:$0xff] }
  0x35   : > { %653 = vperm.xlu2 %5142, %v518_v16   ;;  %v4201_v16 = vld [vmem:[%s6560_s5 + $0x10] sm:$0xff] }
  0x36   : > { %688 = vperm.xlu0 %5140, %v525_v17   ;;  %608 = vperm.xlu1 %5141, %v509_v18   ;;  %v483_v17 = vmax.f32 %v442_v8, 0.0  ;;  %v369_v18 = vmul.f32 %v5316_v33, %v324_v11 }
  0x3d   : > { %613 = vperm.xlu2 %5142, %v510_v19   ;;  %v4865_v19 = vld [vmem:[%s6556_s1 + $0x10] sm:$0xff] }
  0x3e   : > { %548 = vperm.xlu0 %5140, %v497_v20   ;;  %693 = vperm.xlu1 %5141, %v526_v21   ;;  %v464_v20 = vmax.f32 %v423_v9, 0.0  ;;  %v463_v21 = vmax.f32 %v422_v10, 0.0 }
  0x3f   : > { %1671 = vmatpush.msrb.mxu2 %v4865_v19  ;;  %v345_v19 = vld [vmem:[%s5307_s10 + $0xb0] sm:$0xff] }
  0x45   : > { %698 = vperm.xlu2 %5142, %v527_v22   ;;  %v387_v22 = vmul.f32 %v5316_v33, %v342_v13  ;;  %v4209_v13 = vld [vmem:[%s6560_s5 + $0x50] sm:$0xff] }
  0x46   : > { %658 = vperm.xlu0 %5140, %v519_v23   ;;  %553 = vperm.xlu1 %5141, %v498_v24   ;;  %v386_v23 = vmul.f32 %v5316_v33, %v341_v14 }
  0x47   : > { %v432_v31 = vadd.f32 %v5328_v37, %v387_v22  ;;  %v4210_v22 = vld [vmem:[%s6560_s5 + $0x58] sm:$0xff] }
  0x4d   : > { %558 = vperm.xlu2 %5142, %v499_v25  }
  0x4e   : > { %618 = vperm.xlu0 %5140, %v511_v26   ;;  %663 = vperm.xlu1 %5141, %v520_v27  }
  0x55   : > { %668 = vperm.xlu2 %5142, %v521_v28   ;;  %v414_v28 = vadd.f32 %v5328_v37, %v369_v18  ;;  %v336_v18 = vld [vmem:[%s5307_s10 + $0x68] sm:$0xff] }
  0x56   : > { %703 = vperm.xlu0 %5140, %v528_v29   ;;  %623 = vperm.xlu1 %5141, %v512_v30  }
  0x5d   : > { %568 = vperm.xlu2 %5142, %v501_v32   ;;  %v431_v32 = vadd.f32 %v5328_v37, %v386_v23 }
  0x5e   : > { %563 = vperm.xlu0 %5140, %v500_v34   ;;  %708 = vperm.xlu1 %5141, %v529_v35   ;;  %v346_v34 = vld [vmem:[%s5307_s10 + $0xb8] sm:$0xff]  ;;  %v4205_v35 = vld [vmem:[%s6560_s5 + $0x30] sm:$0xff] }
  0x5f   : > { %v472_v44 = vmax.f32 %v431_v32, 0.0 }
  0x65   : > { %578 = vperm.xlu2 %5142, %v503_v40   ;;  %v4204_v40 = vld [vmem:[%s6560_s5 + $0x28] sm:$0xff] }
  0x66   : > { %713 = vperm.xlu0 %5140, %v530_v41   ;;  %573 = vperm.xlu1 %5141, %v502_v42   ;;  %v455_v41 = vmax.f32 %v414_v28, 0.0  ;;  %v391_v42 = vmul.f32 %v5316_v33, %v346_v34  ;;  %v390_v28 = vmul.f32 %v5316_v33, %v345_v19 }
  0x67   : > { %v674_v45 = vpop.permute.xlu2 %673 }
  0x68   : > { %v768_v46 = vmul.f32 %v674_v45, %v481_v43  ;;  %v473_v43 = vmax.f32 %v432_v31, 0.0  ;;  %v396_v45 = vmul.f32 %v5316_v33, %v351_v36 }
  0x6a   : > { %810 = vst.msk [vmem:[#allocation2 + $0xd8] sm:$0xff] %vm782_vm0, %v768_v46  ;;  %v388_v46 = vmul.f32 %v5316_v33, %v343_v38 }
  0x6d   : > { %728 = vperm.xlu2 %5142, %v533_v49  }
  0x6e   : > { %718 = vperm.xlu0 %5140, %v531_v51   ;;  %723 = vperm.xlu1 %5141, %v532_v52   ;;  %v436_v52 = vadd.f32 %v5328_v37, %v391_v42  ;;  %v435_v42 = vadd.f32 %v5328_v37, %v390_v28 }
  0x6f   : > { %v594_v55 = vpop.permute.xlu2 %593 }
  0x70   : > { %v752_v56 = vmul.f32 %v594_v55, %v465_v53  ;;  %v441_v55 = vadd.f32 %v5328_v37, %v396_v45  ;;  %v353_v45 = vld [vmem:[%s5307_s10 + $0xf0] sm:$0xff] }
  0x71   : > { %v852_v59 = vld [vmem:[#allocation2 + $0xd8] sm:$0xff] }
  0x72   : > { %794 = vst.msk [vmem:[#allocation2 + $0x58] sm:$0xff] %vm782_vm0, %v752_v56  ;;  %4819 = vmatmul.msk.f32.vlgmr.msra.gmra.mxu3 %vm782_vm0, %v852_v59  ;;  %v433_v56 = vadd.f32 %v5328_v37, %v388_v46  ;;  %v344_v59 = vld [vmem:[%s5307_s10 + $0xa8] sm:$0xff]  ;;  %v482_v2 = vmax.f32 %v441_v55, 0.0  ;;  %v337_v46 = vld [vmem:[%s5307_s10 + $0x70] sm:$0xff] }
  0x73   : > { %v389_v4 = vmul.f32 %v5316_v33, %v344_v59  ;;  %v382_v55 = vmul.f32 %v5316_v33, %v337_v46 }
  0x74   : > { %v474_v3 = vmax.f32 %v433_v56, 0.0 }
  0x75   : > { %4237 = vperm.xlu2 %5142, %v4199_v60   ;;  %v323_v60 = vld [vmem:[%s5307_s10] sm:$0xff]  ;;  %v434_v14 = vadd.f32 %v5328_v37, %v389_v4 }
  0x76   : > { %733 = vperm.xlu0 %5140, %v534_v63   ;;  %738 = vperm.xlu1 %5141, %v535_v0   ;;  %v4207_v63 = vld [vmem:[%s6560_s5 + $0x40] sm:$0xff]  ;;  %v477_v0 = vmax.f32 %v436_v52, 0.0  ;;  %v368_v5 = vmul.f32 %v5316_v33, %v323_v60 }
  0x77   : > { %v599_v6 = vpop.permute.xlu2 %598 }
  0x78   : > { %v753_v7 = vmul.f32 %v599_v6, %v466_v1  ;;  %v383_v1 = vmul.f32 %v5316_v33, %v338_v57 }
  0x7a   : > { %795 = vst.msk [vmem:[#allocation2 + $0x60] sm:$0xff] %vm782_vm0, %v753_v7  ;;  %v428_v10 = vadd.f32 %v5328_v37, %v383_v1 }
  0x7c   : > { %v469_v23 = vmax.f32 %v428_v10, 0.0 }
  0x7d   : > { %4252 = vperm.xlu2 %5142, %v4202_v12  }
  0x7e   : > { %4242 = vperm.xlu0 %5140, %v4200_v15   ;;  %4247 = vperm.xlu1 %5141, %v4201_v16   ;;  %v413_v15 = vadd.f32 %v5328_v37, %v368_v5  ;;  %v355_v16 = vld [vmem:[%s5307_s10 + $0x100] sm:$0xff]  ;;  %v325_v5 = vld [vmem:[%s5307_s10 + $0x10] sm:$0xff] }
  0x7f   : > { %v684_v24 = vpop.permute.xlu2 %683 }
  0x80   : > { %v770_v25 = vmul.f32 %v684_v24, %v483_v17  ;;  %v589_v26 = vpop.permute.xlu1 %588  ;;  %v584_v27 = vpop.permute.xlu0 %583  ;;  %v4211_v17 = vld [vmem:[%s6560_s5 + $0x60] sm:$0xff]  ;;  %v400_v24 = vmul.f32 %v5316_v33, %v355_v16 }
  0x81   : > { %v751_v29 = vmul.f32 %v589_v26, %v464_v20  ;;  %v750_v30 = vmul.f32 %v584_v27, %v463_v21  ;;  %v454_v26 = vmax.f32 %v413_v15, 0.0  ;;  %v381_v27 = vmul.f32 %v5316_v33, %v336_v18 }
  0x82   : > { %812 = vst.msk [vmem:[#allocation2 + $0xe8] sm:$0xff] %vm782_vm0, %v770_v25  ;;  %v475_v25 = vmax.f32 %v434_v14, 0.0  ;;  %v370_v15 = vmul.f32 %v5316_v33, %v325_v5 }
  0x83   : > { %793 = vst.msk [vmem:[#allocation2 + $0x50] sm:$0xff] %vm782_vm0, %v751_v29  ;;  %v4939_v29 = vld [vmem:[%s6556_s1 + $0x20] sm:$0xff] }
  0x84   : > { %792 = vst.msk [vmem:[#allocation2 + $0x48] sm:$0xff] %vm782_vm0, %v750_v30  ;;  %2429 = vmatpush.msrb.mxu0 %v4939_v29  ;;  %v347_v29 = vld [vmem:[%s5307_s10 + $0xc0] sm:$0xff] }
  0x85   : > { %4267 = vperm.xlu2 %5142, %v4205_v35   ;;  %v445_v35 = vadd.f32 %v5328_v37, %v400_v24  ;;  %v4220_v24 = vld [vmem:[%s6560_s5 + $0xa8] sm:$0xff] }
  0x86   : > { %4257 = vperm.xlu0 %5140, %v4203_v39   ;;  %4262 = vperm.xlu1 %5141, %v4204_v40   ;;  %v836_v39 = vld [vmem:[#allocation2 + $0x58] sm:$0xff] }
  0x87   : > { %v544_v48 = vpop.permute.xlu2 %543  ;;  %v4214_v40 = vld [vmem:[%s6560_s5 + $0x78] sm:$0xff] }
  0x88   : > { %v634_v49 = vpop.permute.xlu1 %633  ;;  %v629_v50 = vpop.permute.xlu0 %628  ;;  %v742_v51 = vmul.f32 %v544_v48, %v455_v41  ;;  %v426_v41 = vadd.f32 %v5328_v37, %v381_v27  ;;  %v4212_v48 = vld [vmem:[%s6560_s5 + $0x68] sm:$0xff]  ;;  %v329_v27 = vld [vmem:[%s5307_s10 + $0x30] sm:$0xff] }
  0x89   : > { %v760_v53 = vmul.f32 %v634_v49, %v473_v43  ;;  %v759_v54 = vmul.f32 %v629_v50, %v472_v44  ;;  %v327_v43 = vld [vmem:[%s5307_s10 + $0x20] sm:$0xff]  ;;  %v4213_v49 = vld [vmem:[%s6560_s5 + $0x70] sm:$0xff]  ;;  %v486_v50 = vmax.f32 %v445_v35, 0.0  ;;  %v854_v4 = vld [vmem:[#allocation2 + $0xe8] sm:$0xff] }
  0x8a   : > { %784 = vst.msk [vmem:[#allocation2 + $0x8] sm:$0xff] %vm782_vm0, %v742_v51  ;;  %v835_v20 = vld [vmem:[#allocation2 + $0x50] sm:$0xff]  ;;  %v372_v51 = vmul.f32 %v5316_v33, %v327_v43  ;;  %v467_v52 = vmax.f32 %v426_v41, 0.0  ;;  %v392_v41 = vmul.f32 %v5316_v33, %v347_v29 }
  0x8b   : > { %802 = vst.msk [vmem:[#allocation2 + $0x98] sm:$0xff] %vm782_vm0, %v760_v53  ;;  %v834_v61 = vld [vmem:[#allocation2 + $0x48] sm:$0xff]  ;;  %v476_v53 = vmax.f32 %v435_v42, 0.0 }
  0x8c   : > { %801 = vst.msk [vmem:[#allocation2 + $0x90] sm:$0xff] %vm782_vm0, %v759_v54  ;;  %4801 = vmatmul.msk.f32.vlgmr.msra.gmra.mxu1 %vm782_vm0, %v834_v61  ;;  %v398_v54 = vmul.f32 %v5316_v33, %v353_v45  ;;  %v417_v60 = vadd.f32 %v5328_v37, %v372_v51  ;;  %v437_v51 = vadd.f32 %v5328_v37, %v392_v41 }
  0x8d   : > { %4282 = vperm.xlu2 %5142, %v4208_v58  }
  0x8e   : > { %4272 = vperm.xlu0 %5140, %v4206_v62   ;;  %4277 = vperm.xlu1 %5141, %v4207_v63   ;;  %v837_v63 = vld [vmem:[#allocation2 + $0x60] sm:$0xff]  ;;  %v443_v1 = vadd.f32 %v5328_v37, %v398_v54 }
  0x8f   : > { %v654_v6 = vpop.permute.xlu2 %653 }
  0x90   : > { %v679_v7 = vpop.permute.xlu1 %678  ;;  %v639_v8 = vpop.permute.xlu0 %638  ;;  %v764_v9 = vmul.f32 %v654_v6, %v477_v0  ;;  %v4217_v0 = vld [vmem:[%s6560_s5 + $0x90] sm:$0xff]  ;;  %v354_v6 = vld [vmem:[%s5307_s10 + $0xf8] sm:$0xff] }
  0x91   : > { %v769_v11 = vmul.f32 %v679_v7, %v482_v2  ;;  %v761_v12 = vmul.f32 %v639_v8, %v474_v3  ;;  %v427_v2 = vadd.f32 %v5328_v37, %v382_v55  ;;  %v349_v3 = vld [vmem:[%s5307_s10 + $0xd0] sm:$0xff]  ;;  %v4215_v8 = vld [vmem:[%s6560_s5 + $0x80] sm:$0xff]  ;;  %v399_v16 = vmul.f32 %v5316_v33, %v354_v6 }
  0x92   : > { %806 = vst.msk [vmem:[#allocation2 + $0xb8] sm:$0xff] %vm782_vm0, %v764_v9  ;;  %v844_v47 = vld [vmem:[#allocation2 + $0x98] sm:$0xff]  ;;  %v4216_v9 = vld [vmem:[%s6560_s5 + $0x88] sm:$0xff]  ;;  %v339_v55 = vld [vmem:[%s5307_s10 + $0x80] sm:$0xff] }
  0x93   : > { %811 = vst.msk [vmem:[#allocation2 + $0xe0] sm:$0xff] %vm782_vm0, %v769_v11  ;;  %v843_v21 = vld [vmem:[#allocation2 + $0x90] sm:$0xff]  ;;  %v458_v11 = vmax.f32 %v417_v60, 0.0  ;;  %v468_v14 = vmax.f32 %v427_v2, 0.0 }
  0x94   : > { %803 = vst.msk [vmem:[#allocation2 + $0xa0] sm:$0xff] %vm782_vm0, %v761_v12  ;;  %4802 = vmatmul.msk.f32.gmra.mxu1 %vm782_vm0, %v835_v20  ;;  %4810 = vmatmul.msk.f32.vlgmr.msra.gmra.mxu2 %vm782_vm0, %v843_v21  ;;  %v394_v12 = vmul.f32 %v5316_v33, %v349_v3 }
  0x95   : > { %4297 = vperm.xlu2 %5142, %v4211_v17  }
  0x96   : > { %4287 = vperm.xlu0 %5140, %v4209_v13   ;;  %4292 = vperm.xlu1 %5141, %v4210_v22   ;;  %v484_v13 = vmax.f32 %v443_v1, 0.0  ;;  %v439_v21 = vadd.f32 %v5328_v37, %v394_v12  ;;  %v384_v1 = vmul.f32 %v5316_v33, %v339_v55 }
  0x97   : > { %v614_v30 = vpop.permute.xlu2 %613 }
  0x98   : > { %v644_v31 = vpop.permute.xlu0 %643  ;;  %v756_v32 = vmul.f32 %v614_v30, %v469_v23  ;;  %v539_v34 = vpop.permute.xlu1 %538  ;;  %v326_v30 = vld [vmem:[%s5307_s10 + $0x18] sm:$0xff]  ;;  %v429_v12 = vadd.f32 %v5328_v37, %v384_v1 }
  0x99   : > { %v762_v36 = vmul.f32 %v644_v31, %v475_v25  ;;  %v741_v38 = vmul.f32 %v539_v34, %v454_v26  ;;  %v415_v25 = vadd.f32 %v5328_v37, %v370_v15  ;;  %v444_v26 = vadd.f32 %v5328_v37, %v399_v16  ;;  %v826_v31 = vld [vmem:[#allocation2 + $0x8] sm:$0xff]  ;;  %v4219_v34 = vld [vmem:[%s6560_s5 + $0xa0] sm:$0xff]  ;;  %v358_v1 = vld [vmem:[%s5307_s10 + $0x118] sm:$0xff] }
  0x9a   : > { %798 = vst.msk [vmem:[#allocation2 + $0x78] sm:$0xff] %vm782_vm0, %v756_v32  ;;  %v853_v44 = vld [vmem:[#allocation2 + $0xe0] sm:$0xff]  ;;  %v4218_v32 = vld [vmem:[%s6560_s5 + $0x98] sm:$0xff]  ;;  %v371_v42 = vmul.f32 %v5316_v33, %v326_v30  ;;  %v356_v16 = vld [vmem:[%s5307_s10 + $0x108] sm:$0xff] }
  0x9b   : > { %804 = vst.msk [vmem:[#allocation2 + $0xa8] sm:$0xff] %vm782_vm0, %v762_v36  ;;  %4820 = vmatmul.msk.f32.gmra.mxu3 %vm782_vm0, %v853_v44  ;;  %v845_v10 = vld [vmem:[#allocation2 + $0xa0] sm:$0xff]  ;;  %v480_v36 = vmax.f32 %v439_v21, 0.0  ;;  %v848_v21 = vld [vmem:[#allocation2 + $0xb8] sm:$0xff] }
  0x9c   : > { %783 = vst.msk [vmem:[#allocation2] sm:$0xff] %vm782_vm0, %v741_v38  ;;  %4803 = vmatmul.msk.f32.gmra.mxu1 %vm782_vm0, %v836_v39  ;;  %4811 = vmatmul.msk.f32.gmra.mxu2 %vm782_vm0, %v844_v47  ;;  %v374_v38 = vmul.f32 %v5316_v33, %v329_v27  ;;  %v456_v39 = vmax.f32 %v415_v25, 0.0 }
  0x9d   : > { %4312 = vperm.xlu2 %5142, %v4214_v40   ;;  %v485_v40 = vmax.f32 %v444_v26, 0.0  ;;  %v401_v26 = vmul.f32 %v5316_v33, %v356_v16 }
  0x9e   : > { %4302 = vperm.xlu0 %5140, %v4212_v48   ;;  %4307 = vperm.xlu1 %5141, %v4213_v49   ;;  %v419_v47 = vadd.f32 %v5328_v37, %v374_v38  ;;  %v4227_v38 = vld [vmem:[%s6560_s5 + $0xe0] sm:$0xff] }
  0x9f   : > { %v699_v56 = vpop.permute.xlu2 %698 }
  0xa0   : > { %v604_v57 = vpop.permute.xlu0 %603  ;;  %v773_v58 = vmul.f32 %v699_v56, %v486_v50  ;;  %v649_v59 = vpop.permute.xlu1 %648  ;;  %v4223_v50 = vld [vmem:[%s6560_s5 + $0xc0] sm:$0xff]  ;;  %v348_v56 = vld [vmem:[%s5307_s10 + $0xc8] sm:$0xff] }
  0xa1   : > { %v754_v61 = vmul.f32 %v604_v57, %v467_v52  ;;  %v763_v62 = vmul.f32 %v649_v59, %v476_v53  ;;  %v416_v52 = vadd.f32 %v5328_v37, %v371_v42  ;;  %v331_v53 = vld [vmem:[%s5307_s10 + $0x40] sm:$0xff]  ;;  %v4222_v59 = vld [vmem:[%s6560_s5 + $0xb8] sm:$0xff]  ;;  %v393_v2 = vmul.f32 %v5316_v33, %v348_v56 }
  0xa2   : > { %815 = vst.msk [vmem:[#allocation2 + $0x100] sm:$0xff] %vm782_vm0, %v773_v58  ;;  %v846_v35 = vld [vmem:[#allocation2 + $0xa8] sm:$0xff]  ;;  %v4221_v58 = vld [vmem:[%s6560_s5 + $0xb0] sm:$0xff] }
  0xa3   : > { %796 = vst.msk [vmem:[#allocation2 + $0x68] sm:$0xff] %vm782_vm0, %v754_v61  ;;  %v825_v7 = vld [vmem:[#allocation2] sm:$0xff]  ;;  %4821 = vmatmul.msk.f32.gmra.mxu3 %vm782_vm0, %v854_v4  ;;  %v460_v61 = vmax.f32 %v419_v47, 0.0  ;;  %v4228_v47 = vld [vmem:[%s6560_s5 + $0xe8] sm:$0xff] }
  0xa4   : > { %805 = vst.msk [vmem:[#allocation2 + $0xb0] sm:$0xff] %vm782_vm0, %v763_v62  ;;  %4792 = vmatmul.msk.f32.vlgmr.msra.gmra.mxu0 %vm782_vm0, %v825_v7  ;;  %4804 = vmatmul.msk.f32.gmra.mxu1 %vm782_vm0, %v837_v63  ;;  %v376_v62 = vmul.f32 %v5316_v33, %v331_v53  ;;  %v478_v63 = vmax.f32 %v437_v51, 0.0 }
  0xa5   : > { %4812 = vmatmul.msk.f32.gmra.mxu2 %vm782_vm0, %v845_v10  ;;  %4327 = vperm.xlu2 %5142, %v4217_v0   ;;  %v457_v0 = vmax.f32 %v416_v52, 0.0  ;;  %v4224_v10 = vld [vmem:[%s6560_s5 + $0xc8] sm:$0xff] }
  0xa6   : > { %4317 = vperm.xlu0 %5140, %v4215_v8   ;;  %4322 = vperm.xlu1 %5141, %v4216_v9   ;;  %v421_v7 = vadd.f32 %v5328_v37, %v376_v62 }
  0xa7   : > { %v559_v17 = vpop.permute.xlu2 %558 }
  0xa8   : > { %v689_v18 = vpop.permute.xlu0 %688  ;;  %v745_v19 = vmul.f32 %v559_v17, %v458_v11  ;;  %v609_v20 = vpop.permute.xlu1 %608  ;;  %v4226_v11 = vld [vmem:[%s6560_s5 + $0xd8] sm:$0xff]  ;;  %v340_v17 = vld [vmem:[%s5307_s10 + $0x88] sm:$0xff] }
  0xa9   : > { %v771_v22 = vmul.f32 %v689_v18, %v484_v13  ;;  %v755_v23 = vmul.f32 %v609_v20, %v468_v14  ;;  %v438_v13 = vadd.f32 %v5328_v37, %v393_v2  ;;  %v361_v14 = vld [vmem:[%s5307_s10 + $0x130] sm:$0xff]  ;;  %v840_v18 = vld [vmem:[#allocation2 + $0x78] sm:$0xff]  ;;  %v385_v27 = vmul.f32 %v5316_v33, %v340_v17 }
  0xaa   : > { %787 = vst.msk [vmem:[#allocation2 + $0x20] sm:$0xff] %vm782_vm0, %v745_v19  ;;  %v838_v28 = vld [vmem:[#allocation2 + $0x68] sm:$0xff]  ;;  %v4225_v20 = vld [vmem:[%s6560_s5 + $0xd0] sm:$0xff]  ;;  %v330_v2 = vld [vmem:[%s5307_s10 + $0x38] sm:$0xff] }
  0xab   : > { %813 = vst.msk [vmem:[#allocation2 + $0xf0] sm:$0xff] %vm782_vm0, %v771_v22  ;;  %v847_v60 = vld [vmem:[#allocation2 + $0xb0] sm:$0xff]  ;;  %v462_v22 = vmax.f32 %v421_v7, 0.0  ;;  %v479_v25 = vmax.f32 %v438_v13, 0.0  ;;  %v430_v41 = vadd.f32 %v5328_v37, %v385_v27 }
  0xac   : > { %797 = vst.msk [vmem:[#allocation2 + $0x70] sm:$0xff] %vm782_vm0, %v755_v23  ;;  %4793 = vmatmul.msk.f32.gmra.mxu0 %vm782_vm0, %v826_v31  ;;  %4805 = vmatmul.msk.f32.gmra.mxu1 %vm782_vm0, %v838_v28  ;;  %v406_v23 = vmul.f32 %v5316_v33, %v361_v14  ;;  %v4976_v28 = vld [vmem:[%s6556_s1 + $0x28] sm:$0xff] }
  0xad   : > { %4813 = vmatmul.msk.f32.gmra.mxu2 %vm782_vm0, %v846_v35  ;;  %4342 = vperm.xlu2 %5142, %v4220_v24   ;;  %v470_v24 = vmax.f32 %v429_v12, 0.0  ;;  %v471_v51 = vmax.f32 %v430_v41, 0.0  ;;  %v1510_v41 = vld [vmem:[#allocation2 + $0x2] sm:$0xff] }
  0xae   : > { %4332 = vperm.xlu0 %5140, %v4218_v32   ;;  %4337 = vperm.xlu1 %5141, %v4219_v34   ;;  %v451_v34 = vadd.f32 %v5328_v37, %v406_v23 }
  0xaf   : > { %v669_v43 = vpop.permute.xlu2 %668  ;;  %2808 = vmatpush.msra.mxu1 %v4976_v28 }
  0xb0   : > { %v549_v44 = vpop.permute.xlu0 %548  ;;  %v767_v45 = vmul.f32 %v669_v43, %v480_v36  ;;  %v694_v46 = vpop.permute.xlu1 %693  ;;  %v328_v43 = vld [vmem:[%s5307_s10 + $0x28] sm:$0xff] }
  0xb1   : > { %v743_v48 = vmul.f32 %v549_v44, %v456_v39  ;;  %v772_v49 = vmul.f32 %v694_v46, %v485_v40  ;;  %v4229_v39 = vld [vmem:[%s6560_s5 + $0xf0] sm:$0xff]  ;;  %v446_v40 = vadd.f32 %v5328_v37, %v401_v26  ;;  %v857_v46 = vld [vmem:[#allocation2 + $0x100] sm:$0xff]  ;;  %v373_v52 = vmul.f32 %v5316_v33, %v328_v43 }
  0xb2   : > { %809 = vst.msk [vmem:[#allocation2 + $0xd0] sm:$0xff] %vm782_vm0, %v767_v45  ;;  %v855_v54 = vld [vmem:[#allocation2 + $0xf0] sm:$0xff] }
  0xb3   : > { %785 = vst.msk [vmem:[#allocation2 + $0x10] sm:$0xff] %vm782_vm0, %v743_v48  ;;  %v839_v57 = vld [vmem:[#allocation2 + $0x70] sm:$0xff]  ;;  %4822 = vmatmul.msk.f32.gmra.mxu3 %vm782_vm0, %v855_v54  ;;  %v492_v48 = vmax.f32 %v451_v34, 0.0  ;;  %v418_v62 = vadd.f32 %v5328_v37, %v373_v52 }
  0xb4   : > { %814 = vst.msk [vmem:[#allocation2 + $0xf8] sm:$0xff] %vm782_vm0, %v772_v49  ;;  %4806 = vmatmul.msk.f32.gmra.mxu1 %vm782_vm0, %v839_v57  ;;  %v357_v44 = vld [vmem:[%s5307_s10 + $0x110] sm:$0xff] }
  0xb5   : > { %4814 = vmatmul.msk.f32.gmra.mxu2 %vm782_vm0, %v847_v60  ;;  %4357 = vperm.xlu2 %5142, %v4223_v50   ;;  %v5013_v49 = vld [vmem:[%s6556_s1 + $0x30] sm:$0xff]  ;;  %v487_v50 = vmax.f32 %v446_v40, 0.0  ;;  %v402_v53 = vmul.f32 %v5316_v33, %v357_v44  ;;  %v4230_v60 = vld [vmem:[%s6560_s5 + $0xf8] sm:$0xff]  ;;  %v1131_v40 = vld [vmem:[#allocation2 + $0x1] sm:$0xff] }
  0xb6   : > { %4347 = vperm.xlu0 %5140, %v4221_v58   ;;  %4352 = vperm.xlu1 %5141, %v4222_v59  }
  0xb7   : > { %v569_v3 = vpop.permute.xlu2 %568  ;;  %3187 = vmatpush.msra.mxu2 %v5013_v49 }
  0xb8   : > { %v659_v4 = vpop.permute.xlu0 %658  ;;  %v747_v5 = vmul.f32 %v569_v3, %v460_v61  ;;  %v554_v6 = vpop.permute.xlu1 %553  ;;  %v4232_v61 = vld [vmem:[%s6560_s5 + $0x108] sm:$0xff]  ;;  %v829_v3 = vld [vmem:[#allocation2 + $0x20] sm:$0xff] }
  0xb9   : > { %v765_v8 = vmul.f32 %v659_v4, %v478_v63  ;;  %v744_v9 = vmul.f32 %v554_v6, %v457_v0  ;;  %v447_v63 = vadd.f32 %v5328_v37, %v402_v53  ;;  %v459_v6 = vmax.f32 %v418_v62, 0.0  ;;  %v851_v23 = vld [vmem:[#allocation2 + $0xd0] sm:$0xff] }
  0xba   : > { %789 = vst.msk [vmem:[#allocation2 + $0x30] sm:$0xff] %vm782_vm0, %v747_v5  ;;  %v827_v15 = vld [vmem:[#allocation2 + $0x10] sm:$0xff]  ;;  %v4231_v5 = vld [vmem:[%s6560_s5 + $0x100] sm:$0xff] }
  0xbb   : > { %807 = vst.msk [vmem:[#allocation2 + $0xc0] sm:$0xff] %vm782_vm0, %v765_v8  ;;  %4794 = vmatmul.msk.f32.gmra.mxu0 %vm782_vm0, %v827_v15  ;;  %v856_v19 = vld [vmem:[#allocation2 + $0xf8] sm:$0xff]  ;;  %v488_v7 = vmax.f32 %v447_v63, 0.0  ;;  %v403_v8 = vmul.f32 %v5316_v33, %v358_v1 }
  0xbc   : > { %786 = vst.msk [vmem:[#allocation2 + $0x18] sm:$0xff] %vm782_vm0, %v744_v9  ;;  %4807 = vmatmul.msk.f32.gmra.mxu1 %vm782_vm0, %v840_v18  ;;  %4823 = vmatmul.msk.f32.gmra.mxu3 %vm782_vm0, %v856_v19  ;;  %v375_v9 = vmul.f32 %v5316_v33, %v330_v2  ;;  %v359_v18 = vld [vmem:[%s5307_s10 + $0x120] sm:$0xff]  ;;  %v360_v19 = vld [vmem:[%s5307_s10 + $0x128] sm:$0xff] }
  0xbd   : > { %4815 = vmatmul.msk.f32.gmra.mxu2 %vm782_vm0, %v848_v21  ;;  %4372 = vperm.xlu2 %5142, %v4226_v11   ;;  %v448_v15 = vadd.f32 %v5328_v37, %v403_v8  ;;  %v4233_v21 = vld [vmem:[%s6560_s5 + $0x110] sm:$0xff]  ;;  %v404_v26 = vmul.f32 %v5316_v33, %v359_v18  ;;  %v405_v27 = vmul.f32 %v5316_v33, %v360_v19 }
  0xbe   : > { %4362 = vperm.xlu0 %5140, %v4224_v10   ;;  %4367 = vperm.xlu1 %5141, %v4225_v20   ;;  %v5050_v10 = vld [vmem:[%s6556_s1 + $0x38] sm:$0xff]  ;;  %v420_v16 = vadd.f32 %v5328_v37, %v375_v9 }
  0xbf   : > { %v579_v29 = vpop.permute.xlu2 %578  ;;  %3566 = vmatpush.msra.mxu3 %v5050_v10  ;;  %v450_v34 = vadd.f32 %v5328_v37, %v405_v27 }
  0xc0   : > { %v619_v30 = vpop.permute.xlu0 %618  ;;  %v749_v31 = vmul.f32 %v579_v29, %v462_v22  ;;  %v664_v32 = vpop.permute.xlu1 %663  ;;  %v4234_v22 = vld [vmem:[%s6560_s5 + $0x118] sm:$0xff] }
  0xc1   : > { %v757_v35 = vmul.f32 %v619_v30, %v470_v24  ;;  %v766_v36 = vmul.f32 %v664_v32, %v479_v25  ;;  %v489_v24 = vmax.f32 %v448_v15, 0.0  ;;  %v461_v25 = vmax.f32 %v420_v16, 0.0  ;;  %v831_v53 = vld [vmem:[#allocation2 + $0x30] sm:$0xff] }
  0xc2   : > { %791 = vst.msk [vmem:[#allocation2 + $0x40] sm:$0xff] %vm782_vm0, %v749_v31  ;;  %v849_v42 = vld [vmem:[#allocation2 + $0xc0] sm:$0xff]  ;;  %v449_v32 = vadd.f32 %v5328_v37, %v404_v26  ;;  %v491_v43 = vmax.f32 %v450_v34, 0.0 }
  0xc3   : > { %799 = vst.msk [vmem:[#allocation2 + $0x80] sm:$0xff] %vm782_vm0, %v757_v35  ;;  %v828_v45 = vld [vmem:[#allocation2 + $0x18] sm:$0xff] }
  0xc4   : > { %808 = vst.msk [vmem:[#allocation2 + $0xc8] sm:$0xff] %vm782_vm0, %v766_v36  ;;  %4795 = vmatmul.msk.f32.gmra.mxu0 %vm782_vm0, %v828_v45  ;;  %4824 = vmatmul.msk.f32.gmra.mxu3 %vm782_vm0, %v857_v46  ;;  %v362_v36 = vld [vmem:[%s5307_s10 + $0x138] sm:$0xff]  ;;  %v5087_v46 = vld [vmem:[%s6556_s1 + $0x40] sm:$0xff] }
  0xc5   : > { %4816 = vmatmul.msk.f32.gmra.mxu2 %vm782_vm0, %v849_v42  ;;  %4387 = vperm.xlu2 %5142, %v4229_v39   ;;  %v490_v42 = vmax.f32 %v449_v32, 0.0  ;;  %v407_v44 = vmul.f32 %v5316_v33, %v362_v36  ;;  %v1133_v62 = vld [vmem:[#allocation2 + $0x11] sm:$0xff]  ;;  %v1134_v1 = vld [vmem:[#allocation2 + $0x19] sm:$0xff] }
  0xc6   : > { %4377 = vperm.xlu0 %5140, %v4227_v38   ;;  %4382 = vperm.xlu1 %5141, %v4228_v47   ;;  %v363_v38 = vld [vmem:[%s5307_s10 + $0x140] sm:$0x3f]  ;;  %v1512_v63 = vld [vmem:[#allocation2 + $0x12] sm:$0xff] }
  0xc7   : > { %v729_v54 = vpop.permute.xlu2 %728  ;;  %v408_v45 = vmul.f32 %v5316_v33, %v363_v38  ;;  %3945 = vmatpush.msra.mxu0 %v5087_v46  ;;  %v1132_v33 = vld [vmem:[#allocation2 + $0x9] sm:$0xff]  ;;  %v1513_v2 = vld [vmem:[#allocation2 + $0x1a] sm:$0xff]  ;;  %v1141_v36 = vld [vmem:[#allocation2 + $0x51] sm:$0xff] }
  0xc8   : > { %v704_v55 = vpop.permute.xlu0 %703  ;;  %v779_v56 = vmul.f32 %v729_v54, %v492_v48  ;;  %v624_v57 = vpop.permute.xlu1 %623  ;;  %v1520_v38 = vld [vmem:[#allocation2 + $0x52] sm:$0xff] }
  0xc9   : > { %v774_v58 = vmul.f32 %v704_v55, %v487_v50  ;;  %v758_v59 = vmul.f32 %v624_v57, %v471_v51  ;;  %v452_v51 = vadd.f32 %v5328_v37, %v407_v44  ;;  %v453_v52 = vadd.f32 %v5328_v37, %v408_v45  ;;  %v1511_v55 = vld [vmem:[#allocation2 + $0xa] sm:$0xff] }
  0xca   : > { %821 = vst.msk [vmem:[#allocation2 + $0x130] sm:$0xff] %vm782_vm0, %v779_v56  ;;  %v841_v0 = vld [vmem:[#allocation2 + $0x80] sm:$0xff] }
  0xcb   : > { %816 = vst.msk [vmem:[#allocation2 + $0x108] sm:$0xff] %vm782_vm0, %v774_v58  ;;  %4808 = vmatmul.msk.f32.gmra.mxu1 %vm782_vm0, %v841_v0  ;;  %v850_v4 = vld [vmem:[#allocation2 + $0xc8] sm:$0xff]  ;;  %v493_v56 = vmax.f32 %v452_v51, 0.0  ;;  %v494_v57 = vmax.f32 %v453_v52, 0.0  ;;  %v833_v0 = vld [vmem:[#allocation2 + $0x40] sm:$0xff] }
  0xcc   : > { %800 = vst.msk [vmem:[#allocation2 + $0x88] sm:$0xff] %vm782_vm0, %v758_v59  ;;  %4796 = vmatmul.msk.f32.gmra.mxu0 %vm782_vm0, %v829_v3 }
  0xcd   : > { %4817 = vmatmul.msk.f32.gmra.mxu2 %vm782_vm0, %v850_v4  ;;  %4402 = vperm.xlu2 %5142, %v4232_v61   ;;  %v2268_v4 = vld [vmem:[#allocation2 + $0x13] sm:$0xff] }
  0xce   : > { %4392 = vperm.xlu0 %5140, %v4230_v60   ;;  %4397 = vperm.xlu1 %5141, %v4231_v5  }
  0xd0   : > { %v564_v11 = vpop.permute.xlu0 %563  ;;  %v709_v12 = vpop.permute.xlu1 %708 }
  0xd1   : > { %v746_v13 = vmul.f32 %v564_v11, %v459_v6  ;;  %v775_v14 = vmul.f32 %v709_v12, %v488_v7  ;;  %v2269_v7 = vld [vmem:[#allocation2 + $0x1b] sm:$0xff] }
  0xd2   : > { %v858_v17 = vld [vmem:[#allocation2 + $0x108] sm:$0xff] }
  0xd3   : > { %788 = vst.msk [vmem:[#allocation2 + $0x28] sm:$0xff] %vm782_vm0, %v746_v13  ;;  %v842_v20 = vld [vmem:[#allocation2 + $0x88] sm:$0xff]  ;;  %4825 = vmatmul.msk.f32.gmra.mxu3 %vm782_vm0, %v858_v17 }
  0xd4   : > { %817 = vst.msk [vmem:[#allocation2 + $0x110] sm:$0xff] %vm782_vm0, %v775_v14  ;;  %4809 = vmatmul.msk.f32.gmra.mxu1 %vm782_vm0, %v842_v20 }
  0xd5   : > { %4818 = vmatmul.msk.f32.gmra.mxu2 %vm782_vm0, %v851_v23 }
  0xd6   : > { %4407 = vperm.xlu0 %5140, %v4233_v21   ;;  %4412 = vperm.xlu1 %5141, %v4234_v22   ;;  %v1139_v21 = vld [vmem:[#allocation2 + $0x41] sm:$0xff] }
  0xd7   : > { %v1518_v22 = vld [vmem:[#allocation2 + $0x42] sm:$0xff] }
  0xd8   : > { %v714_v28 = vpop.permute.xlu0 %713  ;;  %v574_v29 = vpop.permute.xlu1 %573 }
  0xd9   : > { %v776_v30 = vmul.f32 %v714_v28, %v489_v24  ;;  %v748_v31 = vmul.f32 %v574_v29, %v461_v25  ;;  %v1140_v28 = vld [vmem:[#allocation2 + $0x49] sm:$0xff] }
  0xda   : > { %v830_v35 = vld [vmem:[#allocation2 + $0x28] sm:$0xff] }
  0xdb   : > { %818 = vst.msk [vmem:[#allocation2 + $0x118] sm:$0xff] %vm782_vm0, %v776_v30  ;;  %4797 = vmatmul.msk.f32.gmra.mxu0 %vm782_vm0, %v830_v35  ;;  %v859_v39 = vld [vmem:[#allocation2 + $0x110] sm:$0xff]  ;;  %v1135_v5 = vld [vmem:[#allocation2 + $0x21] sm:$0xff] }
  0xdc   : > { %790 = vst.msk [vmem:[#allocation2 + $0x38] sm:$0xff] %vm782_vm0, %v748_v31  ;;  %4826 = vmatmul.msk.f32.gmra.mxu3 %vm782_vm0, %v859_v39  ;;  %4829 = vmatmul.msk.f32.vlgmr.msrb.gmra.mxu1 %vm782_vm0, %v1131_v40  ;;  %v1514_v6 = vld [vmem:[#allocation2 + $0x22] sm:$0xff]  ;;  %v1515_v9 = vld [vmem:[#allocation2 + $0x2a] sm:$0xff] }
  0xdd   : > { %4866 = vmatmul.msk.f32.vlgmr.msrb.gmra.mxu2 %vm782_vm0, %v1510_v41  ;;  %v1136_v8 = vld [vmem:[#allocation2 + $0x29] sm:$0xff] }
  0xde   : > { %v2270_v11 = vld [vmem:[#allocation2 + $0x23] sm:$0xff]  ;;  %v2271_v15 = vld [vmem:[#allocation2 + $0x2b] sm:$0xff] }
  0xdf   : > { %v1519_v29 = vld [vmem:[#allocation2 + $0x4a] sm:$0xff] }
  0xe0   : > { %v719_v47 = vpop.permute.xlu0 %718  ;;  %v724_v48 = vpop.permute.xlu1 %723  ;;  %v2274_v35 = vld [vmem:[#allocation2 + $0x43] sm:$0xff]  ;;  %v2275_v41 = vld [vmem:[#allocation2 + $0x4b] sm:$0xff] }
  0xe1   : > { %v777_v49 = vmul.f32 %v719_v47, %v490_v42  ;;  %v778_v50 = vmul.f32 %v724_v48, %v491_v43  ;;  %v1142_v42 = vld [vmem:[#allocation2 + $0x59] sm:$0xff] }
  0xe2   : > { %v860_v54 = vld [vmem:[#allocation2 + $0x118] sm:$0xff] }
  0xe3   : > { %819 = vst.msk [vmem:[#allocation2 + $0x120] sm:$0xff] %vm782_vm0, %v777_v49  ;;  %4798 = vmatmul.msk.f32.gmra.mxu0 %vm782_vm0, %v831_v53  ;;  %v832_v61 = vld [vmem:[#allocation2 + $0x38] sm:$0xff]  ;;  %v1143_v49 = vld [vmem:[#allocation2 + $0x61] sm:$0xff] }
  0xe4   : > { %820 = vst.msk [vmem:[#allocation2 + $0x128] sm:$0xff] %vm782_vm0, %v778_v50  ;;  %4827 = vmatmul.msk.f32.gmra.mxu3 %vm782_vm0, %v860_v54  ;;  %4830 = vmatmul.msk.f32.gmra.mxu1 %vm782_vm0, %v1132_v33  ;;  %v1137_v12 = vld [vmem:[#allocation2 + $0x31] sm:$0xff]  ;;  %v1138_v16 = vld [vmem:[#allocation2 + $0x39] sm:$0xff]  ;;  %v1522_v50 = vld [vmem:[#allocation2 + $0x62] sm:$0xff] }
  0xe5   : > { %4867 = vmatmul.msk.f32.gmra.mxu2 %vm782_vm0, %v1511_v55  ;;  %v1516_v13 = vld [vmem:[#allocation2 + $0x32] sm:$0xff]  ;;  %v1517_v17 = vld [vmem:[#allocation2 + $0x3a] sm:$0xff]  ;;  %v1144_v33 = vld [vmem:[#allocation2 + $0x69] sm:$0xff] }
  0xe6   : > { %v2272_v20 = vld [vmem:[#allocation2 + $0x33] sm:$0xff]  ;;  %v2273_v27 = vld [vmem:[#allocation2 + $0x3b] sm:$0xff]  ;;  %v1523_v55 = vld [vmem:[#allocation2 + $0x6a] sm:$0xff] }
  0xe7   : > { %v1521_v43 = vld [vmem:[#allocation2 + $0x5a] sm:$0xff] }
  0xe8   : > { %v734_v58 = vpop.permute.xlu0 %733  ;;  %v739_v37 = vpop.permute.xlu1 %738  ;;  %v2276_v48 = vld [vmem:[#allocation2 + $0x53] sm:$0xff]  ;;  %v2277_v54 = vld [vmem:[#allocation2 + $0x5b] sm:$0xff] }
  0xe9   : > { %v780_v59 = vmul.f32 %v734_v58, %v493_v56  ;;  %v781_v60 = vmul.f32 %v739_v37, %v494_v57 }
  0xeb   : > { %822 = vst.msk [vmem:[#allocation2 + $0x138] sm:$0xff] %vm782_vm0, %v780_v59  ;;  %4799 = vmatmul.msk.f32.gmra.mxu0 %vm782_vm0, %v832_v61  ;;  %v2278_v59 = vld [vmem:[#allocation2 + $0x63] sm:$0xff]  ;;  %v1524_v61 = vld [vmem:[#allocation2 + $0x72] sm:$0xff] }
  0xec   : > { %824 = vst.msk [vmem:[#allocation2 + $0x140] sm:$0x3f] %vm823_vm1, %v781_v60  ;;  %4831 = vmatmul.msk.f32.gmra.mxu1 %vm782_vm0, %v1133_v62  ;;  %4903 = vmatmul.msk.f32.vlgmr.msrb.gmra.mxu3 %vm782_vm0, %v1512_v63  ;;  %v1145_v60 = vld [vmem:[#allocation2 + $0x71] sm:$0xff] }
  0xed   : > { %4868 = vmatmul.msk.f32.gmra.mxu2 %vm782_vm0, %v1512_v63 }
  0xf3   : > { %4800 = vmatmul.msk.f32.gmra.mxu0 %vm782_vm0, %v833_v0  ;;  %v2279_v0 = vld [vmem:[#allocation2 + $0x6b] sm:$0xff] }
  0xf4   : > { %4832 = vmatmul.msk.f32.gmra.mxu1 %vm782_vm0, %v1134_v1  ;;  %4904 = vmatmul.msk.f32.gmra.mxu3 %vm782_vm0, %v1513_v2  ;;  %v1146_v1 = vld [vmem:[#allocation2 + $0x79] sm:$0xff] }
  0xf5   : > { %4869 = vmatmul.msk.f32.gmra.mxu2 %vm782_vm0, %v1513_v2  ;;  %v1068_v3 = vpop.f32.mrf.mxu3  ;;  %v1525_v2 = vld [vmem:[#allocation2 + $0x7a] sm:$0xff] }
  0xf6   : > { %1122 = vst.msk [vmem:[#allocation3 + $0xd8] sm:$0xff] %vm782_vm0, %v1068_v3 }
  0xfb   : > { %4940 = vmatmul.msk.f32.vlgmr.msrb.gmra.mxu0 %vm782_vm0, %v2268_v4 }
  0xfc   : > { %4833 = vmatmul.msk.f32.gmra.mxu1 %vm782_vm0, %v1135_v5  ;;  %4905 = vmatmul.msk.f32.gmra.mxu3 %vm782_vm0, %v1514_v6 }
  0xfd   : > { %4870 = vmatmul.msk.f32.gmra.mxu2 %vm782_vm0, %v1514_v6 }
 0x103   : > { %4941 = vmatmul.msk.f32.gmra.mxu0 %vm782_vm0, %v2269_v7 }
 0x104   : > { %4834 = vmatmul.msk.f32.gmra.mxu1 %vm782_vm0, %v1136_v8  ;;  %4906 = vmatmul.msk.f32.gmra.mxu3 %vm782_vm0, %v1515_v9  ;;  %v2280_v8 = vld [vmem:[#allocation2 + $0x73] sm:$0xff] }
 0x105   : > { %4871 = vmatmul.msk.f32.gmra.mxu2 %vm782_vm0, %v1515_v9 }
 0x109   : > { %v1014_v10 = vpop.f32.mrf.mxu1 }
 0x10a   : > { %1104 = vst.msk [vmem:[#allocation3 + $0x48] sm:$0xff] %vm782_vm0, %v1014_v10  ;;  %v1147_v10 = vld [vmem:[#allocation2 + $0x81] sm:$0xff] }
 0x10b   : > { %4942 = vmatmul.msk.f32.gmra.mxu0 %vm782_vm0, %v2270_v11  ;;  %v1526_v11 = vld [vmem:[#allocation2 + $0x82] sm:$0xff] }
 0x10c   : > { %4835 = vmatmul.msk.f32.gmra.mxu1 %vm782_vm0, %v1137_v12  ;;  %4907 = vmatmul.msk.f32.gmra.mxu3 %vm782_vm0, %v1516_v13 }
 0x10d   : > { %4872 = vmatmul.msk.f32.gmra.mxu2 %vm782_vm0, %v1516_v13 }
 0x111   : > { %v1017_v14 = vpop.f32.mrf.mxu1 }
 0x112   : > { %1105 = vst.msk [vmem:[#allocation3 + $0x50] sm:$0xff] %vm782_vm0, %v1017_v14 }
 0x113   : > { %4943 = vmatmul.msk.f32.gmra.mxu0 %vm782_vm0, %v2271_v15 }
 0x114   : > { %4836 = vmatmul.msk.f32.gmra.mxu1 %vm782_vm0, %v1138_v16  ;;  %4908 = vmatmul.msk.f32.gmra.mxu3 %vm782_vm0, %v1517_v17 }
 0x115   : > { %4873 = vmatmul.msk.f32.gmra.mxu2 %vm782_vm0, %v1517_v17  ;;  %v2281_v17 = vld [vmem:[#allocation2 + $0x7b] sm:$0xff] }
 0x117   : > { %v1041_v18 = vpop.f32.mrf.mxu2 }
 0x118   : > { %1113 = vst.msk [vmem:[#allocation3 + $0x90] sm:$0xff] %vm782_vm0, %v1041_v18 }
 0x119   : > { %v1020_v19 = vpop.f32.mrf.mxu1 }
 0x11a   : > { %1106 = vst.msk [vmem:[#allocation3 + $0x58] sm:$0xff] %vm782_vm0, %v1020_v19  ;;  %v1148_v19 = vld [vmem:[#allocation2 + $0x89] sm:$0xff] }
 0x11b   : > { %4944 = vmatmul.msk.f32.gmra.mxu0 %vm782_vm0, %v2272_v20  ;;  %v1527_v20 = vld [vmem:[#allocation2 + $0x8a] sm:$0xff] }
 0x11c   : > { %4837 = vmatmul.msk.f32.gmra.mxu1 %vm782_vm0, %v1139_v21  ;;  %4909 = vmatmul.msk.f32.gmra.mxu3 %vm782_vm0, %v1518_v22 }
 0x11d   : > { %4874 = vmatmul.msk.f32.gmra.mxu2 %vm782_vm0, %v1518_v22 }
 0x11e   : > { %v1071_v23 = vpop.f32.mrf.mxu3 }
 0x11f   : > { %v1044_v24 = vpop.f32.mrf.mxu2  ;;  %1123 = vst.msk [vmem:[#allocation3 + $0xe0] sm:$0xff] %vm782_vm0, %v1071_v23 }
 0x120   : > { %1114 = vst.msk [vmem:[#allocation3 + $0x98] sm:$0xff] %vm782_vm0, %v1044_v24 }
 0x121   : > { %v987_v25 = vpop.f32.mrf.mxu0  ;;  %v1023_v26 = vpop.f32.mrf.mxu1 }
 0x122   : > { %1095 = vst.msk [vmem:[#allocation3] sm:$0xff] %vm782_vm0, %v987_v25 }
 0x123   : > { %1107 = vst.msk [vmem:[#allocation3 + $0x60] sm:$0xff] %vm782_vm0, %v1023_v26  ;;  %4945 = vmatmul.msk.f32.gmra.mxu0 %vm782_vm0, %v2273_v27 }
 0x124   : > { %4838 = vmatmul.msk.f32.gmra.mxu1 %vm782_vm0, %v1140_v28  ;;  %4910 = vmatmul.msk.f32.gmra.mxu3 %vm782_vm0, %v1519_v29  ;;  %v2282_v28 = vld [vmem:[#allocation2 + $0x83] sm:$0xff] }
 0x125   : > { %4875 = vmatmul.msk.f32.gmra.mxu2 %vm782_vm0, %v1519_v29 }
 0x126   : > { %v1074_v30 = vpop.f32.mrf.mxu3 }
 0x127   : > { %1124 = vst.msk [vmem:[#allocation3 + $0xe8] sm:$0xff] %vm782_vm0, %v1074_v30  ;;  %v1149_v30 = vld [vmem:[#allocation2 + $0x91] sm:$0xff] }
 0x128   : > { %v1047_v31 = vpop.f32.mrf.mxu2 }
 0x129   : > { %1115 = vst.msk [vmem:[#allocation3 + $0xa0] sm:$0xff] %vm782_vm0, %v1047_v31  ;;  %v990_v32 = vpop.f32.mrf.mxu0  ;;  %v1026_v34 = vpop.f32.mrf.mxu1  ;;  %v1402_v7 = vld [vmem:[#allocation3] sm:$0xff]  ;;  %v1528_v31 = vld [vmem:[#allocation2 + $0x92] sm:$0xff] }
 0x12a   : > { %1096 = vst.msk [vmem:[#allocation3 + $0x8] sm:$0xff] %vm782_vm0, %v990_v32 }
 0x12b   : > { %1108 = vst.msk [vmem:[#allocation3 + $0x68] sm:$0xff] %vm782_vm0, %v1026_v34  ;;  %4946 = vmatmul.msk.f32.gmra.mxu0 %vm782_vm0, %v2274_v35 }
 0x12c   : > { %4839 = vmatmul.msk.f32.gmra.mxu1 %vm782_vm0, %v1141_v36  ;;  %4911 = vmatmul.msk.f32.gmra.mxu3 %vm782_vm0, %v1520_v38 }
 0x12d   : > { %4876 = vmatmul.msk.f32.gmra.mxu2 %vm782_vm0, %v1520_v38 }
 0x130   : > { %v1050_v39 = vpop.f32.mrf.mxu2 }
 0x131   : > { %1116 = vst.msk [vmem:[#allocation3 + $0xa8] sm:$0xff] %vm782_vm0, %v1050_v39  ;;  %v1029_v40 = vpop.f32.mrf.mxu1  ;;  %v1403_v16 = vld [vmem:[#allocation3 + $0x8] sm:$0xff] }
 0x132   : > { %1109 = vst.msk [vmem:[#allocation3 + $0x70] sm:$0xff] %vm782_vm0, %v1029_v40 }
 0x133   : > { %4947 = vmatmul.msk.f32.gmra.mxu0 %vm782_vm0, %v2275_v41 }
 0x134   : > { %4840 = vmatmul.msk.f32.gmra.mxu1 %vm782_vm0, %v1142_v42  ;;  %4912 = vmatmul.msk.f32.gmra.mxu3 %vm782_vm0, %v1521_v43 }
 0x135   : > { %4877 = vmatmul.msk.f32.gmra.mxu2 %vm782_vm0, %v1521_v43  ;;  %v2283_v43 = vld [vmem:[#allocation2 + $0x8b] sm:$0xff] }
 0x136   : > { %v1077_v44 = vpop.f32.mrf.mxu3 }
 0x137   : > { %1125 = vst.msk [vmem:[#allocation3 + $0xf0] sm:$0xff] %vm782_vm0, %v1077_v44 }
 0x138   : > { %v1053_v45 = vpop.f32.mrf.mxu2  ;;  %v993_v46 = vpop.f32.mrf.mxu0 }
 0x139   : > { %1117 = vst.msk [vmem:[#allocation3 + $0xb0] sm:$0xff] %vm782_vm0, %v1053_v45  ;;  %v1032_v47 = vpop.f32.mrf.mxu1  ;;  %v1150_v45 = vld [vmem:[#allocation2 + $0x99] sm:$0xff] }
 0x13a   : > { %1097 = vst.msk [vmem:[#allocation3 + $0x10] sm:$0xff] %vm782_vm0, %v993_v46  ;;  %v1529_v46 = vld [vmem:[#allocation2 + $0x9a] sm:$0xff] }
 0x13b   : > { %1110 = vst.msk [vmem:[#allocation3 + $0x78] sm:$0xff] %vm782_vm0, %v1032_v47  ;;  %4948 = vmatmul.msk.f32.gmra.mxu0 %vm782_vm0, %v2276_v48 }
 0x13c   : > { %4841 = vmatmul.msk.f32.gmra.mxu1 %vm782_vm0, %v1143_v49  ;;  %4913 = vmatmul.msk.f32.gmra.mxu3 %vm782_vm0, %v1522_v50 }
 0x13d   : > { %4878 = vmatmul.msk.f32.gmra.mxu2 %vm782_vm0, %v1522_v50 }
 0x13f   : > { %v1080_v51 = vpop.f32.mrf.mxu3 }
 0x140   : > { %v1056_v52 = vpop.f32.mrf.mxu2  ;;  %1126 = vst.msk [vmem:[#allocation3 + $0xf8] sm:$0xff] %vm782_vm0, %v1080_v51 }
 0x141   : > { %1118 = vst.msk [vmem:[#allocation3 + $0xb8] sm:$0xff] %vm782_vm0, %v1056_v52  ;;  %v996_v53 = vpop.f32.mrf.mxu0  ;;  %v1404_v27 = vld [vmem:[#allocation3 + $0x10] sm:$0xff] }
 0x142   : > { %1098 = vst.msk [vmem:[#allocation3 + $0x18] sm:$0xff] %vm782_vm0, %v996_v53 }
 0x143   : > { %4949 = vmatmul.msk.f32.gmra.mxu0 %vm782_vm0, %v2277_v54 }
 0x144   : > { %4842 = vmatmul.msk.f32.gmra.mxu1 %vm782_vm0, %v1144_v33  ;;  %4914 = vmatmul.msk.f32.gmra.mxu3 %vm782_vm0, %v1523_v55 }
 0x145   : > { %4879 = vmatmul.msk.f32.gmra.mxu2 %vm782_vm0, %v1523_v55 }
 0x147   : > { %v1083_v56 = vpop.f32.mrf.mxu3 }
 0x148   : > { %v1059_v57 = vpop.f32.mrf.mxu2  ;;  %1127 = vst.msk [vmem:[#allocation3 + $0x100] sm:$0xff] %vm782_vm0, %v1083_v56  ;;  %v1035_v37 = vpop.f32.mrf.mxu1 }
 0x149   : > { %1119 = vst.msk [vmem:[#allocation3 + $0xc0] sm:$0xff] %vm782_vm0, %v1059_v57  ;;  %v999_v58 = vpop.f32.mrf.mxu0  ;;  %v1405_v42 = vld [vmem:[#allocation3 + $0x18] sm:$0xff]  ;;  %v2284_v57 = vld [vmem:[#allocation2 + $0x93] sm:$0xff] }
 0x14a   : > { %1099 = vst.msk [vmem:[#allocation3 + $0x20] sm:$0xff] %vm782_vm0, %v999_v58 }
 0x14b   : > { %1111 = vst.msk [vmem:[#allocation3 + $0x80] sm:$0xff] %vm782_vm0, %v1035_v37  ;;  %4950 = vmatmul.msk.f32.gmra.mxu0 %vm782_vm0, %v2278_v59  ;;  %v1151_v37 = vld [vmem:[#allocation2 + $0xa1] sm:$0xff] }
 0x14c   : > { %4843 = vmatmul.msk.f32.gmra.mxu1 %vm782_vm0, %v1145_v60  ;;  %4915 = vmatmul.msk.f32.gmra.mxu3 %vm782_vm0, %v1524_v61  ;;  %v1530_v59 = vld [vmem:[#allocation2 + $0xa2] sm:$0xff] }
 0x14d   : > { %4880 = vmatmul.msk.f32.gmra.mxu2 %vm782_vm0, %v1524_v61 }
 0x150   : > { %v1062_v62 = vpop.f32.mrf.mxu2 }
 0x151   : > { %1120 = vst.msk [vmem:[#allocation3 + $0xc8] sm:$0xff] %vm782_vm0, %v1062_v62  ;;  %v1038_v63 = vpop.f32.mrf.mxu1  ;;  %v1406_v55 = vld [vmem:[#allocation3 + $0x20] sm:$0xff] }
 0x152   : > { %1112 = vst.msk [vmem:[#allocation3 + $0x88] sm:$0xff] %vm782_vm0, %v1038_v63 }
 0x153   : > { %4951 = vmatmul.msk.f32.gmra.mxu0 %vm782_vm0, %v2279_v0 }
 0x154   : > { %4844 = vmatmul.msk.f32.gmra.mxu1 %vm782_vm0, %v1146_v1  ;;  %4916 = vmatmul.msk.f32.gmra.mxu3 %vm782_vm0, %v1525_v2 }
 0x155   : > { %4881 = vmatmul.msk.f32.gmra.mxu2 %vm782_vm0, %v1525_v2 }
 0x156   : > { %v1086_v3 = vpop.f32.mrf.mxu3 }
 0x157   : > { %1128 = vst.msk [vmem:[#allocation3 + $0x108] sm:$0xff] %vm782_vm0, %v1086_v3 }
 0x158   : > { %v1065_v4 = vpop.f32.mrf.mxu2  ;;  %v1002_v5 = vpop.f32.mrf.mxu0 }
 0x159   : > { %1121 = vst.msk [vmem:[#allocation3 + $0xd0] sm:$0xff] %vm782_vm0, %v1065_v4  ;;  %v1294_v6 = vpop.f32.mrf.mxu1 }
 0x15a   : > { %1100 = vst.msk [vmem:[#allocation3 + $0x28] sm:$0xff] %vm782_vm0, %v1002_v5  ;;  %v1438_v9 = vadd.f32 %v1402_v7, %v1294_v6  ;;  %v2285_v7 = vld [vmem:[#allocation2 + $0x9b] sm:$0xff] }
 0x15b   : > { %4952 = vmatmul.msk.f32.gmra.mxu0 %vm782_vm0, %v2280_v8 }
 0x15c   : > { %4845 = vmatmul.msk.f32.gmra.mxu1 %vm782_vm0, %v1147_v10  ;;  %4917 = vmatmul.msk.f32.gmra.mxu3 %vm782_vm0, %v1526_v11  ;;  %1474 = vst.msk [vmem:[#allocation3] sm:$0xff] %vm782_vm0, %v1438_v9  ;;  %v1152_v9 = vld [vmem:[#allocation2 + $0xa9] sm:$0xff] }
 0x15d   : > { %4882 = vmatmul.msk.f32.gmra.mxu2 %vm782_vm0, %v1526_v11  ;;  %v1531_v10 = vld [vmem:[#allocation2 + $0xaa] sm:$0xff] }
 0x15f   : > { %v1089_v12 = vpop.f32.mrf.mxu3 }
 0x160   : > { %1129 = vst.msk [vmem:[#allocation3 + $0x110] sm:$0xff] %vm782_vm0, %v1089_v12  ;;  %v1673_v13 = vpop.f32.mrf.mxu2  ;;  %v1005_v14 = vpop.f32.mrf.mxu0 }
 0x161   : > { %1101 = vst.msk [vmem:[#allocation3 + $0x30] sm:$0xff] %vm782_vm0, %v1005_v14  ;;  %v1297_v15 = vpop.f32.mrf.mxu1  ;;  %v1407_v5 = vld [vmem:[#allocation3 + $0x28] sm:$0xff] }
 0x162   : > { %v1439_v18 = vadd.f32 %v1403_v16, %v1297_v15 }
 0x163   : > { %4953 = vmatmul.msk.f32.gmra.mxu0 %vm782_vm0, %v2281_v17  ;;  %v1781_v21 = vld [vmem:[#allocation3] sm:$0xff] }
 0x164   : > { %4846 = vmatmul.msk.f32.gmra.mxu1 %vm782_vm0, %v1148_v19  ;;  %4918 = vmatmul.msk.f32.gmra.mxu3 %vm782_vm0, %v1527_v20  ;;  %v1817_v22 = vadd.f32 %v1781_v21, %v1673_v13  ;;  %1475 = vst.msk [vmem:[#allocation3 + $0x8] sm:$0xff] %vm782_vm0, %v1439_v18 }
 0x165   : > { %4883 = vmatmul.msk.f32.gmra.mxu2 %vm782_vm0, %v1527_v20 }
 0x166   : > { %1853 = vst.msk [vmem:[#allocation3] sm:$0xff] %vm782_vm0, %v1817_v22  ;;  %v2286_v22 = vld [vmem:[#allocation2 + $0xa3] sm:$0xff] }
 0x167   : > { %v1092_v23 = vpop.f32.mrf.mxu3 }
 0x168   : > { %1130 = vst.msk [vmem:[#allocation3 + $0x118] sm:$0xff] %vm782_vm0, %v1092_v23  ;;  %v1676_v24 = vpop.f32.mrf.mxu2  ;;  %v1008_v25 = vpop.f32.mrf.mxu0  ;;  %v1408_v20 = vld [vmem:[#allocation3 + $0x30] sm:$0xff] }
 0x169   : > { %1102 = vst.msk [vmem:[#allocation3 + $0x38] sm:$0xff] %vm782_vm0, %v1008_v25  ;;  %v1300_v26 = vpop.f32.mrf.mxu1  ;;  %v1532_v25 = vld [vmem:[#allocation2 + $0xb2] sm:$0xff] }
 0x16a   : > { %v1440_v29 = vadd.f32 %v1404_v27, %v1300_v26 }
 0x16b   : > { %4954 = vmatmul.msk.f32.gmra.mxu0 %vm782_vm0, %v2282_v28  ;;  %v1782_v32 = vld [vmem:[#allocation3 + $0x8] sm:$0xff] }
 0x16c   : > { %4847 = vmatmul.msk.f32.gmra.mxu1 %vm782_vm0, %v1149_v30  ;;  %4919 = vmatmul.msk.f32.gmra.mxu3 %vm782_vm0, %v1528_v31  ;;  %v1818_v34 = vadd.f32 %v1782_v32, %v1676_v24  ;;  %1476 = vst.msk [vmem:[#allocation3 + $0x10] sm:$0xff] %vm782_vm0, %v1440_v29  ;;  %v1153_v24 = vld [vmem:[#allocation2 + $0xb1] sm:$0xff] }
 0x16d   : > { %4884 = vmatmul.msk.f32.gmra.mxu2 %vm782_vm0, %v1528_v31  ;;  %v2160_v36 = vld [vmem:[#allocation3] sm:$0xff] }
 0x16e   : > { %1854 = vst.msk [vmem:[#allocation3 + $0x8] sm:$0xff] %vm782_vm0, %v1818_v34 }
 0x16f   : > { %v2052_v35 = vpop.f32.mrf.mxu3 }
 0x170   : > { %v1679_v38 = vpop.f32.mrf.mxu2  ;;  %v2196_v39 = vadd.f32 %v2160_v36, %v2052_v35  ;;  %v1011_v40 = vpop.f32.mrf.mxu0  ;;  %v1409_v36 = vld [vmem:[#allocation3 + $0x38] sm:$0xff] }
 0x171   : > { %1103 = vst.msk [vmem:[#allocation3 + $0x40] sm:$0xff] %vm782_vm0, %v1011_v40  ;;  %v1303_v41 = vpop.f32.mrf.mxu1 }
 0x172   : > { %2232 = vst.msk [vmem:[#allocation3] sm:$0xff] %vm782_vm0, %v2196_v39  ;;  %v1441_v44 = vadd.f32 %v1405_v42, %v1303_v41  ;;  %v2287_v39 = vld [vmem:[#allocation2 + $0xab] sm:$0xff]  ;;  %v1154_v41 = vld [vmem:[#allocation2 + $0xb9] sm:$0xff] }
 0x173   : > { %4955 = vmatmul.msk.f32.gmra.mxu0 %vm782_vm0, %v2283_v43  ;;  %v1783_v47 = vld [vmem:[#allocation3 + $0x10] sm:$0xff] }
 0x174   : > { %4848 = vmatmul.msk.f32.gmra.mxu1 %vm782_vm0, %v1150_v45  ;;  %4920 = vmatmul.msk.f32.gmra.mxu3 %vm782_vm0, %v1529_v46  ;;  %v1819_v48 = vadd.f32 %v1783_v47, %v1679_v38  ;;  %1477 = vst.msk [vmem:[#allocation3 + $0x18] sm:$0xff] %vm782_vm0, %v1441_v44  ;;  %v1533_v42 = vld [vmem:[#allocation2 + $0xba] sm:$0xff] }
 0x175   : > { %4885 = vmatmul.msk.f32.gmra.mxu2 %vm782_vm0, %v1529_v46  ;;  %v2161_v50 = vld [vmem:[#allocation3 + $0x8] sm:$0xff] }
 0x176   : > { %1855 = vst.msk [vmem:[#allocation3 + $0x10] sm:$0xff] %vm782_vm0, %v1819_v48 }
 0x177   : > { %v2055_v49 = vpop.f32.mrf.mxu3 }
 0x178   : > { %v1682_v51 = vpop.f32.mrf.mxu2  ;;  %v2197_v52 = vadd.f32 %v2161_v50, %v2055_v49  ;;  %v2431_v53 = vpop.f32.mrf.mxu0 }
 0x179   : > { %v2539_v54 = vld [vmem:[#allocation3] sm:$0xff]  ;;  %v1306_v33 = vpop.f32.mrf.mxu1 }
 0x17a   : > { %2233 = vst.msk [vmem:[#allocation3 + $0x8] sm:$0xff] %vm782_vm0, %v2197_v52  ;;  %v2575_v56 = vadd.f32 %v2539_v54, %v2431_v53  ;;  %v1442_v58 = vadd.f32 %v1406_v55, %v1306_v33  ;;  %v1410_v52 = vld [vmem:[#allocation3 + $0x40] sm:$0xff]  ;;  %v2288_v54 = vld [vmem:[#allocation2 + $0xb3] sm:$0xff] }
 0x17b   : > { %4956 = vmatmul.msk.f32.gmra.mxu0 %vm782_vm0, %v2284_v57  ;;  %v1784_v60 = vld [vmem:[#allocation3 + $0x18] sm:$0xff] }
 0x17c   : > { %2611 = vst.msk [vmem:[#allocation3] sm:$0xff] %vm782_vm0, %v2575_v56  ;;  %4849 = vmatmul.msk.f32.gmra.mxu1 %vm782_vm0, %v1151_v37  ;;  %4921 = vmatmul.msk.f32.gmra.mxu3 %vm782_vm0, %v1530_v59  ;;  %v1820_v61 = vadd.f32 %v1784_v60, %v1682_v51  ;;  %v1155_v55 = vld [vmem:[#allocation2 + $0xc1] sm:$0xff] }
 0x17d   : > { %1478 = vst.msk [vmem:[#allocation3 + $0x20] sm:$0xff] %vm782_vm0, %v1442_v58  ;;  %4886 = vmatmul.msk.f32.gmra.mxu2 %vm782_vm0, %v1530_v59  ;;  %v2162_v63 = vld [vmem:[#allocation3 + $0x10] sm:$0xff]  ;;  %v1534_v56 = vld [vmem:[#allocation2 + $0xc2] sm:$0xff] }
 0x17e   : > { %1856 = vst.msk [vmem:[#allocation3 + $0x18] sm:$0xff] %vm782_vm0, %v1820_v61 }
 0x17f   : > { %v2058_v62 = vpop.f32.mrf.mxu3 }
 0x180   : > { %v1685_v0 = vpop.f32.mrf.mxu2  ;;  %v2198_v1 = vadd.f32 %v2162_v63, %v2058_v62  ;;  %v2434_v2 = vpop.f32.mrf.mxu0 }
 0x181   : > { %v2540_v3 = vld [vmem:[#allocation3 + $0x8] sm:$0xff]  ;;  %v1309_v4 = vpop.f32.mrf.mxu1 }
 0x182   : > { %2234 = vst.msk [vmem:[#allocation3 + $0x10] sm:$0xff] %vm782_vm0, %v2198_v1  ;;  %v2576_v6 = vadd.f32 %v2540_v3, %v2434_v2  ;;  %v1443_v8 = vadd.f32 %v1407_v5, %v1309_v4  ;;  %v1411_v1 = vld [vmem:[#allocation3 + $0x48] sm:$0xff]  ;;  %v2289_v3 = vld [vmem:[#allocation2 + $0xbb] sm:$0xff] }
 0x183   : > { %4957 = vmatmul.msk.f32.gmra.mxu0 %vm782_vm0, %v2285_v7  ;;  %v1156_v5 = vld [vmem:[#allocation2 + $0xc9] sm:$0xff] }
 0x184   : > { %v1785_v11 = vld [vmem:[#allocation3 + $0x20] sm:$0xff]  ;;  %2612 = vst.msk [vmem:[#allocation3 + $0x8] sm:$0xff] %vm782_vm0, %v2576_v6  ;;  %4850 = vmatmul.msk.f32.gmra.mxu1 %vm782_vm0, %v1152_v9  ;;  %4922 = vmatmul.msk.f32.gmra.mxu3 %vm782_vm0, %v1531_v10 }
 0x185   : > { %v1821_v12 = vadd.f32 %v1785_v11, %v1685_v0  ;;  %1479 = vst.msk [vmem:[#allocation3 + $0x28] sm:$0xff] %vm782_vm0, %v1443_v8  ;;  %4887 = vmatmul.msk.f32.gmra.mxu2 %vm782_vm0, %v1531_v10  ;;  %v2163_v14 = vld [vmem:[#allocation3 + $0x18] sm:$0xff]  ;;  %v1535_v6 = vld [vmem:[#allocation2 + $0xca] sm:$0xff] }
 0x187   : > { %1857 = vst.msk [vmem:[#allocation3 + $0x20] sm:$0xff] %vm782_vm0, %v1821_v12  ;;  %v2061_v13 = vpop.f32.mrf.mxu3 }
 0x188   : > { %v1688_v15 = vpop.f32.mrf.mxu2  ;;  %v2199_v16 = vadd.f32 %v2163_v14, %v2061_v13  ;;  %v2437_v17 = vpop.f32.mrf.mxu0 }
 0x189   : > { %v2541_v18 = vld [vmem:[#allocation3 + $0x10] sm:$0xff]  ;;  %v1312_v19 = vpop.f32.mrf.mxu1 }
 0x18a   : > { %2235 = vst.msk [vmem:[#allocation3 + $0x18] sm:$0xff] %vm782_vm0, %v2199_v16  ;;  %v2577_v21 = vadd.f32 %v2541_v18, %v2437_v17  ;;  %v1444_v23 = vadd.f32 %v1408_v20, %v1312_v19  ;;  %v1412_v16 = vld [vmem:[#allocation3 + $0x50] sm:$0xff]  ;;  %v2290_v18 = vld [vmem:[#allocation2 + $0xc3] sm:$0xff] }
 0x18b   : > { %4958 = vmatmul.msk.f32.gmra.mxu0 %vm782_vm0, %v2286_v22  ;;  %v1157_v20 = vld [vmem:[#allocation2 + $0xd1] sm:$0xff] }
 0x18c   : > { %v1786_v26 = vld [vmem:[#allocation3 + $0x28] sm:$0xff]  ;;  %2613 = vst.msk [vmem:[#allocation3 + $0x10] sm:$0xff] %vm782_vm0, %v2577_v21  ;;  %4851 = vmatmul.msk.f32.gmra.mxu1 %vm782_vm0, %v1153_v24  ;;  %4923 = vmatmul.msk.f32.gmra.mxu3 %vm782_vm0, %v1532_v25 }
 0x18d   : > { %v1822_v27 = vadd.f32 %v1786_v26, %v1688_v15  ;;  %1480 = vst.msk [vmem:[#allocation3 + $0x30] sm:$0xff] %vm782_vm0, %v1444_v23  ;;  %4888 = vmatmul.msk.f32.gmra.mxu2 %vm782_vm0, %v1532_v25  ;;  %v1536_v21 = vld [vmem:[#allocation2 + $0xd2] sm:$0xff] }
 0x18e   : > { %v2164_v29 = vld [vmem:[#allocation3 + $0x20] sm:$0xff] }
 0x18f   : > { %1858 = vst.msk [vmem:[#allocation3 + $0x28] sm:$0xff] %vm782_vm0, %v1822_v27  ;;  %v2064_v28 = vpop.f32.mrf.mxu3 }
 0x190   : > { %v1691_v30 = vpop.f32.mrf.mxu2  ;;  %v2200_v31 = vadd.f32 %v2164_v29, %v2064_v28  ;;  %v2440_v32 = vpop.f32.mrf.mxu0 }
 0x191   : > { %v2542_v34 = vld [vmem:[#allocation3 + $0x18] sm:$0xff]  ;;  %v1315_v35 = vpop.f32.mrf.mxu1 }
 0x192   : > { %2236 = vst.msk [vmem:[#allocation3 + $0x20] sm:$0xff] %vm782_vm0, %v2200_v31  ;;  %v2578_v38 = vadd.f32 %v2542_v34, %v2440_v32  ;;  %v1445_v40 = vadd.f32 %v1409_v36, %v1315_v35  ;;  %v1413_v31 = vld [vmem:[#allocation3 + $0x58] sm:$0xff]  ;;  %v2291_v34 = vld [vmem:[#allocation2 + $0xcb] sm:$0xff] }
 0x193   : > { %4959 = vmatmul.msk.f32.gmra.mxu0 %vm782_vm0, %v2287_v39  ;;  %v1158_v36 = vld [vmem:[#allocation2 + $0xd9] sm:$0xff] }
 0x194   : > { %v1787_v43 = vld [vmem:[#allocation3 + $0x30] sm:$0xff]  ;;  %2614 = vst.msk [vmem:[#allocation3 + $0x18] sm:$0xff] %vm782_vm0, %v2578_v38  ;;  %4852 = vmatmul.msk.f32.gmra.mxu1 %vm782_vm0, %v1154_v41  ;;  %4924 = vmatmul.msk.f32.gmra.mxu3 %vm782_vm0, %v1533_v42 }
 0x195   : > { %v1823_v44 = vadd.f32 %v1787_v43, %v1691_v30  ;;  %1481 = vst.msk [vmem:[#allocation3 + $0x38] sm:$0xff] %vm782_vm0, %v1445_v40  ;;  %4889 = vmatmul.msk.f32.gmra.mxu2 %vm782_vm0, %v1533_v42  ;;  %v1537_v38 = vld [vmem:[#allocation2 + $0xda] sm:$0xff] }
 0x196   : > { %v2165_v46 = vld [vmem:[#allocation3 + $0x28] sm:$0xff] }
 0x197   : > { %1859 = vst.msk [vmem:[#allocation3 + $0x30] sm:$0xff] %vm782_vm0, %v1823_v44  ;;  %v2067_v45 = vpop.f32.mrf.mxu3 }
 0x198   : > { %v1694_v47 = vpop.f32.mrf.mxu2  ;;  %v2201_v48 = vadd.f32 %v2165_v46, %v2067_v45  ;;  %v2443_v49 = vpop.f32.mrf.mxu0 }
 0x199   : > { %v2543_v50 = vld [vmem:[#allocation3 + $0x20] sm:$0xff]  ;;  %v1318_v51 = vpop.f32.mrf.mxu1 }
 0x19a   : > { %2237 = vst.msk [vmem:[#allocation3 + $0x28] sm:$0xff] %vm782_vm0, %v2201_v48  ;;  %v2579_v53 = vadd.f32 %v2543_v50, %v2443_v49  ;;  %v1446_v33 = vadd.f32 %v1410_v52, %v1318_v51  ;;  %v1414_v48 = vld [vmem:[#allocation3 + $0x60] sm:$0xff]  ;;  %v2292_v50 = vld [vmem:[#allocation2 + $0xd3] sm:$0xff] }
 0x19b   : > { %4960 = vmatmul.msk.f32.gmra.mxu0 %vm782_vm0, %v2288_v54  ;;  %v1159_v52 = vld [vmem:[#allocation2 + $0xe1] sm:$0xff] }
 0x19c   : > { %v1788_v57 = vld [vmem:[#allocation3 + $0x38] sm:$0xff]  ;;  %2615 = vst.msk [vmem:[#allocation3 + $0x20] sm:$0xff] %vm782_vm0, %v2579_v53  ;;  %4853 = vmatmul.msk.f32.gmra.mxu1 %vm782_vm0, %v1155_v55  ;;  %4925 = vmatmul.msk.f32.gmra.mxu3 %vm782_vm0, %v1534_v56 }
 0x19d   : > { %v1824_v58 = vadd.f32 %v1788_v57, %v1694_v47  ;;  %1482 = vst.msk [vmem:[#allocation3 + $0x40] sm:$0xff] %vm782_vm0, %v1446_v33  ;;  %4890 = vmatmul.msk.f32.gmra.mxu2 %vm782_vm0, %v1534_v56  ;;  %v1538_v53 = vld [vmem:[#allocation2 + $0xe2] sm:$0xff] }
 0x19e   : > { %v2166_v59 = vld [vmem:[#allocation3 + $0x30] sm:$0xff] }
 0x19f   : > { %1860 = vst.msk [vmem:[#allocation3 + $0x38] sm:$0xff] %vm782_vm0, %v1824_v58  ;;  %v2070_v37 = vpop.f32.mrf.mxu3 }
 0x1a0   : > { %v1697_v60 = vpop.f32.mrf.mxu2  ;;  %v2202_v61 = vadd.f32 %v2166_v59, %v2070_v37  ;;  %v2446_v62 = vpop.f32.mrf.mxu0 }
 0x1a1   : > { %v2544_v63 = vld [vmem:[#allocation3 + $0x28] sm:$0xff]  ;;  %v1321_v0 = vpop.f32.mrf.mxu1 }
 0x1a2   : > { %2238 = vst.msk [vmem:[#allocation3 + $0x30] sm:$0xff] %vm782_vm0, %v2202_v61  ;;  %v2580_v2 = vadd.f32 %v2544_v63, %v2446_v62  ;;  %v1447_v4 = vadd.f32 %v1411_v1, %v1321_v0  ;;  %v1415_v61 = vld [vmem:[#allocation3 + $0x68] sm:$0xff]  ;;  %v2293_v63 = vld [vmem:[#allocation2 + $0xdb] sm:$0xff] }
 0x1a3   : > { %4961 = vmatmul.msk.f32.gmra.mxu0 %vm782_vm0, %v2289_v3  ;;  %v1160_v1 = vld [vmem:[#allocation2 + $0xe9] sm:$0xff] }
 0x1a4   : > { %v1789_v7 = vld [vmem:[#allocation3 + $0x40] sm:$0xff]  ;;  %2616 = vst.msk [vmem:[#allocation3 + $0x28] sm:$0xff] %vm782_vm0, %v2580_v2  ;;  %4854 = vmatmul.msk.f32.gmra.mxu1 %vm782_vm0, %v1156_v5  ;;  %4926 = vmatmul.msk.f32.gmra.mxu3 %vm782_vm0, %v1535_v6 }
 0x1a5   : > { %v1825_v8 = vadd.f32 %v1789_v7, %v1697_v60  ;;  %1483 = vst.msk [vmem:[#allocation3 + $0x48] sm:$0xff] %vm782_vm0, %v1447_v4  ;;  %4891 = vmatmul.msk.f32.gmra.mxu2 %vm782_vm0, %v1535_v6  ;;  %v1539_v2 = vld [vmem:[#allocation2 + $0xea] sm:$0xff] }
 0x1a6   : > { %v2167_v10 = vld [vmem:[#allocation3 + $0x38] sm:$0xff] }
 0x1a7   : > { %1861 = vst.msk [vmem:[#allocation3 + $0x40] sm:$0xff] %vm782_vm0, %v1825_v8  ;;  %v2073_v9 = vpop.f32.mrf.mxu3 }
 0x1a8   : > { %v1700_v11 = vpop.f32.mrf.mxu2  ;;  %v2203_v12 = vadd.f32 %v2167_v10, %v2073_v9  ;;  %v2449_v13 = vpop.f32.mrf.mxu0 }
 0x1a9   : > { %v2545_v14 = vld [vmem:[#allocation3 + $0x30] sm:$0xff]  ;;  %v1324_v15 = vpop.f32.mrf.mxu1 }
 0x1aa   : > { %2239 = vst.msk [vmem:[#allocation3 + $0x38] sm:$0xff] %vm782_vm0, %v2203_v12  ;;  %v2581_v17 = vadd.f32 %v2545_v14, %v2449_v13  ;;  %v1448_v19 = vadd.f32 %v1412_v16, %v1324_v15  ;;  %v1416_v12 = vld [vmem:[#allocation3 + $0x70] sm:$0xff]  ;;  %v2294_v14 = vld [vmem:[#allocation2 + $0xe3] sm:$0xff] }
 0x1ab   : > { %4962 = vmatmul.msk.f32.gmra.mxu0 %vm782_vm0, %v2290_v18  ;;  %v1161_v16 = vld [vmem:[#allocation2 + $0xf1] sm:$0xff] }
 0x1ac   : > { %v1790_v22 = vld [vmem:[#allocation3 + $0x48] sm:$0xff]  ;;  %2617 = vst.msk [vmem:[#allocation3 + $0x30] sm:$0xff] %vm782_vm0, %v2581_v17  ;;  %4855 = vmatmul.msk.f32.gmra.mxu1 %vm782_vm0, %v1157_v20  ;;  %4927 = vmatmul.msk.f32.gmra.mxu3 %vm782_vm0, %v1536_v21 }
 0x1ad   : > { %v1826_v23 = vadd.f32 %v1790_v22, %v1700_v11  ;;  %1484 = vst.msk [vmem:[#allocation3 + $0x50] sm:$0xff] %vm782_vm0, %v1448_v19  ;;  %4892 = vmatmul.msk.f32.gmra.mxu2 %vm782_vm0, %v1536_v21  ;;  %v1540_v17 = vld [vmem:[#allocation2 + $0xf2] sm:$0xff] }
 0x1ae   : > { %v2168_v25 = vld [vmem:[#allocation3 + $0x40] sm:$0xff] }
 0x1af   : > { %1862 = vst.msk [vmem:[#allocation3 + $0x48] sm:$0xff] %vm782_vm0, %v1826_v23  ;;  %v2076_v24 = vpop.f32.mrf.mxu3 }
 0x1b0   : > { %v1703_v26 = vpop.f32.mrf.mxu2  ;;  %v2204_v27 = vadd.f32 %v2168_v25, %v2076_v24  ;;  %v2452_v28 = vpop.f32.mrf.mxu0 }
 0x1b1   : > { %v2546_v29 = vld [vmem:[#allocation3 + $0x38] sm:$0xff]  ;;  %v1327_v30 = vpop.f32.mrf.mxu1 }
 0x1b2   : > { %2240 = vst.msk [vmem:[#allocation3 + $0x40] sm:$0xff] %vm782_vm0, %v2204_v27  ;;  %v2582_v32 = vadd.f32 %v2546_v29, %v2452_v28  ;;  %v1449_v35 = vadd.f32 %v1413_v31, %v1327_v30  ;;  %v1417_v27 = vld [vmem:[#allocation3 + $0x78] sm:$0xff]  ;;  %v2295_v29 = vld [vmem:[#allocation2 + $0xeb] sm:$0xff] }
 0x1b3   : > { %4963 = vmatmul.msk.f32.gmra.mxu0 %vm782_vm0, %v2291_v34  ;;  %v1162_v31 = vld [vmem:[#allocation2 + $0xf9] sm:$0xff] }
 0x1b4   : > { %v1791_v39 = vld [vmem:[#allocation3 + $0x50] sm:$0xff]  ;;  %2618 = vst.msk [vmem:[#allocation3 + $0x38] sm:$0xff] %vm782_vm0, %v2582_v32  ;;  %4856 = vmatmul.msk.f32.gmra.mxu1 %vm782_vm0, %v1158_v36  ;;  %4928 = vmatmul.msk.f32.gmra.mxu3 %vm782_vm0, %v1537_v38 }
 0x1b5   : > { %v1827_v40 = vadd.f32 %v1791_v39, %v1703_v26  ;;  %1485 = vst.msk [vmem:[#allocation3 + $0x58] sm:$0xff] %vm782_vm0, %v1449_v35  ;;  %4893 = vmatmul.msk.f32.gmra.mxu2 %vm782_vm0, %v1537_v38  ;;  %v1541_v32 = vld [vmem:[#allocation2 + $0xfa] sm:$0xff] }
 0x1b6   : > { %v2169_v42 = vld [vmem:[#allocation3 + $0x48] sm:$0xff] }
 0x1b7   : > { %1863 = vst.msk [vmem:[#allocation3 + $0x50] sm:$0xff] %vm782_vm0, %v1827_v40  ;;  %v2079_v41 = vpop.f32.mrf.mxu3 }
 0x1b8   : > { %v1706_v43 = vpop.f32.mrf.mxu2  ;;  %v2205_v44 = vadd.f32 %v2169_v42, %v2079_v41  ;;  %v2455_v45 = vpop.f32.mrf.mxu0 }
 0x1b9   : > { %v2547_v46 = vld [vmem:[#allocation3 + $0x40] sm:$0xff]  ;;  %v1330_v47 = vpop.f32.mrf.mxu1 }
 0x1ba   : > { %2241 = vst.msk [vmem:[#allocation3 + $0x48] sm:$0xff] %vm782_vm0, %v2205_v44  ;;  %v2583_v49 = vadd.f32 %v2547_v46, %v2455_v45  ;;  %v1450_v51 = vadd.f32 %v1414_v48, %v1330_v47  ;;  %v1418_v44 = vld [vmem:[#allocation3 + $0x80] sm:$0xff]  ;;  %v2296_v46 = vld [vmem:[#allocation2 + $0xf3] sm:$0xff] }
 0x1bb   : > { %4964 = vmatmul.msk.f32.gmra.mxu0 %vm782_vm0, %v2292_v50  ;;  %v1163_v48 = vld [vmem:[#allocation2 + $0x101] sm:$0xff] }
 0x1bc   : > { %v1792_v54 = vld [vmem:[#allocation3 + $0x58] sm:$0xff]  ;;  %2619 = vst.msk [vmem:[#allocation3 + $0x40] sm:$0xff] %vm782_vm0, %v2583_v49  ;;  %4857 = vmatmul.msk.f32.gmra.mxu1 %vm782_vm0, %v1159_v52  ;;  %4929 = vmatmul.msk.f32.gmra.mxu3 %vm782_vm0, %v1538_v53 }
 0x1bd   : > { %v1828_v33 = vadd.f32 %v1792_v54, %v1706_v43  ;;  %1486 = vst.msk [vmem:[#allocation3 + $0x60] sm:$0xff] %vm782_vm0, %v1450_v51  ;;  %4894 = vmatmul.msk.f32.gmra.mxu2 %vm782_vm0, %v1538_v53  ;;  %v1542_v49 = vld [vmem:[#allocation2 + $0x102] sm:$0xff] }
 0x1be   : > { %v2170_v56 = vld [vmem:[#allocation3 + $0x50] sm:$0xff] }
 0x1bf   : > { %1864 = vst.msk [vmem:[#allocation3 + $0x58] sm:$0xff] %vm782_vm0, %v1828_v33  ;;  %v2082_v55 = vpop.f32.mrf.mxu3 }
 0x1c0   : > { %v1709_v57 = vpop.f32.mrf.mxu2  ;;  %v2206_v58 = vadd.f32 %v2170_v56, %v2082_v55  ;;  %v2458_v37 = vpop.f32.mrf.mxu0 }
 0x1c1   : > { %v2548_v59 = vld [vmem:[#allocation3 + $0x48] sm:$0xff]  ;;  %v1333_v60 = vpop.f32.mrf.mxu1 }
 0x1c2   : > { %2242 = vst.msk [vmem:[#allocation3 + $0x50] sm:$0xff] %vm782_vm0, %v2206_v58  ;;  %v2584_v62 = vadd.f32 %v2548_v59, %v2458_v37  ;;  %v1451_v0 = vadd.f32 %v1415_v61, %v1333_v60  ;;  %v1419_v58 = vld [vmem:[#allocation3 + $0x88] sm:$0xff]  ;;  %v2297_v59 = vld [vmem:[#allocation2 + $0xfb] sm:$0xff] }
 0x1c3   : > { %4965 = vmatmul.msk.f32.gmra.mxu0 %vm782_vm0, %v2293_v63  ;;  %v1164_v61 = vld [vmem:[#allocation2 + $0x109] sm:$0xff] }
 0x1c4   : > { %v1793_v3 = vld [vmem:[#allocation3 + $0x60] sm:$0xff]  ;;  %2620 = vst.msk [vmem:[#allocation3 + $0x48] sm:$0xff] %vm782_vm0, %v2584_v62  ;;  %4858 = vmatmul.msk.f32.gmra.mxu1 %vm782_vm0, %v1160_v1  ;;  %4930 = vmatmul.msk.f32.gmra.mxu3 %vm782_vm0, %v1539_v2 }
 0x1c5   : > { %v1829_v4 = vadd.f32 %v1793_v3, %v1709_v57  ;;  %1487 = vst.msk [vmem:[#allocation3 + $0x68] sm:$0xff] %vm782_vm0, %v1451_v0  ;;  %4895 = vmatmul.msk.f32.gmra.mxu2 %vm782_vm0, %v1539_v2  ;;  %v1543_v62 = vld [vmem:[#allocation2 + $0x10a] sm:$0xff] }
 0x1c6   : > { %v2171_v6 = vld [vmem:[#allocation3 + $0x58] sm:$0xff] }
 0x1c7   : > { %1865 = vst.msk [vmem:[#allocation3 + $0x60] sm:$0xff] %vm782_vm0, %v1829_v4  ;;  %v2085_v5 = vpop.f32.mrf.mxu3 }
 0x1c8   : > { %v1712_v7 = vpop.f32.mrf.mxu2  ;;  %v2207_v8 = vadd.f32 %v2171_v6, %v2085_v5  ;;  %v2461_v9 = vpop.f32.mrf.mxu0 }
 0x1c9   : > { %v2549_v10 = vld [vmem:[#allocation3 + $0x50] sm:$0xff]  ;;  %v1336_v11 = vpop.f32.mrf.mxu1 }
 0x1ca   : > { %2243 = vst.msk [vmem:[#allocation3 + $0x58] sm:$0xff] %vm782_vm0, %v2207_v8  ;;  %v2585_v13 = vadd.f32 %v2549_v10, %v2461_v9  ;;  %v1452_v15 = vadd.f32 %v1416_v12, %v1336_v11  ;;  %v1420_v8 = vld [vmem:[#allocation3 + $0x90] sm:$0xff]  ;;  %v2298_v10 = vld [vmem:[#allocation2 + $0x103] sm:$0xff] }
 0x1cb   : > { %4966 = vmatmul.msk.f32.gmra.mxu0 %vm782_vm0, %v2294_v14  ;;  %v1165_v12 = vld [vmem:[#allocation2 + $0x111] sm:$0xff] }
 0x1cc   : > { %v1794_v18 = vld [vmem:[#allocation3 + $0x68] sm:$0xff]  ;;  %2621 = vst.msk [vmem:[#allocation3 + $0x50] sm:$0xff] %vm782_vm0, %v2585_v13  ;;  %4859 = vmatmul.msk.f32.gmra.mxu1 %vm782_vm0, %v1161_v16  ;;  %4931 = vmatmul.msk.f32.gmra.mxu3 %vm782_vm0, %v1540_v17 }
 0x1cd   : > { %v1830_v19 = vadd.f32 %v1794_v18, %v1712_v7  ;;  %1488 = vst.msk [vmem:[#allocation3 + $0x70] sm:$0xff] %vm782_vm0, %v1452_v15  ;;  %4896 = vmatmul.msk.f32.gmra.mxu2 %vm782_vm0, %v1540_v17  ;;  %v1544_v13 = vld [vmem:[#allocation2 + $0x112] sm:$0xff] }
 0x1ce   : > { %v2172_v21 = vld [vmem:[#allocation3 + $0x60] sm:$0xff] }
 0x1cf   : > { %1866 = vst.msk [vmem:[#allocation3 + $0x68] sm:$0xff] %vm782_vm0, %v1830_v19  ;;  %v2088_v20 = vpop.f32.mrf.mxu3 }
 0x1d0   : > { %v1715_v22 = vpop.f32.mrf.mxu2  ;;  %v2208_v23 = vadd.f32 %v2172_v21, %v2088_v20  ;;  %v2464_v24 = vpop.f32.mrf.mxu0 }
 0x1d1   : > { %v2550_v25 = vld [vmem:[#allocation3 + $0x58] sm:$0xff]  ;;  %v1339_v26 = vpop.f32.mrf.mxu1 }
 0x1d2   : > { %2244 = vst.msk [vmem:[#allocation3 + $0x60] sm:$0xff] %vm782_vm0, %v2208_v23  ;;  %v2586_v28 = vadd.f32 %v2550_v25, %v2464_v24  ;;  %v1453_v30 = vadd.f32 %v1417_v27, %v1339_v26  ;;  %v1421_v23 = vld [vmem:[#allocation3 + $0x98] sm:$0xff]  ;;  %v2299_v25 = vld [vmem:[#allocation2 + $0x10b] sm:$0xff] }
 0x1d3   : > { %4967 = vmatmul.msk.f32.gmra.mxu0 %vm782_vm0, %v2295_v29  ;;  %v1166_v27 = vld [vmem:[#allocation2 + $0x119] sm:$0xff] }
 0x1d4   : > { %v1795_v34 = vld [vmem:[#allocation3 + $0x70] sm:$0xff]  ;;  %2622 = vst.msk [vmem:[#allocation3 + $0x58] sm:$0xff] %vm782_vm0, %v2586_v28  ;;  %4860 = vmatmul.msk.f32.gmra.mxu1 %vm782_vm0, %v1162_v31  ;;  %4932 = vmatmul.msk.f32.gmra.mxu3 %vm782_vm0, %v1541_v32 }
 0x1d5   : > { %v1831_v35 = vadd.f32 %v1795_v34, %v1715_v22  ;;  %1489 = vst.msk [vmem:[#allocation3 + $0x78] sm:$0xff] %vm782_vm0, %v1453_v30  ;;  %4897 = vmatmul.msk.f32.gmra.mxu2 %vm782_vm0, %v1541_v32  ;;  %v1545_v28 = vld [vmem:[#allocation2 + $0x11a] sm:$0xff] }
 0x1d6   : > { %v2173_v38 = vld [vmem:[#allocation3 + $0x68] sm:$0xff] }
 0x1d7   : > { %1867 = vst.msk [vmem:[#allocation3 + $0x70] sm:$0xff] %vm782_vm0, %v1831_v35  ;;  %v2091_v36 = vpop.f32.mrf.mxu3 }
 0x1d8   : > { %v1718_v39 = vpop.f32.mrf.mxu2  ;;  %v2209_v40 = vadd.f32 %v2173_v38, %v2091_v36  ;;  %v2467_v41 = vpop.f32.mrf.mxu0 }
 0x1d9   : > { %v2551_v42 = vld [vmem:[#allocation3 + $0x60] sm:$0xff]  ;;  %v1342_v43 = vpop.f32.mrf.mxu1 }
 0x1da   : > { %2245 = vst.msk [vmem:[#allocation3 + $0x68] sm:$0xff] %vm782_vm0, %v2209_v40  ;;  %v2587_v45 = vadd.f32 %v2551_v42, %v2467_v41  ;;  %v1454_v47 = vadd.f32 %v1418_v44, %v1342_v43  ;;  %v1422_v40 = vld [vmem:[#allocation3 + $0xa0] sm:$0xff]  ;;  %v2300_v42 = vld [vmem:[#allocation2 + $0x113] sm:$0xff] }
 0x1db   : > { %4968 = vmatmul.msk.f32.gmra.mxu0 %vm782_vm0, %v2296_v46  ;;  %v1923_v44 = vld [vmem:[#allocation2 + $0x122] sm:$0xff] }
 0x1dc   : > { %v1796_v50 = vld [vmem:[#allocation3 + $0x78] sm:$0xff]  ;;  %2623 = vst.msk [vmem:[#allocation3 + $0x60] sm:$0xff] %vm782_vm0, %v2587_v45  ;;  %4861 = vmatmul.msk.f32.gmra.mxu1 %vm782_vm0, %v1163_v48  ;;  %4933 = vmatmul.msk.f32.gmra.mxu3 %vm782_vm0, %v1542_v49  ;;  %v2647_v45 = vld [vmem:[#allocation2 + $0x14] sm:$0xff] }
 0x1dd   : > { %v1832_v51 = vadd.f32 %v1796_v50, %v1718_v39  ;;  %1490 = vst.msk [vmem:[#allocation3 + $0x80] sm:$0xff] %vm782_vm0, %v1454_v47  ;;  %4898 = vmatmul.msk.f32.gmra.mxu2 %vm782_vm0, %v1542_v49  ;;  %v3026_v47 = vld [vmem:[#allocation2 + $0x24] sm:$0xff] }
 0x1de   : > { %v2174_v53 = vld [vmem:[#allocation3 + $0x70] sm:$0xff] }
 0x1df   : > { %1868 = vst.msk [vmem:[#allocation3 + $0x78] sm:$0xff] %vm782_vm0, %v1832_v51  ;;  %v2094_v52 = vpop.f32.mrf.mxu3 }
 0x1e0   : > { %v1721_v54 = vpop.f32.mrf.mxu2  ;;  %v2210_v33 = vadd.f32 %v2174_v53, %v2094_v52  ;;  %v2470_v55 = vpop.f32.mrf.mxu0 }
 0x1e1   : > { %v2552_v56 = vld [vmem:[#allocation3 + $0x68] sm:$0xff]  ;;  %v1345_v57 = vpop.f32.mrf.mxu1 }
 0x1e2   : > { %2246 = vst.msk [vmem:[#allocation3 + $0x70] sm:$0xff] %vm782_vm0, %v2210_v33  ;;  %v2588_v37 = vadd.f32 %v2552_v56, %v2470_v55  ;;  %v1455_v60 = vadd.f32 %v1419_v58, %v1345_v57  ;;  %v1423_v55 = vld [vmem:[#allocation3 + $0xa8] sm:$0xff]  ;;  %v2301_v57 = vld [vmem:[#allocation2 + $0x11b] sm:$0xff] }
 0x1e3   : > { %4969 = vmatmul.msk.f32.gmra.mxu0 %vm782_vm0, %v2297_v59  ;;  %v2648_v59 = vld [vmem:[#allocation2 + $0x1c] sm:$0xff] }
 0x1e4   : > { %v1797_v63 = vld [vmem:[#allocation3 + $0x80] sm:$0xff]  ;;  %2624 = vst.msk [vmem:[#allocation3 + $0x68] sm:$0xff] %vm782_vm0, %v2588_v37  ;;  %4862 = vmatmul.msk.f32.gmra.mxu1 %vm782_vm0, %v1164_v61  ;;  %4934 = vmatmul.msk.f32.gmra.mxu3 %vm782_vm0, %v1543_v62 }
 0x1e5   : > { %v1833_v0 = vadd.f32 %v1797_v63, %v1721_v54  ;;  %1491 = vst.msk [vmem:[#allocation3 + $0x88] sm:$0xff] %vm782_vm0, %v1455_v60  ;;  %4899 = vmatmul.msk.f32.gmra.mxu2 %vm782_vm0, %v1543_v62  ;;  %v1924_v37 = vld [vmem:[#allocation2 + $0x12a] sm:$0xff] }
 0x1e6   : > { %v2175_v2 = vld [vmem:[#allocation3 + $0x78] sm:$0xff]  ;;  %v3027_v61 = vld [vmem:[#allocation2 + $0x2c] sm:$0xff] }
 0x1e7   : > { %1869 = vst.msk [vmem:[#allocation3 + $0x80] sm:$0xff] %vm782_vm0, %v1833_v0  ;;  %v2097_v1 = vpop.f32.mrf.mxu3 }
 0x1e8   : > { %v1724_v3 = vpop.f32.mrf.mxu2  ;;  %v2211_v4 = vadd.f32 %v2175_v2, %v2097_v1  ;;  %v2473_v5 = vpop.f32.mrf.mxu0 }
 0x1e9   : > { %v2553_v6 = vld [vmem:[#allocation3 + $0x70] sm:$0xff]  ;;  %v1348_v7 = vpop.f32.mrf.mxu1 }
 0x1ea   : > { %2247 = vst.msk [vmem:[#allocation3 + $0x78] sm:$0xff] %vm782_vm0, %v2211_v4  ;;  %v2589_v9 = vadd.f32 %v2553_v6, %v2473_v5  ;;  %v1456_v11 = vadd.f32 %v1420_v8, %v1348_v7  ;;  %v1424_v6 = vld [vmem:[#allocation3 + $0xb0] sm:$0xff]  ;;  %v2302_v8 = vld [vmem:[#allocation2 + $0x123] sm:$0xff] }
 0x1eb   : > { %4970 = vmatmul.msk.f32.gmra.mxu0 %vm782_vm0, %v2298_v10  ;;  %v3405_v10 = vld [vmem:[#allocation2 + $0x25] sm:$0xff] }
 0x1ec   : > { %v1798_v14 = vld [vmem:[#allocation3 + $0x88] sm:$0xff]  ;;  %2625 = vst.msk [vmem:[#allocation3 + $0x70] sm:$0xff] %vm782_vm0, %v2589_v9  ;;  %4863 = vmatmul.msk.f32.gmra.mxu1 %vm782_vm0, %v1165_v12  ;;  %4935 = vmatmul.msk.f32.gmra.mxu3 %vm782_vm0, %v1544_v13 }
 0x1ed   : > { %v1834_v15 = vadd.f32 %v1798_v14, %v1724_v3  ;;  %1492 = vst.msk [vmem:[#allocation3 + $0x90] sm:$0xff] %vm782_vm0, %v1456_v11  ;;  %4900 = vmatmul.msk.f32.gmra.mxu2 %vm782_vm0, %v1544_v13  ;;  %v3028_v12 = vld [vmem:[#allocation2 + $0x34] sm:$0xff] }
 0x1ee   : > { %v2176_v17 = vld [vmem:[#allocation3 + $0x80] sm:$0xff] }
 0x1ef   : > { %1870 = vst.msk [vmem:[#allocation3 + $0x88] sm:$0xff] %vm782_vm0, %v1834_v15  ;;  %v2100_v16 = vpop.f32.mrf.mxu3 }
 0x1f0   : > { %v1727_v18 = vpop.f32.mrf.mxu2  ;;  %v2212_v19 = vadd.f32 %v2176_v17, %v2100_v16  ;;  %v2476_v20 = vpop.f32.mrf.mxu0 }
 0x1f1   : > { %v2554_v21 = vld [vmem:[#allocation3 + $0x78] sm:$0xff]  ;;  %v1351_v22 = vpop.f32.mrf.mxu1 }
 0x1f2   : > { %2248 = vst.msk [vmem:[#allocation3 + $0x80] sm:$0xff] %vm782_vm0, %v2212_v19  ;;  %v2590_v24 = vadd.f32 %v2554_v21, %v2476_v20  ;;  %v1457_v26 = vadd.f32 %v1421_v23, %v1351_v22  ;;  %v1425_v21 = vld [vmem:[#allocation3 + $0xb8] sm:$0xff]  ;;  %v2303_v23 = vld [vmem:[#allocation2 + $0x12b] sm:$0xff] }
 0x1f3   : > { %4971 = vmatmul.msk.f32.gmra.mxu0 %vm782_vm0, %v2299_v25  ;;  %v3406_v25 = vld [vmem:[#allocation2 + $0x2d] sm:$0xff] }
 0x1f4   : > { %v1799_v29 = vld [vmem:[#allocation3 + $0x90] sm:$0xff]  ;;  %2626 = vst.msk [vmem:[#allocation3 + $0x78] sm:$0xff] %vm782_vm0, %v2590_v24  ;;  %4864 = vmatmul.msk.f32.gmra.mxu1 %vm782_vm0, %v1166_v27  ;;  %4936 = vmatmul.msk.f32.gmra.mxu3 %vm782_vm0, %v1545_v28 }
 0x1f5   : > { %v1835_v30 = vadd.f32 %v1799_v29, %v1727_v18  ;;  %1493 = vst.msk [vmem:[#allocation3 + $0x98] sm:$0xff] %vm782_vm0, %v1457_v26  ;;  %4901 = vmatmul.msk.f32.gmra.mxu2 %vm782_vm0, %v1545_v28  ;;  %v3029_v27 = vld [vmem:[#allocation2 + $0x3c] sm:$0xff] }
 0x1f6   : > { %v2177_v32 = vld [vmem:[#allocation3 + $0x88] sm:$0xff] }
 0x1f7   : > { %1871 = vst.msk [vmem:[#allocation3 + $0x90] sm:$0xff] %vm782_vm0, %v1835_v30  ;;  %v2103_v31 = vpop.f32.mrf.mxu3 }
 0x1f8   : > { %v1730_v34 = vpop.f32.mrf.mxu2  ;;  %v2213_v35 = vadd.f32 %v2177_v32, %v2103_v31  ;;  %v2479_v36 = vpop.f32.mrf.mxu0 }
 0x1f9   : > { %v2555_v38 = vld [vmem:[#allocation3 + $0x80] sm:$0xff]  ;;  %v1354_v39 = vpop.f32.mrf.mxu1 }
 0x1fa   : > { %2249 = vst.msk [vmem:[#allocation3 + $0x88] sm:$0xff] %vm782_vm0, %v2213_v35  ;;  %v2591_v41 = vadd.f32 %v2555_v38, %v2479_v36  ;;  %v1458_v43 = vadd.f32 %v1422_v40, %v1354_v39  ;;  %v1426_v38 = vld [vmem:[#allocation3 + $0xc0] sm:$0xff] }
 0x1fb   : > { %4972 = vmatmul.msk.f32.gmra.mxu0 %vm782_vm0, %v2300_v42  ;;  %v3784_v40 = vld [vmem:[#allocation2 + $0x26] sm:$0xff]  ;;  %v3407_v42 = vld [vmem:[#allocation2 + $0x35] sm:$0xff] }
 0x1fc   : > { %v1800_v46 = vld [vmem:[#allocation3 + $0x98] sm:$0xff]  ;;  %2627 = vst.msk [vmem:[#allocation3 + $0x80] sm:$0xff] %vm782_vm0, %v2591_v41  ;;  %4937 = vmatmul.msk.f32.gmra.mxu3 %vm782_vm0, %v1923_v44  ;;  %4977 = vmatmul.msk.f32.vlgmr.msra.gmra.mxu1 %vm782_vm0, %v2647_v45 }
 0x1fd   : > { %v1836_v48 = vadd.f32 %v1800_v46, %v1730_v34  ;;  %1494 = vst.msk [vmem:[#allocation3 + $0xa0] sm:$0xff] %vm782_vm0, %v1458_v43  ;;  %5014 = vmatmul.msk.f32.vlgmr.msra.gmra.mxu2 %vm782_vm0, %v3026_v47  ;;  %v3030_v44 = vld [vmem:[#allocation2 + $0x44] sm:$0xff] }
 0x1fe   : > { %v2178_v50 = vld [vmem:[#allocation3 + $0x90] sm:$0xff] }
 0x1ff   : > { %1872 = vst.msk [vmem:[#allocation3 + $0x98] sm:$0xff] %vm782_vm0, %v1836_v48  ;;  %v2106_v49 = vpop.f32.mrf.mxu3 }
 0x200   : > { %v1733_v51 = vpop.f32.mrf.mxu2  ;;  %v2214_v52 = vadd.f32 %v2178_v50, %v2106_v49  ;;  %v2482_v53 = vpop.f32.mrf.mxu0 }
 0x201   : > { %v2556_v54 = vld [vmem:[#allocation3 + $0x88] sm:$0xff]  ;;  %v1357_v33 = vpop.f32.mrf.mxu1 }
 0x202   : > { %2250 = vst.msk [vmem:[#allocation3 + $0x90] sm:$0xff] %vm782_vm0, %v2214_v52  ;;  %v2592_v56 = vadd.f32 %v2556_v54, %v2482_v53  ;;  %v1459_v58 = vadd.f32 %v1423_v55, %v1357_v33  ;;  %v1427_v53 = vld [vmem:[#allocation3 + $0xc8] sm:$0xff] }
 0x203   : > { %4973 = vmatmul.msk.f32.gmra.mxu0 %vm782_vm0, %v2301_v57  ;;  %v3785_v33 = vld [vmem:[#allocation2 + $0x2e] sm:$0xff] }
 0x204   : > { %v1801_v60 = vld [vmem:[#allocation3 + $0xa0] sm:$0xff]  ;;  %2628 = vst.msk [vmem:[#allocation3 + $0x88] sm:$0xff] %vm782_vm0, %v2592_v56  ;;  %4938 = vmatmul.msk.f32.gmra.mxu3 %vm782_vm0, %v1924_v37  ;;  %4978 = vmatmul.msk.f32.gmra.mxu1 %vm782_vm0, %v2648_v59  ;;  %v3408_v56 = vld [vmem:[#allocation2 + $0x3d] sm:$0xff] }
 0x205   : > { %v1837_v62 = vadd.f32 %v1801_v60, %v1733_v51  ;;  %1495 = vst.msk [vmem:[#allocation3 + $0xa8] sm:$0xff] %vm782_vm0, %v1459_v58  ;;  %5015 = vmatmul.msk.f32.gmra.mxu2 %vm782_vm0, %v3027_v61  ;;  %v3031_v58 = vld [vmem:[#allocation2 + $0x4c] sm:$0xff] }
 0x206   : > { %v2179_v0 = vld [vmem:[#allocation3 + $0x98] sm:$0xff] }
 0x207   : > { %1873 = vst.msk [vmem:[#allocation3 + $0xa0] sm:$0xff] %vm782_vm0, %v1837_v62  ;;  %v2109_v63 = vpop.f32.mrf.mxu3 }
 0x208   : > { %v1736_v1 = vpop.f32.mrf.mxu2  ;;  %v2215_v2 = vadd.f32 %v2179_v0, %v2109_v63  ;;  %v2485_v3 = vpop.f32.mrf.mxu0 }
 0x209   : > { %v2557_v4 = vld [vmem:[#allocation3 + $0x90] sm:$0xff]  ;;  %v1360_v5 = vpop.f32.mrf.mxu1 }
 0x20a   : > { %2251 = vst.msk [vmem:[#allocation3 + $0x98] sm:$0xff] %vm782_vm0, %v2215_v2  ;;  %v2593_v7 = vadd.f32 %v2557_v4, %v2485_v3  ;;  %v1460_v9 = vadd.f32 %v1424_v6, %v1360_v5  ;;  %v1428_v2 = vld [vmem:[#allocation3 + $0xd0] sm:$0xff]  ;;  %v3409_v6 = vld [vmem:[#allocation2 + $0x45] sm:$0xff] }
 0x20b   : > { %4974 = vmatmul.msk.f32.gmra.mxu0 %vm782_vm0, %v2302_v8  ;;  %v3786_v4 = vld [vmem:[#allocation2 + $0x36] sm:$0xff] }
 0x20c   : > { %v1802_v11 = vld [vmem:[#allocation3 + $0xa8] sm:$0xff]  ;;  %2629 = vst.msk [vmem:[#allocation3 + $0x90] sm:$0xff] %vm782_vm0, %v2593_v7  ;;  %4979 = vmatmul.msk.f32.gmra.mxu1 %vm782_vm0, %v3026_v47  ;;  %5051 = vmatmul.msk.f32.vlgmr.msra.gmra.mxu3 %vm782_vm0, %v3405_v10 }
 0x20d   : > { %v1838_v13 = vadd.f32 %v1802_v11, %v1736_v1  ;;  %1496 = vst.msk [vmem:[#allocation3 + $0xb0] sm:$0xff] %vm782_vm0, %v1460_v9  ;;  %5016 = vmatmul.msk.f32.gmra.mxu2 %vm782_vm0, %v3028_v12  ;;  %v3032_v8 = vld [vmem:[#allocation2 + $0x54] sm:$0xff] }
 0x20e   : > { %v2180_v15 = vld [vmem:[#allocation3 + $0xa0] sm:$0xff] }
 0x20f   : > { %1874 = vst.msk [vmem:[#allocation3 + $0xa8] sm:$0xff] %vm782_vm0, %v1838_v13  ;;  %v2112_v14 = vpop.f32.mrf.mxu3 }
 0x210   : > { %v1739_v16 = vpop.f32.mrf.mxu2  ;;  %v2216_v17 = vadd.f32 %v2180_v15, %v2112_v14  ;;  %v2488_v18 = vpop.f32.mrf.mxu0 }
 0x211   : > { %v2558_v19 = vld [vmem:[#allocation3 + $0x98] sm:$0xff]  ;;  %v1363_v20 = vpop.f32.mrf.mxu1 }
 0x212   : > { %2252 = vst.msk [vmem:[#allocation3 + $0xa0] sm:$0xff] %vm782_vm0, %v2216_v17  ;;  %v2594_v22 = vadd.f32 %v2558_v19, %v2488_v18  ;;  %v1461_v24 = vadd.f32 %v1425_v21, %v1363_v20  ;;  %v1429_v17 = vld [vmem:[#allocation3 + $0xd8] sm:$0xff]  ;;  %v3410_v21 = vld [vmem:[#allocation2 + $0x4d] sm:$0xff] }
 0x213   : > { %4975 = vmatmul.msk.f32.gmra.mxu0 %vm782_vm0, %v2303_v23  ;;  %v3787_v19 = vld [vmem:[#allocation2 + $0x3e] sm:$0xff] }
 0x214   : > { %v1803_v26 = vld [vmem:[#allocation3 + $0xb0] sm:$0xff]  ;;  %2630 = vst.msk [vmem:[#allocation3 + $0x98] sm:$0xff] %vm782_vm0, %v2594_v22  ;;  %4980 = vmatmul.msk.f32.gmra.mxu1 %vm782_vm0, %v3027_v61  ;;  %5052 = vmatmul.msk.f32.gmra.mxu3 %vm782_vm0, %v3406_v25 }
 0x215   : > { %v1839_v28 = vadd.f32 %v1803_v26, %v1739_v16  ;;  %1497 = vst.msk [vmem:[#allocation3 + $0xb8] sm:$0xff] %vm782_vm0, %v1461_v24  ;;  %5017 = vmatmul.msk.f32.gmra.mxu2 %vm782_vm0, %v3029_v27  ;;  %v3033_v23 = vld [vmem:[#allocation2 + $0x5c] sm:$0xff] }
 0x216   : > { %v2181_v30 = vld [vmem:[#allocation3 + $0xa8] sm:$0xff] }
 0x217   : > { %1875 = vst.msk [vmem:[#allocation3 + $0xb0] sm:$0xff] %vm782_vm0, %v1839_v28  ;;  %v2115_v29 = vpop.f32.mrf.mxu3 }
 0x218   : > { %v1742_v31 = vpop.f32.mrf.mxu2  ;;  %v2217_v32 = vadd.f32 %v2181_v30, %v2115_v29  ;;  %v2491_v34 = vpop.f32.mrf.mxu0 }
 0x219   : > { %v2559_v35 = vld [vmem:[#allocation3 + $0xa0] sm:$0xff]  ;;  %v1366_v36 = vpop.f32.mrf.mxu1 }
 0x21a   : > { %2253 = vst.msk [vmem:[#allocation3 + $0xa8] sm:$0xff] %vm782_vm0, %v2217_v32  ;;  %v2595_v39 = vadd.f32 %v2559_v35, %v2491_v34  ;;  %v1462_v41 = vadd.f32 %v1426_v38, %v1366_v36  ;;  %v1430_v32 = vld [vmem:[#allocation3 + $0xe0] sm:$0xff]  ;;  %v3411_v38 = vld [vmem:[#allocation2 + $0x55] sm:$0xff] }
 0x21b   : > { %5088 = vmatmul.msk.f32.vlgmr.msra.gmra.mxu0 %vm782_vm0, %v3784_v40  ;;  %v3788_v35 = vld [vmem:[#allocation2 + $0x46] sm:$0xff] }
 0x21c   : > { %v1804_v43 = vld [vmem:[#allocation3 + $0xb8] sm:$0xff]  ;;  %2631 = vst.msk [vmem:[#allocation3 + $0xa0] sm:$0xff] %vm782_vm0, %v2595_v39  ;;  %4981 = vmatmul.msk.f32.gmra.mxu1 %vm782_vm0, %v3028_v12  ;;  %5053 = vmatmul.msk.f32.gmra.mxu3 %vm782_vm0, %v3407_v42 }
 0x21d   : > { %v1840_v45 = vadd.f32 %v1804_v43, %v1742_v31  ;;  %1498 = vst.msk [vmem:[#allocation3 + $0xc0] sm:$0xff] %vm782_vm0, %v1462_v41  ;;  %5018 = vmatmul.msk.f32.gmra.mxu2 %vm782_vm0, %v3030_v44  ;;  %v3034_v40 = vld [vmem:[#allocation2 + $0x64] sm:$0xff] }
 0x21e   : > { %v2182_v47 = vld [vmem:[#allocation3 + $0xb0] sm:$0xff] }
 0x21f   : > { %1876 = vst.msk [vmem:[#allocation3 + $0xb8] sm:$0xff] %vm782_vm0, %v1840_v45  ;;  %v2118_v46 = vpop.f32.mrf.mxu3 }
 0x220   : > { %v1745_v48 = vpop.f32.mrf.mxu2  ;;  %v2218_v49 = vadd.f32 %v2182_v47, %v2118_v46  ;;  %v2494_v50 = vpop.f32.mrf.mxu0 }
 0x221   : > { %v2560_v51 = vld [vmem:[#allocation3 + $0xa8] sm:$0xff]  ;;  %v1369_v52 = vpop.f32.mrf.mxu1 }
 0x222   : > { %2254 = vst.msk [vmem:[#allocation3 + $0xb0] sm:$0xff] %vm782_vm0, %v2218_v49  ;;  %v2596_v54 = vadd.f32 %v2560_v51, %v2494_v50  ;;  %v1463_v55 = vadd.f32 %v1427_v53, %v1369_v52  ;;  %v1431_v49 = vld [vmem:[#allocation3 + $0xe8] sm:$0xff]  ;;  %v3412_v53 = vld [vmem:[#allocation2 + $0x5d] sm:$0xff] }
 0x223   : > { %5089 = vmatmul.msk.f32.gmra.mxu0 %vm782_vm0, %v3785_v33  ;;  %v3789_v51 = vld [vmem:[#allocation2 + $0x4e] sm:$0xff] }
 0x224   : > { %v1805_v57 = vld [vmem:[#allocation3 + $0xc0] sm:$0xff]  ;;  %2632 = vst.msk [vmem:[#allocation3 + $0xa8] sm:$0xff] %vm782_vm0, %v2596_v54  ;;  %4982 = vmatmul.msk.f32.gmra.mxu1 %vm782_vm0, %v3029_v27  ;;  %5054 = vmatmul.msk.f32.gmra.mxu3 %vm782_vm0, %v3408_v56 }
 0x225   : > { %v1841_v37 = vadd.f32 %v1805_v57, %v1745_v48  ;;  %1499 = vst.msk [vmem:[#allocation3 + $0xc8] sm:$0xff] %vm782_vm0, %v1463_v55  ;;  %5019 = vmatmul.msk.f32.gmra.mxu2 %vm782_vm0, %v3031_v58  ;;  %v3035_v33 = vld [vmem:[#allocation2 + $0x6c] sm:$0xff] }
 0x226   : > { %v2183_v60 = vld [vmem:[#allocation3 + $0xb8] sm:$0xff] }
 0x227   : > { %1877 = vst.msk [vmem:[#allocation3 + $0xc0] sm:$0xff] %vm782_vm0, %v1841_v37  ;;  %v2121_v59 = vpop.f32.mrf.mxu3 }
 0x228   : > { %v1748_v61 = vpop.f32.mrf.mxu2  ;;  %v2219_v62 = vadd.f32 %v2183_v60, %v2121_v59  ;;  %v2497_v63 = vpop.f32.mrf.mxu0 }
 0x229   : > { %v2561_v0 = vld [vmem:[#allocation3 + $0xb0] sm:$0xff]  ;;  %v1372_v1 = vpop.f32.mrf.mxu1 }
 0x22a   : > { %2255 = vst.msk [vmem:[#allocation3 + $0xb8] sm:$0xff] %vm782_vm0, %v2219_v62  ;;  %v2597_v3 = vadd.f32 %v2561_v0, %v2497_v63  ;;  %v1464_v5 = vadd.f32 %v1428_v2, %v1372_v1  ;;  %v1432_v62 = vld [vmem:[#allocation3 + $0xf0] sm:$0xff]  ;;  %v3413_v2 = vld [vmem:[#allocation2 + $0x65] sm:$0xff] }
 0x22b   : > { %5090 = vmatmul.msk.f32.gmra.mxu0 %vm782_vm0, %v3786_v4  ;;  %v3790_v0 = vld [vmem:[#allocation2 + $0x56] sm:$0xff] }
 0x22c   : > { %v1806_v7 = vld [vmem:[#allocation3 + $0xc8] sm:$0xff]  ;;  %2633 = vst.msk [vmem:[#allocation3 + $0xb0] sm:$0xff] %vm782_vm0, %v2597_v3  ;;  %4983 = vmatmul.msk.f32.gmra.mxu1 %vm782_vm0, %v3030_v44  ;;  %5055 = vmatmul.msk.f32.gmra.mxu3 %vm782_vm0, %v3409_v6 }
 0x22d   : > { %v1842_v9 = vadd.f32 %v1806_v7, %v1748_v61  ;;  %1500 = vst.msk [vmem:[#allocation3 + $0xd0] sm:$0xff] %vm782_vm0, %v1464_v5  ;;  %5020 = vmatmul.msk.f32.gmra.mxu2 %vm782_vm0, %v3032_v8  ;;  %v3036_v4 = vld [vmem:[#allocation2 + $0x74] sm:$0xff] }
 0x22e   : > { %v2184_v11 = vld [vmem:[#allocation3 + $0xc0] sm:$0xff] }
 0x22f   : > { %1878 = vst.msk [vmem:[#allocation3 + $0xc8] sm:$0xff] %vm782_vm0, %v1842_v9  ;;  %v2124_v10 = vpop.f32.mrf.mxu3 }
 0x230   : > { %v1751_v12 = vpop.f32.mrf.mxu2  ;;  %v2220_v13 = vadd.f32 %v2184_v11, %v2124_v10  ;;  %v2500_v14 = vpop.f32.mrf.mxu0 }
 0x231   : > { %v2562_v15 = vld [vmem:[#allocation3 + $0xb8] sm:$0xff]  ;;  %v1375_v16 = vpop.f32.mrf.mxu1 }
 0x232   : > { %2256 = vst.msk [vmem:[#allocation3 + $0xc0] sm:$0xff] %vm782_vm0, %v2220_v13  ;;  %v2598_v18 = vadd.f32 %v2562_v15, %v2500_v14  ;;  %v1465_v20 = vadd.f32 %v1429_v17, %v1375_v16  ;;  %v1433_v13 = vld [vmem:[#allocation3 + $0xf8] sm:$0xff]  ;;  %v3414_v17 = vld [vmem:[#allocation2 + $0x6d] sm:$0xff] }
 0x233   : > { %5091 = vmatmul.msk.f32.gmra.mxu0 %vm782_vm0, %v3787_v19  ;;  %v3791_v15 = vld [vmem:[#allocation2 + $0x5e] sm:$0xff] }
 0x234   : > { %v1807_v22 = vld [vmem:[#allocation3 + $0xd0] sm:$0xff]  ;;  %2634 = vst.msk [vmem:[#allocation3 + $0xb8] sm:$0xff] %vm782_vm0, %v2598_v18  ;;  %4984 = vmatmul.msk.f32.gmra.mxu1 %vm782_vm0, %v3031_v58  ;;  %5056 = vmatmul.msk.f32.gmra.mxu3 %vm782_vm0, %v3410_v21 }
 0x235   : > { %v1843_v24 = vadd.f32 %v1807_v22, %v1751_v12  ;;  %1501 = vst.msk [vmem:[#allocation3 + $0xd8] sm:$0xff] %vm782_vm0, %v1465_v20  ;;  %5021 = vmatmul.msk.f32.gmra.mxu2 %vm782_vm0, %v3033_v23  ;;  %v3037_v19 = vld [vmem:[#allocation2 + $0x7c] sm:$0xff] }
 0x236   : > { %v2185_v26 = vld [vmem:[#allocation3 + $0xc8] sm:$0xff] }
 0x237   : > { %1879 = vst.msk [vmem:[#allocation3 + $0xd0] sm:$0xff] %vm782_vm0, %v1843_v24  ;;  %v2127_v25 = vpop.f32.mrf.mxu3 }
 0x238   : > { %v1754_v27 = vpop.f32.mrf.mxu2  ;;  %v2221_v28 = vadd.f32 %v2185_v26, %v2127_v25  ;;  %v2503_v29 = vpop.f32.mrf.mxu0 }
 0x239   : > { %v2563_v30 = vld [vmem:[#allocation3 + $0xc0] sm:$0xff]  ;;  %v1378_v31 = vpop.f32.mrf.mxu1 }
 0x23a   : > { %2257 = vst.msk [vmem:[#allocation3 + $0xc8] sm:$0xff] %vm782_vm0, %v2221_v28  ;;  %v2599_v34 = vadd.f32 %v2563_v30, %v2503_v29  ;;  %v1466_v36 = vadd.f32 %v1430_v32, %v1378_v31  ;;  %v1434_v28 = vld [vmem:[#allocation3 + $0x100] sm:$0xff]  ;;  %v3415_v32 = vld [vmem:[#allocation2 + $0x75] sm:$0xff] }
 0x23b   : > { %5092 = vmatmul.msk.f32.gmra.mxu0 %vm782_vm0, %v3788_v35  ;;  %v3792_v30 = vld [vmem:[#allocation2 + $0x66] sm:$0xff] }
 0x23c   : > { %v1808_v39 = vld [vmem:[#allocation3 + $0xd8] sm:$0xff]  ;;  %2635 = vst.msk [vmem:[#allocation3 + $0xc0] sm:$0xff] %vm782_vm0, %v2599_v34  ;;  %4985 = vmatmul.msk.f32.gmra.mxu1 %vm782_vm0, %v3032_v8  ;;  %5057 = vmatmul.msk.f32.gmra.mxu3 %vm782_vm0, %v3411_v38 }
 0x23d   : > { %v1844_v41 = vadd.f32 %v1808_v39, %v1754_v27  ;;  %1502 = vst.msk [vmem:[#allocation3 + $0xe0] sm:$0xff] %vm782_vm0, %v1466_v36  ;;  %5022 = vmatmul.msk.f32.gmra.mxu2 %vm782_vm0, %v3034_v40  ;;  %v3038_v35 = vld [vmem:[#allocation2 + $0x84] sm:$0xff] }
 0x23e   : > { %v2186_v43 = vld [vmem:[#allocation3 + $0xd0] sm:$0xff] }
 0x23f   : > { %1880 = vst.msk [vmem:[#allocation3 + $0xd8] sm:$0xff] %vm782_vm0, %v1844_v41  ;;  %v2130_v42 = vpop.f32.mrf.mxu3 }
 0x240   : > { %v1757_v44 = vpop.f32.mrf.mxu2  ;;  %v2222_v45 = vadd.f32 %v2186_v43, %v2130_v42  ;;  %v2506_v46 = vpop.f32.mrf.mxu0 }
 0x241   : > { %v2564_v47 = vld [vmem:[#allocation3 + $0xc8] sm:$0xff]  ;;  %v1381_v48 = vpop.f32.mrf.mxu1 }
 0x242   : > { %2258 = vst.msk [vmem:[#allocation3 + $0xd0] sm:$0xff] %vm782_vm0, %v2222_v45  ;;  %v2600_v50 = vadd.f32 %v2564_v47, %v2506_v46  ;;  %v1467_v52 = vadd.f32 %v1431_v49, %v1381_v48  ;;  %v1435_v45 = vld [vmem:[#allocation3 + $0x108] sm:$0xff]  ;;  %v3416_v49 = vld [vmem:[#allocation2 + $0x7d] sm:$0xff] }
 0x243   : > { %5093 = vmatmul.msk.f32.gmra.mxu0 %vm782_vm0, %v3789_v51  ;;  %v3793_v47 = vld [vmem:[#allocation2 + $0x6e] sm:$0xff] }
 0x244   : > { %v1809_v54 = vld [vmem:[#allocation3 + $0xe0] sm:$0xff]  ;;  %2636 = vst.msk [vmem:[#allocation3 + $0xc8] sm:$0xff] %vm782_vm0, %v2600_v50  ;;  %4986 = vmatmul.msk.f32.gmra.mxu1 %vm782_vm0, %v3033_v23  ;;  %5058 = vmatmul.msk.f32.gmra.mxu3 %vm782_vm0, %v3412_v53 }
 0x245   : > { %v1845_v55 = vadd.f32 %v1809_v54, %v1757_v44  ;;  %1503 = vst.msk [vmem:[#allocation3 + $0xe8] sm:$0xff] %vm782_vm0, %v1467_v52  ;;  %5023 = vmatmul.msk.f32.gmra.mxu2 %vm782_vm0, %v3035_v33  ;;  %v3039_v51 = vld [vmem:[#allocation2 + $0x8c] sm:$0xff] }
 0x246   : > { %v2187_v57 = vld [vmem:[#allocation3 + $0xd8] sm:$0xff] }
 0x247   : > { %1881 = vst.msk [vmem:[#allocation3 + $0xe0] sm:$0xff] %vm782_vm0, %v1845_v55  ;;  %v2133_v56 = vpop.f32.mrf.mxu3 }
 0x248   : > { %v1760_v58 = vpop.f32.mrf.mxu2  ;;  %v2223_v37 = vadd.f32 %v2187_v57, %v2133_v56  ;;  %v2509_v59 = vpop.f32.mrf.mxu0 }
 0x249   : > { %v2565_v60 = vld [vmem:[#allocation3 + $0xd0] sm:$0xff]  ;;  %v1384_v61 = vpop.f32.mrf.mxu1 }
 0x24a   : > { %2259 = vst.msk [vmem:[#allocation3 + $0xd8] sm:$0xff] %vm782_vm0, %v2223_v37  ;;  %v2601_v63 = vadd.f32 %v2565_v60, %v2509_v59  ;;  %v1468_v1 = vadd.f32 %v1432_v62, %v1384_v61  ;;  %v1436_v37 = vld [vmem:[#allocation3 + $0x110] sm:$0xff]  ;;  %v3417_v62 = vld [vmem:[#allocation2 + $0x85] sm:$0xff] }
 0x24b   : > { %5094 = vmatmul.msk.f32.gmra.mxu0 %vm782_vm0, %v3790_v0  ;;  %v3794_v60 = vld [vmem:[#allocation2 + $0x76] sm:$0xff] }
 0x24c   : > { %v1810_v3 = vld [vmem:[#allocation3 + $0xe8] sm:$0xff]  ;;  %2637 = vst.msk [vmem:[#allocation3 + $0xd0] sm:$0xff] %vm782_vm0, %v2601_v63  ;;  %4987 = vmatmul.msk.f32.gmra.mxu1 %vm782_vm0, %v3034_v40  ;;  %5059 = vmatmul.msk.f32.gmra.mxu3 %vm782_vm0, %v3413_v2 }
 0x24d   : > { %v1846_v5 = vadd.f32 %v1810_v3, %v1760_v58  ;;  %1504 = vst.msk [vmem:[#allocation3 + $0xf0] sm:$0xff] %vm782_vm0, %v1468_v1  ;;  %5024 = vmatmul.msk.f32.gmra.mxu2 %vm782_vm0, %v3036_v4  ;;  %v3040_v0 = vld [vmem:[#allocation2 + $0x94] sm:$0xff] }
 0x24e   : > { %v2188_v7 = vld [vmem:[#allocation3 + $0xe0] sm:$0xff] }
 0x24f   : > { %1882 = vst.msk [vmem:[#allocation3 + $0xe8] sm:$0xff] %vm782_vm0, %v1846_v5  ;;  %v2136_v6 = vpop.f32.mrf.mxu3 }
 0x250   : > { %v1763_v8 = vpop.f32.mrf.mxu2  ;;  %v2224_v9 = vadd.f32 %v2188_v7, %v2136_v6  ;;  %v2512_v10 = vpop.f32.mrf.mxu0 }
 0x251   : > { %v2566_v11 = vld [vmem:[#allocation3 + $0xd8] sm:$0xff]  ;;  %v1387_v12 = vpop.f32.mrf.mxu1 }
 0x252   : > { %2260 = vst.msk [vmem:[#allocation3 + $0xe0] sm:$0xff] %vm782_vm0, %v2224_v9  ;;  %v2602_v14 = vadd.f32 %v2566_v11, %v2512_v10  ;;  %v1469_v16 = vadd.f32 %v1433_v13, %v1387_v12  ;;  %v1437_v9 = vld [vmem:[#allocation3 + $0x118] sm:$0xff]  ;;  %v3418_v13 = vld [vmem:[#allocation2 + $0x8d] sm:$0xff] }
 0x253   : > { %5095 = vmatmul.msk.f32.gmra.mxu0 %vm782_vm0, %v3791_v15  ;;  %v3795_v11 = vld [vmem:[#allocation2 + $0x7e] sm:$0xff] }
 0x254   : > { %v1811_v18 = vld [vmem:[#allocation3 + $0xf0] sm:$0xff]  ;;  %2638 = vst.msk [vmem:[#allocation3 + $0xd8] sm:$0xff] %vm782_vm0, %v2602_v14  ;;  %4988 = vmatmul.msk.f32.gmra.mxu1 %vm782_vm0, %v3035_v33  ;;  %5060 = vmatmul.msk.f32.gmra.mxu3 %vm782_vm0, %v3414_v17 }
 0x255   : > { %v1847_v20 = vadd.f32 %v1811_v18, %v1763_v8  ;;  %1505 = vst.msk [vmem:[#allocation3 + $0xf8] sm:$0xff] %vm782_vm0, %v1469_v16  ;;  %5025 = vmatmul.msk.f32.gmra.mxu2 %vm782_vm0, %v3037_v19  ;;  %v3041_v15 = vld [vmem:[#allocation2 + $0x9c] sm:$0xff] }
 0x256   : > { %v2189_v22 = vld [vmem:[#allocation3 + $0xe8] sm:$0xff] }
 0x257   : > { %1883 = vst.msk [vmem:[#allocation3 + $0xf0] sm:$0xff] %vm782_vm0, %v1847_v20  ;;  %v2139_v21 = vpop.f32.mrf.mxu3 }
 0x258   : > { %v1766_v23 = vpop.f32.mrf.mxu2  ;;  %v2225_v24 = vadd.f32 %v2189_v22, %v2139_v21  ;;  %v2515_v25 = vpop.f32.mrf.mxu0 }
 0x259   : > { %v2567_v26 = vld [vmem:[#allocation3 + $0xe0] sm:$0xff]  ;;  %v1390_v27 = vpop.f32.mrf.mxu1 }
 0x25a   : > { %2261 = vst.msk [vmem:[#allocation3 + $0xe8] sm:$0xff] %vm782_vm0, %v2225_v24  ;;  %v2603_v29 = vadd.f32 %v2567_v26, %v2515_v25  ;;  %v1470_v31 = vadd.f32 %v1434_v28, %v1390_v27  ;;  %v2918_v25 = vld [vmem:[#allocation3] sm:$0xff]  ;;  %v3419_v28 = vld [vmem:[#allocation2 + $0x95] sm:$0xff] }
 0x25b   : > { %5096 = vmatmul.msk.f32.gmra.mxu0 %vm782_vm0, %v3792_v30  ;;  %v3796_v26 = vld [vmem:[#allocation2 + $0x86] sm:$0xff] }
 0x25c   : > { %v1812_v34 = vld [vmem:[#allocation3 + $0xf8] sm:$0xff]  ;;  %2639 = vst.msk [vmem:[#allocation3 + $0xe0] sm:$0xff] %vm782_vm0, %v2603_v29  ;;  %4989 = vmatmul.msk.f32.gmra.mxu1 %vm782_vm0, %v3036_v4  ;;  %5061 = vmatmul.msk.f32.gmra.mxu3 %vm782_vm0, %v3415_v32 }
 0x25d   : > { %v1848_v36 = vadd.f32 %v1812_v34, %v1766_v23  ;;  %1506 = vst.msk [vmem:[#allocation3 + $0x100] sm:$0xff] %vm782_vm0, %v1470_v31  ;;  %5026 = vmatmul.msk.f32.gmra.mxu2 %vm782_vm0, %v3038_v35  ;;  %v3042_v30 = vld [vmem:[#allocation2 + $0xa4] sm:$0xff] }
 0x25e   : > { %v2190_v39 = vld [vmem:[#allocation3 + $0xf0] sm:$0xff] }
 0x25f   : > { %1884 = vst.msk [vmem:[#allocation3 + $0xf8] sm:$0xff] %vm782_vm0, %v1848_v36  ;;  %v2142_v38 = vpop.f32.mrf.mxu3 }
 0x260   : > { %v1769_v40 = vpop.f32.mrf.mxu2  ;;  %v2226_v41 = vadd.f32 %v2190_v39, %v2142_v38  ;;  %v2518_v42 = vpop.f32.mrf.mxu0 }
 0x261   : > { %v2568_v43 = vld [vmem:[#allocation3 + $0xe8] sm:$0xff]  ;;  %v1393_v44 = vpop.f32.mrf.mxu1 }
 0x262   : > { %2262 = vst.msk [vmem:[#allocation3 + $0xf0] sm:$0xff] %vm782_vm0, %v2226_v41  ;;  %v2604_v46 = vadd.f32 %v2568_v43, %v2518_v42  ;;  %v1471_v48 = vadd.f32 %v1435_v45, %v1393_v44  ;;  %v2919_v42 = vld [vmem:[#allocation3 + $0x8] sm:$0xff]  ;;  %v3420_v45 = vld [vmem:[#allocation2 + $0x9d] sm:$0xff] }
 0x263   : > { %5097 = vmatmul.msk.f32.gmra.mxu0 %vm782_vm0, %v3793_v47  ;;  %v3797_v43 = vld [vmem:[#allocation2 + $0x8e] sm:$0xff] }
 0x264   : > { %v1813_v50 = vld [vmem:[#allocation3 + $0x100] sm:$0xff]  ;;  %2640 = vst.msk [vmem:[#allocation3 + $0xe8] sm:$0xff] %vm782_vm0, %v2604_v46  ;;  %4990 = vmatmul.msk.f32.gmra.mxu1 %vm782_vm0, %v3037_v19  ;;  %5062 = vmatmul.msk.f32.gmra.mxu3 %vm782_vm0, %v3416_v49 }
 0x265   : > { %v1849_v52 = vadd.f32 %v1813_v50, %v1769_v40  ;;  %1507 = vst.msk [vmem:[#allocation3 + $0x108] sm:$0xff] %vm782_vm0, %v1471_v48  ;;  %5027 = vmatmul.msk.f32.gmra.mxu2 %vm782_vm0, %v3039_v51  ;;  %v3043_v47 = vld [vmem:[#allocation2 + $0xac] sm:$0xff] }
 0x266   : > { %v2191_v54 = vld [vmem:[#allocation3 + $0xf8] sm:$0xff] }
 0x267   : > { %1885 = vst.msk [vmem:[#allocation3 + $0x100] sm:$0xff] %vm782_vm0, %v1849_v52  ;;  %v2145_v53 = vpop.f32.mrf.mxu3 }
 0x268   : > { %v1772_v33 = vpop.f32.mrf.mxu2  ;;  %v2227_v55 = vadd.f32 %v2191_v54, %v2145_v53  ;;  %v2521_v56 = vpop.f32.mrf.mxu0 }
 0x269   : > { %v2569_v57 = vld [vmem:[#allocation3 + $0xf0] sm:$0xff]  ;;  %v1396_v58 = vpop.f32.mrf.mxu1 }
 0x26a   : > { %2263 = vst.msk [vmem:[#allocation3 + $0xf8] sm:$0xff] %vm782_vm0, %v2227_v55  ;;  %v2605_v59 = vadd.f32 %v2569_v57, %v2521_v56  ;;  %v1472_v61 = vadd.f32 %v1436_v37, %v1396_v58  ;;  %v2920_v56 = vld [vmem:[#allocation3 + $0x10] sm:$0xff]  ;;  %v3421_v37 = vld [vmem:[#allocation2 + $0xa5] sm:$0xff] }
 0x26b   : > { %5098 = vmatmul.msk.f32.gmra.mxu0 %vm782_vm0, %v3794_v60  ;;  %v3798_v57 = vld [vmem:[#allocation2 + $0x96] sm:$0xff] }
 0x26c   : > { %v1814_v63 = vld [vmem:[#allocation3 + $0x108] sm:$0xff]  ;;  %2641 = vst.msk [vmem:[#allocation3 + $0xf0] sm:$0xff] %vm782_vm0, %v2605_v59  ;;  %4991 = vmatmul.msk.f32.gmra.mxu1 %vm782_vm0, %v3038_v35  ;;  %5063 = vmatmul.msk.f32.gmra.mxu3 %vm782_vm0, %v3417_v62 }
 0x26d   : > { %v1850_v1 = vadd.f32 %v1814_v63, %v1772_v33  ;;  %1508 = vst.msk [vmem:[#allocation3 + $0x110] sm:$0xff] %vm782_vm0, %v1472_v61  ;;  %5028 = vmatmul.msk.f32.gmra.mxu2 %vm782_vm0, %v3040_v0  ;;  %v3044_v60 = vld [vmem:[#allocation2 + $0xb4] sm:$0xff] }
 0x26e   : > { %v2192_v3 = vld [vmem:[#allocation3 + $0x100] sm:$0xff] }
 0x26f   : > { %1886 = vst.msk [vmem:[#allocation3 + $0x108] sm:$0xff] %vm782_vm0, %v1850_v1  ;;  %v2148_v2 = vpop.f32.mrf.mxu3 }
 0x270   : > { %v1775_v4 = vpop.f32.mrf.mxu2  ;;  %v2228_v5 = vadd.f32 %v2192_v3, %v2148_v2  ;;  %v2524_v6 = vpop.f32.mrf.mxu0 }
 0x271   : > { %v2570_v7 = vld [vmem:[#allocation3 + $0xf8] sm:$0xff]  ;;  %v1399_v8 = vpop.f32.mrf.mxu1 }
 0x272   : > { %2264 = vst.msk [vmem:[#allocation3 + $0x100] sm:$0xff] %vm782_vm0, %v2228_v5  ;;  %v2606_v10 = vadd.f32 %v2570_v7, %v2524_v6  ;;  %v1473_v12 = vadd.f32 %v1437_v9, %v1399_v8  ;;  %v2921_v6 = vld [vmem:[#allocation3 + $0x18] sm:$0xff]  ;;  %v3422_v9 = vld [vmem:[#allocation2 + $0xad] sm:$0xff] }
 0x273   : > { %5099 = vmatmul.msk.f32.gmra.mxu0 %vm782_vm0, %v3795_v11  ;;  %v3799_v7 = vld [vmem:[#allocation2 + $0x9e] sm:$0xff] }
 0x274   : > { %v1815_v14 = vld [vmem:[#allocation3 + $0x110] sm:$0xff]  ;;  %2642 = vst.msk [vmem:[#allocation3 + $0xf8] sm:$0xff] %vm782_vm0, %v2606_v10  ;;  %4992 = vmatmul.msk.f32.gmra.mxu1 %vm782_vm0, %v3039_v51  ;;  %5064 = vmatmul.msk.f32.gmra.mxu3 %vm782_vm0, %v3418_v13 }
 0x275   : > { %v1851_v16 = vadd.f32 %v1815_v14, %v1775_v4  ;;  %1509 = vst.msk [vmem:[#allocation3 + $0x118] sm:$0xff] %vm782_vm0, %v1473_v12  ;;  %5029 = vmatmul.msk.f32.gmra.mxu2 %vm782_vm0, %v3041_v15  ;;  %v3045_v11 = vld [vmem:[#allocation2 + $0xbc] sm:$0xff] }
 0x276   : > { %v2193_v18 = vld [vmem:[#allocation3 + $0x108] sm:$0xff] }
 0x277   : > { %1887 = vst.msk [vmem:[#allocation3 + $0x110] sm:$0xff] %vm782_vm0, %v1851_v16  ;;  %v2151_v17 = vpop.f32.mrf.mxu3 }
 0x278   : > { %v1778_v19 = vpop.f32.mrf.mxu2  ;;  %v2229_v20 = vadd.f32 %v2193_v18, %v2151_v17  ;;  %v2527_v21 = vpop.f32.mrf.mxu0 }
 0x279   : > { %v2571_v22 = vld [vmem:[#allocation3 + $0x100] sm:$0xff]  ;;  %v2810_v24 = vpop.f32.mrf.mxu1 }
 0x27a   : > { %2265 = vst.msk [vmem:[#allocation3 + $0x108] sm:$0xff] %vm782_vm0, %v2229_v20  ;;  %v2607_v23 = vadd.f32 %v2571_v22, %v2527_v21  ;;  %v2954_v27 = vadd.f32 %v2918_v25, %v2810_v24  ;;  %v2922_v20 = vld [vmem:[#allocation3 + $0x20] sm:$0xff]  ;;  %v3423_v24 = vld [vmem:[#allocation2 + $0xb5] sm:$0xff] }
 0x27b   : > { %5100 = vmatmul.msk.f32.gmra.mxu0 %vm782_vm0, %v3796_v26  ;;  %v3800_v22 = vld [vmem:[#allocation2 + $0xa6] sm:$0xff] }
 0x27c   : > { %v1816_v29 = vld [vmem:[#allocation3 + $0x118] sm:$0xff]  ;;  %2643 = vst.msk [vmem:[#allocation3 + $0x100] sm:$0xff] %vm782_vm0, %v2607_v23  ;;  %4993 = vmatmul.msk.f32.gmra.mxu1 %vm782_vm0, %v3040_v0  ;;  %5065 = vmatmul.msk.f32.gmra.mxu3 %vm782_vm0, %v3419_v28 }
 0x27d   : > { %v1852_v31 = vadd.f32 %v1816_v29, %v1778_v19  ;;  %2990 = vst.msk [vmem:[#allocation3] sm:$0xff] %vm782_vm0, %v2954_v27  ;;  %5030 = vmatmul.msk.f32.gmra.mxu2 %vm782_vm0, %v3042_v30  ;;  %v3046_v26 = vld [vmem:[#allocation2 + $0xc4] sm:$0xff] }
 0x27e   : > { %v2194_v34 = vld [vmem:[#allocation3 + $0x110] sm:$0xff] }
 0x27f   : > { %1888 = vst.msk [vmem:[#allocation3 + $0x118] sm:$0xff] %vm782_vm0, %v1852_v31  ;;  %v2154_v32 = vpop.f32.mrf.mxu3 }
 0x280   : > { %v2230_v35 = vadd.f32 %v2194_v34, %v2154_v32  ;;  %v3189_v36 = vpop.f32.mrf.mxu2  ;;  %v2530_v38 = vpop.f32.mrf.mxu0 }
 0x281   : > { %v2572_v39 = vld [vmem:[#allocation3 + $0x108] sm:$0xff]  ;;  %v2813_v41 = vpop.f32.mrf.mxu1 }
 0x282   : > { %2266 = vst.msk [vmem:[#allocation3 + $0x110] sm:$0xff] %vm782_vm0, %v2230_v35  ;;  %v2608_v40 = vadd.f32 %v2572_v39, %v2530_v38  ;;  %v2955_v44 = vadd.f32 %v2919_v42, %v2813_v41  ;;  %v3801_v39 = vld [vmem:[#allocation2 + $0xae] sm:$0xff] }
 0x283   : > { %5101 = vmatmul.msk.f32.gmra.mxu0 %vm782_vm0, %v3797_v43  ;;  %v3424_v43 = vld [vmem:[#allocation2 + $0xbd] sm:$0xff] }
 0x284   : > { %v3297_v46 = vld [vmem:[#allocation3] sm:$0xff]  ;;  %2644 = vst.msk [vmem:[#allocation3 + $0x108] sm:$0xff] %vm782_vm0, %v2608_v40  ;;  %4994 = vmatmul.msk.f32.gmra.mxu1 %vm782_vm0, %v3041_v15  ;;  %5066 = vmatmul.msk.f32.gmra.mxu3 %vm782_vm0, %v3420_v45  ;;  %v4238_v40 = vpop.permute.xlu2 %4237 }
 0x285   : > { %v3333_v48 = vadd.f32 %v3297_v46, %v3189_v36  ;;  %2991 = vst.msk [vmem:[#allocation3 + $0x8] sm:$0xff] %vm782_vm0, %v2955_v44  ;;  %5031 = vmatmul.msk.f32.gmra.mxu2 %vm782_vm0, %v3043_v47  ;;  %v2923_v36 = vld [vmem:[#allocation3 + $0x28] sm:$0xff] }
 0x286   : > { %v2195_v50 = vld [vmem:[#allocation3 + $0x118] sm:$0xff]  ;;  %v3047_v46 = vld [vmem:[#allocation2 + $0xcc] sm:$0xff] }
 0x287   : > { %3369 = vst.msk [vmem:[#allocation3] sm:$0xff] %vm782_vm0, %v3333_v48  ;;  %v2157_v49 = vpop.f32.mrf.mxu3 }
 0x288   : > { %v2231_v51 = vadd.f32 %v2195_v50, %v2157_v49  ;;  %v3192_v52 = vpop.f32.mrf.mxu2  ;;  %v2533_v53 = vpop.f32.mrf.mxu0 }
 0x289   : > { %v2573_v54 = vld [vmem:[#allocation3 + $0x110] sm:$0xff]  ;;  %v2816_v55 = vpop.f32.mrf.mxu1 }
 0x28a   : > { %2267 = vst.msk [vmem:[#allocation3 + $0x118] sm:$0xff] %vm782_vm0, %v2231_v51  ;;  %v2609_v33 = vadd.f32 %v2573_v54, %v2533_v53  ;;  %v2956_v58 = vadd.f32 %v2920_v56, %v2816_v55  ;;  %v3802_v56 = vld [vmem:[#allocation2 + $0xb6] sm:$0xff] }
 0x28b   : > { %5102 = vmatmul.msk.f32.gmra.mxu0 %vm782_vm0, %v3798_v57  ;;  %v4243_v57 = vpop.permute.xlu0 %4242 }
 0x28c   : > { %v3298_v59 = vld [vmem:[#allocation3 + $0x8] sm:$0xff]  ;;  %2645 = vst.msk [vmem:[#allocation3 + $0x110] sm:$0xff] %vm782_vm0, %v2609_v33  ;;  %4995 = vmatmul.msk.f32.gmra.mxu1 %vm782_vm0, %v3042_v30  ;;  %5067 = vmatmul.msk.f32.gmra.mxu3 %vm782_vm0, %v3421_v37  ;;  %v2924_v33 = vld [vmem:[#allocation3 + $0x30] sm:$0xff] }
 0x28d   : > { %v3334_v61 = vadd.f32 %v3298_v59, %v3192_v52  ;;  %2992 = vst.msk [vmem:[#allocation3 + $0x10] sm:$0xff] %vm782_vm0, %v2956_v58  ;;  %5032 = vmatmul.msk.f32.gmra.mxu2 %vm782_vm0, %v3044_v60  ;;  %v3425_v59 = vld [vmem:[#allocation2 + $0xc5] sm:$0xff] }
 0x28e   : > { %v3676_v63 = vld [vmem:[#allocation3] sm:$0xff] }
 0x28f   : > { %3370 = vst.msk [vmem:[#allocation3 + $0x8] sm:$0xff] %vm782_vm0, %v3334_v61  ;;  %v3568_v62 = vpop.f32.mrf.mxu3 }
 0x290   : > { %v3195_v0 = vpop.f32.mrf.mxu2  ;;  %v3712_v1 = vadd.f32 %v3676_v63, %v3568_v62  ;;  %v2536_v2 = vpop.f32.mrf.mxu0  ;;  %v6120_v63 = vld [vmem:[#allocation2 + $0xd4] sm:$0xff] }
 0x291   : > { %v2574_v3 = vld [vmem:[#allocation3 + $0x118] sm:$0xff]  ;;  %v2819_v5 = vpop.f32.mrf.mxu1 }
 0x292   : > { %3748 = vst.msk [vmem:[#allocation3] sm:$0xff] %vm782_vm0, %v3712_v1  ;;  %v2610_v4 = vadd.f32 %v2574_v3, %v2536_v2  ;;  %v2957_v8 = vadd.f32 %v2921_v6, %v2819_v5 }
 0x293   : > { %5103 = vmatmul.msk.f32.gmra.mxu0 %vm782_vm0, %v3799_v7 }
 0x294   : > { %v3299_v10 = vld [vmem:[#allocation3 + $0x10] sm:$0xff]  ;;  %2646 = vst.msk [vmem:[#allocation3 + $0x118] sm:$0xff] %vm782_vm0, %v2610_v4  ;;  %4996 = vmatmul.msk.f32.gmra.mxu1 %vm782_vm0, %v3043_v47  ;;  %5068 = vmatmul.msk.f32.gmra.mxu3 %vm782_vm0, %v3422_v9 }
 0x295   : > { %v3335_v12 = vadd.f32 %v3299_v10, %v3195_v0  ;;  %2993 = vst.msk [vmem:[#allocation3 + $0x18] sm:$0xff] %vm782_vm0, %v2957_v8  ;;  %5033 = vmatmul.msk.f32.gmra.mxu2 %vm782_vm0, %v3045_v11 }
 0x296   : > { %v3677_v14 = vld [vmem:[#allocation3 + $0x8] sm:$0xff] }
 0x297   : > { %3371 = vst.msk [vmem:[#allocation3 + $0x10] sm:$0xff] %vm782_vm0, %v3335_v12  ;;  %v3571_v13 = vpop.f32.mrf.mxu3 }
 0x298   : > { %v3198_v15 = vpop.f32.mrf.mxu2  ;;  %v3713_v16 = vadd.f32 %v3677_v14, %v3571_v13  ;;  %v3947_v17 = vpop.f32.mrf.mxu0 }
 0x299   : > { %v4055_v18 = vld [vmem:[#allocation3] sm:$0xff]  ;;  %v2822_v19 = vpop.f32.mrf.mxu1 }
 0x29a   : > { %3749 = vst.msk [vmem:[#allocation3 + $0x8] sm:$0xff] %vm782_vm0, %v3713_v16  ;;  %v4091_v21 = vadd.f32 %v4055_v18, %v3947_v17  ;;  %v2958_v23 = vadd.f32 %v2922_v20, %v2822_v19  ;;  %v3803_v17 = vld [vmem:[#allocation2 + $0xbe] sm:$0xff]  ;;  %v4248_v18 = vpop.permute.xlu1 %4247 }
 0x29b   : > { %5104 = vmatmul.msk.f32.gmra.mxu0 %vm782_vm0, %v3800_v22 }
 0x29c   : > { %v3300_v25 = vld [vmem:[#allocation3 + $0x18] sm:$0xff]  ;;  %4127 = vst.msk [vmem:[#allocation3] sm:$0xff] %vm782_vm0, %v4091_v21  ;;  %4997 = vmatmul.msk.f32.gmra.mxu1 %vm782_vm0, %v3044_v60  ;;  %5069 = vmatmul.msk.f32.gmra.mxu3 %vm782_vm0, %v3423_v24  ;;  %v3426_v21 = vld [vmem:[#allocation2 + $0xcd] sm:$0xff] }
 0x29d   : > { %v3336_v27 = vadd.f32 %v3300_v25, %v3198_v15  ;;  %2994 = vst.msk [vmem:[#allocation3 + $0x20] sm:$0xff] %vm782_vm0, %v2958_v23  ;;  %5034 = vmatmul.msk.f32.gmra.mxu2 %vm782_vm0, %v3046_v26  ;;  %v2925_v15 = vld [vmem:[#allocation3 + $0x38] sm:$0xff] }
 0x29e   : > { %v3678_v29 = vld [vmem:[#allocation3 + $0x10] sm:$0xff] }
 0x29f   : > { %3372 = vst.msk [vmem:[#allocation3 + $0x18] sm:$0xff] %vm782_vm0, %v3336_v27  ;;  %v3574_v28 = vpop.f32.mrf.mxu3  ;;  %v6137_v24 = vld [vmem:[#allocation2 + $0xdc] sm:$0xff] }
 0x2a0   : > { %v3201_v30 = vpop.f32.mrf.mxu2  ;;  %v3714_v31 = vadd.f32 %v3678_v29, %v3574_v28  ;;  %v3950_v32 = vpop.f32.mrf.mxu0 }
 0x2a1   : > { %v4056_v34 = vld [vmem:[#allocation3 + $0x8] sm:$0xff]  ;;  %v2825_v35 = vpop.f32.mrf.mxu1 }
 0x2a2   : > { %3750 = vst.msk [vmem:[#allocation3 + $0x10] sm:$0xff] %vm782_vm0, %v3714_v31  ;;  %v4092_v38 = vadd.f32 %v4056_v34, %v3950_v32  ;;  %v2959_v42 = vadd.f32 %v2923_v36, %v2825_v35 }
 0x2a3   : > { %v4163_v41 = vld [vmem:[#allocation3] sm:$0xff]  ;;  %5105 = vmatmul.msk.f32.gmra.mxu0 %vm782_vm0, %v3801_v39 }
 0x2a4   : > { %v4415_v44 = vmul.f32 %v4238_v40, %v4163_v41  ;;  %v3301_v45 = vld [vmem:[#allocation3 + $0x20] sm:$0xff]  ;;  %4128 = vst.msk [vmem:[#allocation3 + $0x8] sm:$0xff] %vm782_vm0, %v4092_v38  ;;  %4998 = vmatmul.msk.f32.gmra.mxu1 %vm782_vm0, %v3045_v11  ;;  %5070 = vmatmul.msk.f32.gmra.mxu3 %vm782_vm0, %v3424_v43  ;;  %v4253_v43 = vpop.permute.xlu2 %4252 }
 0x2a5   : > { %v3337_v47 = vadd.f32 %v3301_v45, %v3201_v30  ;;  %2995 = vst.msk [vmem:[#allocation3 + $0x28] sm:$0xff] %vm782_vm0, %v2959_v42  ;;  %5035 = vmatmul.msk.f32.gmra.mxu2 %vm782_vm0, %v3047_v46  ;;  %v2926_v40 = vld [vmem:[#allocation3 + $0x40] sm:$0xff] }
 0x2a6   : > { %4644 = vst.msk [vmem:[%s6105_s15] sm:$0xff] %vm782_vm0, %v4415_v44  ;;  %v3679_v49 = vld [vmem:[#allocation3 + $0x18] sm:$0xff]  ;;  %v4530_v60 = vmul.f32 %v4415_v44, %v4415_v44  ;;  %v4451_v1 = vsel %vm782_vm0, %v4415_v44, 0.0 }
 0x2a7   : > { %3373 = vst.msk [vmem:[#allocation3 + $0x20] sm:$0xff] %vm782_vm0, %v3337_v47  ;;  %v3577_v48 = vpop.f32.mrf.mxu3  ;;  %v3804_v42 = vld [vmem:[#allocation2 + $0xc6] sm:$0xff] }
 0x2a8   : > { %v3204_v50 = vpop.f32.mrf.mxu2  ;;  %v3715_v51 = vadd.f32 %v3679_v49, %v3577_v48  ;;  %v3953_v52 = vpop.f32.mrf.mxu0  ;;  %v4566_v7 = vsel %vm782_vm0, %v4530_v60, 0.0  ;;  %v6153_v49 = vld [vmem:[#allocation2 + $0xe4] sm:$0xff] }
 0x2a9   : > { %v4057_v53 = vld [vmem:[#allocation3 + $0x10] sm:$0xff]  ;;  %v2828_v54 = vpop.f32.mrf.mxu1 }
 0x2aa   : > { %3751 = vst.msk [vmem:[#allocation3 + $0x18] sm:$0xff] %vm782_vm0, %v3715_v51  ;;  %v4093_v55 = vadd.f32 %v4057_v53, %v3953_v52  ;;  %v2960_v37 = vadd.f32 %v2924_v33, %v2828_v54 }
 0x2ab   : > { %v4164_v58 = vld [vmem:[#allocation3 + $0x8] sm:$0xff]  ;;  %5106 = vmatmul.msk.f32.gmra.mxu0 %vm782_vm0, %v3802_v56 }
 0x2ac   : > { %v4416_v61 = vmul.f32 %v4243_v57, %v4164_v58  ;;  %v3302_v62 = vld [vmem:[#allocation3 + $0x28] sm:$0xff]  ;;  %4129 = vst.msk [vmem:[#allocation3 + $0x10] sm:$0xff] %vm782_vm0, %v4093_v55  ;;  %4999 = vmatmul.msk.f32.gmra.mxu1 %vm782_vm0, %v3046_v26  ;;  %5071 = vmatmul.msk.f32.gmra.mxu3 %vm782_vm0, %v3425_v59 }
 0x2ad   : > { %v3338_v0 = vadd.f32 %v3302_v62, %v3204_v50  ;;  %2996 = vst.msk [vmem:[#allocation3 + $0x30] sm:$0xff] %vm782_vm0, %v2960_v37  ;;  %5036 = vmatmul.msk.f32.gmra.mxu2 %vm782_vm0, %v6120_v63 }
 0x2ae   : > { %v4452_v2 = vsel %vm782_vm0, %v4416_v61, 0.0  ;;  %v4531_v3 = vmul.f32 %v4416_v61, %v4416_v61  ;;  %4645 = vst.msk [vmem:[%s6105_s15 + $0x8] sm:$0xff] %vm782_vm0, %v4416_v61  ;;  %v3680_v6 = vld [vmem:[#allocation3 + $0x20] sm:$0xff]  ;;  %v2927_v61 = vld [vmem:[#allocation3 + $0x48] sm:$0xff] }
 0x2af   : > { %v4453_v4 = vadd.f32 %v4452_v2, %v4451_v1  ;;  %3374 = vst.msk [vmem:[#allocation3 + $0x28] sm:$0xff] %vm782_vm0, %v3338_v0  ;;  %v3580_v5 = vpop.f32.mrf.mxu3  ;;  %v4258_v0 = vpop.permute.xlu0 %4257 }
 0x2b0   : > { %v4567_v8 = vsel %vm782_vm0, %v4531_v3, 0.0  ;;  %v3207_v9 = vpop.f32.mrf.mxu2  ;;  %v3716_v10 = vadd.f32 %v3680_v6, %v3580_v5  ;;  %v3956_v11 = vpop.f32.mrf.mxu0  ;;  %v3428_v3 = vld [vmem:[#allocation2 + $0xdd] sm:$0xff]  ;;  %v6169_v6 = vld [vmem:[#allocation2 + $0xec] sm:$0xff] }
 0x2b1   : > { %v4568_v12 = vadd.f32 %v4567_v8, %v4566_v7  ;;  %v4058_v13 = vld [vmem:[#allocation3 + $0x18] sm:$0xff]  ;;  %v2831_v14 = vpop.f32.mrf.mxu1 }
 0x2b2   : > { %3752 = vst.msk [vmem:[#allocation3 + $0x20] sm:$0xff] %vm782_vm0, %v3716_v10  ;;  %v4094_v16 = vadd.f32 %v4058_v13, %v3956_v11  ;;  %v2961_v20 = vadd.f32 %v2925_v15, %v2831_v14 }
 0x2b3   : > { %v4165_v19 = vld [vmem:[#allocation3 + $0x10] sm:$0xff]  ;;  %5107 = vmatmul.msk.f32.gmra.mxu0 %vm782_vm0, %v3803_v17 }
 0x2b4   : > { %v4417_v22 = vmul.f32 %v4248_v18, %v4165_v19  ;;  %v3303_v23 = vld [vmem:[#allocation3 + $0x30] sm:$0xff]  ;;  %4130 = vst.msk [vmem:[#allocation3 + $0x18] sm:$0xff] %vm782_vm0, %v4094_v16  ;;  %5000 = vmatmul.msk.f32.gmra.mxu1 %vm782_vm0, %v3047_v46  ;;  %5072 = vmatmul.msk.f32.gmra.mxu3 %vm782_vm0, %v3426_v21 }
 0x2b5   : > { %v3339_v25 = vadd.f32 %v3303_v23, %v3207_v9  ;;  %2997 = vst.msk [vmem:[#allocation3 + $0x38] sm:$0xff] %vm782_vm0, %v2961_v20  ;;  %5037 = vmatmul.msk.f32.gmra.mxu2 %vm782_vm0, %v6137_v24  ;;  %v3427_v46 = vld [vmem:[#allocation2 + $0xd5] sm:$0xff]  ;;  %v4263_v23 = vpop.permute.xlu1 %4262 }
 0x2b6   : > { %v4454_v26 = vsel %vm782_vm0, %v4417_v22, 0.0  ;;  %v4532_v27 = vmul.f32 %v4417_v22, %v4417_v22  ;;  %4646 = vst.msk [vmem:[%s6105_s15 + $0x10] sm:$0xff] %vm782_vm0, %v4417_v22  ;;  %v3681_v30 = vld [vmem:[#allocation3 + $0x28] sm:$0xff]  ;;  %v2928_v20 = vld [vmem:[#allocation3 + $0x50] sm:$0xff] }
 0x2b7   : > { %v4455_v28 = vadd.f32 %v4454_v26, %v4453_v4  ;;  %3375 = vst.msk [vmem:[#allocation3 + $0x30] sm:$0xff] %vm782_vm0, %v3339_v25  ;;  %v3583_v29 = vpop.f32.mrf.mxu3  ;;  %v3806_v22 = vld [vmem:[#allocation2 + $0xd6] sm:$0xff]  ;;  %v3429_v26 = vld [vmem:[#allocation2 + $0xe5] sm:$0xff] }
 0x2b8   : > { %v4569_v31 = vsel %vm782_vm0, %v4532_v27, 0.0  ;;  %v3210_v32 = vpop.f32.mrf.mxu2  ;;  %v3717_v34 = vadd.f32 %v3681_v30, %v3583_v29  ;;  %v3959_v35 = vpop.f32.mrf.mxu0  ;;  %v6185_v29 = vld [vmem:[#allocation2 + $0xf4] sm:$0xff] }
 0x2b9   : > { %v4570_v36 = vadd.f32 %v4569_v31, %v4568_v12  ;;  %v4059_v38 = vld [vmem:[#allocation3 + $0x20] sm:$0xff]  ;;  %v2834_v39 = vpop.f32.mrf.mxu1 }
 0x2ba   : > { %3753 = vst.msk [vmem:[#allocation3 + $0x28] sm:$0xff] %vm782_vm0, %v3717_v34  ;;  %v4095_v41 = vadd.f32 %v4059_v38, %v3959_v35  ;;  %v2962_v45 = vadd.f32 %v2926_v40, %v2834_v39 }
 0x2bb   : > { %v4166_v44 = vld [vmem:[#allocation3 + $0x18] sm:$0xff]  ;;  %5108 = vmatmul.msk.f32.gmra.mxu0 %vm782_vm0, %v3804_v42 }
 0x2bc   : > { %v4418_v47 = vmul.f32 %v4253_v43, %v4166_v44  ;;  %v3304_v48 = vld [vmem:[#allocation3 + $0x38] sm:$0xff]  ;;  %4131 = vst.msk [vmem:[#allocation3 + $0x20] sm:$0xff] %vm782_vm0, %v4095_v41  ;;  %5001 = vmatmul.msk.f32.gmra.mxu1 %vm782_vm0, %v6120_v63  ;;  %5073 = vmatmul.msk.f32.gmra.mxu3 %vm782_vm0, %v3427_v46  ;;  %v3805_v63 = vld [vmem:[#allocation2 + $0xce] sm:$0xff] }
 0x2bd   : > { %v3340_v50 = vadd.f32 %v3304_v48, %v3210_v32  ;;  %2998 = vst.msk [vmem:[#allocation3 + $0x40] sm:$0xff] %vm782_vm0, %v2962_v45  ;;  %5038 = vmatmul.msk.f32.gmra.mxu2 %vm782_vm0, %v6153_v49  ;;  %v2929_v45 = vld [vmem:[#allocation3 + $0x58] sm:$0xff]  ;;  %v4268_v48 = vpop.permute.xlu2 %4267 }
 0x2be   : > { %v4456_v51 = vsel %vm782_vm0, %v4418_v47, 0.0  ;;  %v4533_v52 = vmul.f32 %v4418_v47, %v4418_v47  ;;  %4647 = vst.msk [vmem:[%s6105_s15 + $0x18] sm:$0xff] %vm782_vm0, %v4418_v47  ;;  %v3682_v33 = vld [vmem:[#allocation3 + $0x30] sm:$0xff] }
 0x2bf   : > { %v4457_v53 = vadd.f32 %v4456_v51, %v4455_v28  ;;  %3376 = vst.msk [vmem:[#allocation3 + $0x38] sm:$0xff] %vm782_vm0, %v3340_v50  ;;  %v3586_v54 = vpop.f32.mrf.mxu3  ;;  %v3807_v47 = vld [vmem:[#allocation2 + $0xde] sm:$0xff]  ;;  %v3430_v51 = vld [vmem:[#allocation2 + $0xed] sm:$0xff] }
 0x2c0   : > { %v4571_v55 = vsel %vm782_vm0, %v4533_v52, 0.0  ;;  %v3213_v56 = vpop.f32.mrf.mxu2  ;;  %v3718_v57 = vadd.f32 %v3682_v33, %v3586_v54  ;;  %v3962_v58 = vpop.f32.mrf.mxu0  ;;  %v6201_v54 = vld [vmem:[#allocation2 + $0xfc] sm:$0xff] }
 0x2c1   : > { %v4572_v37 = vadd.f32 %v4571_v55, %v4570_v36  ;;  %v4060_v59 = vld [vmem:[#allocation3 + $0x28] sm:$0xff]  ;;  %v2837_v60 = vpop.f32.mrf.mxu1 }
 0x2c2   : > { %3754 = vst.msk [vmem:[#allocation3 + $0x30] sm:$0xff] %vm782_vm0, %v3718_v57  ;;  %v4096_v62 = vadd.f32 %v4060_v59, %v3962_v58  ;;  %v2963_v2 = vadd.f32 %v2927_v61, %v2837_v60 }
 0x2c3   : > { %v4167_v1 = vld [vmem:[#allocation3 + $0x20] sm:$0xff]  ;;  %5109 = vmatmul.msk.f32.gmra.mxu0 %vm782_vm0, %v3805_v63 }
 0x2c4   : > { %v4419_v4 = vmul.f32 %v4258_v0, %v4167_v1  ;;  %v3305_v5 = vld [vmem:[#allocation3 + $0x40] sm:$0xff]  ;;  %4132 = vst.msk [vmem:[#allocation3 + $0x28] sm:$0xff] %vm782_vm0, %v4096_v62  ;;  %5002 = vmatmul.msk.f32.gmra.mxu1 %vm782_vm0, %v6137_v24  ;;  %5074 = vmatmul.msk.f32.gmra.mxu3 %vm782_vm0, %v3428_v3 }
 0x2c5   : > { %v3341_v7 = vadd.f32 %v3305_v5, %v3213_v56  ;;  %2999 = vst.msk [vmem:[#allocation3 + $0x48] sm:$0xff] %vm782_vm0, %v2963_v2  ;;  %5039 = vmatmul.msk.f32.gmra.mxu2 %vm782_vm0, %v6169_v6  ;;  %v2930_v2 = vld [vmem:[#allocation3 + $0x60] sm:$0xff]  ;;  %v4273_v5 = vpop.permute.xlu0 %4272 }
 0x2c6   : > { %v4458_v8 = vsel %vm782_vm0, %v4419_v4, 0.0  ;;  %v4534_v9 = vmul.f32 %v4419_v4, %v4419_v4  ;;  %4648 = vst.msk [vmem:[%s6105_s15 + $0x20] sm:$0xff] %vm782_vm0, %v4419_v4  ;;  %v3683_v12 = vld [vmem:[#allocation3 + $0x38] sm:$0xff] }
 0x2c7   : > { %v4459_v10 = vadd.f32 %v4458_v8, %v4457_v53  ;;  %3377 = vst.msk [vmem:[#allocation3 + $0x40] sm:$0xff] %vm782_vm0, %v3341_v7  ;;  %v3589_v11 = vpop.f32.mrf.mxu3  ;;  %v3808_v4 = vld [vmem:[#allocation2 + $0xe6] sm:$0xff]  ;;  %v3431_v8 = vld [vmem:[#allocation2 + $0xf5] sm:$0xff] }
 0x2c8   : > { %v4573_v13 = vsel %vm782_vm0, %v4534_v9, 0.0  ;;  %v3216_v14 = vpop.f32.mrf.mxu2  ;;  %v3719_v15 = vadd.f32 %v3683_v12, %v3589_v11  ;;  %v3965_v16 = vpop.f32.mrf.mxu0  ;;  %v6217_v11 = vld [vmem:[#allocation2 + $0x104] sm:$0xff] }
 0x2c9   : > { %v4574_v17 = vadd.f32 %v4573_v13, %v4572_v37  ;;  %v4061_v18 = vld [vmem:[#allocation3 + $0x30] sm:$0xff]  ;;  %v2840_v19 = vpop.f32.mrf.mxu1 }
 0x2ca   : > { %3755 = vst.msk [vmem:[#allocation3 + $0x38] sm:$0xff] %vm782_vm0, %v3719_v15  ;;  %v4097_v21 = vadd.f32 %v4061_v18, %v3965_v16  ;;  %v2964_v25 = vadd.f32 %v2928_v20, %v2840_v19 }
 0x2cb   : > { %v4168_v24 = vld [vmem:[#allocation3 + $0x28] sm:$0xff]  ;;  %5110 = vmatmul.msk.f32.gmra.mxu0 %vm782_vm0, %v3806_v22 }
 0x2cc   : > { %v4420_v27 = vmul.f32 %v4263_v23, %v4168_v24  ;;  %v3306_v28 = vld [vmem:[#allocation3 + $0x48] sm:$0xff]  ;;  %4133 = vst.msk [vmem:[#allocation3 + $0x30] sm:$0xff] %vm782_vm0, %v4097_v21  ;;  %5003 = vmatmul.msk.f32.gmra.mxu1 %vm782_vm0, %v6153_v49  ;;  %5075 = vmatmul.msk.f32.gmra.mxu3 %vm782_vm0, %v3429_v26 }
 0x2cd   : > { %v3342_v30 = vadd.f32 %v3306_v28, %v3216_v14  ;;  %3000 = vst.msk [vmem:[#allocation3 + $0x50] sm:$0xff] %vm782_vm0, %v2964_v25  ;;  %5040 = vmatmul.msk.f32.gmra.mxu2 %vm782_vm0, %v6185_v29  ;;  %v2931_v25 = vld [vmem:[#allocation3 + $0x68] sm:$0xff]  ;;  %v4278_v28 = vpop.permute.xlu1 %4277 }
 0x2ce   : > { %v4460_v31 = vsel %vm782_vm0, %v4420_v27, 0.0  ;;  %v4535_v32 = vmul.f32 %v4420_v27, %v4420_v27  ;;  %4649 = vst.msk [vmem:[%s6105_s15 + $0x28] sm:$0xff] %vm782_vm0, %v4420_v27  ;;  %v3684_v36 = vld [vmem:[#allocation3 + $0x40] sm:$0xff] }
 0x2cf   : > { %v4461_v34 = vadd.f32 %v4460_v31, %v4459_v10  ;;  %3378 = vst.msk [vmem:[#allocation3 + $0x48] sm:$0xff] %vm782_vm0, %v3342_v30  ;;  %v3592_v35 = vpop.f32.mrf.mxu3  ;;  %v3809_v27 = vld [vmem:[#allocation2 + $0xee] sm:$0xff]  ;;  %v3432_v31 = vld [vmem:[#allocation2 + $0xfd] sm:$0xff] }
 0x2d0   : > { %v4575_v38 = vsel %vm782_vm0, %v4535_v32, 0.0  ;;  %v3219_v39 = vpop.f32.mrf.mxu2  ;;  %v3720_v40 = vadd.f32 %v3684_v36, %v3592_v35  ;;  %v3968_v41 = vpop.f32.mrf.mxu0  ;;  %v6233_v35 = vld [vmem:[#allocation2 + $0x10c] sm:$0xff] }
 0x2d1   : > { %v4576_v42 = vadd.f32 %v4575_v38, %v4574_v17  ;;  %v4062_v43 = vld [vmem:[#allocation3 + $0x38] sm:$0xff]  ;;  %v2843_v44 = vpop.f32.mrf.mxu1 }
 0x2d2   : > { %3756 = vst.msk [vmem:[#allocation3 + $0x40] sm:$0xff] %vm782_vm0, %v3720_v40  ;;  %v4098_v46 = vadd.f32 %v4062_v43, %v3968_v41  ;;  %v2965_v50 = vadd.f32 %v2929_v45, %v2843_v44 }
 0x2d3   : > { %v4169_v49 = vld [vmem:[#allocation3 + $0x30] sm:$0xff]  ;;  %5111 = vmatmul.msk.f32.gmra.mxu0 %vm782_vm0, %v3807_v47 }
 0x2d4   : > { %v4421_v52 = vmul.f32 %v4268_v48, %v4169_v49  ;;  %v3307_v53 = vld [vmem:[#allocation3 + $0x50] sm:$0xff]  ;;  %4134 = vst.msk [vmem:[#allocation3 + $0x38] sm:$0xff] %vm782_vm0, %v4098_v46  ;;  %5004 = vmatmul.msk.f32.gmra.mxu1 %vm782_vm0, %v6169_v6  ;;  %5076 = vmatmul.msk.f32.gmra.mxu3 %vm782_vm0, %v3430_v51 }
 0x2d5   : > { %v3343_v33 = vadd.f32 %v3307_v53, %v3219_v39  ;;  %3001 = vst.msk [vmem:[#allocation3 + $0x58] sm:$0xff] %vm782_vm0, %v2965_v50  ;;  %5041 = vmatmul.msk.f32.gmra.mxu2 %vm782_vm0, %v6201_v54  ;;  %v2932_v50 = vld [vmem:[#allocation3 + $0x70] sm:$0xff]  ;;  %v4283_v53 = vpop.permute.xlu2 %4282 }
 0x2d6   : > { %v4462_v55 = vsel %vm782_vm0, %v4421_v52, 0.0  ;;  %v4536_v56 = vmul.f32 %v4421_v52, %v4421_v52  ;;  %4650 = vst.msk [vmem:[%s6105_s15 + $0x30] sm:$0xff] %vm782_vm0, %v4421_v52  ;;  %v3685_v37 = vld [vmem:[#allocation3 + $0x48] sm:$0xff] }
 0x2d7   : > { %v4463_v57 = vadd.f32 %v4462_v55, %v4461_v34  ;;  %3379 = vst.msk [vmem:[#allocation3 + $0x50] sm:$0xff] %vm782_vm0, %v3343_v33  ;;  %v3595_v58 = vpop.f32.mrf.mxu3  ;;  %v3810_v52 = vld [vmem:[#allocation2 + $0xf6] sm:$0xff]  ;;  %v3433_v55 = vld [vmem:[#allocation2 + $0x105] sm:$0xff] }
 0x2d8   : > { %v4577_v59 = vsel %vm782_vm0, %v4536_v56, 0.0  ;;  %v3222_v60 = vpop.f32.mrf.mxu2  ;;  %v3721_v61 = vadd.f32 %v3685_v37, %v3595_v58  ;;  %v3971_v62 = vpop.f32.mrf.mxu0  ;;  %v6249_v58 = vld [vmem:[#allocation2 + $0x114] sm:$0xff] }
 0x2d9   : > { %v4578_v63 = vadd.f32 %v4577_v59, %v4576_v42  ;;  %v4063_v0 = vld [vmem:[#allocation3 + $0x40] sm:$0xff]  ;;  %v2846_v1 = vpop.f32.mrf.mxu1 }
 0x2da   : > { %3757 = vst.msk [vmem:[#allocation3 + $0x48] sm:$0xff] %vm782_vm0, %v3721_v61  ;;  %v4099_v3 = vadd.f32 %v4063_v0, %v3971_v62  ;;  %v2966_v7 = vadd.f32 %v2930_v2, %v2846_v1 }
 0x2db   : > { %v4170_v6 = vld [vmem:[#allocation3 + $0x38] sm:$0xff]  ;;  %5112 = vmatmul.msk.f32.gmra.mxu0 %vm782_vm0, %v3808_v4 }
 0x2dc   : > { %v4422_v9 = vmul.f32 %v4273_v5, %v4170_v6  ;;  %v3308_v10 = vld [vmem:[#allocation3 + $0x58] sm:$0xff]  ;;  %4135 = vst.msk [vmem:[#allocation3 + $0x40] sm:$0xff] %vm782_vm0, %v4099_v3  ;;  %5005 = vmatmul.msk.f32.gmra.mxu1 %vm782_vm0, %v6185_v29  ;;  %5077 = vmatmul.msk.f32.gmra.mxu3 %vm782_vm0, %v3431_v8 }
 0x2dd   : > { %v3344_v12 = vadd.f32 %v3308_v10, %v3222_v60  ;;  %3002 = vst.msk [vmem:[#allocation3 + $0x60] sm:$0xff] %vm782_vm0, %v2966_v7  ;;  %5042 = vmatmul.msk.f32.gmra.mxu2 %vm782_vm0, %v6217_v11  ;;  %v2933_v7 = vld [vmem:[#allocation3 + $0x78] sm:$0xff]  ;;  %v4288_v10 = vpop.permute.xlu0 %4287 }
 0x2de   : > { %v4464_v13 = vsel %vm782_vm0, %v4422_v9, 0.0  ;;  %v4537_v14 = vmul.f32 %v4422_v9, %v4422_v9  ;;  %4651 = vst.msk [vmem:[%s6105_s15 + $0x38] sm:$0xff] %vm782_vm0, %v4422_v9  ;;  %v3686_v17 = vld [vmem:[#allocation3 + $0x50] sm:$0xff] }
 0x2df   : > { %v4465_v15 = vadd.f32 %v4464_v13, %v4463_v57  ;;  %3380 = vst.msk [vmem:[#allocation3 + $0x58] sm:$0xff] %vm782_vm0, %v3344_v12  ;;  %v3598_v16 = vpop.f32.mrf.mxu3  ;;  %v3811_v9 = vld [vmem:[#allocation2 + $0xfe] sm:$0xff]  ;;  %v3434_v13 = vld [vmem:[#allocation2 + $0x10d] sm:$0xff] }
 0x2e0   : > { %v4579_v18 = vsel %vm782_vm0, %v4537_v14, 0.0  ;;  %v3225_v19 = vpop.f32.mrf.mxu2  ;;  %v3722_v20 = vadd.f32 %v3686_v17, %v3598_v16  ;;  %v3974_v21 = vpop.f32.mrf.mxu0  ;;  %v6265_v16 = vld [vmem:[#allocation2 + $0x11c] sm:$0xff] }
 0x2e1   : > { %v4580_v22 = vadd.f32 %v4579_v18, %v4578_v63  ;;  %v4064_v23 = vld [vmem:[#allocation3 + $0x48] sm:$0xff]  ;;  %v2849_v24 = vpop.f32.mrf.mxu1 }
 0x2e2   : > { %3758 = vst.msk [vmem:[#allocation3 + $0x50] sm:$0xff] %vm782_vm0, %v3722_v20  ;;  %v4100_v26 = vadd.f32 %v4064_v23, %v3974_v21  ;;  %v2967_v30 = vadd.f32 %v2931_v25, %v2849_v24 }
 0x2e3   : > { %v4171_v29 = vld [vmem:[#allocation3 + $0x40] sm:$0xff]  ;;  %5113 = vmatmul.msk.f32.gmra.mxu0 %vm782_vm0, %v3809_v27 }
 0x2e4   : > { %v4423_v32 = vmul.f32 %v4278_v28, %v4171_v29  ;;  %v3309_v34 = vld [vmem:[#allocation3 + $0x60] sm:$0xff]  ;;  %4136 = vst.msk [vmem:[#allocation3 + $0x48] sm:$0xff] %vm782_vm0, %v4100_v26  ;;  %5006 = vmatmul.msk.f32.gmra.mxu1 %vm782_vm0, %v6201_v54  ;;  %5078 = vmatmul.msk.f32.gmra.mxu3 %vm782_vm0, %v3432_v31 }
 0x2e5   : > { %v3345_v36 = vadd.f32 %v3309_v34, %v3225_v19  ;;  %3003 = vst.msk [vmem:[#allocation3 + $0x68] sm:$0xff] %vm782_vm0, %v2967_v30  ;;  %5043 = vmatmul.msk.f32.gmra.mxu2 %vm782_vm0, %v6233_v35  ;;  %v2934_v30 = vld [vmem:[#allocation3 + $0x80] sm:$0xff]  ;;  %v4293_v34 = vpop.permute.xlu1 %4292 }
 0x2e6   : > { %v4466_v38 = vsel %vm782_vm0, %v4423_v32, 0.0  ;;  %v4538_v39 = vmul.f32 %v4423_v32, %v4423_v32  ;;  %4652 = vst.msk [vmem:[%s6105_s15 + $0x40] sm:$0xff] %vm782_vm0, %v4423_v32  ;;  %v3687_v42 = vld [vmem:[#allocation3 + $0x58] sm:$0xff] }
 0x2e7   : > { %v4467_v40 = vadd.f32 %v4466_v38, %v4465_v15  ;;  %3381 = vst.msk [vmem:[#allocation3 + $0x60] sm:$0xff] %vm782_vm0, %v3345_v36  ;;  %v3601_v41 = vpop.f32.mrf.mxu3  ;;  %v3812_v32 = vld [vmem:[#allocation2 + $0x106] sm:$0xff]  ;;  %v3435_v38 = vld [vmem:[#allocation2 + $0x115] sm:$0xff] }
 0x2e8   : > { %v4581_v43 = vsel %vm782_vm0, %v4538_v39, 0.0  ;;  %v3228_v44 = vpop.f32.mrf.mxu2  ;;  %v3723_v45 = vadd.f32 %v3687_v42, %v3601_v41  ;;  %v3977_v46 = vpop.f32.mrf.mxu0  ;;  %v6281_v41 = vld [vmem:[#allocation2 + $0x124] sm:$0xff] }
 0x2e9   : > { %v4582_v47 = vadd.f32 %v4581_v43, %v4580_v22  ;;  %v4065_v48 = vld [vmem:[#allocation3 + $0x50] sm:$0xff]  ;;  %v2852_v49 = vpop.f32.mrf.mxu1 }
 0x2ea   : > { %3759 = vst.msk [vmem:[#allocation3 + $0x58] sm:$0xff] %vm782_vm0, %v3723_v45  ;;  %v4101_v51 = vadd.f32 %v4065_v48, %v3977_v46  ;;  %v2968_v33 = vadd.f32 %v2932_v50, %v2852_v49 }
 0x2eb   : > { %v4172_v54 = vld [vmem:[#allocation3 + $0x48] sm:$0xff]  ;;  %5114 = vmatmul.msk.f32.gmra.mxu0 %vm782_vm0, %v3810_v52 }
 0x2ec   : > { %v4424_v56 = vmul.f32 %v4283_v53, %v4172_v54  ;;  %v3310_v57 = vld [vmem:[#allocation3 + $0x68] sm:$0xff]  ;;  %4137 = vst.msk [vmem:[#allocation3 + $0x50] sm:$0xff] %vm782_vm0, %v4101_v51  ;;  %5007 = vmatmul.msk.f32.gmra.mxu1 %vm782_vm0, %v6217_v11  ;;  %5079 = vmatmul.msk.f32.gmra.mxu3 %vm782_vm0, %v3433_v55 }
 0x2ed   : > { %v3346_v37 = vadd.f32 %v3310_v57, %v3228_v44  ;;  %3004 = vst.msk [vmem:[#allocation3 + $0x70] sm:$0xff] %vm782_vm0, %v2968_v33  ;;  %5044 = vmatmul.msk.f32.gmra.mxu2 %vm782_vm0, %v6249_v58  ;;  %v2935_v33 = vld [vmem:[#allocation3 + $0x88] sm:$0xff]  ;;  %v4298_v57 = vpop.permute.xlu2 %4297 }
 0x2ee   : > { %v4468_v59 = vsel %vm782_vm0, %v4424_v56, 0.0  ;;  %v4539_v60 = vmul.f32 %v4424_v56, %v4424_v56  ;;  %4653 = vst.msk [vmem:[%s6105_s15 + $0x48] sm:$0xff] %vm782_vm0, %v4424_v56  ;;  %v3688_v63 = vld [vmem:[#allocation3 + $0x60] sm:$0xff] }
 0x2ef   : > { %v4469_v61 = vadd.f32 %v4468_v59, %v4467_v40  ;;  %3382 = vst.msk [vmem:[#allocation3 + $0x68] sm:$0xff] %vm782_vm0, %v3346_v37  ;;  %v3604_v62 = vpop.f32.mrf.mxu3  ;;  %v3813_v56 = vld [vmem:[#allocation2 + $0x10e] sm:$0xff]  ;;  %v3436_v59 = vld [vmem:[#allocation2 + $0x11d] sm:$0xff] }
 0x2f0   : > { %v4583_v0 = vsel %vm782_vm0, %v4539_v60, 0.0  ;;  %v3231_v1 = vpop.f32.mrf.mxu2  ;;  %v3724_v2 = vadd.f32 %v3688_v63, %v3604_v62  ;;  %v3980_v3 = vpop.f32.mrf.mxu0  ;;  %v6297_v62 = vld [vmem:[#allocation2 + $0x12c] sm:$0xff] }
 0x2f1   : > { %v4584_v4 = vadd.f32 %v4583_v0, %v4582_v47  ;;  %v4066_v5 = vld [vmem:[#allocation3 + $0x58] sm:$0xff]  ;;  %v2855_v6 = vpop.f32.mrf.mxu1 }
 0x2f2   : > { %3760 = vst.msk [vmem:[#allocation3 + $0x60] sm:$0xff] %vm782_vm0, %v3724_v2  ;;  %v4102_v8 = vadd.f32 %v4066_v5, %v3980_v3  ;;  %v2969_v12 = vadd.f32 %v2933_v7, %v2855_v6 }
 0x2f3   : > { %v4173_v11 = vld [vmem:[#allocation3 + $0x50] sm:$0xff]  ;;  %5115 = vmatmul.msk.f32.gmra.mxu0 %vm782_vm0, %v3811_v9 }
 0x2f4   : > { %v4425_v14 = vmul.f32 %v4288_v10, %v4173_v11  ;;  %v3311_v15 = vld [vmem:[#allocation3 + $0x70] sm:$0xff]  ;;  %4138 = vst.msk [vmem:[#allocation3 + $0x58] sm:$0xff] %vm782_vm0, %v4102_v8  ;;  %5008 = vmatmul.msk.f32.gmra.mxu1 %vm782_vm0, %v6233_v35  ;;  %5080 = vmatmul.msk.f32.gmra.mxu3 %vm782_vm0, %v3434_v13 }
 0x2f5   : > { %v3347_v17 = vadd.f32 %v3311_v15, %v3231_v1  ;;  %3005 = vst.msk [vmem:[#allocation3 + $0x78] sm:$0xff] %vm782_vm0, %v2969_v12  ;;  %5045 = vmatmul.msk.f32.gmra.mxu2 %vm782_vm0, %v6265_v16  ;;  %v2936_v12 = vld [vmem:[#allocation3 + $0x90] sm:$0xff]  ;;  %v4303_v15 = vpop.permute.xlu0 %4302 }
 0x2f6   : > { %v4470_v18 = vsel %vm782_vm0, %v4425_v14, 0.0  ;;  %v4540_v19 = vmul.f32 %v4425_v14, %v4425_v14  ;;  %4654 = vst.msk [vmem:[%s6105_s15 + $0x50] sm:$0xff] %vm782_vm0, %v4425_v14  ;;  %v3689_v22 = vld [vmem:[#allocation3 + $0x68] sm:$0xff] }
 0x2f7   : > { %v4471_v20 = vadd.f32 %v4470_v18, %v4469_v61  ;;  %3383 = vst.msk [vmem:[#allocation3 + $0x70] sm:$0xff] %vm782_vm0, %v3347_v17  ;;  %v3607_v21 = vpop.f32.mrf.mxu3  ;;  %v3814_v14 = vld [vmem:[#allocation2 + $0x116] sm:$0xff]  ;;  %v3437_v18 = vld [vmem:[#allocation2 + $0x125] sm:$0xff] }
 0x2f8   : > { %v4585_v23 = vsel %vm782_vm0, %v4540_v19, 0.0  ;;  %v3234_v24 = vpop.f32.mrf.mxu2  ;;  %v3725_v25 = vadd.f32 %v3689_v22, %v3607_v21  ;;  %v3983_v26 = vpop.f32.mrf.mxu0  ;;  %v3060_v21 = vld [vmem:[#allocation2 + $0x134] sm:$0xff] }
 0x2f9   : > { %v4586_v27 = vadd.f32 %v4585_v23, %v4584_v4  ;;  %v4067_v28 = vld [vmem:[#allocation3 + $0x60] sm:$0xff]  ;;  %v2858_v29 = vpop.f32.mrf.mxu1 }
 0x2fa   : > { %3761 = vst.msk [vmem:[#allocation3 + $0x68] sm:$0xff] %vm782_vm0, %v3725_v25  ;;  %v4103_v31 = vadd.f32 %v4067_v28, %v3983_v26  ;;  %v2970_v36 = vadd.f32 %v2934_v30, %v2858_v29 }
 0x2fb   : > { %v4174_v35 = vld [vmem:[#allocation3 + $0x58] sm:$0xff]  ;;  %5116 = vmatmul.msk.f32.gmra.mxu0 %vm782_vm0, %v3812_v32 }
 0x2fc   : > { %v4426_v39 = vmul.f32 %v4293_v34, %v4174_v35  ;;  %v3312_v40 = vld [vmem:[#allocation3 + $0x78] sm:$0xff]  ;;  %4139 = vst.msk [vmem:[#allocation3 + $0x60] sm:$0xff] %vm782_vm0, %v4103_v31  ;;  %5009 = vmatmul.msk.f32.gmra.mxu1 %vm782_vm0, %v6249_v58  ;;  %5081 = vmatmul.msk.f32.gmra.mxu3 %vm782_vm0, %v3435_v38 }
 0x2fd   : > { %v3348_v42 = vadd.f32 %v3312_v40, %v3234_v24  ;;  %3006 = vst.msk [vmem:[#allocation3 + $0x80] sm:$0xff] %vm782_vm0, %v2970_v36  ;;  %5046 = vmatmul.msk.f32.gmra.mxu2 %vm782_vm0, %v6281_v41  ;;  %v2937_v36 = vld [vmem:[#allocation3 + $0x98] sm:$0xff]  ;;  %v4308_v40 = vpop.permute.xlu1 %4307 }
 0x2fe   : > { %v4472_v43 = vsel %vm782_vm0, %v4426_v39, 0.0  ;;  %v4541_v44 = vmul.f32 %v4426_v39, %v4426_v39  ;;  %4655 = vst.msk [vmem:[%s6105_s15 + $0x58] sm:$0xff] %vm782_vm0, %v4426_v39  ;;  %v3690_v47 = vld [vmem:[#allocation3 + $0x70] sm:$0xff] }
 0x2ff   : > { %v4473_v45 = vadd.f32 %v4472_v43, %v4471_v20  ;;  %3384 = vst.msk [vmem:[#allocation3 + $0x78] sm:$0xff] %vm782_vm0, %v3348_v42  ;;  %v3610_v46 = vpop.f32.mrf.mxu3  ;;  %v3815_v39 = vld [vmem:[#allocation2 + $0x11e] sm:$0xff]  ;;  %v3438_v43 = vld [vmem:[#allocation2 + $0x12d] sm:$0xff] }
 0x300   : > { %v4587_v48 = vsel %vm782_vm0, %v4541_v44, 0.0  ;;  %v3237_v49 = vpop.f32.mrf.mxu2  ;;  %v3726_v50 = vadd.f32 %v3690_v47, %v3610_v46  ;;  %v3986_v51 = vpop.f32.mrf.mxu0  ;;  %v3061_v46 = vld [vmem:[#allocation2 + $0x13c] sm:$0xff] }
 0x301   : > { %v4588_v52 = vadd.f32 %v4587_v48, %v4586_v27  ;;  %v4068_v53 = vld [vmem:[#allocation3 + $0x68] sm:$0xff]  ;;  %v2861_v54 = vpop.f32.mrf.mxu1 }
 0x302   : > { %3762 = vst.msk [vmem:[#allocation3 + $0x70] sm:$0xff] %vm782_vm0, %v3726_v50  ;;  %v4104_v55 = vadd.f32 %v4068_v53, %v3986_v51  ;;  %v2971_v37 = vadd.f32 %v2935_v33, %v2861_v54 }
 0x303   : > { %v4175_v58 = vld [vmem:[#allocation3 + $0x60] sm:$0xff]  ;;  %5117 = vmatmul.msk.f32.gmra.mxu0 %vm782_vm0, %v3813_v56 }
 0x304   : > { %v4427_v60 = vmul.f32 %v4298_v57, %v4175_v58  ;;  %v3313_v61 = vld [vmem:[#allocation3 + $0x80] sm:$0xff]  ;;  %4140 = vst.msk [vmem:[#allocation3 + $0x68] sm:$0xff] %vm782_vm0, %v4104_v55  ;;  %5010 = vmatmul.msk.f32.gmra.mxu1 %vm782_vm0, %v6265_v16  ;;  %5082 = vmatmul.msk.f32.gmra.mxu3 %vm782_vm0, %v3436_v59 }
 0x305   : > { %v3349_v63 = vadd.f32 %v3313_v61, %v3237_v49  ;;  %3007 = vst.msk [vmem:[#allocation3 + $0x88] sm:$0xff] %vm782_vm0, %v2971_v37  ;;  %5047 = vmatmul.msk.f32.gmra.mxu2 %vm782_vm0, %v6297_v62  ;;  %v2938_v37 = vld [vmem:[#allocation3 + $0xa0] sm:$0xff]  ;;  %v4313_v61 = vpop.permute.xlu2 %4312 }
 0x306   : > { %v4474_v0 = vsel %vm782_vm0, %v4427_v60, 0.0  ;;  %v4542_v1 = vmul.f32 %v4427_v60, %v4427_v60  ;;  %4656 = vst.msk [vmem:[%s6105_s15 + $0x60] sm:$0xff] %vm782_vm0, %v4427_v60  ;;  %v3691_v4 = vld [vmem:[#allocation3 + $0x78] sm:$0xff] }
 0x307   : > { %v4475_v2 = vadd.f32 %v4474_v0, %v4473_v45  ;;  %3385 = vst.msk [vmem:[#allocation3 + $0x80] sm:$0xff] %vm782_vm0, %v3349_v63  ;;  %v3613_v3 = vpop.f32.mrf.mxu3  ;;  %v3816_v60 = vld [vmem:[#allocation2 + $0x126] sm:$0xff]  ;;  %v3439_v0 = vld [vmem:[#allocation2 + $0x135] sm:$0xff] }
 0x308   : > { %v4589_v5 = vsel %vm782_vm0, %v4542_v1, 0.0  ;;  %v3240_v6 = vpop.f32.mrf.mxu2  ;;  %v3727_v7 = vadd.f32 %v3691_v4, %v3613_v3  ;;  %v3989_v8 = vpop.f32.mrf.mxu0 }
 0x309   : > { %v4590_v9 = vadd.f32 %v4589_v5, %v4588_v52  ;;  %v4069_v10 = vld [vmem:[#allocation3 + $0x70] sm:$0xff]  ;;  %v2864_v11 = vpop.f32.mrf.mxu1 }
 0x30a   : > { %3763 = vst.msk [vmem:[#allocation3 + $0x78] sm:$0xff] %vm782_vm0, %v3727_v7  ;;  %v4105_v13 = vadd.f32 %v4069_v10, %v3989_v8  ;;  %v2972_v17 = vadd.f32 %v2936_v12, %v2864_v11 }
 0x30b   : > { %v4176_v16 = vld [vmem:[#allocation3 + $0x68] sm:$0xff]  ;;  %5118 = vmatmul.msk.f32.gmra.mxu0 %vm782_vm0, %v3814_v14 }
 0x30c   : > { %v4428_v19 = vmul.f32 %v4303_v15, %v4176_v16  ;;  %v3314_v20 = vld [vmem:[#allocation3 + $0x88] sm:$0xff]  ;;  %4141 = vst.msk [vmem:[#allocation3 + $0x70] sm:$0xff] %vm782_vm0, %v4105_v13  ;;  %5011 = vmatmul.msk.f32.gmra.mxu1 %vm782_vm0, %v6281_v41  ;;  %5083 = vmatmul.msk.f32.gmra.mxu3 %vm782_vm0, %v3437_v18 }
 0x30d   : > { %v3350_v22 = vadd.f32 %v3314_v20, %v3240_v6  ;;  %3008 = vst.msk [vmem:[#allocation3 + $0x90] sm:$0xff] %vm782_vm0, %v2972_v17  ;;  %5048 = vmatmul.msk.f32.gmra.mxu2 %vm782_vm0, %v3060_v21  ;;  %v2939_v16 = vld [vmem:[#allocation3 + $0xa8] sm:$0xff] }
 0x30e   : > { %v4476_v23 = vsel %vm782_vm0, %v4428_v19, 0.0  ;;  %v4543_v24 = vmul.f32 %v4428_v19, %v4428_v19  ;;  %4657 = vst.msk [vmem:[%s6105_s15 + $0x68] sm:$0xff] %vm782_vm0, %v4428_v19  ;;  %v3692_v27 = vld [vmem:[#allocation3 + $0x80] sm:$0xff]  ;;  %v4318_v19 = vpop.permute.xlu0 %4317 }
 0x30f   : > { %v4477_v25 = vadd.f32 %v4476_v23, %v4475_v2  ;;  %3386 = vst.msk [vmem:[#allocation3 + $0x88] sm:$0xff] %vm782_vm0, %v3350_v22  ;;  %v3616_v26 = vpop.f32.mrf.mxu3  ;;  %v3817_v18 = vld [vmem:[#allocation2 + $0x12e] sm:$0xff]  ;;  %v3440_v22 = vld [vmem:[#allocation2 + $0x13d] sm:$0xff] }
 0x310   : > { %v4591_v28 = vsel %vm782_vm0, %v4543_v24, 0.0  ;;  %v3243_v29 = vpop.f32.mrf.mxu2  ;;  %v3728_v30 = vadd.f32 %v3692_v27, %v3616_v26  ;;  %v3992_v31 = vpop.f32.mrf.mxu0 }
 0x311   : > { %v4592_v32 = vadd.f32 %v4591_v28, %v4590_v9  ;;  %v4070_v34 = vld [vmem:[#allocation3 + $0x78] sm:$0xff]  ;;  %v2867_v35 = vpop.f32.mrf.mxu1 }
 0x312   : > { %3764 = vst.msk [vmem:[#allocation3 + $0x80] sm:$0xff] %vm782_vm0, %v3728_v30  ;;  %v4106_v38 = vadd.f32 %v4070_v34, %v3992_v31  ;;  %v2973_v42 = vadd.f32 %v2937_v36, %v2867_v35 }
 0x313   : > { %v4177_v41 = vld [vmem:[#allocation3 + $0x70] sm:$0xff]  ;;  %5119 = vmatmul.msk.f32.gmra.mxu0 %vm782_vm0, %v3815_v39 }
 0x314   : > { %v4429_v44 = vmul.f32 %v4308_v40, %v4177_v41  ;;  %v3315_v45 = vld [vmem:[#allocation3 + $0x90] sm:$0xff]  ;;  %4142 = vst.msk [vmem:[#allocation3 + $0x78] sm:$0xff] %vm782_vm0, %v4106_v38  ;;  %5012 = vmatmul.msk.f32.gmra.mxu1 %vm782_vm0, %v6297_v62  ;;  %5084 = vmatmul.msk.f32.gmra.mxu3 %vm782_vm0, %v3438_v43  ;;  %v4323_v43 = vpop.permute.xlu1 %4322 }
 0x315   : > { %v3351_v47 = vadd.f32 %v3315_v45, %v3243_v29  ;;  %3009 = vst.msk [vmem:[#allocation3 + $0x98] sm:$0xff] %vm782_vm0, %v2973_v42  ;;  %5049 = vmatmul.msk.f32.gmra.mxu2 %vm782_vm0, %v3061_v46  ;;  %v2940_v40 = vld [vmem:[#allocation3 + $0xb0] sm:$0xff] }
 0x316   : > { %v4478_v48 = vsel %vm782_vm0, %v4429_v44, 0.0  ;;  %v4544_v49 = vmul.f32 %v4429_v44, %v4429_v44  ;;  %4658 = vst.msk [vmem:[%s6105_s15 + $0x70] sm:$0xff] %vm782_vm0, %v4429_v44  ;;  %v3693_v52 = vld [vmem:[#allocation3 + $0x88] sm:$0xff] }
 0x317   : > { %v4479_v50 = vadd.f32 %v4478_v48, %v4477_v25  ;;  %3387 = vst.msk [vmem:[#allocation3 + $0x90] sm:$0xff] %vm782_vm0, %v3351_v47  ;;  %v3619_v51 = vpop.f32.mrf.mxu3  ;;  %v3818_v42 = vld [vmem:[#allocation2 + $0x136] sm:$0xff] }
 0x318   : > { %v4593_v53 = vsel %vm782_vm0, %v4544_v49, 0.0  ;;  %v3246_v54 = vpop.f32.mrf.mxu2  ;;  %v3729_v33 = vadd.f32 %v3693_v52, %v3619_v51  ;;  %v3995_v55 = vpop.f32.mrf.mxu0 }
 0x319   : > { %v4594_v56 = vadd.f32 %v4593_v53, %v4592_v32  ;;  %v4071_v57 = vld [vmem:[#allocation3 + $0x80] sm:$0xff]  ;;  %v2870_v58 = vpop.f32.mrf.mxu1 }
 0x31a   : > { %3765 = vst.msk [vmem:[#allocation3 + $0x88] sm:$0xff] %vm782_vm0, %v3729_v33  ;;  %v4107_v59 = vadd.f32 %v4071_v57, %v3995_v55  ;;  %v2974_v63 = vadd.f32 %v2938_v37, %v2870_v58 }
 0x31b   : > { %v4178_v62 = vld [vmem:[#allocation3 + $0x78] sm:$0xff]  ;;  %5120 = vmatmul.msk.f32.gmra.mxu0 %vm782_vm0, %v3816_v60 }
 0x31c   : > { %v4430_v1 = vmul.f32 %v4313_v61, %v4178_v62  ;;  %v3316_v2 = vld [vmem:[#allocation3 + $0x98] sm:$0xff]  ;;  %4143 = vst.msk [vmem:[#allocation3 + $0x80] sm:$0xff] %vm782_vm0, %v4107_v59  ;;  %5085 = vmatmul.msk.f32.gmra.mxu3 %vm782_vm0, %v3439_v0  ;;  %v4328_v62 = vpop.permute.xlu2 %4327 }
 0x31d   : > { %v3352_v3 = vadd.f32 %v3316_v2, %v3246_v54  ;;  %3010 = vst.msk [vmem:[#allocation3 + $0xa0] sm:$0xff] %vm782_vm0, %v2974_v63  ;;  %v2941_v59 = vld [vmem:[#allocation3 + $0xb8] sm:$0xff] }
 0x31e   : > { %v4480_v4 = vsel %vm782_vm0, %v4430_v1, 0.0  ;;  %v4545_v5 = vmul.f32 %v4430_v1, %v4430_v1  ;;  %4659 = vst.msk [vmem:[%s6105_s15 + $0x78] sm:$0xff] %vm782_vm0, %v4430_v1  ;;  %v3694_v8 = vld [vmem:[#allocation3 + $0x90] sm:$0xff] }
 0x31f   : > { %v4481_v6 = vadd.f32 %v4480_v4, %v4479_v50  ;;  %3388 = vst.msk [vmem:[#allocation3 + $0x98] sm:$0xff] %vm782_vm0, %v3352_v3  ;;  %v3622_v7 = vpop.f32.mrf.mxu3  ;;  %v3819_v61 = vld [vmem:[#allocation2 + $0x13e] sm:$0xff] }
 0x320   : > { %v4595_v9 = vsel %vm782_vm0, %v4545_v5, 0.0  ;;  %v3249_v10 = vpop.f32.mrf.mxu2  ;;  %v3730_v11 = vadd.f32 %v3694_v8, %v3622_v7  ;;  %v3998_v12 = vpop.f32.mrf.mxu0 }
 0x321   : > { %v4596_v13 = vadd.f32 %v4595_v9, %v4594_v56  ;;  %v4072_v14 = vld [vmem:[#allocation3 + $0x88] sm:$0xff]  ;;  %v2873_v15 = vpop.f32.mrf.mxu1 }
 0x322   : > { %3766 = vst.msk [vmem:[#allocation3 + $0x90] sm:$0xff] %vm782_vm0, %v3730_v11  ;;  %v4108_v17 = vadd.f32 %v4072_v14, %v3998_v12  ;;  %v2975_v21 = vadd.f32 %v2939_v16, %v2873_v15  ;;  %v2942_v16 = vld [vmem:[#allocation3 + $0xc0] sm:$0xff] }
 0x323   : > { %v4179_v20 = vld [vmem:[#allocation3 + $0x80] sm:$0xff]  ;;  %5121 = vmatmul.msk.f32.gmra.mxu0 %vm782_vm0, %v3817_v18  ;;  %v4333_v18 = vpop.permute.xlu0 %4332 }
 0x324   : > { %v4431_v23 = vmul.f32 %v4318_v19, %v4179_v20  ;;  %v3317_v24 = vld [vmem:[#allocation3 + $0xa0] sm:$0xff]  ;;  %4144 = vst.msk [vmem:[#allocation3 + $0x88] sm:$0xff] %vm782_vm0, %v4108_v17  ;;  %5086 = vmatmul.msk.f32.gmra.mxu3 %vm782_vm0, %v3440_v22 }
 0x325   : > { %v3353_v25 = vadd.f32 %v3317_v24, %v3249_v10  ;;  %3011 = vst.msk [vmem:[#allocation3 + $0xa8] sm:$0xff] %vm782_vm0, %v2975_v21 }
 0x326   : > { %v4482_v26 = vsel %vm782_vm0, %v4431_v23, 0.0  ;;  %v4546_v27 = vmul.f32 %v4431_v23, %v4431_v23  ;;  %4660 = vst.msk [vmem:[%s6105_s15 + $0x80] sm:$0xff] %vm782_vm0, %v4431_v23  ;;  %v3695_v30 = vld [vmem:[#allocation3 + $0x98] sm:$0xff] }
 0x327   : > { %v4483_v28 = vadd.f32 %v4482_v26, %v4481_v6  ;;  %3389 = vst.msk [vmem:[#allocation3 + $0xa0] sm:$0xff] %vm782_vm0, %v3353_v25  ;;  %v3625_v29 = vpop.f32.mrf.mxu3 }
 0x328   : > { %v4597_v31 = vsel %vm782_vm0, %v4546_v27, 0.0  ;;  %v3252_v32 = vpop.f32.mrf.mxu2  ;;  %v3731_v34 = vadd.f32 %v3695_v30, %v3625_v29  ;;  %v4001_v35 = vpop.f32.mrf.mxu0 }
 0x329   : > { %v4598_v36 = vadd.f32 %v4597_v31, %v4596_v13  ;;  %v4073_v38 = vld [vmem:[#allocation3 + $0x90] sm:$0xff]  ;;  %v2876_v39 = vpop.f32.mrf.mxu1 }
 0x32a   : > { %3767 = vst.msk [vmem:[#allocation3 + $0x98] sm:$0xff] %vm782_vm0, %v3731_v34  ;;  %v4109_v41 = vadd.f32 %v4073_v38, %v4001_v35  ;;  %v2976_v45 = vadd.f32 %v2940_v40, %v2876_v39  ;;  %v2943_v38 = vld [vmem:[#allocation3 + $0xc8] sm:$0xff]  ;;  %v4338_v40 = vpop.permute.xlu1 %4337 }
 0x32b   : > { %v4180_v44 = vld [vmem:[#allocation3 + $0x88] sm:$0xff]  ;;  %5122 = vmatmul.msk.f32.gmra.mxu0 %vm782_vm0, %v3818_v42 }
 0x32c   : > { %v4432_v46 = vmul.f32 %v4323_v43, %v4180_v44  ;;  %v3318_v47 = vld [vmem:[#allocation3 + $0xa8] sm:$0xff]  ;;  %4145 = vst.msk [vmem:[#allocation3 + $0x90] sm:$0xff] %vm782_vm0, %v4109_v41 }
 0x32d   : > { %v3354_v48 = vadd.f32 %v3318_v47, %v3252_v32  ;;  %3012 = vst.msk [vmem:[#allocation3 + $0xb0] sm:$0xff] %vm782_vm0, %v2976_v45 }
 0x32e   : > { %v4484_v49 = vsel %vm782_vm0, %v4432_v46, 0.0  ;;  %v4547_v50 = vmul.f32 %v4432_v46, %v4432_v46  ;;  %4661 = vst.msk [vmem:[%s6105_s15 + $0x88] sm:$0xff] %vm782_vm0, %v4432_v46  ;;  %v3696_v53 = vld [vmem:[#allocation3 + $0xa0] sm:$0xff] }
 0x32f   : > { %v4485_v51 = vadd.f32 %v4484_v49, %v4483_v28  ;;  %3390 = vst.msk [vmem:[#allocation3 + $0xa8] sm:$0xff] %vm782_vm0, %v3354_v48  ;;  %v3628_v52 = vpop.f32.mrf.mxu3 }
 0x330   : > { %v4599_v54 = vsel %vm782_vm0, %v4547_v50, 0.0  ;;  %v3255_v33 = vpop.f32.mrf.mxu2  ;;  %v3732_v55 = vadd.f32 %v3696_v53, %v3628_v52  ;;  %v4004_v56 = vpop.f32.mrf.mxu0 }
 0x331   : > { %v4600_v57 = vadd.f32 %v4599_v54, %v4598_v36  ;;  %v4074_v58 = vld [vmem:[#allocation3 + $0x98] sm:$0xff]  ;;  %v2879_v37 = vpop.f32.mrf.mxu1 }
 0x332   : > { %3768 = vst.msk [vmem:[#allocation3 + $0xa0] sm:$0xff] %vm782_vm0, %v3732_v55  ;;  %v4110_v60 = vadd.f32 %v4074_v58, %v4004_v56  ;;  %v2977_v0 = vadd.f32 %v2941_v59, %v2879_v37  ;;  %v4343_v37 = vpop.permute.xlu2 %4342 }
 0x333   : > { %v4181_v63 = vld [vmem:[#allocation3 + $0x90] sm:$0xff]  ;;  %5123 = vmatmul.msk.f32.gmra.mxu0 %vm782_vm0, %v3819_v61 }
 0x334   : > { %v4433_v1 = vmul.f32 %v4328_v62, %v4181_v63  ;;  %v3319_v2 = vld [vmem:[#allocation3 + $0xb0] sm:$0xff]  ;;  %4146 = vst.msk [vmem:[#allocation3 + $0x98] sm:$0xff] %vm782_vm0, %v4110_v60 }
 0x335   : > { %v3355_v3 = vadd.f32 %v3319_v2, %v3255_v33  ;;  %3013 = vst.msk [vmem:[#allocation3 + $0xb8] sm:$0xff] %vm782_vm0, %v2977_v0 }
 0x336   : > { %v4486_v4 = vsel %vm782_vm0, %v4433_v1, 0.0  ;;  %v4548_v5 = vmul.f32 %v4433_v1, %v4433_v1  ;;  %4662 = vst.msk [vmem:[%s6105_s15 + $0x90] sm:$0xff] %vm782_vm0, %v4433_v1  ;;  %v3697_v8 = vld [vmem:[#allocation3 + $0xa8] sm:$0xff] }
 0x337   : > { %v4487_v6 = vadd.f32 %v4486_v4, %v4485_v51  ;;  %3391 = vst.msk [vmem:[#allocation3 + $0xb0] sm:$0xff] %vm782_vm0, %v3355_v3  ;;  %v3631_v7 = vpop.f32.mrf.mxu3 }
 0x338   : > { %v4601_v9 = vsel %vm782_vm0, %v4548_v5, 0.0  ;;  %v3258_v10 = vpop.f32.mrf.mxu2  ;;  %v3733_v11 = vadd.f32 %v3697_v8, %v3631_v7  ;;  %v4007_v12 = vpop.f32.mrf.mxu0 }
 0x339   : > { %v4602_v13 = vadd.f32 %v4601_v9, %v4600_v57  ;;  %v4075_v14 = vld [vmem:[#allocation3 + $0xa0] sm:$0xff]  ;;  %v2882_v15 = vpop.f32.mrf.mxu1  ;;  %v2944_v57 = vld [vmem:[#allocation3 + $0xd0] sm:$0xff] }
 0x33a   : > { %3769 = vst.msk [vmem:[#allocation3 + $0xa8] sm:$0xff] %vm782_vm0, %v3733_v11  ;;  %v4111_v17 = vadd.f32 %v4075_v14, %v4007_v12  ;;  %v2978_v20 = vadd.f32 %v2942_v16, %v2882_v15  ;;  %v2945_v12 = vld [vmem:[#allocation3 + $0xd8] sm:$0xff]  ;;  %v4348_v14 = vpop.permute.xlu0 %4347 }
 0x33b   : > { %v4182_v19 = vld [vmem:[#allocation3 + $0x98] sm:$0xff] }
 0x33c   : > { %v4434_v21 = vmul.f32 %v4333_v18, %v4182_v19  ;;  %v3320_v22 = vld [vmem:[#allocation3 + $0xb8] sm:$0xff]  ;;  %4147 = vst.msk [vmem:[#allocation3 + $0xa0] sm:$0xff] %vm782_vm0, %v4111_v17 }
 0x33d   : > { %v3356_v23 = vadd.f32 %v3320_v22, %v3258_v10  ;;  %3014 = vst.msk [vmem:[#allocation3 + $0xc0] sm:$0xff] %vm782_vm0, %v2978_v20 }
 0x33e   : > { %v4488_v24 = vsel %vm782_vm0, %v4434_v21, 0.0  ;;  %v4549_v25 = vmul.f32 %v4434_v21, %v4434_v21  ;;  %4663 = vst.msk [vmem:[%s6105_s15 + $0x98] sm:$0xff] %vm782_vm0, %v4434_v21  ;;  %v3698_v28 = vld [vmem:[#allocation3 + $0xb0] sm:$0xff] }
 0x33f   : > { %v4489_v26 = vadd.f32 %v4488_v24, %v4487_v6  ;;  %3392 = vst.msk [vmem:[#allocation3 + $0xb8] sm:$0xff] %vm782_vm0, %v3356_v23  ;;  %v3634_v27 = vpop.f32.mrf.mxu3 }
 0x340   : > { %v4603_v29 = vsel %vm782_vm0, %v4549_v25, 0.0  ;;  %v3261_v30 = vpop.f32.mrf.mxu2  ;;  %v3734_v31 = vadd.f32 %v3698_v28, %v3634_v27  ;;  %v4010_v32 = vpop.f32.mrf.mxu0 }
 0x341   : > { %v4604_v34 = vadd.f32 %v4603_v29, %v4602_v13  ;;  %v4076_v35 = vld [vmem:[#allocation3 + $0xa8] sm:$0xff]  ;;  %v2885_v36 = vpop.f32.mrf.mxu1 }
 0x342   : > { %3770 = vst.msk [vmem:[#allocation3 + $0xb0] sm:$0xff] %vm782_vm0, %v3734_v31  ;;  %v4112_v39 = vadd.f32 %v4076_v35, %v4010_v32  ;;  %v2979_v42 = vadd.f32 %v2943_v38, %v2885_v36  ;;  %v2946_v32 = vld [vmem:[#allocation3 + $0xe0] sm:$0xff]  ;;  %v4353_v35 = vpop.permute.xlu1 %4352 }
 0x343   : > { %v4183_v41 = vld [vmem:[#allocation3 + $0xa0] sm:$0xff] }
 0x344   : > { %v4435_v43 = vmul.f32 %v4338_v40, %v4183_v41  ;;  %v3321_v44 = vld [vmem:[#allocation3 + $0xc0] sm:$0xff]  ;;  %4148 = vst.msk [vmem:[#allocation3 + $0xa8] sm:$0xff] %vm782_vm0, %v4112_v39 }
 0x345   : > { %v3357_v45 = vadd.f32 %v3321_v44, %v3261_v30  ;;  %3015 = vst.msk [vmem:[#allocation3 + $0xc8] sm:$0xff] %vm782_vm0, %v2979_v42 }
 0x346   : > { %v4490_v46 = vsel %vm782_vm0, %v4435_v43, 0.0  ;;  %v4550_v47 = vmul.f32 %v4435_v43, %v4435_v43  ;;  %4664 = vst.msk [vmem:[%s6105_s15 + $0xa0] sm:$0xff] %vm782_vm0, %v4435_v43  ;;  %v3699_v50 = vld [vmem:[#allocation3 + $0xb8] sm:$0xff] }
 0x347   : > { %v4491_v48 = vadd.f32 %v4490_v46, %v4489_v26  ;;  %3393 = vst.msk [vmem:[#allocation3 + $0xc0] sm:$0xff] %vm782_vm0, %v3357_v45  ;;  %v3637_v49 = vpop.f32.mrf.mxu3 }
 0x348   : > { %v4605_v51 = vsel %vm782_vm0, %v4550_v47, 0.0  ;;  %v3264_v52 = vpop.f32.mrf.mxu2  ;;  %v3735_v53 = vadd.f32 %v3699_v50, %v3637_v49  ;;  %v4013_v54 = vpop.f32.mrf.mxu0 }
 0x349   : > { %v4606_v33 = vadd.f32 %v4605_v51, %v4604_v34  ;;  %v4077_v55 = vld [vmem:[#allocation3 + $0xb0] sm:$0xff]  ;;  %v2888_v56 = vpop.f32.mrf.mxu1 }
 0x34a   : > { %3771 = vst.msk [vmem:[#allocation3 + $0xb8] sm:$0xff] %vm782_vm0, %v3735_v53  ;;  %v4113_v58 = vadd.f32 %v4077_v55, %v4013_v54  ;;  %v2980_v60 = vadd.f32 %v2944_v57, %v2888_v56  ;;  %v2947_v54 = vld [vmem:[#allocation3 + $0xe8] sm:$0xff]  ;;  %v4358_v55 = vpop.permute.xlu2 %4357 }
 0x34b   : > { %v4184_v59 = vld [vmem:[#allocation3 + $0xa8] sm:$0xff] }
 0x34c   : > { %v4436_v61 = vmul.f32 %v4343_v37, %v4184_v59  ;;  %v3322_v62 = vld [vmem:[#allocation3 + $0xc8] sm:$0xff]  ;;  %4149 = vst.msk [vmem:[#allocation3 + $0xb0] sm:$0xff] %vm782_vm0, %v4113_v58 }
 0x34d   : > { %v3358_v63 = vadd.f32 %v3322_v62, %v3264_v52  ;;  %3016 = vst.msk [vmem:[#allocation3 + $0xd0] sm:$0xff] %vm782_vm0, %v2980_v60 }
 0x34e   : > { %v4492_v0 = vsel %vm782_vm0, %v4436_v61, 0.0  ;;  %v4551_v1 = vmul.f32 %v4436_v61, %v4436_v61  ;;  %4665 = vst.msk [vmem:[%s6105_s15 + $0xa8] sm:$0xff] %vm782_vm0, %v4436_v61  ;;  %v3700_v4 = vld [vmem:[#allocation3 + $0xc0] sm:$0xff] }
 0x34f   : > { %v4493_v2 = vadd.f32 %v4492_v0, %v4491_v48  ;;  %3394 = vst.msk [vmem:[#allocation3 + $0xc8] sm:$0xff] %vm782_vm0, %v3358_v63  ;;  %v3640_v3 = vpop.f32.mrf.mxu3 }
 0x350   : > { %v4607_v5 = vsel %vm782_vm0, %v4551_v1, 0.0  ;;  %v3267_v6 = vpop.f32.mrf.mxu2  ;;  %v3736_v7 = vadd.f32 %v3700_v4, %v3640_v3  ;;  %v4016_v8 = vpop.f32.mrf.mxu0 }
 0x351   : > { %v4608_v9 = vadd.f32 %v4607_v5, %v4606_v33  ;;  %v4078_v10 = vld [vmem:[#allocation3 + $0xb8] sm:$0xff]  ;;  %v2891_v11 = vpop.f32.mrf.mxu1 }
 0x352   : > { %3772 = vst.msk [vmem:[#allocation3 + $0xc0] sm:$0xff] %vm782_vm0, %v3736_v7  ;;  %v4114_v13 = vadd.f32 %v4078_v10, %v4016_v8  ;;  %v2981_v16 = vadd.f32 %v2945_v12, %v2891_v11  ;;  %v2948_v8 = vld [vmem:[#allocation3 + $0xf0] sm:$0xff]  ;;  %v4363_v10 = vpop.permute.xlu0 %4362 }
 0x353   : > { %v4185_v15 = vld [vmem:[#allocation3 + $0xb0] sm:$0xff] }
 0x354   : > { %v4437_v17 = vmul.f32 %v4348_v14, %v4185_v15  ;;  %v3323_v18 = vld [vmem:[#allocation3 + $0xd0] sm:$0xff]  ;;  %4150 = vst.msk [vmem:[#allocation3 + $0xb8] sm:$0xff] %vm782_vm0, %v4114_v13 }
 0x355   : > { %v3359_v19 = vadd.f32 %v3323_v18, %v3267_v6  ;;  %3017 = vst.msk [vmem:[#allocation3 + $0xd8] sm:$0xff] %vm782_vm0, %v2981_v16 }
 0x356   : > { %v4494_v20 = vsel %vm782_vm0, %v4437_v17, 0.0  ;;  %v4552_v21 = vmul.f32 %v4437_v17, %v4437_v17  ;;  %4666 = vst.msk [vmem:[%s6105_s15 + $0xb0] sm:$0xff] %vm782_vm0, %v4437_v17  ;;  %v3701_v24 = vld [vmem:[#allocation3 + $0xc8] sm:$0xff] }
 0x357   : > { %v4495_v22 = vadd.f32 %v4494_v20, %v4493_v2  ;;  %3395 = vst.msk [vmem:[#allocation3 + $0xd0] sm:$0xff] %vm782_vm0, %v3359_v19  ;;  %v3643_v23 = vpop.f32.mrf.mxu3 }
 0x358   : > { %v4609_v25 = vsel %vm782_vm0, %v4552_v21, 0.0  ;;  %v3270_v26 = vpop.f32.mrf.mxu2  ;;  %v3737_v27 = vadd.f32 %v3701_v24, %v3643_v23  ;;  %v4019_v28 = vpop.f32.mrf.mxu0  ;;  %v2949_v23 = vld [vmem:[#allocation3 + $0xf8] sm:$0xff] }
 0x359   : > { %v4610_v29 = vadd.f32 %v4609_v25, %v4608_v9  ;;  %v4079_v30 = vld [vmem:[#allocation3 + $0xc0] sm:$0xff]  ;;  %v2894_v31 = vpop.f32.mrf.mxu1  ;;  %v4368_v25 = vpop.permute.xlu1 %4367 }
 0x35a   : > { %3773 = vst.msk [vmem:[#allocation3 + $0xc8] sm:$0xff] %vm782_vm0, %v3737_v27  ;;  %v4115_v34 = vadd.f32 %v4079_v30, %v4019_v28  ;;  %v2982_v38 = vadd.f32 %v2946_v32, %v2894_v31 }
 0x35b   : > { %v4186_v36 = vld [vmem:[#allocation3 + $0xb8] sm:$0xff] }
 0x35c   : > { %v4438_v39 = vmul.f32 %v4353_v35, %v4186_v36  ;;  %v3324_v40 = vld [vmem:[#allocation3 + $0xd8] sm:$0xff]  ;;  %4151 = vst.msk [vmem:[#allocation3 + $0xc0] sm:$0xff] %vm782_vm0, %v4115_v34 }
 0x35d   : > { %v3360_v41 = vadd.f32 %v3324_v40, %v3270_v26  ;;  %3018 = vst.msk [vmem:[#allocation3 + $0xe0] sm:$0xff] %vm782_vm0, %v2982_v38  ;;  %v2950_v40 = vld [vmem:[#allocation3 + $0x100] sm:$0xff] }
 0x35e   : > { %v4496_v42 = vsel %vm782_vm0, %v4438_v39, 0.0  ;;  %v4553_v43 = vmul.f32 %v4438_v39, %v4438_v39  ;;  %4667 = vst.msk [vmem:[%s6105_s15 + $0xb8] sm:$0xff] %vm782_vm0, %v4438_v39  ;;  %v3702_v46 = vld [vmem:[#allocation3 + $0xd0] sm:$0xff] }
 0x35f   : > { %v4497_v44 = vadd.f32 %v4496_v42, %v4495_v22  ;;  %3396 = vst.msk [vmem:[#allocation3 + $0xd8] sm:$0xff] %vm782_vm0, %v3360_v41  ;;  %v3646_v45 = vpop.f32.mrf.mxu3  ;;  %v4373_v42 = vpop.permute.xlu2 %4372 }
 0x360   : > { %v4611_v47 = vsel %vm782_vm0, %v4553_v43, 0.0  ;;  %v3273_v48 = vpop.f32.mrf.mxu2  ;;  %v3738_v49 = vadd.f32 %v3702_v46, %v3646_v45  ;;  %v4022_v50 = vpop.f32.mrf.mxu0 }
 0x361   : > { %v4612_v51 = vadd.f32 %v4611_v47, %v4610_v29  ;;  %v4080_v52 = vld [vmem:[#allocation3 + $0xc8] sm:$0xff]  ;;  %v2897_v53 = vpop.f32.mrf.mxu1 }
 0x362   : > { %3774 = vst.msk [vmem:[#allocation3 + $0xd0] sm:$0xff] %vm782_vm0, %v3738_v49  ;;  %v4116_v33 = vadd.f32 %v4080_v52, %v4022_v50  ;;  %v2983_v57 = vadd.f32 %v2947_v54, %v2897_v53 }
 0x363   : > { %v4187_v56 = vld [vmem:[#allocation3 + $0xc0] sm:$0xff] }
 0x364   : > { %v4439_v58 = vmul.f32 %v4358_v55, %v4187_v56  ;;  %v3325_v37 = vld [vmem:[#allocation3 + $0xe0] sm:$0xff]  ;;  %4152 = vst.msk [vmem:[#allocation3 + $0xc8] sm:$0xff] %vm782_vm0, %v4116_v33  ;;  %v2951_v33 = vld [vmem:[#allocation3 + $0x108] sm:$0xff]  ;;  %v4378_v56 = vpop.permute.xlu0 %4377 }
 0x365   : > { %v3361_v59 = vadd.f32 %v3325_v37, %v3273_v48  ;;  %3019 = vst.msk [vmem:[#allocation3 + $0xe8] sm:$0xff] %vm782_vm0, %v2983_v57 }
 0x366   : > { %v4498_v60 = vsel %vm782_vm0, %v4439_v58, 0.0  ;;  %v4554_v61 = vmul.f32 %v4439_v58, %v4439_v58  ;;  %4668 = vst.msk [vmem:[%s6105_s15 + $0xc0] sm:$0xff] %vm782_vm0, %v4439_v58  ;;  %v3703_v0 = vld [vmem:[#allocation3 + $0xd8] sm:$0xff] }
 0x367   : > { %v6418_v62 = vadd.f32 %v4498_v60, %v4497_v44  ;;  %3397 = vst.msk [vmem:[#allocation3 + $0xe0] sm:$0xff] %vm782_vm0, %v3361_v59  ;;  %v3649_v63 = vpop.f32.mrf.mxu3 }
 0x368   : > { %v4613_v1 = vsel %vm782_vm0, %v4554_v61, 0.0  ;;  %v3276_v2 = vpop.f32.mrf.mxu2  ;;  %v3739_v3 = vadd.f32 %v3703_v0, %v3649_v63  ;;  %v4025_v4 = vpop.f32.mrf.mxu0 }
 0x369   : > { %v6422_v5 = vadd.f32 %v4613_v1, %v4612_v51  ;;  %v4081_v6 = vld [vmem:[#allocation3 + $0xd0] sm:$0xff]  ;;  %v2900_v7 = vpop.f32.mrf.mxu1 }
 0x36a   : > { %3775 = vst.msk [vmem:[#allocation3 + $0xd8] sm:$0xff] %vm782_vm0, %v3739_v3  ;;  %v4117_v9 = vadd.f32 %v4081_v6, %v4025_v4  ;;  %v2984_v12 = vadd.f32 %v2948_v8, %v2900_v7  ;;  %v2952_v6 = vld [vmem:[#allocation3 + $0x110] sm:$0xff]  ;;  %v4383_v8 = vpop.permute.xlu1 %4382 }
 0x36b   : > { %v4188_v11 = vld [vmem:[#allocation3 + $0xc8] sm:$0xff] }
 0x36c   : > { %v6425_v13 = vmul.f32 %v4363_v10, %v4188_v11  ;;  %v3326_v14 = vld [vmem:[#allocation3 + $0xe8] sm:$0xff]  ;;  %4153 = vst.msk [vmem:[#allocation3 + $0xd0] sm:$0xff] %vm782_vm0, %v4117_v9 }
 0x36d   : > { %v3362_v15 = vadd.f32 %v3326_v14, %v3276_v2  ;;  %3020 = vst.msk [vmem:[#allocation3 + $0xf0] sm:$0xff] %vm782_vm0, %v2984_v12 }
 0x36e   : > { %4669 = vst.msk [vmem:[%s6105_s15 + $0xc8] sm:$0xff] %vm782_vm0, %v6425_v13  ;;  %v3704_v17 = vld [vmem:[#allocation3 + $0xe0] sm:$0xff] }
 0x36f   : > { %3398 = vst.msk [vmem:[#allocation3 + $0xe8] sm:$0xff] %vm782_vm0, %v3362_v15  ;;  %v3652_v16 = vpop.f32.mrf.mxu3 }
 0x370   : > { %v3279_v18 = vpop.f32.mrf.mxu2  ;;  %v3740_v19 = vadd.f32 %v3704_v17, %v3652_v16  ;;  %v4028_v20 = vpop.f32.mrf.mxu0 }
 0x371   : > { %v4082_v21 = vld [vmem:[#allocation3 + $0xd8] sm:$0xff]  ;;  %v2903_v22 = vpop.f32.mrf.mxu1 }
 0x372   : > { %3776 = vst.msk [vmem:[#allocation3 + $0xe0] sm:$0xff] %vm782_vm0, %v3740_v19  ;;  %v4118_v24 = vadd.f32 %v4082_v21, %v4028_v20  ;;  %v2985_v27 = vadd.f32 %v2949_v23, %v2903_v22  ;;  %v2953_v22 = vld [vmem:[#allocation3 + $0x118] sm:$0xff] }
 0x373   : > { %v4189_v26 = vld [vmem:[#allocation3 + $0xd0] sm:$0xff] }
 0x374   : > { %v6434_v28 = vmul.f32 %v4368_v25, %v4189_v26  ;;  %v3327_v29 = vld [vmem:[#allocation3 + $0xf0] sm:$0xff]  ;;  %4154 = vst.msk [vmem:[#allocation3 + $0xd8] sm:$0xff] %vm782_vm0, %v4118_v24  ;;  %v4388_v24 = vpop.permute.xlu2 %4387 }
 0x375   : > { %v3363_v30 = vadd.f32 %v3327_v29, %v3279_v18  ;;  %3021 = vst.msk [vmem:[#allocation3 + $0xf8] sm:$0xff] %vm782_vm0, %v2985_v27 }
 0x376   : > { %4670 = vst.msk [vmem:[%s6105_s15 + $0xd0] sm:$0xff] %vm782_vm0, %v6434_v28  ;;  %v3705_v32 = vld [vmem:[#allocation3 + $0xe8] sm:$0xff] }
 0x377   : > { %3399 = vst.msk [vmem:[#allocation3 + $0xf0] sm:$0xff] %vm782_vm0, %v3363_v30  ;;  %v3655_v31 = vpop.f32.mrf.mxu3 }
 0x378   : > { %v3282_v34 = vpop.f32.mrf.mxu2  ;;  %v3741_v35 = vadd.f32 %v3705_v32, %v3655_v31  ;;  %v4031_v36 = vpop.f32.mrf.mxu0 }
 0x379   : > { %v4083_v38 = vld [vmem:[#allocation3 + $0xe0] sm:$0xff]  ;;  %v2906_v39 = vpop.f32.mrf.mxu1 }
 0x37a   : > { %3777 = vst.msk [vmem:[#allocation3 + $0xe8] sm:$0xff] %vm782_vm0, %v3741_v35  ;;  %v4119_v41 = vadd.f32 %v4083_v38, %v4031_v36  ;;  %v2986_v44 = vadd.f32 %v2950_v40, %v2906_v39  ;;  %v4393_v39 = vpop.permute.xlu0 %4392 }
 0x37b   : > { %v4190_v43 = vld [vmem:[#allocation3 + $0xd8] sm:$0xff] }
 0x37c   : > { %v6443_v45 = vmul.f32 %v4373_v42, %v4190_v43  ;;  %v3328_v46 = vld [vmem:[#allocation3 + $0xf8] sm:$0xff]  ;;  %4155 = vst.msk [vmem:[#allocation3 + $0xe0] sm:$0xff] %vm782_vm0, %v4119_v41 }
 0x37d   : > { %v3364_v47 = vadd.f32 %v3328_v46, %v3282_v34  ;;  %3022 = vst.msk [vmem:[#allocation3 + $0x100] sm:$0xff] %vm782_vm0, %v2986_v44 }
 0x37e   : > { %4671 = vst.msk [vmem:[%s6105_s15 + $0xd8] sm:$0xff] %vm782_vm0, %v6443_v45  ;;  %v3706_v49 = vld [vmem:[#allocation3 + $0xf0] sm:$0xff] }
 0x37f   : > { %3400 = vst.msk [vmem:[#allocation3 + $0xf8] sm:$0xff] %vm782_vm0, %v3364_v47  ;;  %v3658_v48 = vpop.f32.mrf.mxu3 }
 0x380   : > { %v3285_v50 = vpop.f32.mrf.mxu2  ;;  %v3742_v51 = vadd.f32 %v3706_v49, %v3658_v48  ;;  %v4034_v52 = vpop.f32.mrf.mxu0 }
 0x381   : > { %v4084_v53 = vld [vmem:[#allocation3 + $0xe8] sm:$0xff]  ;;  %v2909_v54 = vpop.f32.mrf.mxu1 }
 0x382   : > { %3778 = vst.msk [vmem:[#allocation3 + $0xf0] sm:$0xff] %vm782_vm0, %v3742_v51  ;;  %v4120_v55 = vadd.f32 %v4084_v53, %v4034_v52  ;;  %v2987_v58 = vadd.f32 %v2951_v33, %v2909_v54  ;;  %v4398_v52 = vpop.permute.xlu1 %4397  ;;  %v4555_v33 = vmul.f32 %v6425_v13, %v6425_v13 }
 0x383   : > { %v4191_v57 = vld [vmem:[#allocation3 + $0xe0] sm:$0xff] }
 0x384   : > { %v6452_v37 = vmul.f32 %v4378_v56, %v4191_v57  ;;  %v3329_v59 = vld [vmem:[#allocation3 + $0x100] sm:$0xff]  ;;  %4156 = vst.msk [vmem:[#allocation3 + $0xe8] sm:$0xff] %vm782_vm0, %v4120_v55  ;;  %v4500_v57 = vsel %vm782_vm0, %v6425_v13, 0.0 }
 0x385   : > { %v3365_v60 = vadd.f32 %v3329_v59, %v3285_v50  ;;  %3023 = vst.msk [vmem:[#allocation3 + $0x108] sm:$0xff] %vm782_vm0, %v2987_v58  ;;  %v4556_v58 = vmul.f32 %v6434_v28, %v6434_v28  ;;  %v4501_v13 = vadd.f32 %v4500_v57, %v6418_v62 }
 0x386   : > { %4672 = vst.msk [vmem:[%s6105_s15 + $0xe0] sm:$0xff] %vm782_vm0, %v6452_v37  ;;  %v3707_v63 = vld [vmem:[#allocation3 + $0xf8] sm:$0xff]  ;;  %v4506_v62 = vsel %vm782_vm0, %v6452_v37, 0.0 }
 0x387   : > { %3401 = vst.msk [vmem:[#allocation3 + $0x100] sm:$0xff] %vm782_vm0, %v3365_v60  ;;  %v3661_v61 = vpop.f32.mrf.mxu3 }
 0x388   : > { %v3288_v0 = vpop.f32.mrf.mxu2  ;;  %v3743_v1 = vadd.f32 %v3707_v63, %v3661_v61  ;;  %v4037_v2 = vpop.f32.mrf.mxu0  ;;  %v4615_v63 = vsel %vm782_vm0, %v4555_v33, 0.0 }
 0x389   : > { %v4085_v3 = vld [vmem:[#allocation3 + $0xf0] sm:$0xff]  ;;  %v2912_v4 = vpop.f32.mrf.mxu1 }
 0x38a   : > { %3779 = vst.msk [vmem:[#allocation3 + $0xf8] sm:$0xff] %vm782_vm0, %v3743_v1  ;;  %v4121_v7 = vadd.f32 %v4085_v3, %v4037_v2  ;;  %v2988_v10 = vadd.f32 %v2952_v6, %v2912_v4  ;;  %v4557_v1 = vmul.f32 %v6443_v45, %v6443_v45  ;;  %v4403_v3 = vpop.permute.xlu2 %4402  ;;  %v4617_v6 = vsel %vm782_vm0, %v4556_v58, 0.0 }
 0x38b   : > { %v4192_v9 = vld [vmem:[#allocation3 + $0xe8] sm:$0xff] }
 0x38c   : > { %v6461_v11 = vmul.f32 %v4383_v8, %v4192_v9  ;;  %v3330_v12 = vld [vmem:[#allocation3 + $0x108] sm:$0xff]  ;;  %4157 = vst.msk [vmem:[#allocation3 + $0xf0] sm:$0xff] %vm782_vm0, %v4121_v7  ;;  %v4504_v7 = vsel %vm782_vm0, %v6443_v45, 0.0  ;;  %v4558_v8 = vmul.f32 %v6452_v37, %v6452_v37  ;;  %v4616_v9 = vadd.f32 %v4615_v63, %v6422_v5 }
 0x38d   : > { %v3366_v14 = vadd.f32 %v3330_v12, %v3288_v0  ;;  %3024 = vst.msk [vmem:[#allocation3 + $0x110] sm:$0xff] %vm782_vm0, %v2988_v10  ;;  %v4502_v0 = vsel %vm782_vm0, %v6434_v28, 0.0  ;;  %v4619_v12 = vsel %vm782_vm0, %v4557_v1, 0.0 }
 0x38e   : > { %4673 = vst.msk [vmem:[%s6105_s15 + $0xe8] sm:$0xff] %vm782_vm0, %v6461_v11  ;;  %v3708_v16 = vld [vmem:[#allocation3 + $0x100] sm:$0xff]  ;;  %v4503_v10 = vadd.f32 %v4502_v0, %v4501_v13  ;;  %v4618_v45 = vadd.f32 %v4617_v6, %v4616_v9 }
 0x38f   : > { %3402 = vst.msk [vmem:[#allocation3 + $0x108] sm:$0xff] %vm782_vm0, %v3366_v14  ;;  %v3664_v15 = vpop.f32.mrf.mxu3  ;;  %v4559_v14 = vmul.f32 %v6461_v11, %v6461_v11 }
 0x390   : > { %v3744_v17 = vadd.f32 %v3708_v16, %v3664_v15  ;;  %v4040_v18 = vpop.f32.mrf.mxu0  ;;  %v3291_v20 = vpop.f32.mrf.mxu2  ;;  %v4505_v15 = vadd.f32 %v4504_v7, %v4503_v10  ;;  %v4621_v16 = vsel %vm782_vm0, %v4558_v8, 0.0 }
 0x391   : > { %v4086_v19 = vld [vmem:[#allocation3 + $0xf8] sm:$0xff]  ;;  %v2915_v21 = vpop.f32.mrf.mxu1  ;;  %v4623_v37 = vsel %vm782_vm0, %v4559_v14, 0.0 }
 0x392   : > { %3780 = vst.msk [vmem:[#allocation3 + $0x100] sm:$0xff] %vm782_vm0, %v3744_v17  ;;  %v4122_v23 = vadd.f32 %v4086_v19, %v4040_v18  ;;  %v2989_v26 = vadd.f32 %v2953_v22, %v2915_v21  ;;  %v4508_v17 = vsel %vm782_vm0, %v6461_v11, 0.0  ;;  %v4620_v19 = vadd.f32 %v4619_v12, %v4618_v45 }
 0x393   : > { %v4193_v25 = vld [vmem:[#allocation3 + $0xf0] sm:$0xff] }
 0x394   : > { %v6470_v27 = vmul.f32 %v4388_v24, %v4193_v25  ;;  %v3331_v29 = vld [vmem:[#allocation3 + $0x110] sm:$0xff]  ;;  %4158 = vst.msk [vmem:[#allocation3 + $0xf8] sm:$0xff] %vm782_vm0, %v4122_v23  ;;  %v4408_v25 = vpop.permute.xlu0 %4407 }
 0x395   : > { %v3367_v30 = vadd.f32 %v3331_v29, %v3291_v20  ;;  %3025 = vst.msk [vmem:[#allocation3 + $0x118] sm:$0xff] %vm782_vm0, %v2989_v26  ;;  %v4507_v20 = vadd.f32 %v4506_v62, %v4505_v15  ;;  %v4622_v26 = vadd.f32 %v4621_v16, %v4620_v19 }
 0x396   : > { %4674 = vst.msk [vmem:[%s6105_s15 + $0xf0] sm:$0xff] %vm782_vm0, %v6470_v27  ;;  %v3709_v32 = vld [vmem:[#allocation3 + $0x108] sm:$0xff]  ;;  %v4560_v5 = vmul.f32 %v6470_v27, %v6470_v27  ;;  %v4510_v22 = vsel %vm782_vm0, %v6470_v27, 0.0 }
 0x397   : > { %3403 = vst.msk [vmem:[#allocation3 + $0x110] sm:$0xff] %vm782_vm0, %v3367_v30  ;;  %v3667_v31 = vpop.f32.mrf.mxu3  ;;  %v4509_v11 = vadd.f32 %v4508_v17, %v4507_v20 }
 0x398   : > { %v3745_v34 = vadd.f32 %v3709_v32, %v3667_v31  ;;  %v4043_v35 = vpop.f32.mrf.mxu0  ;;  %v3294_v42 = vpop.f32.mrf.mxu2  ;;  %v4625_v30 = vsel %vm782_vm0, %v4560_v5, 0.0 }
 0x399   : > { %v4087_v36 = vld [vmem:[#allocation3 + $0x100] sm:$0xff]  ;;  %v4511_v27 = vadd.f32 %v4510_v22, %v4509_v11 }
 0x39a   : > { %3781 = vst.msk [vmem:[#allocation3 + $0x108] sm:$0xff] %vm782_vm0, %v3745_v34  ;;  %v4123_v38 = vadd.f32 %v4087_v36, %v4043_v35  ;;  %v4624_v35 = vadd.f32 %v4623_v37, %v4622_v26 }
 0x39b   : > { %v4194_v40 = vld [vmem:[#allocation3 + $0xf8] sm:$0xff] }
 0x39c   : > { %v6479_v41 = vmul.f32 %v4393_v39, %v4194_v40  ;;  %v3332_v43 = vld [vmem:[#allocation3 + $0x118] sm:$0xff]  ;;  %4159 = vst.msk [vmem:[#allocation3 + $0x100] sm:$0xff] %vm782_vm0, %v4123_v38  ;;  %v4626_v40 = vadd.f32 %v4625_v30, %v4624_v35 }
 0x39d   : > { %v3368_v44 = vadd.f32 %v3332_v43, %v3294_v42 }
 0x39e   : > { %4675 = vst.msk [vmem:[%s6105_s15 + $0xf8] sm:$0xff] %vm782_vm0, %v6479_v41  ;;  %v3710_v47 = vld [vmem:[#allocation3 + $0x110] sm:$0xff]  ;;  %v4561_v23 = vmul.f32 %v6479_v41, %v6479_v41  ;;  %v4512_v31 = vsel %vm782_vm0, %v6479_v41, 0.0 }
 0x39f   : > { %3404 = vst.msk [vmem:[#allocation3 + $0x118] sm:$0xff] %vm782_vm0, %v3368_v44  ;;  %v3670_v46 = vpop.f32.mrf.mxu3  ;;  %v4513_v42 = vadd.f32 %v4512_v31, %v4511_v27 }
 0x3a0   : > { %v3746_v48 = vadd.f32 %v3710_v47, %v3670_v46  ;;  %v4046_v49 = vpop.f32.mrf.mxu0  ;;  %v4627_v36 = vsel %vm782_vm0, %v4561_v23, 0.0 }
 0x3a1   : > { %v4088_v50 = vld [vmem:[#allocation3 + $0x108] sm:$0xff]  ;;  %v4628_v46 = vadd.f32 %v4627_v36, %v4626_v40 }
 0x3a2   : > { %3782 = vst.msk [vmem:[#allocation3 + $0x110] sm:$0xff] %vm782_vm0, %v3746_v48  ;;  %v4124_v51 = vadd.f32 %v4088_v50, %v4046_v49  ;;  %v4413_v50 = vpop.permute.xlu1 %4412 }
 0x3a3   : > { %v4195_v53 = vld [vmem:[#allocation3 + $0x100] sm:$0xff] }
 0x3a4   : > { %v4447_v54 = vmul.f32 %v4398_v52, %v4195_v53  ;;  %4160 = vst.msk [vmem:[#allocation3 + $0x108] sm:$0xff] %vm782_vm0, %v4124_v51 }
 0x3a6   : > { %4676 = vst.msk [vmem:[%s6105_s15 + $0x100] sm:$0xff] %vm782_vm0, %v4447_v54  ;;  %v3711_v56 = vld [vmem:[#allocation3 + $0x118] sm:$0xff]  ;;  %v4562_v32 = vmul.f32 %v4447_v54, %v4447_v54  ;;  %v4514_v38 = vsel %vm782_vm0, %v4447_v54, 0.0 }
 0x3a7   : > { %v3673_v55 = vpop.f32.mrf.mxu3  ;;  %v4515_v47 = vadd.f32 %v4514_v38, %v4513_v42 }
 0x3a8   : > { %v3747_v59 = vadd.f32 %v3711_v56, %v3673_v55  ;;  %v4049_v60 = vpop.f32.mrf.mxu0  ;;  %v4629_v43 = vsel %vm782_vm0, %v4562_v32, 0.0 }
 0x3a9   : > { %v4089_v61 = vld [vmem:[#allocation3 + $0x110] sm:$0xff]  ;;  %v4630_v51 = vadd.f32 %v4629_v43, %v4628_v46 }
 0x3aa   : > { %3783 = vst.msk [vmem:[#allocation3 + $0x118] sm:$0xff] %vm782_vm0, %v3747_v59  ;;  %v4125_v2 = vadd.f32 %v4089_v61, %v4049_v60 }
 0x3ab   : > { %v4196_v4 = vld [vmem:[#allocation3 + $0x108] sm:$0xff] }
 0x3ac   : > { %v4448_v28 = vmul.f32 %v4403_v3, %v4196_v4  ;;  %4161 = vst.msk [vmem:[#allocation3 + $0x110] sm:$0xff] %vm782_vm0, %v4125_v2 }
 0x3ae   : > { %4677 = vst.msk [vmem:[%s6105_s15 + $0x108] sm:$0xff] %vm782_vm0, %v4448_v28  ;;  %v4563_v39 = vmul.f32 %v4448_v28, %v4448_v28  ;;  %v4516_v44 = vsel %vm782_vm0, %v4448_v28, 0.0 }
 0x3af   : > { %v4517_v52 = vadd.f32 %v4516_v44, %v4515_v47 }
 0x3b0   : > { %v4052_v18 = vpop.f32.mrf.mxu0  ;;  %v4631_v48 = vsel %vm782_vm0, %v4563_v39, 0.0 }
 0x3b1   : > { %v4090_v21 = vld [vmem:[#allocation3 + $0x118] sm:$0xff]  ;;  %v4632_v55 = vadd.f32 %v4631_v48, %v4630_v51 }
 0x3b2   : > { %v4126_v24 = vadd.f32 %v4090_v21, %v4052_v18 }
 0x3b3   : > { %v4197_v29 = vld [vmem:[#allocation3 + $0x110] sm:$0xff] }
 0x3b4   : > { %v4449_v34 = vmul.f32 %v4408_v25, %v4197_v29  ;;  %4162 = vst.msk [vmem:[#allocation3 + $0x118] sm:$0xff] %vm782_vm0, %v4126_v24 }
 0x3b6   : > { %4678 = vst.msk [vmem:[%s6105_s15 + $0x110] sm:$0xff] %vm782_vm0, %v4449_v34  ;;  %v4564_v41 = vmul.f32 %v4449_v34, %v4449_v34  ;;  %v4518_v49 = vsel %vm782_vm0, %v4449_v34, 0.0 }
 0x3b7   : > { %v4519_v56 = vadd.f32 %v4518_v49, %v4517_v52 }
 0x3b8   : > { %v4633_v54 = vsel %vm782_vm0, %v4564_v41, 0.0 }
 0x3b9   : > { %v4634_v59 = vadd.f32 %v4633_v54, %v4632_v55 }
 0x3bb   : > { %v4198_v53 = vld [vmem:[#allocation3 + $0x118] sm:$0xff] }
 0x3bc   : > { %v4450_v33 = vmul.f32 %v4413_v50, %v4198_v53 }
 0x3be   : > { %v4520_v57 = vsel %vm782_vm0, %v4450_v33, 0.0  ;;  %v4565_v58 = vmul.f32 %v4450_v33, %v4450_v33  ;;  %4679 = vst.msk [vmem:[%s6105_s15 + $0x118] sm:$0xff] %vm782_vm0, %v4450_v33 }
 0x3bf   : > { %v4521_v60 = vadd.f32 %v4520_v57, %v4519_v56 }
 0x3c0   : > { %v4635_v61 = vsel %vm782_vm0, %v4565_v58, 0.0 }
 0x3c1   : > { %v4522_v63 = vrot.slane %v4521_v60, 4  ;;  %v4636_v0 = vadd.f32 %v4635_v61, %v4634_v59 }
 0x3c3   : > { %v4523_v1 = vadd.f32 %v4522_v63, %v4521_v60  ;;  %v4637_v2 = vrot.slane %v4636_v0, 4 }
 0x3c5   : > { %v4524_v3 = vrot.slane %v4523_v1, 2  ;;  %v4638_v13 = vadd.f32 %v4637_v2, %v4636_v0 }
 0x3c7   : > { %v4525_v4 = vadd.f32 %v4524_v3, %v4523_v1  ;;  %v4639_v6 = vrot.slane %v4638_v13, 2 }
 0x3c9   : > { %v4526_v7 = vrot.slane %v4525_v4, 1  ;;  %v4640_v8 = vadd.f32 %v4639_v6, %v4638_v13 }
 0x3cb   : > { %v4527_v28 = vadd.f32 %v4526_v7, %v4525_v4  ;;  %v4641_v9 = vrot.slane %v4640_v8, 1 }
 0x3cd   : > { %4529 = vst.msk [vmem:[%s319_s18] sm:$0x1] %vm4528_vm2, %v4527_v28  ;;  %v4642_v10 = vadd.f32 %v4641_v9, %v4640_v8 }
 0x3cf   : > { %4643 = vst.msk [vmem:[%s322_s21] sm:$0x1] %vm4528_vm2, %v4642_v10 }
 0x3d0 PF: > { %s19_s27 = sadd.s32 1, %s5151_s27  }
 0x3d1   : > { %p16_p4 = scmp.ge.s32.totalorder %s19_s27, 4  }
 0x3d3   :  { %18 = sbr.rel (!%p16_p4) target bundleno = 1 (0x1), region = 106 }

</bundles_post_ra>
